<compile_context>
chip_gen: v6e
topology: v6e:2x2x1
jax: 0.10.0
libtpu: 0.0.40
codegen_flags: <defaults>
</compile_context>

<pallas_src>
import functools

import jax
import jax.numpy as jnp
from jax.experimental import pallas as pl
from jax.experimental.pallas import tpu as pltpu

NEG_SLOPE = 0.1
BN_EPS = 1e-5
CASE_EPS = 1e-5
OUT_MUL = 2.0
LANE = 128                       # channel dims padded to multiples of this (lane-dense)


def _silu(x):
    return x * jax.nn.sigmoid(x)


def _round_up(n, m):
    return ((n + m - 1) // m) * m


def _vmem_limit_bytes():
    """Generation-aware scoped-VMEM limit (~70% of physical capacity)."""
    try:
        cap = int(pltpu.get_tpu_info().vmem_capacity_bytes)
    except Exception:
        cap = 64 * 1024 * 1024            # conservative (v7x-sized) fallback
    return int(cap * 0.7)                 # ~44 MiB on v7x, ~90 MiB on v5e/v6e


def _pick_bblk(batch, per_image_bytes, act_budget_bytes):
    """Largest batch-block that fits the activation budget while keeping multiple grid
    steps (so v7x's two TensorCores both get work and the pipeline can overlap)."""
    cap = max(1, min(8, batch, act_budget_bytes // max(per_image_bytes, 1)))
    fit = [d for d in range(1, batch + 1) if batch % d == 0 and d <= cap]
    best = max(fit)
    target_steps = min(4, batch)
    preferred = [d for d in fit if batch // d >= target_steps]
    if preferred:
        best = max(preferred)
    return best


def _cparams(vmem_limit, semantics):
    return pltpu.CompilerParams(dimension_semantics=semantics,
                                vmem_limit_bytes=vmem_limit)


# ----------------------------- Pallas kernels ------------------------------ #

def conv_first_kernel(x_ref, w_ref, ws_ref, y_ref, s1_ref, s2_ref,
                      ysh_ref, ss1_ref, ss2_ref, *, H, W):
    """Stage-1 3x3 conv on a block of pre-padded bf16 NHWC images as ONE K=9*Cin MXU
    contraction, plus per-block sum / sum-of-squares for the BN stats, plus the fused
    1x1 shortcut conv (reusing the already-materialized center tap)."""
    bblk = x_ref.shape[0]
    ci = x_ref.shape[-1]
    co = w_ref.shape[-1]
    hw = H * W

    # im2col slab built once per block; tap order k = 3*dy + dx matches weight packing.
    taps = [x_ref[:, dy:dy + H, dx:dx + W, :] for dy in range(3) for dx in range(3)]
    patches = jnp.concatenate(taps, axis=-1).reshape(bblk * hw, 9 * ci)
    acc = jnp.dot(patches, w_ref[...], preferred_element_type=jnp.float32)

    y_ref[...] = acc.reshape(bblk, hw, co).astype(y_ref.dtype)
    s1_ref[...] = jnp.sum(acc, axis=0, keepdims=True)
    s2_ref[...] = jnp.sum(acc * acc, axis=0, keepdims=True)

    # shortcut 1x1 conv on the unpadded interior == the center tap (dy = dx = 1)
    xin = taps[4].reshape(bblk * hw, ci)
    ysh = jnp.dot(xin, ws_ref[...], preferred_element_type=jnp.float32)
    ysh_ref[...] = ysh.reshape(bblk, hw, co).astype(ysh_ref.dtype)
    ss1_ref[...] = jnp.sum(ysh, axis=0, keepdims=True)
    ss2_ref[...] = jnp.sum(ysh * ysh, axis=0, keepdims=True)


def conv_mid_kernel(x_ref, a_ref, b_ref, w_ref, y_ref, s1_ref, s2_ref, zp_ref,
                    *, H, W, neg_slope):
    """Stages 2/3: the previous stage's BN + leaky-relu + CaSE gamma are applied to the
    raw conv output tile as ONE per-channel FMA (gamma folded into a/b on the host),
    the 1-px spatial zero-pad happens into a VMEM scratch (no HBM repad), then the
    3x3 conv runs as a single K=9*C MXU contraction with BN partial stats emitted."""
    bblk, hw, ci = x_ref.shape
    co = w_ref.shape[-1]

    z = x_ref[...].reshape(bblk * hw, ci).astype(jnp.float32) * a_ref[...] + b_ref[...]
    z = jnp.where(z >= 0, z, neg_slope * z)

    # zero the whole scratch every step (cheap VMEM writes; keeps the border correct
    # even when the "parallel" grid dim is split across v7x's two TensorCores).
    zp_ref[...] = jnp.zeros_like(zp_ref)
    zp_ref[:, 1:H + 1, 1:W + 1, :] = z.reshape(bblk, H, W, ci).astype(zp_ref.dtype)

    taps = [zp_ref[:, dy:dy + H, dx:dx + W, :] for dy in range(3) for dx in range(3)]
    patches = jnp.concatenate(taps, axis=-1).reshape(bblk * hw, 9 * ci)
    acc = jnp.dot(patches, w_ref[...], preferred_element_type=jnp.float32)

    y_ref[...] = acc.reshape(bblk, hw, co).astype(y_ref.dtype)
    s1_ref[...] = jnp.sum(acc, axis=0, keepdims=True)
    s2_ref[...] = jnp.sum(acc * acc, axis=0, keepdims=True)


def case_kernel(y_ref, scale_ref, shift_ref, mask_ref, w1_ref, b1_ref,
                w2_ref, b2_ref, w3_ref, b3_ref, gamma_ref, acc_ref,
                *, inv_m, inv_c, neg_slope):
    """CaSE training branch, fused with the channel-descriptor reduction: accumulate
    sum over N,H,W of BN(+leaky)(y) across the grid in a VMEM scratch; on the last
    step standardize (real channels only, via mask) and run the SiLU/SiLU/Sigmoid
    MLP to produce gamma."""
    @pl.when(pl.program_id(0) == 0)
    def _():
        acc_ref[...] = jnp.zeros_like(acc_ref)

    bblk, hw, c = y_ref.shape
    z = (y_ref[...].reshape(bblk * hw, c).astype(jnp.float32) * scale_ref[...]
         + shift_ref[...])
    if neg_slope is not None:
        z = jnp.where(z >= 0, z, neg_slope * z)
    acc_ref[...] += jnp.sum(z, axis=0, keepdims=True)

    @pl.when(pl.program_id(0) == pl.num_programs(0) - 1)
    def _():
        mask = mask_ref[...]
        g = acc_ref[...] * inv_m                                 # (1, C) descriptor
        gm = jnp.sum(g * mask, axis=1, keepdims=True) * inv_c
        gd = (g - gm) * mask
        gv = jnp.sum(gd * gd, axis=1, keepdims=True) * inv_c
        gs = gd * jax.lax.rsqrt(gv + CASE_EPS)
        h = _silu(jnp.dot(gs, w1_ref[...], preferred_element_type=jnp.float32)
                  + b1_ref[...])
        h = _silu(jnp.dot(h, w2_ref[...], preferred_element_type=jnp.float32)
                  + b2_ref[...])
        gamma_ref[...] = jax.nn.sigmoid(
            jnp.dot(h, w3_ref[...], preferred_element_type=jnp.float32)
            + b3_ref[...]) * OUT_MUL


def final_kernel(y_ref, ysh_ref, a_ref, b_ref, as_ref, bs_ref, out_ref):
    """out = gamma3*BN3(y3) + BN_shortcut(y_shortcut) as one fused elementwise pass
    (both BN/gamma folded into per-channel a/b on the host)."""
    bblk, hw, c = y_ref.shape
    y = y_ref[...].reshape(bblk * hw, c).astype(jnp.float32)
    ysh = ysh_ref[...].reshape(bblk * hw, c).astype(jnp.float32)
    out = y * a_ref[...] + b_ref[...] + ysh * as_ref[...] + bs_ref[...]
    out_ref[...] = out.reshape(bblk, hw, c)


# ----------------------------- pallas_call wrappers ------------------------ #

def run_conv_first(xpad, w9, ws, *, bblk, vmem_limit):
    B, Hp, Wp, Ci = xpad.shape
    H, W = Hp - 2, Wp - 2
    HW = H * W
    Co = ws.shape[-1]
    nblk = B // bblk
    ystruct = jax.ShapeDtypeStruct((B, HW, Co), jnp.bfloat16)
    sstruct = jax.ShapeDtypeStruct((nblk, 1, Co), jnp.float32)
    yspec = pl.BlockSpec((bblk, HW, Co), lambda g: (g, 0, 0))
    sspec = pl.BlockSpec((None, 1, Co), lambda g: (g, 0, 0))
    return pl.pallas_call(
        functools.partial(conv_first_kernel, H=H, W=W),
        grid=(nblk,),
        in_specs=[pl.BlockSpec((bblk, Hp, Wp, Ci), lambda g: (g, 0, 0, 0)),
                  pl.BlockSpec((9 * Ci, Co), lambda g: (0, 0)),
                  pl.BlockSpec((Ci, Co), lambda g: (0, 0))],
        out_specs=(yspec, sspec, sspec, yspec, sspec, sspec),
        out_shape=(ystruct, sstruct, sstruct, ystruct, sstruct, sstruct),
        compiler_params=_cparams(vmem_limit, ("parallel",)),
    )(xpad, w9, ws)


def run_conv_mid(yprev, a, b, w9, *, H, W, bblk, vmem_limit):
    B, HW, Ci = yprev.shape
    Co = w9.shape[-1]
    nblk = B // bblk
    yspec = pl.BlockSpec((bblk, HW, Co), lambda g: (g, 0, 0))
    sspec = pl.BlockSpec((None, 1, Co), lambda g: (g, 0, 0))
    rowspec = pl.BlockSpec((1, Ci), lambda g: (0, 0))
    return pl.pallas_call(
        functools.partial(conv_mid_kernel, H=H, W=W, neg_slope=NEG_SLOPE),
        grid=(nblk,),
        in_specs=[pl.BlockSpec((bblk, HW, Ci), lambda g: (g, 0, 0)),
                  rowspec, rowspec,
                  pl.BlockSpec((9 * Ci, Co), lambda g: (0, 0))],
        out_specs=(yspec, sspec, sspec),
        out_shape=(jax.ShapeDtypeStruct((B, HW, Co), jnp.bfloat16),
                   jax.ShapeDtypeStruct((nblk, 1, Co), jnp.float32),
                   jax.ShapeDtypeStruct((nblk, 1, Co), jnp.float32)),
        scratch_shapes=[pltpu.VMEM((bblk, H + 2, W + 2, Ci), jnp.bfloat16)],
        compiler_params=_cparams(vmem_limit, ("parallel",)),
    )(yprev, a, b, w9)


def run_case(y, scale, shift, mask, mlp, *, bblk, inv_m, inv_c, leaky, vmem_limit):
    B, HW, C = y.shape
    nblk = B // bblk
    Hd = mlp[1].shape[-1]
    rowC = pl.BlockSpec((1, C), lambda g: (0, 0))
    rowH = pl.BlockSpec((1, Hd), lambda g: (0, 0))
    return pl.pallas_call(
        functools.partial(case_kernel, inv_m=inv_m, inv_c=inv_c,
                          neg_slope=NEG_SLOPE if leaky else None),
        grid=(nblk,),
        in_specs=[pl.BlockSpec((bblk, HW, C), lambda g: (g, 0, 0)),
                  rowC, rowC, rowC,
                  pl.BlockSpec((C, Hd), lambda g: (0, 0)), rowH,
                  pl.BlockSpec((Hd, Hd), lambda g: (0, 0)), rowH,
                  pl.BlockSpec((Hd, C), lambda g: (0, 0)), rowC],
        out_specs=pl.BlockSpec((1, C), lambda g: (0, 0)),
        out_shape=jax.ShapeDtypeStruct((1, C), jnp.float32),
        scratch_shapes=[pltpu.VMEM((1, C), jnp.float32)],
        compiler_params=_cparams(vmem_limit, ("arbitrary",)),   # grid is a reduction
    )(y, scale, shift, mask, *mlp)


def run_final(y3, ysh, a3, b3, a_s, b_s, *, bblk, vmem_limit):
    B, HW, C = y3.shape
    nblk = B // bblk
    yspec = pl.BlockSpec((bblk, HW, C), lambda g: (g, 0, 0))
    rowC = pl.BlockSpec((1, C), lambda g: (0, 0))
    return pl.pallas_call(
        final_kernel,
        grid=(nblk,),
        in_specs=[yspec, yspec, rowC, rowC, rowC, rowC],
        out_specs=pl.BlockSpec((bblk, HW, C), lambda g: (g, 0, 0)),
        out_shape=jax.ShapeDtypeStruct((B, HW, C), jnp.float32),
        compiler_params=_cparams(vmem_limit, ("parallel",)),
    )(y3, ysh, a3, b3, a_s, b_s)


# ----------------------------- tiny (1,C) glue ------------------------------ #

def _bn_scale_shift(s1, s2, bnw, bnb, inv_m):
    # Tiny per-channel math between pallas calls.  NOTE: E[x^2]-E[x]^2 cancels
    # catastrophically for very large N*H*W; fine at these scales.
    mu = jnp.sum(s1, axis=0) * inv_m
    ex2 = jnp.sum(s2, axis=0) * inv_m
    var = jnp.maximum(ex2 - mu * mu, 0.0)          # biased variance (training-mode BN)
    scale = bnw * jax.lax.rsqrt(var + BN_EPS)
    shift = bnb - mu * scale
    return scale, shift


# ----------------------------- forward (NHWC end-to-end) -------------------- #

def basic_block_rn12_forward(x_nchw, p):
    B, Cin, H, W = x_nchw.shape
    Cout = p['w1'].shape[0]
    hidden = p['c1_g1b'].shape[0]
    Ci_p = _round_up(Cin, LANE)
    C_p = _round_up(Cout, LANE)
    Hd_p = _round_up(hidden, LANE)
    HW = H * W
    M = B * HW
    inv_m = 1.0 / M
    inv_c = 1.0 / Cout

    # ---- generation-aware VMEM budget -> batch-block size ----
    vmem_limit = _vmem_limit_bytes()
    c_big = max(Ci_p, C_p)
    # rough per-image footprint of the conv stage: im2col slab + double-buffered
    # in/out streams + f32 accumulator + padded scratch
    per_img = HW * c_big * (9 * 2 + 12) + (H + 2) * (W + 2) * c_big * 2
    bblk = _pick_bblk(B, per_img, vmem_limit // 2)

    # ---- parameter packing (tiny, once): lane-pad every channel dim to 128 ----
    def pad2(m, r, c):
        return jnp.pad(m.astype(jnp.float32), ((0, r - m.shape[0]), (0, c - m.shape[1])))

    def row(v, n):
        v = v.reshape(1, -1).astype(jnp.float32)
        return jnp.pad(v, ((0, 0), (0, n - v.shape[1])))

    def pack_conv3x3(w, ci_pad):    # [Co, Ci, 3, 3] -> [9*ci_pad, C_p] bf16, tap k = 3*dy+dx
        co, ci = w.shape[0], w.shape[1]
        t = jnp.transpose(w, (2, 3, 1, 0)).reshape(9, ci, co).astype(jnp.float32)
        t = jnp.pad(t, ((0, 0), (0, ci_pad - ci), (0, C_p - co)))
        return t.reshape(9 * ci_pad, C_p).astype(jnp.bfloat16)

    w1 = pack_conv3x3(p['w1'], Ci_p)
    w2 = pack_conv3x3(p['w2'], C_p)
    w3 = pack_conv3x3(p['w3'], C_p)
    ws = pad2(jnp.transpose(p['ws'][:, :, 0, 0], (1, 0)), Ci_p, C_p).astype(jnp.bfloat16)
    bn = {k: row(p[k], C_p) for k in ('bn1_w', 'bn1_b', 'bn2_w', 'bn2_b',
                                      'bn3_w', 'bn3_b', 'bns_w', 'bns_b')}
    chan_mask = row(jnp.ones((Cout,), jnp.float32), C_p)
    case_p = {i: (pad2(p[f'c{i}_g1w'], C_p, Hd_p), row(p[f'c{i}_g1b'], Hd_p),
                  pad2(p[f'c{i}_g2w'], Hd_p, Hd_p), row(p[f'c{i}_g2b'], Hd_p),
                  pad2(p[f'c{i}_g3w'], Hd_p, C_p), row(p[f'c{i}_g3b'], C_p))
              for i in (1, 2, 3)}

    # ---- boundary glue: NCHW -> NHWC once, channel + 1px spatial zero-pad, bf16 ----
    x_nhwc = jnp.transpose(x_nchw, (0, 2, 3, 1))
    xpad = jnp.pad(x_nhwc, ((0, 0), (1, 1), (1, 1), (0, Ci_p - Cin))).astype(jnp.bfloat16)

    # ---- stage 1: conv1 + fused 1x1 shortcut conv (raw outputs + per-block stats) ----
    y1, s1a, s1b, ysh, ssa, ssb = run_conv_first(xpad, w1, ws, bblk=bblk,
                                                 vmem_limit=vmem_limit)
    scale1, shift1 = _bn_scale_shift(s1a, s1b, bn['bn1_w'], bn['bn1_b'], inv_m)
    scale_s, shift_s = _bn_scale_shift(ssa, ssb, bn['bns_w'], bn['bns_b'], inv_m)
    g1 = run_case(y1, scale1, shift1, chan_mask, case_p[1], bblk=bblk,
                  inv_m=inv_m, inv_c=inv_c, leaky=True, vmem_limit=vmem_limit)
    # gamma > 0  =>  gamma*leaky(s*y + t) == leaky((gamma*s)*y + gamma*t): fold it.
    a1, b1 = scale1 * g1, shift1 * g1

    # ---- stage 2: BN1/leaky/CaSE1 fused into the conv2 kernel's input FMA ----
    y2, s2a, s2b = run_conv_mid(y1, a1, b1, w2, H=H, W=W, bblk=bblk,
                                vmem_limit=vmem_limit)
    scale2, shift2 = _bn_scale_shift(s2a, s2b, bn['bn2_w'], bn['bn2_b'], inv_m)
    g2 = run_case(y2, scale2, shift2, chan_mask, case_p[2], bblk=bblk,
                  inv_m=inv_m, inv_c=inv_c, leaky=True, vmem_limit=vmem_limit)
    a2, b2 = scale2 * g2, shift2 * g2

    # ---- stage 3: BN2/leaky/CaSE2 fused into the conv3 kernel's input FMA ----
    y3, s3a, s3b = run_conv_mid(y2, a2, b2, w3, H=H, W=W, bblk=bblk,
                                vmem_limit=vmem_limit)
    scale3, shift3 = _bn_scale_shift(s3a, s3b, bn['bn3_w'], bn['bn3_b'], inv_m)
    g3 = run_case(y3, scale3, shift3, chan_mask, case_p[3], bblk=bblk,
                  inv_m=inv_m, inv_c=inv_c, leaky=False, vmem_limit=vmem_limit)
    a3, b3 = scale3 * g3, shift3 * g3      # BN3 then gamma3 is linear: fold directly

    # ---- final: gamma3*BN3(y3) + BN_shortcut(ysh) in one fused elementwise pass ----
    out = run_final(y3, ysh, a3, b3, scale_s, shift_s, bblk=bblk, vmem_limit=vmem_limit)

    # TODO(synk): F.dropout(out, p=args.dropout) skipped — `args` is an undefined global
    # in the source module; treated as dropout == 0.

    # ---- boundary glue: crop channel padding, back to NCHW ----
    out = out.reshape(B, H, W, C_p)[..., :Cout]
    return jnp.transpose(out, (0, 3, 1, 2))


# ----------------------------- pure-JAX f32 reference ----------------------- #

def reference_forward(x, p):
    conv = lambda x_, w_, pad: jax.lax.conv_general_dilated(
        x_, w_, (1, 1), ((pad, pad), (pad, pad)),
        dimension_numbers=('NCHW', 'OIHW', 'NCHW'))

    def bn(y, w, b):
        mu = jnp.mean(y, axis=(0, 2, 3), keepdims=True)
        var = jnp.mean((y - mu) ** 2, axis=(0, 2, 3), keepdims=True)
        return (y - mu) / jnp.sqrt(var + BN_EPS) * w.reshape(1, -1, 1, 1) + b.reshape(1, -1, 1, 1)

    def case(y, g1w, g1b, g2w, g2b, g3w, g3b):
        g = jnp.mean(y, axis=(0, 2, 3))
        gm = jnp.mean(g)
        gv = jnp.mean((g - gm) ** 2)
        g = ((g - gm) / jnp.sqrt(gv + CASE_EPS))[None, :]
        h = _silu(g @ g1w + g1b[None, :])
        h = _silu(h @ g2w + g2b[None, :])
        g = jax.nn.sigmoid(h @ g3w + g3b[None, :]) * OUT_MUL
        return y * g.reshape(1, -1, 1, 1)

    lrelu = lambda y: jnp.where(y >= 0, y, NEG_SLOPE * y)

    out = case(lrelu(bn(conv(x, p['w1'], 1), p['bn1_w'], p['bn1_b'])),
               p['c1_g1w'], p['c1_g1b'], p['c1_g2w'], p['c1_g2b'], p['c1_g3w'], p['c1_g3b'])
    out = case(lrelu(bn(conv(out, p['w2'], 1), p['bn2_w'], p['bn2_b'])),
               p['c2_g1w'], p['c2_g1b'], p['c2_g2w'], p['c2_g2b'], p['c2_g3w'], p['c2_g3b'])
    out = case(bn(conv(out, p['w3'], 1), p['bn3_w'], p['bn3_b']),
               p['c3_g1w'], p['c3_g1b'], p['c3_g2w'], p['c3_g2b'], p['c3_g3w'], p['c3_g3b'])
    out = out + bn(conv(x, p['ws'], 0), p['bns_w'], p['bns_b'])
    return out


# --------------------------------- main ------------------------------------ #

if __name__ == "__main__":
    B, IN_PLANES, PLANES, H, W = 2, 4, 8, 16, 16
    HIDDEN = max(16, PLANES // 64)   # CaSE hidden units

    key = jax.random.PRNGKey(0)
    ks = iter(jax.random.split(key, 40))
    init = lambda shape, s=0.1: s * jax.random.normal(next(ks), shape, jnp.float32)

    x = jax.random.normal(next(ks), (B, IN_PLANES, H, W), jnp.float32)

    # Synthetic deterministic parameters. (The original CaSE zero-inits lin3; nonzero
    # values are used here so the full MLP path is exercised.)
    params = {
        'w1': init((PLANES, IN_PLANES, 3, 3)),
        'bn1_w': 1.0 + init((PLANES,)), 'bn1_b': init((PLANES,)),
        'w2': init((PLANES, PLANES, 3, 3)),
        'bn2_w': 1.0 + init((PLANES,)), 'bn2_b': init((PLANES,)),
        'w3': init((PLANES, PLANES, 3, 3)),
        'bn3_w': 1.0 + init((PLANES,)), 'bn3_b': init((PLANES,)),
        'ws': init((PLANES, IN_PLANES, 1, 1)),
        'bns_w': 1.0 + init((PLANES,)), 'bns_b': init((PLANES,)),
    }
    for i in (1, 2, 3):
        params[f'c{i}_g1w'] = init((PLANES, HIDDEN))
        params[f'c{i}_g1b'] = init((HIDDEN,))
        params[f'c{i}_g2w'] = init((HIDDEN, HIDDEN))
        params[f'c{i}_g2b'] = init((HIDDEN,))
        params[f'c{i}_g3w'] = init((HIDDEN, PLANES))
        params[f'c{i}_g3b'] = init((PLANES,))

    fwd = jax.jit(basic_block_rn12_forward)
    out = jax.block_until_ready(fwd(x, params))
    ref = jax.block_until_ready(reference_forward(x, params))

    assert out.shape == (B, PLANES, H, W), out.shape
    # Tolerance accounts for bf16 MXU operands / bf16 inter-stage activations
    # vs the pure-f32 reference.
    assert bool(jnp.allclose(out, ref, atol=5e-2, rtol=5e-2)), \
        "Pallas output mismatch vs JAX reference"

    print("KERNEL_OK")
</pallas_src>

<mosaic_0001>
module attributes {stable_mosaic.version = 11 : i64} {
  func.func @conv_first_kernel(%arg0: i32, %arg1: memref<1x18x18x128xbf16, #tpu.memory_space<vmem>>, %arg2: memref<1152x128xbf16, #tpu.memory_space<vmem>>, %arg3: memref<128x128xbf16, #tpu.memory_space<vmem>>, %arg4: memref<1x256x128xbf16, #tpu.memory_space<vmem>>, %arg5: memref<1x1x128xf32, #tpu.memory_space<vmem>>, %arg6: memref<1x1x128xf32, #tpu.memory_space<vmem>>, %arg7: memref<1x256x128xbf16, #tpu.memory_space<vmem>>, %arg8: memref<1x1x128xf32, #tpu.memory_space<vmem>>, %arg9: memref<1x1x128xf32, #tpu.memory_space<vmem>>) attributes {dimension_semantics = [#tpu.dimension_semantics<parallel>], iteration_bounds = array<i64: 2>, scalar_prefetch = 0 : i64, scratch_operands = 0 : i64, tpu.core_type = #tpu.core_type<tc>, window_params = [{transform_indices = @transform_0, window_bounds = array<i64: 1, 18, 18, 128>}, {pipeline_mode = #tpu.pipeline_mode<synchronous>, transform_indices = @transform_1, window_bounds = array<i64: 1152, 128>}, {pipeline_mode = #tpu.pipeline_mode<synchronous>, transform_indices = @transform_2, window_bounds = array<i64: 128, 128>}, {transform_indices = @transform_3, window_bounds = array<i64: 1, 256, 128>}, {transform_indices = @transform_4, window_bounds = array<i64: 1, 1, 128>}, {transform_indices = @transform_5, window_bounds = array<i64: 1, 1, 128>}, {transform_indices = @transform_6, window_bounds = array<i64: 1, 256, 128>}, {transform_indices = @transform_7, window_bounds = array<i64: 1, 1, 128>}, {transform_indices = @transform_8, window_bounds = array<i64: 1, 1, 128>}]} {
    %c0 = arith.constant 0 : index
    %c0_0 = arith.constant 0 : index
    %c0_1 = arith.constant 0 : index
    %c0_2 = arith.constant 0 : index
    %0 = vector.load %arg1[%c0, %c0_0, %c0_1, %c0_2] : memref<1x18x18x128xbf16, #tpu.memory_space<vmem>>, vector<1x16x16x128xbf16>
    %c0_3 = arith.constant 0 : index
    %c0_4 = arith.constant 0 : index
    %c1 = arith.constant 1 : index
    %c0_5 = arith.constant 0 : index
    %1 = vector.load %arg1[%c0_3, %c0_4, %c1, %c0_5] : memref<1x18x18x128xbf16, #tpu.memory_space<vmem>>, vector<1x16x16x128xbf16>
    %c0_6 = arith.constant 0 : index
    %c0_7 = arith.constant 0 : index
    %c2 = arith.constant 2 : index
    %c0_8 = arith.constant 0 : index
    %2 = vector.load %arg1[%c0_6, %c0_7, %c2, %c0_8] : memref<1x18x18x128xbf16, #tpu.memory_space<vmem>>, vector<1x16x16x128xbf16>
    %c0_9 = arith.constant 0 : index
    %c1_10 = arith.constant 1 : index
    %c0_11 = arith.constant 0 : index
    %c0_12 = arith.constant 0 : index
    %3 = vector.load %arg1[%c0_9, %c1_10, %c0_11, %c0_12] : memref<1x18x18x128xbf16, #tpu.memory_space<vmem>>, vector<1x16x16x128xbf16>
    %c0_13 = arith.constant 0 : index
    %c1_14 = arith.constant 1 : index
    %c1_15 = arith.constant 1 : index
    %c0_16 = arith.constant 0 : index
    %4 = vector.load %arg1[%c0_13, %c1_14, %c1_15, %c0_16] : memref<1x18x18x128xbf16, #tpu.memory_space<vmem>>, vector<1x16x16x128xbf16>
    %c0_17 = arith.constant 0 : index
    %c1_18 = arith.constant 1 : index
    %c2_19 = arith.constant 2 : index
    %c0_20 = arith.constant 0 : index
    %5 = vector.load %arg1[%c0_17, %c1_18, %c2_19, %c0_20] : memref<1x18x18x128xbf16, #tpu.memory_space<vmem>>, vector<1x16x16x128xbf16>
    %c0_21 = arith.constant 0 : index
    %c2_22 = arith.constant 2 : index
    %c0_23 = arith.constant 0 : index
    %c0_24 = arith.constant 0 : index
    %6 = vector.load %arg1[%c0_21, %c2_22, %c0_23, %c0_24] : memref<1x18x18x128xbf16, #tpu.memory_space<vmem>>, vector<1x16x16x128xbf16>
    %c0_25 = arith.constant 0 : index
    %c2_26 = arith.constant 2 : index
    %c1_27 = arith.constant 1 : index
    %c0_28 = arith.constant 0 : index
    %7 = vector.load %arg1[%c0_25, %c2_26, %c1_27, %c0_28] : memref<1x18x18x128xbf16, #tpu.memory_space<vmem>>, vector<1x16x16x128xbf16>
    %c0_29 = arith.constant 0 : index
    %c2_30 = arith.constant 2 : index
    %c2_31 = arith.constant 2 : index
    %c0_32 = arith.constant 0 : index
    %8 = vector.load %arg1[%c0_29, %c2_30, %c2_31, %c0_32] : memref<1x18x18x128xbf16, #tpu.memory_space<vmem>>, vector<1x16x16x128xbf16>
    %9 = tpu.concatenate %0, %1, %2, %3, %4, %5, %6, %7, %8 in 3 : vector<1x16x16x128xbf16>, vector<1x16x16x128xbf16>, vector<1x16x16x128xbf16>, vector<1x16x16x128xbf16>, vector<1x16x16x128xbf16>, vector<1x16x16x128xbf16>, vector<1x16x16x128xbf16>, vector<1x16x16x128xbf16>, vector<1x16x16x128xbf16> -> vector<1x16x16x1152xbf16>
    %10 = vector.shape_cast %9 : vector<1x16x16x1152xbf16> to vector<256x1152xbf16>
    %c0_33 = arith.constant 0 : index
    %c0_34 = arith.constant 0 : index
    %11 = vector.load %arg2[%c0_33, %c0_34] : memref<1152x128xbf16, #tpu.memory_space<vmem>>, vector<1152x128xbf16>
    %cst = arith.constant dense<0.000000e+00> : vector<256x128xf32>
    %12 = tpu.matmul %10, %11, %cst {dimension_numbers = #tpu.dot_dimension_numbers<[1], [0], [0], [1], [0, 0, 1, 1], [], []>} : vector<256x1152xbf16>, vector<1152x128xbf16>, vector<256x128xf32> -> vector<256x128xf32>
    %13 = vector.shape_cast %12 : vector<256x128xf32> to vector<1x256x128xf32>
    %14 = arith.truncf %13 : vector<1x256x128xf32> to vector<1x256x128xbf16>
    %c0_35 = arith.constant 0 : index
    %c0_36 = arith.constant 0 : index
    %c0_37 = arith.constant 0 : index
    %15 = vector.load %arg4[%c0_35, %c0_36, %c0_37] : memref<1x256x128xbf16, #tpu.memory_space<vmem>>, vector<1x256x128xbf16>
    tpu.vector_store %arg4[%c0_35, %c0_36, %c0_37], %14 {strides = array<i32>} : memref<1x256x128xbf16, #tpu.memory_space<vmem>>, vector<1x256x128xbf16>,
    %cst_38 = arith.constant dense<0.000000e+00> : vector<128xf32>
    %16 = vector.multi_reduction <add>, %12, %cst_38 [0] : vector<256x128xf32> to vector<128xf32>
    %17 = vector.shape_cast %16 : vector<128xf32> to vector<1x128xf32>
    %c0_39 = arith.constant 0 : index
    %c0_40 = arith.constant 0 : index
    %c0_41 = arith.constant 0 : index
    %18 = vector.load %arg5[%c0_39, %c0_40, %c0_41] : memref<1x1x128xf32, #tpu.memory_space<vmem>>, vector<1x1x128xf32>
    %19 = vector.shape_cast %18 : vector<1x1x128xf32> to vector<1x128xf32>
    %20 = vector.shape_cast %17 : vector<1x128xf32> to vector<1x1x128xf32>
    tpu.vector_store %arg5[%c0_39, %c0_40, %c0_41], %20 {strides = array<i32>} : memref<1x1x128xf32, #tpu.memory_space<vmem>>, vector<1x1x128xf32>,
    %21 = arith.mulf %12, %12 : vector<256x128xf32>
    %cst_42 = arith.constant dense<0.000000e+00> : vector<128xf32>
    %22 = vector.multi_reduction <add>, %21, %cst_42 [0] : vector<256x128xf32> to vector<128xf32>
    %23 = vector.shape_cast %22 : vector<128xf32> to vector<1x128xf32>
    %c0_43 = arith.constant 0 : index
    %c0_44 = arith.constant 0 : index
    %c0_45 = arith.constant 0 : index
    %24 = vector.load %arg6[%c0_43, %c0_44, %c0_45] : memref<1x1x128xf32, #tpu.memory_space<vmem>>, vector<1x1x128xf32>
    %25 = vector.shape_cast %24 : vector<1x1x128xf32> to vector<1x128xf32>
    %26 = vector.shape_cast %23 : vector<1x128xf32> to vector<1x1x128xf32>
    tpu.vector_store %arg6[%c0_43, %c0_44, %c0_45], %26 {strides = array<i32>} : memref<1x1x128xf32, #tpu.memory_space<vmem>>, vector<1x1x128xf32>,
    %27 = vector.shape_cast %4 : vector<1x16x16x128xbf16> to vector<256x128xbf16>
    %c0_46 = arith.constant 0 : index
    %c0_47 = arith.constant 0 : index
    %28 = vector.load %arg3[%c0_46, %c0_47] : memref<128x128xbf16, #tpu.memory_space<vmem>>, vector<128x128xbf16>
    %cst_48 = arith.constant dense<0.000000e+00> : vector<256x128xf32>
    %29 = tpu.matmul %27, %28, %cst_48 {dimension_numbers = #tpu.dot_dimension_numbers<[1], [0], [0], [1], [0, 0, 1, 1], [], []>} : vector<256x128xbf16>, vector<128x128xbf16>, vector<256x128xf32> -> vector<256x128xf32>
    %30 = vector.shape_cast %29 : vector<256x128xf32> to vector<1x256x128xf32>
    %31 = arith.truncf %30 : vector<1x256x128xf32> to vector<1x256x128xbf16>
    %c0_49 = arith.constant 0 : index
    %c0_50 = arith.constant 0 : index
    %c0_51 = arith.constant 0 : index
    %32 = vector.load %arg7[%c0_49, %c0_50, %c0_51] : memref<1x256x128xbf16, #tpu.memory_space<vmem>>, vector<1x256x128xbf16>
    tpu.vector_store %arg7[%c0_49, %c0_50, %c0_51], %31 {strides = array<i32>} : memref<1x256x128xbf16, #tpu.memory_space<vmem>>, vector<1x256x128xbf16>,
    %cst_52 = arith.constant dense<0.000000e+00> : vector<128xf32>
    %33 = vector.multi_reduction <add>, %29, %cst_52 [0] : vector<256x128xf32> to vector<128xf32>
    %34 = vector.shape_cast %33 : vector<128xf32> to vector<1x128xf32>
    %c0_53 = arith.constant 0 : index
    %c0_54 = arith.constant 0 : index
    %c0_55 = arith.constant 0 : index
    %35 = vector.load %arg8[%c0_53, %c0_54, %c0_55] : memref<1x1x128xf32, #tpu.memory_space<vmem>>, vector<1x1x128xf32>
    %36 = vector.shape_cast %35 : vector<1x1x128xf32> to vector<1x128xf32>
    %37 = vector.shape_cast %34 : vector<1x128xf32> to vector<1x1x128xf32>
    tpu.vector_store %arg8[%c0_53, %c0_54, %c0_55], %37 {strides = array<i32>} : memref<1x1x128xf32, #tpu.memory_space<vmem>>, vector<1x1x128xf32>,
    %38 = arith.mulf %29, %29 : vector<256x128xf32>
    %cst_56 = arith.constant dense<0.000000e+00> : vector<128xf32>
    %39 = vector.multi_reduction <add>, %38, %cst_56 [0] : vector<256x128xf32> to vector<128xf32>
    %40 = vector.shape_cast %39 : vector<128xf32> to vector<1x128xf32>
    %c0_57 = arith.constant 0 : index
    %c0_58 = arith.constant 0 : index
    %c0_59 = arith.constant 0 : index
    %41 = vector.load %arg9[%c0_57, %c0_58, %c0_59] : memref<1x1x128xf32, #tpu.memory_space<vmem>>, vector<1x1x128xf32>
    %42 = vector.shape_cast %41 : vector<1x1x128xf32> to vector<1x128xf32>
    %43 = vector.shape_cast %40 : vector<1x128xf32> to vector<1x1x128xf32>
    tpu.vector_store %arg9[%c0_57, %c0_58, %c0_59], %43 {strides = array<i32>} : memref<1x1x128xf32, #tpu.memory_space<vmem>>, vector<1x1x128xf32>,
    return
  }
  func.func @transform_0(%arg0: i32) -> (i32, i32, i32, i32) {
    %c0_i32 = arith.constant 0 : i32
    %c0_i32_0 = arith.constant 0 : i32
    %c0_i32_1 = arith.constant 0 : i32
    %c0_i32_2 = arith.constant 0 : i32
    return %arg0, %c0_i32, %c0_i32_0, %c0_i32_1 : i32, i32, i32, i32
  }
  func.func @transform_1(%arg0: i32) -> (i32, i32) {
    %c0_i32 = arith.constant 0 : i32
    %c0_i32_0 = arith.constant 0 : i32
    %c0_i32_1 = arith.constant 0 : i32
    return %c0_i32, %c0_i32_0 : i32, i32
  }
  func.func @transform_2(%arg0: i32) -> (i32, i32) {
    %c0_i32 = arith.constant 0 : i32
    %c0_i32_0 = arith.constant 0 : i32
    %c0_i32_1 = arith.constant 0 : i32
    return %c0_i32, %c0_i32_0 : i32, i32
  }
  func.func @transform_3(%arg0: i32) -> (i32, i32, i32) {
    %c0_i32 = arith.constant 0 : i32
    %c0_i32_0 = arith.constant 0 : i32
    %c0_i32_1 = arith.constant 0 : i32
    return %arg0, %c0_i32, %c0_i32_0 : i32, i32, i32
  }
  func.func @transform_4(%arg0: i32) -> (i32, i32, i32) {
    %c0_i32 = arith.constant 0 : i32
    %c0_i32_0 = arith.constant 0 : i32
    %c0_i32_1 = arith.constant 0 : i32
    return %arg0, %c0_i32, %c0_i32_0 : i32, i32, i32
  }
  func.func @transform_5(%arg0: i32) -> (i32, i32, i32) {
    %c0_i32 = arith.constant 0 : i32
    %c0_i32_0 = arith.constant 0 : i32
    %c0_i32_1 = arith.constant 0 : i32
    return %arg0, %c0_i32, %c0_i32_0 : i32, i32, i32
  }
  func.func @transform_6(%arg0: i32) -> (i32, i32, i32) {
    %c0_i32 = arith.constant 0 : i32
    %c0_i32_0 = arith.constant 0 : i32
    %c0_i32_1 = arith.constant 0 : i32
    return %arg0, %c0_i32, %c0_i32_0 : i32, i32, i32
  }
  func.func @transform_7(%arg0: i32) -> (i32, i32, i32) {
    %c0_i32 = arith.constant 0 : i32
    %c0_i32_0 = arith.constant 0 : i32
    %c0_i32_1 = arith.constant 0 : i32
    return %arg0, %c0_i32, %c0_i32_0 : i32, i32, i32
  }
  func.func @transform_8(%arg0: i32) -> (i32, i32, i32) {
    %c0_i32 = arith.constant 0 : i32
    %c0_i32_0 = arith.constant 0 : i32
    %c0_i32_1 = arith.constant 0 : i32
    return %arg0, %c0_i32, %c0_i32_0 : i32, i32, i32
  }
}

module attributes {stable_mosaic.version = 11 : i64} {
  func.func @case_kernel(%arg0: i32, %arg1: memref<1x256x128xbf16, #tpu.memory_space<vmem>>, %arg2: memref<1x128xf32, #tpu.memory_space<vmem>>, %arg3: memref<1x128xf32, #tpu.memory_space<vmem>>, %arg4: memref<1x128xf32, #tpu.memory_space<vmem>>, %arg5: memref<128x128xf32, #tpu.memory_space<vmem>>, %arg6: memref<1x128xf32, #tpu.memory_space<vmem>>, %arg7: memref<128x128xf32, #tpu.memory_space<vmem>>, %arg8: memref<1x128xf32, #tpu.memory_space<vmem>>, %arg9: memref<128x128xf32, #tpu.memory_space<vmem>>, %arg10: memref<1x128xf32, #tpu.memory_space<vmem>>, %arg11: memref<1x128xf32, #tpu.memory_space<vmem>>, %arg12: memref<1x128xf32, #tpu.memory_space<vmem>>) attributes {dimension_semantics = [#tpu.dimension_semantics<arbitrary>], iteration_bounds = array<i64: 2>, scalar_prefetch = 0 : i64, scratch_operands = 1 : i64, tpu.core_type = #tpu.core_type<tc>, window_params = [{transform_indices = @transform_0, window_bounds = array<i64: 1, 256, 128>}, {pipeline_mode = #tpu.pipeline_mode<synchronous>, transform_indices = @transform_1, window_bounds = array<i64: 1, 128>}, {pipeline_mode = #tpu.pipeline_mode<synchronous>, transform_indices = @transform_2, window_bounds = array<i64: 1, 128>}, {pipeline_mode = #tpu.pipeline_mode<synchronous>, transform_indices = @transform_3, window_bounds = array<i64: 1, 128>}, {pipeline_mode = #tpu.pipeline_mode<synchronous>, transform_indices = @transform_4, window_bounds = array<i64: 128, 128>}, {pipeline_mode = #tpu.pipeline_mode<synchronous>, transform_indices = @transform_5, window_bounds = array<i64: 1, 128>}, {pipeline_mode = #tpu.pipeline_mode<synchronous>, transform_indices = @transform_6, window_bounds = array<i64: 128, 128>}, {pipeline_mode = #tpu.pipeline_mode<synchronous>, transform_indices = @transform_7, window_bounds = array<i64: 1, 128>}, {pipeline_mode = #tpu.pipeline_mode<synchronous>, transform_indices = @transform_8, window_bounds = array<i64: 128, 128>}, {pipeline_mode = #tpu.pipeline_mode<synchronous>, transform_indices = @transform_9, window_bounds = array<i64: 1, 128>}, {pipeline_mode = #tpu.pipeline_mode<synchronous>, transform_indices = @transform_10, window_bounds = array<i64: 1, 128>}]} {
    %c0_i32 = arith.constant 0 : i32
    %0 = arith.cmpi eq, %arg0, %c0_i32 : i32
    %1 = arith.extui %0 : i1 to i32
    %c0_i32_0 = arith.constant 0 : i32
    %2 = arith.cmpi ne, %1, %c0_i32_0 : i32
    scf.if %2 {
      %cst_14 = arith.constant 0.000000e+00 : f32
      %25 = vector.broadcast %cst_14 : f32 to vector<1x128xf32>
      %c0_15 = arith.constant 0 : index
      %c0_16 = arith.constant 0 : index
      %26 = vector.load %arg12[%c0_15, %c0_16] : memref<1x128xf32, #tpu.memory_space<vmem>>, vector<1x128xf32>
      tpu.vector_store %arg12[%c0_15, %c0_16], %25 {strides = array<i32>} : memref<1x128xf32, #tpu.memory_space<vmem>>, vector<1x128xf32>,
    } else {
    }
    %c0 = arith.constant 0 : index
    %c0_1 = arith.constant 0 : index
    %c0_2 = arith.constant 0 : index
    %3 = vector.load %arg1[%c0, %c0_1, %c0_2] : memref<1x256x128xbf16, #tpu.memory_space<vmem>>, vector<1x256x128xbf16>
    %4 = vector.shape_cast %3 : vector<1x256x128xbf16> to vector<256x128xbf16>
    %5 = arith.extf %4 : vector<256x128xbf16> to vector<256x128xf32>
    %c0_3 = arith.constant 0 : index
    %c0_4 = arith.constant 0 : index
    %6 = vector.load %arg2[%c0_3, %c0_4] : memref<1x128xf32, #tpu.memory_space<vmem>>, vector<1x128xf32>
    %7 = vector.broadcast %6 : vector<1x128xf32> to vector<256x128xf32>
    %8 = arith.mulf %5, %7 : vector<256x128xf32>
    %c0_5 = arith.constant 0 : index
    %c0_6 = arith.constant 0 : index
    %9 = vector.load %arg3[%c0_5, %c0_6] : memref<1x128xf32, #tpu.memory_space<vmem>>, vector<1x128xf32>
    %10 = vector.broadcast %9 : vector<1x128xf32> to vector<256x128xf32>
    %11 = arith.addf %8, %10 : vector<256x128xf32>
    %cst = arith.constant 0.000000e+00 : f32
    %12 = vector.broadcast %cst : f32 to vector<256x128xf32>
    %13 = arith.cmpf oge, %11, %12 : vector<256x128xf32>
    %cst_7 = arith.constant 1.000000e-01 : f32
    %14 = vector.broadcast %cst_7 : f32 to vector<256x128xf32>
    %15 = arith.mulf %14, %11 : vector<256x128xf32>
    %16 = arith.select %13, %11, %15 : vector<256x128xi1>, vector<256x128xf32>
    %c0_8 = arith.constant 0 : index
    %c0_9 = arith.constant 0 : index
    %17 = vector.load %arg12[%c0_8, %c0_9] : memref<1x128xf32, #tpu.memory_space<vmem>>, vector<1x128xf32>
    %cst_10 = arith.constant dense<0.000000e+00> : vector<128xf32>
    %18 = vector.multi_reduction <add>, %16, %cst_10 [0] : vector<256x128xf32> to vector<128xf32>
    %19 = vector.shape_cast %18 : vector<128xf32> to vector<1x128xf32>
    %20 = arith.addf %17, %19 : vector<1x128xf32>
    %c0_11 = arith.constant 0 : index
    %c0_12 = arith.constant 0 : index
    %21 = vector.load %arg12[%c0_11, %c0_12] : memref<1x128xf32, #tpu.memory_space<vmem>>, vector<1x128xf32>
    tpu.vector_store %arg12[%c0_11, %c0_12], %20 {strides = array<i32>} : memref<1x128xf32, #tpu.memory_space<vmem>>, vector<1x128xf32>,
    %c1_i32 = arith.constant 1 : i32
    %22 = arith.cmpi eq, %arg0, %c1_i32 : i32
    %23 = arith.extui %22 : i1 to i32
    %c0_i32_13 = arith.constant 0 : i32
    %24 = arith.cmpi ne, %23, %c0_i32_13 : i32
    scf.if %24 {
      %c0_14 = arith.constant 0 : index
      %c0_15 = arith.constant 0 : index
      %25 = vector.load %arg4[%c0_14, %c0_15] : memref<1x128xf32, #tpu.memory_space<vmem>>, vector<1x128xf32>
      %c0_16 = arith.constant 0 : index
      %c0_17 = arith.constant 0 : index
      %26 = vector.load %arg12[%c0_16, %c0_17] : memref<1x128xf32, #tpu.memory_space<vmem>>, vector<1x128xf32>
      %cst_18 = arith.constant 0.001953125 : f32
      %27 = vector.broadcast %cst_18 : f32 to vector<1x128xf32>
      %28 = arith.mulf %26, %27 : vector<1x128xf32>
      %29 = arith.mulf %28, %25 : vector<1x128xf32>
      %cst_19 = arith.constant dense<0.000000e+00> : vector<1xf32>
      %30 = vector.multi_reduction <add>, %29, %cst_19 [1] : vector<1x128xf32> to vector<1xf32>
      %31 = vector.shape_cast %30 : vector<1xf32> to vector<1x1xf32>
      %cst_20 = arith.constant 1.250000e-01 : f32
      %32 = vector.broadcast %cst_20 : f32 to vector<1x1xf32>
      %33 = arith.mulf %31, %32 : vector<1x1xf32>
      %34 = vector.broadcast %33 : vector<1x1xf32> to vector<1x128xf32>
      %35 = arith.subf %28, %34 : vector<1x128xf32>
      %36 = arith.mulf %35, %25 : vector<1x128xf32>
      %37 = arith.mulf %36, %36 : vector<1x128xf32>
      %cst_21 = arith.constant dense<0.000000e+00> : vector<1xf32>
      %38 = vector.multi_reduction <add>, %37, %cst_21 [1] : vector<1x128xf32> to vector<1xf32>
      %39 = vector.shape_cast %38 : vector<1xf32> to vector<1x1xf32>
      %cst_22 = arith.constant 1.250000e-01 : f32
      %40 = vector.broadcast %cst_22 : f32 to vector<1x1xf32>
      %41 = arith.mulf %39, %40 : vector<1x1xf32>
      %cst_23 = arith.constant 9.99999974E-6 : f32
      %42 = vector.broadcast %cst_23 : f32 to vector<1x1xf32>
      %43 = arith.addf %41, %42 : vector<1x1xf32>
      %44 = math.rsqrt %43 : vector<1x1xf32>
      %45 = vector.broadcast %44 : vector<1x1xf32> to vector<1x128xf32>
      %46 = arith.mulf %36, %45 : vector<1x128xf32>
      %c0_24 = arith.constant 0 : index
      %c0_25 = arith.constant 0 : index
      %47 = vector.load %arg5[%c0_24, %c0_25] : memref<128x128xf32, #tpu.memory_space<vmem>>, vector<128x128xf32>
      %cst_26 = arith.constant dense<0.000000e+00> : vector<1x128xf32>
      %48 = tpu.matmul %46, %47, %cst_26 {dimension_numbers = #tpu.dot_dimension_numbers<[1], [0], [0], [1], [0, 0, 1, 1], [], []>} : vector<1x128xf32>, vector<128x128xf32>, vector<1x128xf32> -> vector<1x128xf32>
      %c0_27 = arith.constant 0 : index
      %c0_28 = arith.constant 0 : index
      %49 = vector.load %arg6[%c0_27, %c0_28] : memref<1x128xf32, #tpu.memory_space<vmem>>, vector<1x128xf32>
      %50 = arith.addf %48, %49 : vector<1x128xf32>
      %51 = arith.negf %50 : vector<1x128xf32>
      %52 = math.exp %51 : vector<1x128xf32>
      %cst_29 = arith.constant 1.000000e+00 : f32
      %53 = vector.broadcast %cst_29 : f32 to vector<1x128xf32>
      %54 = arith.addf %53, %52 : vector<1x128xf32>
      %55 = arith.divf %53, %54 : vector<1x128xf32>
      %56 = arith.mulf %50, %55 : vector<1x128xf32>
      %c0_30 = arith.constant 0 : index
      %c0_31 = arith.constant 0 : index
      %57 = vector.load %arg7[%c0_30, %c0_31] : memref<128x128xf32, #tpu.memory_space<vmem>>, vector<128x128xf32>
      %cst_32 = arith.constant dense<0.000000e+00> : vector<1x128xf32>
      %58 = tpu.matmul %56, %57, %cst_32 {dimension_numbers = #tpu.dot_dimension_numbers<[1], [0], [0], [1], [0, 0, 1, 1], [], []>} : vector<1x128xf32>, vector<128x128xf32>, vector<1x128xf32> -> vector<1x128xf32>
      %c0_33 = arith.constant 0 : index
      %c0_34 = arith.constant 0 : index
      %59 = vector.load %arg8[%c0_33, %c0_34] : memref<1x128xf32, #tpu.memory_space<vmem>>, vector<1x128xf32>
      %60 = arith.addf %58, %59 : vector<1x128xf32>
      %61 = arith.negf %60 : vector<1x128xf32>
      %62 = math.exp %61 : vector<1x128xf32>
      %cst_35 = arith.constant 1.000000e+00 : f32
      %63 = vector.broadcast %cst_35 : f32 to vector<1x128xf32>
      %64 = arith.addf %63, %62 : vector<1x128xf32>
      %65 = arith.divf %63, %64 : vector<1x128xf32>
      %66 = arith.mulf %60, %65 : vector<1x128xf32>
      %c0_36 = arith.constant 0 : index
      %c0_37 = arith.constant 0 : index
      %67 = vector.load %arg9[%c0_36, %c0_37] : memref<128x128xf32, #tpu.memory_space<vmem>>, vector<128x128xf32>
      %cst_38 = arith.constant dense<0.000000e+00> : vector<1x128xf32>
      %68 = tpu.matmul %66, %67, %cst_38 {dimension_numbers = #tpu.dot_dimension_numbers<[1], [0], [0], [1], [0, 0, 1, 1], [], []>} : vector<1x128xf32>, vector<128x128xf32>, vector<1x128xf32> -> vector<1x128xf32>
      %c0_39 = arith.constant 0 : index
      %c0_40 = arith.constant 0 : index
      %69 = vector.load %arg10[%c0_39, %c0_40] : memref<1x128xf32, #tpu.memory_space<vmem>>, vector<1x128xf32>
      %70 = arith.addf %68, %69 : vector<1x128xf32>
      %71 = arith.negf %70 : vector<1x128xf32>
      %72 = math.exp %71 : vector<1x128xf32>
      %cst_41 = arith.constant 1.000000e+00 : f32
      %73 = vector.broadcast %cst_41 : f32 to vector<1x128xf32>
      %74 = arith.addf %73, %72 : vector<1x128xf32>
      %75 = arith.divf %73, %74 : vector<1x128xf32>
      %cst_42 = arith.constant 2.000000e+00 : f32
      %76 = vector.broadcast %cst_42 : f32 to vector<1x128xf32>
      %77 = arith.mulf %75, %76 : vector<1x128xf32>
      %c0_43 = arith.constant 0 : index
      %c0_44 = arith.constant 0 : index
      %78 = vector.load %arg11[%c0_43, %c0_44] : memref<1x128xf32, #tpu.memory_space<vmem>>, vector<1x128xf32>
      tpu.vector_store %arg11[%c0_43, %c0_44], %77 {strides = array<i32>} : memref<1x128xf32, #tpu.memory_space<vmem>>, vector<1x128xf32>,
    } else {
    }
    return
  }
  func.func @transform_0(%arg0: i32) -> (i32, i32, i32) {
    %c0_i32 = arith.constant 0 : i32
    %c0_i32_0 = arith.constant 0 : i32
    %c0_i32_1 = arith.constant 0 : i32
    return %arg0, %c0_i32, %c0_i32_0 : i32, i32, i32
  }
  func.func @transform_1(%arg0: i32) -> (i32, i32) {
    %c0_i32 = arith.constant 0 : i32
    %c0_i32_0 = arith.constant 0 : i32
    %c0_i32_1 = arith.constant 0 : i32
    return %c0_i32, %c0_i32_0 : i32, i32
  }
  func.func @transform_2(%arg0: i32) -> (i32, i32) {
    %c0_i32 = arith.constant 0 : i32
    %c0_i32_0 = arith.constant 0 : i32
    %c0_i32_1 = arith.constant 0 : i32
    return %c0_i32, %c0_i32_0 : i32, i32
  }
  func.func @transform_3(%arg0: i32) -> (i32, i32) {
    %c0_i32 = arith.constant 0 : i32
    %c0_i32_0 = arith.constant 0 : i32
    %c0_i32_1 = arith.constant 0 : i32
    return %c0_i32, %c0_i32_0 : i32, i32
  }
  func.func @transform_4(%arg0: i32) -> (i32, i32) {
    %c0_i32 = arith.constant 0 : i32
    %c0_i32_0 = arith.constant 0 : i32
    %c0_i32_1 = arith.constant 0 : i32
    return %c0_i32, %c0_i32_0 : i32, i32
  }
  func.func @transform_5(%arg0: i32) -> (i32, i32) {
    %c0_i32 = arith.constant 0 : i32
    %c0_i32_0 = arith.constant 0 : i32
    %c0_i32_1 = arith.constant 0 : i32
    return %c0_i32, %c0_i32_0 : i32, i32
  }
  func.func @transform_6(%arg0: i32) -> (i32, i32) {
    %c0_i32 = arith.constant 0 : i32
    %c0_i32_0 = arith.constant 0 : i32
    %c0_i32_1 = arith.constant 0 : i32
    return %c0_i32, %c0_i32_0 : i32, i32
  }
  func.func @transform_7(%arg0: i32) -> (i32, i32) {
    %c0_i32 = arith.constant 0 : i32
    %c0_i32_0 = arith.constant 0 : i32
    %c0_i32_1 = arith.constant 0 : i32
    return %c0_i32, %c0_i32_0 : i32, i32
  }
  func.func @transform_8(%arg0: i32) -> (i32, i32) {
    %c0_i32 = arith.constant 0 : i32
    %c0_i32_0 = arith.constant 0 : i32
    %c0_i32_1 = arith.constant 0 : i32
    return %c0_i32, %c0_i32_0 : i32, i32
  }
  func.func @transform_9(%arg0: i32) -> (i32, i32) {
    %c0_i32 = arith.constant 0 : i32
    %c0_i32_0 = arith.constant 0 : i32
    %c0_i32_1 = arith.constant 0 : i32
    return %c0_i32, %c0_i32_0 : i32, i32
  }
  func.func @transform_10(%arg0: i32) -> (i32, i32) {
    %c0_i32 = arith.constant 0 : i32
    %c0_i32_0 = arith.constant 0 : i32
    %c0_i32_1 = arith.constant 0 : i32
    return %c0_i32, %c0_i32_0 : i32, i32
  }
}

module attributes {stable_mosaic.version = 11 : i64} {
  func.func @conv_mid_kernel(%arg0: i32, %arg1: memref<1x256x128xbf16, #tpu.memory_space<vmem>>, %arg2: memref<1x128xf32, #tpu.memory_space<vmem>>, %arg3: memref<1x128xf32, #tpu.memory_space<vmem>>, %arg4: memref<1152x128xbf16, #tpu.memory_space<vmem>>, %arg5: memref<1x256x128xbf16, #tpu.memory_space<vmem>>, %arg6: memref<1x1x128xf32, #tpu.memory_space<vmem>>, %arg7: memref<1x1x128xf32, #tpu.memory_space<vmem>>, %arg8: memref<1x18x18x128xbf16, #tpu.memory_space<vmem>>) attributes {dimension_semantics = [#tpu.dimension_semantics<parallel>], iteration_bounds = array<i64: 2>, scalar_prefetch = 0 : i64, scratch_operands = 1 : i64, tpu.core_type = #tpu.core_type<tc>, window_params = [{transform_indices = @transform_0, window_bounds = array<i64: 1, 256, 128>}, {pipeline_mode = #tpu.pipeline_mode<synchronous>, transform_indices = @transform_1, window_bounds = array<i64: 1, 128>}, {pipeline_mode = #tpu.pipeline_mode<synchronous>, transform_indices = @transform_2, window_bounds = array<i64: 1, 128>}, {pipeline_mode = #tpu.pipeline_mode<synchronous>, transform_indices = @transform_3, window_bounds = array<i64: 1152, 128>}, {transform_indices = @transform_4, window_bounds = array<i64: 1, 256, 128>}, {transform_indices = @transform_5, window_bounds = array<i64: 1, 1, 128>}, {transform_indices = @transform_6, window_bounds = array<i64: 1, 1, 128>}]} {
    %c0 = arith.constant 0 : index
    %c0_0 = arith.constant 0 : index
    %c0_1 = arith.constant 0 : index
    %0 = vector.load %arg1[%c0, %c0_0, %c0_1] : memref<1x256x128xbf16, #tpu.memory_space<vmem>>, vector<1x256x128xbf16>
    %1 = vector.shape_cast %0 : vector<1x256x128xbf16> to vector<256x128xbf16>
    %2 = arith.extf %1 : vector<256x128xbf16> to vector<256x128xf32>
    %c0_2 = arith.constant 0 : index
    %c0_3 = arith.constant 0 : index
    %3 = vector.load %arg2[%c0_2, %c0_3] : memref<1x128xf32, #tpu.memory_space<vmem>>, vector<1x128xf32>
    %4 = vector.broadcast %3 : vector<1x128xf32> to vector<256x128xf32>
    %5 = arith.mulf %2, %4 : vector<256x128xf32>
    %c0_4 = arith.constant 0 : index
    %c0_5 = arith.constant 0 : index
    %6 = vector.load %arg3[%c0_4, %c0_5] : memref<1x128xf32, #tpu.memory_space<vmem>>, vector<1x128xf32>
    %7 = vector.broadcast %6 : vector<1x128xf32> to vector<256x128xf32>
    %8 = arith.addf %5, %7 : vector<256x128xf32>
    %cst = arith.constant 0.000000e+00 : f32
    %9 = vector.broadcast %cst : f32 to vector<256x128xf32>
    %10 = arith.cmpf oge, %8, %9 : vector<256x128xf32>
    %cst_6 = arith.constant 1.000000e-01 : f32
    %11 = vector.broadcast %cst_6 : f32 to vector<256x128xf32>
    %12 = arith.mulf %11, %8 : vector<256x128xf32>
    %13 = arith.select %10, %8, %12 : vector<256x128xi1>, vector<256x128xf32>
    %cst_7 = arith.constant 0.000000e+00 : bf16
    %14 = vector.broadcast %cst_7 : bf16 to vector<1x18x18x128xbf16>
    %c0_8 = arith.constant 0 : index
    %c0_9 = arith.constant 0 : index
    %c0_10 = arith.constant 0 : index
    %c0_11 = arith.constant 0 : index
    %15 = vector.load %arg8[%c0_8, %c0_9, %c0_10, %c0_11] : memref<1x18x18x128xbf16, #tpu.memory_space<vmem>>, vector<1x18x18x128xbf16>
    tpu.vector_store %arg8[%c0_8, %c0_9, %c0_10, %c0_11], %14 {strides = array<i32>} : memref<1x18x18x128xbf16, #tpu.memory_space<vmem>>, vector<1x18x18x128xbf16>,
    %16 = vector.shape_cast %13 : vector<256x128xf32> to vector<1x16x16x128xf32>
    %17 = arith.truncf %16 : vector<1x16x16x128xf32> to vector<1x16x16x128xbf16>
    %c0_12 = arith.constant 0 : index
    %c1 = arith.constant 1 : index
    %c1_13 = arith.constant 1 : index
    %c0_14 = arith.constant 0 : index
    %18 = vector.load %arg8[%c0_12, %c1, %c1_13, %c0_14] : memref<1x18x18x128xbf16, #tpu.memory_space<vmem>>, vector<1x16x16x128xbf16>
    tpu.vector_store %arg8[%c0_12, %c1, %c1_13, %c0_14], %17 {strides = array<i32>} : memref<1x18x18x128xbf16, #tpu.memory_space<vmem>>, vector<1x16x16x128xbf16>,
    %c0_15 = arith.constant 0 : index
    %c0_16 = arith.constant 0 : index
    %c0_17 = arith.constant 0 : index
    %c0_18 = arith.constant 0 : index
    %19 = vector.load %arg8[%c0_15, %c0_16, %c0_17, %c0_18] : memref<1x18x18x128xbf16, #tpu.memory_space<vmem>>, vector<1x16x16x128xbf16>
    %c0_19 = arith.constant 0 : index
    %c0_20 = arith.constant 0 : index
    %c1_21 = arith.constant 1 : index
    %c0_22 = arith.constant 0 : index
    %20 = vector.load %arg8[%c0_19, %c0_20, %c1_21, %c0_22] : memref<1x18x18x128xbf16, #tpu.memory_space<vmem>>, vector<1x16x16x128xbf16>
    %c0_23 = arith.constant 0 : index
    %c0_24 = arith.constant 0 : index
    %c2 = arith.constant 2 : index
    %c0_25 = arith.constant 0 : index
    %21 = vector.load %arg8[%c0_23, %c0_24, %c2, %c0_25] : memref<1x18x18x128xbf16, #tpu.memory_space<vmem>>, vector<1x16x16x128xbf16>
    %c0_26 = arith.constant 0 : index
    %c1_27 = arith.constant 1 : index
    %c0_28 = arith.constant 0 : index
    %c0_29 = arith.constant 0 : index
    %22 = vector.load %arg8[%c0_26, %c1_27, %c0_28, %c0_29] : memref<1x18x18x128xbf16, #tpu.memory_space<vmem>>, vector<1x16x16x128xbf16>
    %c0_30 = arith.constant 0 : index
    %c1_31 = arith.constant 1 : index
    %c1_32 = arith.constant 1 : index
    %c0_33 = arith.constant 0 : index
    %23 = vector.load %arg8[%c0_30, %c1_31, %c1_32, %c0_33] : memref<1x18x18x128xbf16, #tpu.memory_space<vmem>>, vector<1x16x16x128xbf16>
    %c0_34 = arith.constant 0 : index
    %c1_35 = arith.constant 1 : index
    %c2_36 = arith.constant 2 : index
    %c0_37 = arith.constant 0 : index
    %24 = vector.load %arg8[%c0_34, %c1_35, %c2_36, %c0_37] : memref<1x18x18x128xbf16, #tpu.memory_space<vmem>>, vector<1x16x16x128xbf16>
    %c0_38 = arith.constant 0 : index
    %c2_39 = arith.constant 2 : index
    %c0_40 = arith.constant 0 : index
    %c0_41 = arith.constant 0 : index
    %25 = vector.load %arg8[%c0_38, %c2_39, %c0_40, %c0_41] : memref<1x18x18x128xbf16, #tpu.memory_space<vmem>>, vector<1x16x16x128xbf16>
    %c0_42 = arith.constant 0 : index
    %c2_43 = arith.constant 2 : index
    %c1_44 = arith.constant 1 : index
    %c0_45 = arith.constant 0 : index
    %26 = vector.load %arg8[%c0_42, %c2_43, %c1_44, %c0_45] : memref<1x18x18x128xbf16, #tpu.memory_space<vmem>>, vector<1x16x16x128xbf16>
    %c0_46 = arith.constant 0 : index
    %c2_47 = arith.constant 2 : index
    %c2_48 = arith.constant 2 : index
    %c0_49 = arith.constant 0 : index
    %27 = vector.load %arg8[%c0_46, %c2_47, %c2_48, %c0_49] : memref<1x18x18x128xbf16, #tpu.memory_space<vmem>>, vector<1x16x16x128xbf16>
    %28 = tpu.concatenate %19, %20, %21, %22, %23, %24, %25, %26, %27 in 3 : vector<1x16x16x128xbf16>, vector<1x16x16x128xbf16>, vector<1x16x16x128xbf16>, vector<1x16x16x128xbf16>, vector<1x16x16x128xbf16>, vector<1x16x16x128xbf16>, vector<1x16x16x128xbf16>, vector<1x16x16x128xbf16>, vector<1x16x16x128xbf16> -> vector<1x16x16x1152xbf16>
    %29 = vector.shape_cast %28 : vector<1x16x16x1152xbf16> to vector<256x1152xbf16>
    %c0_50 = arith.constant 0 : index
    %c0_51 = arith.constant 0 : index
    %30 = vector.load %arg4[%c0_50, %c0_51] : memref<1152x128xbf16, #tpu.memory_space<vmem>>, vector<1152x128xbf16>
    %cst_52 = arith.constant dense<0.000000e+00> : vector<256x128xf32>
    %31 = tpu.matmul %29, %30, %cst_52 {dimension_numbers = #tpu.dot_dimension_numbers<[1], [0], [0], [1], [0, 0, 1, 1], [], []>} : vector<256x1152xbf16>, vector<1152x128xbf16>, vector<256x128xf32> -> vector<256x128xf32>
    %32 = vector.shape_cast %31 : vector<256x128xf32> to vector<1x256x128xf32>
    %33 = arith.truncf %32 : vector<1x256x128xf32> to vector<1x256x128xbf16>
    %c0_53 = arith.constant 0 : index
    %c0_54 = arith.constant 0 : index
    %c0_55 = arith.constant 0 : index
    %34 = vector.load %arg5[%c0_53, %c0_54, %c0_55] : memref<1x256x128xbf16, #tpu.memory_space<vmem>>, vector<1x256x128xbf16>
    tpu.vector_store %arg5[%c0_53, %c0_54, %c0_55], %33 {strides = array<i32>} : memref<1x256x128xbf16, #tpu.memory_space<vmem>>, vector<1x256x128xbf16>,
    %cst_56 = arith.constant dense<0.000000e+00> : vector<128xf32>
    %35 = vector.multi_reduction <add>, %31, %cst_56 [0] : vector<256x128xf32> to vector<128xf32>
    %36 = vector.shape_cast %35 : vector<128xf32> to vector<1x128xf32>
    %c0_57 = arith.constant 0 : index
    %c0_58 = arith.constant 0 : index
    %c0_59 = arith.constant 0 : index
    %37 = vector.load %arg6[%c0_57, %c0_58, %c0_59] : memref<1x1x128xf32, #tpu.memory_space<vmem>>, vector<1x1x128xf32>
    %38 = vector.shape_cast %37 : vector<1x1x128xf32> to vector<1x128xf32>
    %39 = vector.shape_cast %36 : vector<1x128xf32> to vector<1x1x128xf32>
    tpu.vector_store %arg6[%c0_57, %c0_58, %c0_59], %39 {strides = array<i32>} : memref<1x1x128xf32, #tpu.memory_space<vmem>>, vector<1x1x128xf32>,
    %40 = arith.mulf %31, %31 : vector<256x128xf32>
    %cst_60 = arith.constant dense<0.000000e+00> : vector<128xf32>
    %41 = vector.multi_reduction <add>, %40, %cst_60 [0] : vector<256x128xf32> to vector<128xf32>
    %42 = vector.shape_cast %41 : vector<128xf32> to vector<1x128xf32>
    %c0_61 = arith.constant 0 : index
    %c0_62 = arith.constant 0 : index
    %c0_63 = arith.constant 0 : index
    %43 = vector.load %arg7[%c0_61, %c0_62, %c0_63] : memref<1x1x128xf32, #tpu.memory_space<vmem>>, vector<1x1x128xf32>
    %44 = vector.shape_cast %43 : vector<1x1x128xf32> to vector<1x128xf32>
    %45 = vector.shape_cast %42 : vector<1x128xf32> to vector<1x1x128xf32>
    tpu.vector_store %arg7[%c0_61, %c0_62, %c0_63], %45 {strides = array<i32>} : memref<1x1x128xf32, #tpu.memory_space<vmem>>, vector<1x1x128xf32>,
    return
  }
  func.func @transform_0(%arg0: i32) -> (i32, i32, i32) {
    %c0_i32 = arith.constant 0 : i32
    %c0_i32_0 = arith.constant 0 : i32
    %c0_i32_1 = arith.constant 0 : i32
    return %arg0, %c0_i32, %c0_i32_0 : i32, i32, i32
  }
  func.func @transform_1(%arg0: i32) -> (i32, i32) {
    %c0_i32 = arith.constant 0 : i32
    %c0_i32_0 = arith.constant 0 : i32
    %c0_i32_1 = arith.constant 0 : i32
    return %c0_i32, %c0_i32_0 : i32, i32
  }
  func.func @transform_2(%arg0: i32) -> (i32, i32) {
    %c0_i32 = arith.constant 0 : i32
    %c0_i32_0 = arith.constant 0 : i32
    %c0_i32_1 = arith.constant 0 : i32
    return %c0_i32, %c0_i32_0 : i32, i32
  }
  func.func @transform_3(%arg0: i32) -> (i32, i32) {
    %c0_i32 = arith.constant 0 : i32
    %c0_i32_0 = arith.constant 0 : i32
    %c0_i32_1 = arith.constant 0 : i32
    return %c0_i32, %c0_i32_0 : i32, i32
  }
  func.func @transform_4(%arg0: i32) -> (i32, i32, i32) {
    %c0_i32 = arith.constant 0 : i32
    %c0_i32_0 = arith.constant 0 : i32
    %c0_i32_1 = arith.constant 0 : i32
    return %arg0, %c0_i32, %c0_i32_0 : i32, i32, i32
  }
  func.func @transform_5(%arg0: i32) -> (i32, i32, i32) {
    %c0_i32 = arith.constant 0 : i32
    %c0_i32_0 = arith.constant 0 : i32
    %c0_i32_1 = arith.constant 0 : i32
    return %arg0, %c0_i32, %c0_i32_0 : i32, i32, i32
  }
  func.func @transform_6(%arg0: i32) -> (i32, i32, i32) {
    %c0_i32 = arith.constant 0 : i32
    %c0_i32_0 = arith.constant 0 : i32
    %c0_i32_1 = arith.constant 0 : i32
    return %arg0, %c0_i32, %c0_i32_0 : i32, i32, i32
  }
}

module attributes {stable_mosaic.version = 11 : i64} {
  func.func @case_kernel(%arg0: i32, %arg1: memref<1x256x128xbf16, #tpu.memory_space<vmem>>, %arg2: memref<1x128xf32, #tpu.memory_space<vmem>>, %arg3: memref<1x128xf32, #tpu.memory_space<vmem>>, %arg4: memref<1x128xf32, #tpu.memory_space<vmem>>, %arg5: memref<128x128xf32, #tpu.memory_space<vmem>>, %arg6: memref<1x128xf32, #tpu.memory_space<vmem>>, %arg7: memref<128x128xf32, #tpu.memory_space<vmem>>, %arg8: memref<1x128xf32, #tpu.memory_space<vmem>>, %arg9: memref<128x128xf32, #tpu.memory_space<vmem>>, %arg10: memref<1x128xf32, #tpu.memory_space<vmem>>, %arg11: memref<1x128xf32, #tpu.memory_space<vmem>>, %arg12: memref<1x128xf32, #tpu.memory_space<vmem>>) attributes {dimension_semantics = [#tpu.dimension_semantics<arbitrary>], iteration_bounds = array<i64: 2>, scalar_prefetch = 0 : i64, scratch_operands = 1 : i64, tpu.core_type = #tpu.core_type<tc>, window_params = [{transform_indices = @transform_0, window_bounds = array<i64: 1, 256, 128>}, {pipeline_mode = #tpu.pipeline_mode<synchronous>, transform_indices = @transform_1, window_bounds = array<i64: 1, 128>}, {pipeline_mode = #tpu.pipeline_mode<synchronous>, transform_indices = @transform_2, window_bounds = array<i64: 1, 128>}, {pipeline_mode = #tpu.pipeline_mode<synchronous>, transform_indices = @transform_3, window_bounds = array<i64: 1, 128>}, {pipeline_mode = #tpu.pipeline_mode<synchronous>, transform_indices = @transform_4, window_bounds = array<i64: 128, 128>}, {pipeline_mode = #tpu.pipeline_mode<synchronous>, transform_indices = @transform_5, window_bounds = array<i64: 1, 128>}, {pipeline_mode = #tpu.pipeline_mode<synchronous>, transform_indices = @transform_6, window_bounds = array<i64: 128, 128>}, {pipeline_mode = #tpu.pipeline_mode<synchronous>, transform_indices = @transform_7, window_bounds = array<i64: 1, 128>}, {pipeline_mode = #tpu.pipeline_mode<synchronous>, transform_indices = @transform_8, window_bounds = array<i64: 128, 128>}, {pipeline_mode = #tpu.pipeline_mode<synchronous>, transform_indices = @transform_9, window_bounds = array<i64: 1, 128>}, {pipeline_mode = #tpu.pipeline_mode<synchronous>, transform_indices = @transform_10, window_bounds = array<i64: 1, 128>}]} {
    %c0_i32 = arith.constant 0 : i32
    %0 = arith.cmpi eq, %arg0, %c0_i32 : i32
    %1 = arith.extui %0 : i1 to i32
    %c0_i32_0 = arith.constant 0 : i32
    %2 = arith.cmpi ne, %1, %c0_i32_0 : i32
    scf.if %2 {
      %cst_12 = arith.constant 0.000000e+00 : f32
      %20 = vector.broadcast %cst_12 : f32 to vector<1x128xf32>
      %c0_13 = arith.constant 0 : index
      %c0_14 = arith.constant 0 : index
      %21 = vector.load %arg12[%c0_13, %c0_14] : memref<1x128xf32, #tpu.memory_space<vmem>>, vector<1x128xf32>
      tpu.vector_store %arg12[%c0_13, %c0_14], %20 {strides = array<i32>} : memref<1x128xf32, #tpu.memory_space<vmem>>, vector<1x128xf32>,
    } else {
    }
    %c0 = arith.constant 0 : index
    %c0_1 = arith.constant 0 : index
    %c0_2 = arith.constant 0 : index
    %3 = vector.load %arg1[%c0, %c0_1, %c0_2] : memref<1x256x128xbf16, #tpu.memory_space<vmem>>, vector<1x256x128xbf16>
    %4 = vector.shape_cast %3 : vector<1x256x128xbf16> to vector<256x128xbf16>
    %5 = arith.extf %4 : vector<256x128xbf16> to vector<256x128xf32>
    %c0_3 = arith.constant 0 : index
    %c0_4 = arith.constant 0 : index
    %6 = vector.load %arg2[%c0_3, %c0_4] : memref<1x128xf32, #tpu.memory_space<vmem>>, vector<1x128xf32>
    %7 = vector.broadcast %6 : vector<1x128xf32> to vector<256x128xf32>
    %8 = arith.mulf %5, %7 : vector<256x128xf32>
    %c0_5 = arith.constant 0 : index
    %c0_6 = arith.constant 0 : index
    %9 = vector.load %arg3[%c0_5, %c0_6] : memref<1x128xf32, #tpu.memory_space<vmem>>, vector<1x128xf32>
    %10 = vector.broadcast %9 : vector<1x128xf32> to vector<256x128xf32>
    %11 = arith.addf %8, %10 : vector<256x128xf32>
    %c0_7 = arith.constant 0 : index
    %c0_8 = arith.constant 0 : index
    %12 = vector.load %arg12[%c0_7, %c0_8] : memref<1x128xf32, #tpu.memory_space<vmem>>, vector<1x128xf32>
    %cst = arith.constant dense<0.000000e+00> : vector<128xf32>
    %13 = vector.multi_reduction <add>, %11, %cst [0] : vector<256x128xf32> to vector<128xf32>
    %14 = vector.shape_cast %13 : vector<128xf32> to vector<1x128xf32>
    %15 = arith.addf %12, %14 : vector<1x128xf32>
    %c0_9 = arith.constant 0 : index
    %c0_10 = arith.constant 0 : index
    %16 = vector.load %arg12[%c0_9, %c0_10] : memref<1x128xf32, #tpu.memory_space<vmem>>, vector<1x128xf32>
    tpu.vector_store %arg12[%c0_9, %c0_10], %15 {strides = array<i32>} : memref<1x128xf32, #tpu.memory_space<vmem>>, vector<1x128xf32>,
    %c1_i32 = arith.constant 1 : i32
    %17 = arith.cmpi eq, %arg0, %c1_i32 : i32
    %18 = arith.extui %17 : i1 to i32
    %c0_i32_11 = arith.constant 0 : i32
    %19 = arith.cmpi ne, %18, %c0_i32_11 : i32
    scf.if %19 {
      %c0_12 = arith.constant 0 : index
      %c0_13 = arith.constant 0 : index
      %20 = vector.load %arg4[%c0_12, %c0_13] : memref<1x128xf32, #tpu.memory_space<vmem>>, vector<1x128xf32>
      %c0_14 = arith.constant 0 : index
      %c0_15 = arith.constant 0 : index
      %21 = vector.load %arg12[%c0_14, %c0_15] : memref<1x128xf32, #tpu.memory_space<vmem>>, vector<1x128xf32>
      %cst_16 = arith.constant 0.001953125 : f32
      %22 = vector.broadcast %cst_16 : f32 to vector<1x128xf32>
      %23 = arith.mulf %21, %22 : vector<1x128xf32>
      %24 = arith.mulf %23, %20 : vector<1x128xf32>
      %cst_17 = arith.constant dense<0.000000e+00> : vector<1xf32>
      %25 = vector.multi_reduction <add>, %24, %cst_17 [1] : vector<1x128xf32> to vector<1xf32>
      %26 = vector.shape_cast %25 : vector<1xf32> to vector<1x1xf32>
      %cst_18 = arith.constant 1.250000e-01 : f32
      %27 = vector.broadcast %cst_18 : f32 to vector<1x1xf32>
      %28 = arith.mulf %26, %27 : vector<1x1xf32>
      %29 = vector.broadcast %28 : vector<1x1xf32> to vector<1x128xf32>
      %30 = arith.subf %23, %29 : vector<1x128xf32>
      %31 = arith.mulf %30, %20 : vector<1x128xf32>
      %32 = arith.mulf %31, %31 : vector<1x128xf32>
      %cst_19 = arith.constant dense<0.000000e+00> : vector<1xf32>
      %33 = vector.multi_reduction <add>, %32, %cst_19 [1] : vector<1x128xf32> to vector<1xf32>
      %34 = vector.shape_cast %33 : vector<1xf32> to vector<1x1xf32>
      %cst_20 = arith.constant 1.250000e-01 : f32
      %35 = vector.broadcast %cst_20 : f32 to vector<1x1xf32>
      %36 = arith.mulf %34, %35 : vector<1x1xf32>
      %cst_21 = arith.constant 9.99999974E-6 : f32
      %37 = vector.broadcast %cst_21 : f32 to vector<1x1xf32>
      %38 = arith.addf %36, %37 : vector<1x1xf32>
      %39 = math.rsqrt %38 : vector<1x1xf32>
      %40 = vector.broadcast %39 : vector<1x1xf32> to vector<1x128xf32>
      %41 = arith.mulf %31, %40 : vector<1x128xf32>
      %c0_22 = arith.constant 0 : index
      %c0_23 = arith.constant 0 : index
      %42 = vector.load %arg5[%c0_22, %c0_23] : memref<128x128xf32, #tpu.memory_space<vmem>>, vector<128x128xf32>
      %cst_24 = arith.constant dense<0.000000e+00> : vector<1x128xf32>
      %43 = tpu.matmul %41, %42, %cst_24 {dimension_numbers = #tpu.dot_dimension_numbers<[1], [0], [0], [1], [0, 0, 1, 1], [], []>} : vector<1x128xf32>, vector<128x128xf32>, vector<1x128xf32> -> vector<1x128xf32>
      %c0_25 = arith.constant 0 : index
      %c0_26 = arith.constant 0 : index
      %44 = vector.load %arg6[%c0_25, %c0_26] : memref<1x128xf32, #tpu.memory_space<vmem>>, vector<1x128xf32>
      %45 = arith.addf %43, %44 : vector<1x128xf32>
      %46 = arith.negf %45 : vector<1x128xf32>
      %47 = math.exp %46 : vector<1x128xf32>
      %cst_27 = arith.constant 1.000000e+00 : f32
      %48 = vector.broadcast %cst_27 : f32 to vector<1x128xf32>
      %49 = arith.addf %48, %47 : vector<1x128xf32>
      %50 = arith.divf %48, %49 : vector<1x128xf32>
      %51 = arith.mulf %45, %50 : vector<1x128xf32>
      %c0_28 = arith.constant 0 : index
      %c0_29 = arith.constant 0 : index
      %52 = vector.load %arg7[%c0_28, %c0_29] : memref<128x128xf32, #tpu.memory_space<vmem>>, vector<128x128xf32>
      %cst_30 = arith.constant dense<0.000000e+00> : vector<1x128xf32>
      %53 = tpu.matmul %51, %52, %cst_30 {dimension_numbers = #tpu.dot_dimension_numbers<[1], [0], [0], [1], [0, 0, 1, 1], [], []>} : vector<1x128xf32>, vector<128x128xf32>, vector<1x128xf32> -> vector<1x128xf32>
      %c0_31 = arith.constant 0 : index
      %c0_32 = arith.constant 0 : index
      %54 = vector.load %arg8[%c0_31, %c0_32] : memref<1x128xf32, #tpu.memory_space<vmem>>, vector<1x128xf32>
      %55 = arith.addf %53, %54 : vector<1x128xf32>
      %56 = arith.negf %55 : vector<1x128xf32>
      %57 = math.exp %56 : vector<1x128xf32>
      %cst_33 = arith.constant 1.000000e+00 : f32
      %58 = vector.broadcast %cst_33 : f32 to vector<1x128xf32>
      %59 = arith.addf %58, %57 : vector<1x128xf32>
      %60 = arith.divf %58, %59 : vector<1x128xf32>
      %61 = arith.mulf %55, %60 : vector<1x128xf32>
      %c0_34 = arith.constant 0 : index
      %c0_35 = arith.constant 0 : index
      %62 = vector.load %arg9[%c0_34, %c0_35] : memref<128x128xf32, #tpu.memory_space<vmem>>, vector<128x128xf32>
      %cst_36 = arith.constant dense<0.000000e+00> : vector<1x128xf32>
      %63 = tpu.matmul %61, %62, %cst_36 {dimension_numbers = #tpu.dot_dimension_numbers<[1], [0], [0], [1], [0, 0, 1, 1], [], []>} : vector<1x128xf32>, vector<128x128xf32>, vector<1x128xf32> -> vector<1x128xf32>
      %c0_37 = arith.constant 0 : index
      %c0_38 = arith.constant 0 : index
      %64 = vector.load %arg10[%c0_37, %c0_38] : memref<1x128xf32, #tpu.memory_space<vmem>>, vector<1x128xf32>
      %65 = arith.addf %63, %64 : vector<1x128xf32>
      %66 = arith.negf %65 : vector<1x128xf32>
      %67 = math.exp %66 : vector<1x128xf32>
      %cst_39 = arith.constant 1.000000e+00 : f32
      %68 = vector.broadcast %cst_39 : f32 to vector<1x128xf32>
      %69 = arith.addf %68, %67 : vector<1x128xf32>
      %70 = arith.divf %68, %69 : vector<1x128xf32>
      %cst_40 = arith.constant 2.000000e+00 : f32
      %71 = vector.broadcast %cst_40 : f32 to vector<1x128xf32>
      %72 = arith.mulf %70, %71 : vector<1x128xf32>
      %c0_41 = arith.constant 0 : index
      %c0_42 = arith.constant 0 : index
      %73 = vector.load %arg11[%c0_41, %c0_42] : memref<1x128xf32, #tpu.memory_space<vmem>>, vector<1x128xf32>
      tpu.vector_store %arg11[%c0_41, %c0_42], %72 {strides = array<i32>} : memref<1x128xf32, #tpu.memory_space<vmem>>, vector<1x128xf32>,
    } else {
    }
    return
  }
  func.func @transform_0(%arg0: i32) -> (i32, i32, i32) {
    %c0_i32 = arith.constant 0 : i32
    %c0_i32_0 = arith.constant 0 : i32
    %c0_i32_1 = arith.constant 0 : i32
    return %arg0, %c0_i32, %c0_i32_0 : i32, i32, i32
  }
  func.func @transform_1(%arg0: i32) -> (i32, i32) {
    %c0_i32 = arith.constant 0 : i32
    %c0_i32_0 = arith.constant 0 : i32
    %c0_i32_1 = arith.constant 0 : i32
    return %c0_i32, %c0_i32_0 : i32, i32
  }
  func.func @transform_2(%arg0: i32) -> (i32, i32) {
    %c0_i32 = arith.constant 0 : i32
    %c0_i32_0 = arith.constant 0 : i32
    %c0_i32_1 = arith.constant 0 : i32
    return %c0_i32, %c0_i32_0 : i32, i32
  }
  func.func @transform_3(%arg0: i32) -> (i32, i32) {
    %c0_i32 = arith.constant 0 : i32
    %c0_i32_0 = arith.constant 0 : i32
    %c0_i32_1 = arith.constant 0 : i32
    return %c0_i32, %c0_i32_0 : i32, i32
  }
  func.func @transform_4(%arg0: i32) -> (i32, i32) {
    %c0_i32 = arith.constant 0 : i32
    %c0_i32_0 = arith.constant 0 : i32
    %c0_i32_1 = arith.constant 0 : i32
    return %c0_i32, %c0_i32_0 : i32, i32
  }
  func.func @transform_5(%arg0: i32) -> (i32, i32) {
    %c0_i32 = arith.constant 0 : i32
    %c0_i32_0 = arith.constant 0 : i32
    %c0_i32_1 = arith.constant 0 : i32
    return %c0_i32, %c0_i32_0 : i32, i32
  }
  func.func @transform_6(%arg0: i32) -> (i32, i32) {
    %c0_i32 = arith.constant 0 : i32
    %c0_i32_0 = arith.constant 0 : i32
    %c0_i32_1 = arith.constant 0 : i32
    return %c0_i32, %c0_i32_0 : i32, i32
  }
  func.func @transform_7(%arg0: i32) -> (i32, i32) {
    %c0_i32 = arith.constant 0 : i32
    %c0_i32_0 = arith.constant 0 : i32
    %c0_i32_1 = arith.constant 0 : i32
    return %c0_i32, %c0_i32_0 : i32, i32
  }
  func.func @transform_8(%arg0: i32) -> (i32, i32) {
    %c0_i32 = arith.constant 0 : i32
    %c0_i32_0 = arith.constant 0 : i32
    %c0_i32_1 = arith.constant 0 : i32
    return %c0_i32, %c0_i32_0 : i32, i32
  }
  func.func @transform_9(%arg0: i32) -> (i32, i32) {
    %c0_i32 = arith.constant 0 : i32
    %c0_i32_0 = arith.constant 0 : i32
    %c0_i32_1 = arith.constant 0 : i32
    return %c0_i32, %c0_i32_0 : i32, i32
  }
  func.func @transform_10(%arg0: i32) -> (i32, i32) {
    %c0_i32 = arith.constant 0 : i32
    %c0_i32_0 = arith.constant 0 : i32
    %c0_i32_1 = arith.constant 0 : i32
    return %c0_i32, %c0_i32_0 : i32, i32
  }
}

module attributes {stable_mosaic.version = 11 : i64} {
  func.func @final_kernel(%arg0: i32, %arg1: memref<1x256x128xbf16, #tpu.memory_space<vmem>>, %arg2: memref<1x256x128xbf16, #tpu.memory_space<vmem>>, %arg3: memref<1x128xf32, #tpu.memory_space<vmem>>, %arg4: memref<1x128xf32, #tpu.memory_space<vmem>>, %arg5: memref<1x128xf32, #tpu.memory_space<vmem>>, %arg6: memref<1x128xf32, #tpu.memory_space<vmem>>, %arg7: memref<1x256x128xf32, #tpu.memory_space<vmem>>) attributes {dimension_semantics = [#tpu.dimension_semantics<parallel>], iteration_bounds = array<i64: 2>, scalar_prefetch = 0 : i64, scratch_operands = 0 : i64, tpu.core_type = #tpu.core_type<tc>, window_params = [{transform_indices = @transform_0, window_bounds = array<i64: 1, 256, 128>}, {transform_indices = @transform_1, window_bounds = array<i64: 1, 256, 128>}, {pipeline_mode = #tpu.pipeline_mode<synchronous>, transform_indices = @transform_2, window_bounds = array<i64: 1, 128>}, {pipeline_mode = #tpu.pipeline_mode<synchronous>, transform_indices = @transform_3, window_bounds = array<i64: 1, 128>}, {pipeline_mode = #tpu.pipeline_mode<synchronous>, transform_indices = @transform_4, window_bounds = array<i64: 1, 128>}, {pipeline_mode = #tpu.pipeline_mode<synchronous>, transform_indices = @transform_5, window_bounds = array<i64: 1, 128>}, {transform_indices = @transform_6, window_bounds = array<i64: 1, 256, 128>}]} {
    %c0 = arith.constant 0 : index
    %c0_0 = arith.constant 0 : index
    %c0_1 = arith.constant 0 : index
    %0 = vector.load %arg1[%c0, %c0_0, %c0_1] : memref<1x256x128xbf16, #tpu.memory_space<vmem>>, vector<1x256x128xbf16>
    %1 = vector.shape_cast %0 : vector<1x256x128xbf16> to vector<256x128xbf16>
    %2 = arith.extf %1 : vector<256x128xbf16> to vector<256x128xf32>
    %c0_2 = arith.constant 0 : index
    %c0_3 = arith.constant 0 : index
    %c0_4 = arith.constant 0 : index
    %3 = vector.load %arg2[%c0_2, %c0_3, %c0_4] : memref<1x256x128xbf16, #tpu.memory_space<vmem>>, vector<1x256x128xbf16>
    %4 = vector.shape_cast %3 : vector<1x256x128xbf16> to vector<256x128xbf16>
    %5 = arith.extf %4 : vector<256x128xbf16> to vector<256x128xf32>
    %c0_5 = arith.constant 0 : index
    %c0_6 = arith.constant 0 : index
    %6 = vector.load %arg3[%c0_5, %c0_6] : memref<1x128xf32, #tpu.memory_space<vmem>>, vector<1x128xf32>
    %7 = vector.broadcast %6 : vector<1x128xf32> to vector<256x128xf32>
    %8 = arith.mulf %2, %7 : vector<256x128xf32>
    %c0_7 = arith.constant 0 : index
    %c0_8 = arith.constant 0 : index
    %9 = vector.load %arg4[%c0_7, %c0_8] : memref<1x128xf32, #tpu.memory_space<vmem>>, vector<1x128xf32>
    %10 = vector.broadcast %9 : vector<1x128xf32> to vector<256x128xf32>
    %11 = arith.addf %8, %10 : vector<256x128xf32>
    %c0_9 = arith.constant 0 : index
    %c0_10 = arith.constant 0 : index
    %12 = vector.load %arg5[%c0_9, %c0_10] : memref<1x128xf32, #tpu.memory_space<vmem>>, vector<1x128xf32>
    %13 = vector.broadcast %12 : vector<1x128xf32> to vector<256x128xf32>
    %14 = arith.mulf %5, %13 : vector<256x128xf32>
    %15 = arith.addf %11, %14 : vector<256x128xf32>
    %c0_11 = arith.constant 0 : index
    %c0_12 = arith.constant 0 : index
    %16 = vector.load %arg6[%c0_11, %c0_12] : memref<1x128xf32, #tpu.memory_space<vmem>>, vector<1x128xf32>
    %17 = vector.broadcast %16 : vector<1x128xf32> to vector<256x128xf32>
    %18 = arith.addf %15, %17 : vector<256x128xf32>
    %19 = vector.shape_cast %18 : vector<256x128xf32> to vector<1x256x128xf32>
    %c0_13 = arith.constant 0 : index
    %c0_14 = arith.constant 0 : index
    %c0_15 = arith.constant 0 : index
    %20 = vector.load %arg7[%c0_13, %c0_14, %c0_15] : memref<1x256x128xf32, #tpu.memory_space<vmem>>, vector<1x256x128xf32>
    tpu.vector_store %arg7[%c0_13, %c0_14, %c0_15], %19 {strides = array<i32>} : memref<1x256x128xf32, #tpu.memory_space<vmem>>, vector<1x256x128xf32>,
    return
  }
  func.func @transform_0(%arg0: i32) -> (i32, i32, i32) {
    %c0_i32 = arith.constant 0 : i32
    %c0_i32_0 = arith.constant 0 : i32
    %c0_i32_1 = arith.constant 0 : i32
    return %arg0, %c0_i32, %c0_i32_0 : i32, i32, i32
  }
  func.func @transform_1(%arg0: i32) -> (i32, i32, i32) {
    %c0_i32 = arith.constant 0 : i32
    %c0_i32_0 = arith.constant 0 : i32
    %c0_i32_1 = arith.constant 0 : i32
    return %arg0, %c0_i32, %c0_i32_0 : i32, i32, i32
  }
  func.func @transform_2(%arg0: i32) -> (i32, i32) {
    %c0_i32 = arith.constant 0 : i32
    %c0_i32_0 = arith.constant 0 : i32
    %c0_i32_1 = arith.constant 0 : i32
    return %c0_i32, %c0_i32_0 : i32, i32
  }
  func.func @transform_3(%arg0: i32) -> (i32, i32) {
    %c0_i32 = arith.constant 0 : i32
    %c0_i32_0 = arith.constant 0 : i32
    %c0_i32_1 = arith.constant 0 : i32
    return %c0_i32, %c0_i32_0 : i32, i32
  }
  func.func @transform_4(%arg0: i32) -> (i32, i32) {
    %c0_i32 = arith.constant 0 : i32
    %c0_i32_0 = arith.constant 0 : i32
    %c0_i32_1 = arith.constant 0 : i32
    return %c0_i32, %c0_i32_0 : i32, i32
  }
  func.func @transform_5(%arg0: i32) -> (i32, i32) {
    %c0_i32 = arith.constant 0 : i32
    %c0_i32_0 = arith.constant 0 : i32
    %c0_i32_1 = arith.constant 0 : i32
    return %c0_i32, %c0_i32_0 : i32, i32
  }
  func.func @transform_6(%arg0: i32) -> (i32, i32, i32) {
    %c0_i32 = arith.constant 0 : i32
    %c0_i32_0 = arith.constant 0 : i32
    %c0_i32_1 = arith.constant 0 : i32
    return %arg0, %c0_i32, %c0_i32_0 : i32, i32, i32
  }
}

</mosaic_0001>

<bundles_post_ra>
// kernel: basic_block_rn12_forward.12
= control target key start
LH: loop header
LB: loop body
LE: loop exit
PB: predicated region body
PF: predicated region fallthrough
CT: control target
= control target key end

     0   :  { %s1208_s13 = smov 0   ;;  %s1535_s0 = inlined_call_operand.vmem [shape: bf16[2,256,128], index: 0, kind: input, shape index: {}]   ;;  %s1536_s1 = inlined_call_operand.vmem [shape: f32[1,128], index: 1, kind: input, shape index: {}]   ;;  %s1537_s2 = inlined_call_operand.vmem [shape: f32[1,128], index: 2, kind: input, shape index: {}]   ;;  %s1538_s3 = inlined_call_operand.vmem [shape: f32[1,128], index: 3, kind: input, shape index: {}]   ;;  %s1539_s4 = inlined_call_operand.vmem [shape: f32[128,128], index: 4, kind: input, shape index: {}]   ;;  %s1540_s5 = inlined_call_operand.vmem [shape: f32[1,128], index: 5, kind: input, shape index: {}]   ;;  %s1541_s6 = inlined_call_operand.vmem [shape: f32[128,128], index: 6, kind: input, shape index: {}]   ;;  %s1542_s7 = inlined_call_operand.vmem [shape: f32[1,128], index: 7, kind: input, shape index: {}]   ;;  %s1543_s8 = inlined_call_operand.vmem [shape: f32[128,128], index: 8, kind: input, shape index: {}]   ;;  %s1544_s9 = inlined_call_operand.vmem [shape: f32[1,128], index: 9, kind: input, shape index: {}]   ;;  %s1545_s10 = inlined_call_operand.vmem [shape: f32[1,128], index: 10, kind: output, shape index: {}]  }
   0x1 LB: > { %s1214_s14 = sadd.s32 4294967295, %s1148_s13   ;;  %p869_p0 = scmp.ge.s32.totalorder %s1148_s13, 1  ;;  %s1148_s13 = sphi %s1208_s13, %s20_s13  }
   0x2   : > { %p307_p1 = scmp.lt.s32.totalorder %s1148_s13, 3 }
   0x4   : > { %p308_p2 = pnand %p869_p0, %p307_p1 }
   0x5   : > { %p340_p3 = scmp.lt.s32.totalorder (!%p308_p2), %s1214_s14, 1  ;;  %p872_p4 = scmp.ne.s32.totalorder (!%p308_p2), %s1214_s14, 0 }
   0x6   : > { %311 = sbr.rel (%p308_p2) target bundleno = 1108 (0x454), region = 60 }
   0xb   : > { %s341_s15 = scalar_select %p340_p3, %s1214_s14, 1 }
   0xc   : > { %348 = sbr.rel (%p872_p4) target bundleno = 19 (0x13), region = 64 }
   0xd   : > { %s881_s16 = sshll.u32 %s341_s15, 7 }
   0xe   : > { %s1223_s19 = scalar_lea.vmem %s1535_s0, %s881_s16 }
  0x11   : > { %v1150_v0 = vmov 0.0  }
  0x12   : > { %349 = vst [vmem:[#allocation2] sm:$0x1] %v1150_v0 }
  0x13 PF: > { %v883_v1 = vld [vmem:[%s1223_s19] sm:$0xff]   ;;  %v946_v2 = vld [vmem:[%s1223_s19 + $0x8] sm:$0xff]   ;;  %v947_v7 = vld [vmem:[%s1223_s19 + $0x10] sm:$0xff]   ;;  %p875_p5 = scmp.ne.s32.totalorder %s1214_s14, 1 }
  0x14   : > { %v884_v3 = vunpack.c.l.bf16 %v883_v1  ;;  %v885_v4 = vunpack.c.h.bf16 %v883_v1  ;;  %v1231_v5 = vld [vmem:[%s1536_s1] ss:$0 sm:$0xff]  ;;  %v888_v6 = vunpack.c.l.bf16 %v946_v2  ;;  %v889_v8 = vunpack.c.h.bf16 %v946_v2  ;;  %v948_v14 = vld [vmem:[%s1223_s19 + $0x18] sm:$0xff]   ;;  %v950_v31 = vld [vmem:[%s1223_s19 + $0x28] sm:$0xff]  }
  0x15   : > { %v1239_v11 = vld [vmem:[%s1537_s2] ss:$0 sm:$0xff]  ;;  %v892_v12 = vunpack.c.l.bf16 %v947_v7  ;;  %v893_v15 = vunpack.c.h.bf16 %v947_v7  ;;  %v896_v19 = vunpack.c.l.bf16 %v948_v14  ;;  %v897_v23 = vunpack.c.h.bf16 %v948_v14  ;;  %v951_v40 = vld [vmem:[%s1223_s19 + $0x30] sm:$0xff]   ;;  %v952_v49 = vld [vmem:[%s1223_s19 + $0x38] sm:$0xff]  }
  0x16   : > { %v421_v9 = vmul.f32 %v884_v3, %v1231_v5  ;;  %v422_v10 = vmul.f32 %v885_v4, %v1231_v5  ;;  %v423_v13 = vmul.f32 %v888_v6, %v1231_v5  ;;  %v424_v16 = vmul.f32 %v889_v8, %v1231_v5  ;;  %v949_v22 = vld [vmem:[%s1223_s19 + $0x20] sm:$0xff]   ;;  %v954_v3 = vld [vmem:[%s1223_s19 + $0x48] sm:$0xff]   ;;  %v955_v14 = vld [vmem:[%s1223_s19 + $0x50] sm:$0xff]  }
  0x17   : > { %v425_v20 = vmul.f32 %v892_v12, %v1231_v5  ;;  %v426_v24 = vmul.f32 %v893_v15, %v1231_v5  ;;  %v900_v27 = vunpack.c.l.bf16 %v949_v22  ;;  %v427_v28 = vmul.f32 %v896_v19, %v1231_v5  ;;  %v953_v58 = vld [vmem:[%s1223_s19 + $0x40] sm:$0xff]  }
  0x18   : > { %v460_v17 = vadd.f32 %v1239_v11, %v421_v9  ;;  %v461_v18 = vadd.f32 %v1239_v11, %v422_v10  ;;  %v462_v21 = vadd.f32 %v1239_v11, %v423_v13  ;;  %v463_v25 = vadd.f32 %v1239_v11, %v424_v16 }
  0x19   : > { %v464_v29 = vadd.f32 %v1239_v11, %v425_v20  ;;  %v901_v32 = vunpack.c.h.bf16 %v949_v22  ;;  %v428_v33 = vmul.f32 %v897_v23, %v1231_v5  ;;  %v465_v34 = vadd.f32 %v1239_v11, %v426_v24  ;;  %v956_v23 = vld [vmem:[%s1223_s19 + $0x58] sm:$0xff]  }
  0x1a   : > { %v493_v26 = vadd.f32 %v461_v18, %v460_v17  ;;  %v904_v36 = vunpack.c.l.bf16 %v950_v31  ;;  %v429_v37 = vmul.f32 %v900_v27, %v1231_v5  ;;  %v466_v38 = vadd.f32 %v1239_v11, %v427_v28 }
  0x1b   : > { %v905_v41 = vunpack.c.h.bf16 %v950_v31  ;;  %v430_v42 = vmul.f32 %v901_v32, %v1231_v5  ;;  %v467_v43 = vadd.f32 %v1239_v11, %v428_v33  ;;  %v908_v45 = vunpack.c.l.bf16 %v951_v40  ;;  %v957_v32 = vld [vmem:[%s1223_s19 + $0x60] sm:$0xff]  }
  0x1c   : > { %v494_v30 = vadd.f32 %v493_v26, %v462_v21  ;;  %v431_v46 = vmul.f32 %v904_v36, %v1231_v5  ;;  %v468_v47 = vadd.f32 %v1239_v11, %v429_v37  ;;  %v909_v50 = vunpack.c.h.bf16 %v951_v40 }
  0x1d   : > { %v432_v51 = vmul.f32 %v905_v41, %v1231_v5  ;;  %v469_v52 = vadd.f32 %v1239_v11, %v430_v42  ;;  %v912_v54 = vunpack.c.l.bf16 %v952_v49  ;;  %v433_v55 = vmul.f32 %v908_v45, %v1231_v5  ;;  %v958_v41 = vld [vmem:[%s1223_s19 + $0x68] sm:$0xff]  }
  0x1e   : > { %v495_v35 = vadd.f32 %v494_v30, %v463_v25  ;;  %v470_v56 = vadd.f32 %v1239_v11, %v431_v46  ;;  %v913_v59 = vunpack.c.h.bf16 %v952_v49  ;;  %v434_v60 = vmul.f32 %v909_v50, %v1231_v5  ;;  %v959_v50 = vld [vmem:[%s1223_s19 + $0x70] sm:$0xff]  }
  0x1f   : > { %v471_v61 = vadd.f32 %v1239_v11, %v432_v51  ;;  %v916_v63 = vunpack.c.l.bf16 %v953_v58  ;;  %v435_v0 = vmul.f32 %v912_v54, %v1231_v5  ;;  %v472_v1 = vadd.f32 %v1239_v11, %v433_v55 }
  0x20   : > { %v496_v39 = vadd.f32 %v495_v35, %v464_v29  ;;  %v917_v4 = vunpack.c.h.bf16 %v953_v58  ;;  %v436_v6 = vmul.f32 %v913_v59, %v1231_v5  ;;  %v473_v7 = vadd.f32 %v1239_v11, %v434_v60  ;;  %v960_v59 = vld [vmem:[%s1223_s19 + $0x78] sm:$0xff]  }
  0x21   : > { %v920_v9 = vunpack.c.l.bf16 %v954_v3  ;;  %v437_v10 = vmul.f32 %v916_v63, %v1231_v5  ;;  %v474_v12 = vadd.f32 %v1239_v11, %v435_v0  ;;  %v921_v15 = vunpack.c.h.bf16 %v954_v3 }
  0x22   : > { %v497_v44 = vadd.f32 %v496_v39, %v465_v34  ;;  %v438_v16 = vmul.f32 %v917_v4, %v1231_v5  ;;  %v475_v17 = vadd.f32 %v1239_v11, %v436_v6  ;;  %v924_v19 = vunpack.c.l.bf16 %v955_v14 }
  0x23   : > { %v439_v20 = vmul.f32 %v920_v9, %v1231_v5  ;;  %v476_v21 = vadd.f32 %v1239_v11, %v437_v10  ;;  %v925_v24 = vunpack.c.h.bf16 %v955_v14  ;;  %v440_v25 = vmul.f32 %v921_v15, %v1231_v5 }
  0x24   : > { %v498_v48 = vadd.f32 %v497_v44, %v466_v38  ;;  %v477_v26 = vadd.f32 %v1239_v11, %v438_v16  ;;  %v928_v28 = vunpack.c.l.bf16 %v956_v23  ;;  %v441_v29 = vmul.f32 %v924_v19, %v1231_v5 }
  0x25   : > { %v478_v30 = vadd.f32 %v1239_v11, %v439_v20  ;;  %v929_v33 = vunpack.c.h.bf16 %v956_v23  ;;  %v442_v34 = vmul.f32 %v925_v24, %v1231_v5  ;;  %v479_v35 = vadd.f32 %v1239_v11, %v440_v25 }
  0x26   : > { %v499_v53 = vadd.f32 %v498_v48, %v467_v43  ;;  %v932_v37 = vunpack.c.l.bf16 %v957_v32  ;;  %v443_v38 = vmul.f32 %v928_v28, %v1231_v5  ;;  %v480_v39 = vadd.f32 %v1239_v11, %v441_v29 }
  0x27   : > { %v933_v42 = vunpack.c.h.bf16 %v957_v32  ;;  %v444_v43 = vmul.f32 %v929_v33, %v1231_v5  ;;  %v481_v44 = vadd.f32 %v1239_v11, %v442_v34  ;;  %v936_v46 = vunpack.c.l.bf16 %v958_v41 }
  0x28   : > { %v500_v57 = vadd.f32 %v499_v53, %v468_v47  ;;  %v445_v47 = vmul.f32 %v932_v37, %v1231_v5  ;;  %v482_v48 = vadd.f32 %v1239_v11, %v443_v38  ;;  %v937_v51 = vunpack.c.h.bf16 %v958_v41 }
  0x29   : > { %v483_v53 = vadd.f32 %v1239_v11, %v444_v43  ;;  %v940_v55 = vunpack.c.l.bf16 %v959_v50  ;;  %v941_v60 = vunpack.c.h.bf16 %v959_v50  ;;  %v944_v0 = vunpack.c.l.bf16 %v960_v59 }
  0x2a   : > { %v501_v62 = vadd.f32 %v500_v57, %v469_v52  ;;  %v446_v52 = vmul.f32 %v933_v42, %v1231_v5  ;;  %v484_v57 = vadd.f32 %v1239_v11, %v445_v47  ;;  %v945_v4 = vunpack.c.h.bf16 %v960_v59 }
  0x2b   : > { %v450_v6 = vmul.f32 %v941_v60, %v1231_v5  ;;  %v451_v9 = vmul.f32 %v944_v0, %v1231_v5 }
  0x2c   : > { %v502_v2 = vadd.f32 %v501_v62, %v470_v56  ;;  %v447_v56 = vmul.f32 %v936_v46, %v1231_v5  ;;  %v485_v62 = vadd.f32 %v1239_v11, %v446_v52 }
  0x2d   : > { %v489_v14 = vadd.f32 %v1239_v11, %v450_v6  ;;  %v490_v16 = vadd.f32 %v1239_v11, %v451_v9 }
  0x2e   : > { %v503_v8 = vadd.f32 %v502_v2, %v471_v61  ;;  %v448_v61 = vmul.f32 %v937_v51, %v1231_v5  ;;  %v486_v2 = vadd.f32 %v1239_v11, %v447_v56 }
  0x30   : > { %v504_v13 = vadd.f32 %v503_v8, %v472_v1  ;;  %v449_v1 = vmul.f32 %v940_v55, %v1231_v5 }
  0x32   : > { %v505_v18 = vadd.f32 %v504_v13, %v473_v7  ;;  %v487_v7 = vadd.f32 %v1239_v11, %v448_v61  ;;  %v488_v10 = vadd.f32 %v1239_v11, %v449_v1  ;;  %v452_v13 = vmul.f32 %v945_v4, %v1231_v5 }
  0x34   : > { %v506_v22 = vadd.f32 %v505_v18, %v474_v12  ;;  %v491_v18 = vadd.f32 %v1239_v11, %v452_v13 }
  0x36   : > { %v507_v27 = vadd.f32 %v506_v22, %v475_v17 }
  0x38   : > { %v508_v31 = vadd.f32 %v507_v27, %v476_v21  ;;  %v492_v27 = vld [vmem:[#allocation2] sm:$0x1] }
  0x3a   : > { %v509_v36 = vadd.f32 %v508_v31, %v477_v26 }
  0x3c   : > { %v510_v40 = vadd.f32 %v509_v36, %v478_v30 }
  0x3e   : > { %v511_v45 = vadd.f32 %v510_v40, %v479_v35 }
  0x40   : > { %v512_v49 = vadd.f32 %v511_v45, %v480_v39 }
  0x42   : > { %v513_v54 = vadd.f32 %v512_v49, %v481_v44 }
  0x44   : > { %v514_v58 = vadd.f32 %v513_v54, %v482_v48 }
  0x46   : > { %v515_v63 = vadd.f32 %v514_v58, %v483_v53 }
  0x48   : > { %v516_v3 = vadd.f32 %v515_v63, %v484_v57 }
  0x4a   : > { %v517_v8 = vadd.f32 %v516_v3, %v485_v62 }
  0x4c   : > { %v518_v12 = vadd.f32 %v517_v8, %v486_v2 }
  0x4e   : > { %v519_v15 = vadd.f32 %v518_v12, %v487_v7 }
  0x50   : > { %v520_v17 = vadd.f32 %v519_v15, %v488_v10 }
  0x52   : > { %v521_v19 = vadd.f32 %v520_v17, %v489_v14 }
  0x54   : > { %v522_v20 = vadd.f32 %v521_v19, %v490_v16 }
  0x56   : > { %v523_v21 = vadd.f32 %v522_v20, %v491_v18 }
  0x58   : > { %v524_v22 = vrot.slane %v523_v21, 4 }
  0x5a   : > { %v525_v23 = vadd.f32 %v524_v22, %v523_v21 }
  0x5c   : > { %v526_v24 = vrot.slane %v525_v23, 2 }
  0x5e   : > { %v527_v25 = vadd.f32 %v526_v24, %v525_v23 }
  0x60   : > { %v528_v26 = vrot.slane %v527_v25, 1 }
  0x62   : > { %v529_v28 = vadd.f32 %v528_v26, %v527_v25  ;;  %535 = sbr.rel (%p875_p5) target bundleno = 1108 (0x454), region = 68 }
  0x64   : > { %v530_v29 = vadd.f32 %v529_v28, %v492_v27 }
  0x66   : > { %531 = vst [vmem:[#allocation2] sm:$0x1] %v530_v29 }
  0x67   : > { %v536_v5 = vld [vmem:[%s1538_s3] sm:$0x1]  ;;  %vm540_vm0 = vcmask 1040384   ;;  %v570_v33 = vld [vmem:[%s1539_s4 + $0x78] sm:$0xff]  ;;  %v1151_v34 = vmov 0.0   ;;  %v569_v35 = vld [vmem:[%s1539_s4 + $0x70] sm:$0xff] }
  0x68   : > { %1012 = vmatprep.subr.mxu0 %v1151_v34  ;;  %1047 = vmatprep.subr.mxu1 %v1151_v34  ;;  %v568_v36 = vld [vmem:[%s1539_s4 + $0x68] sm:$0xff]  ;;  %v567_v37 = vld [vmem:[%s1539_s4 + $0x60] sm:$0xff]  ;;  %v566_v38 = vld [vmem:[%s1539_s4 + $0x58] sm:$0xff]  ;;  %vm1152_vm1 = vmmov 0  }
  0x69   : > { %1013 = vmatpush3.msra.mxu0 %v570_v33  ;;  %v565_v39 = vld [vmem:[%s1539_s4 + $0x50] sm:$0xff]  ;;  %v564_v46 = vld [vmem:[%s1539_s4 + $0x48] sm:$0xff]  ;;  %v563_v47 = vld [vmem:[%s1539_s4 + $0x40] sm:$0xff]  ;;  %1044 = vmatprep.mubr.msk.f32.mxu0 %vm1152_vm1, %v1151_v34 }
  0x6a   : > { %1014 = vmatprep.subr.mxu0 %v1151_v34  ;;  %v562_v48 = vld [vmem:[%s1539_s4 + $0x38] sm:$0xff]  ;;  %v561_v49 = vld [vmem:[%s1539_s4 + $0x30] sm:$0xff]  ;;  %v560_v50 = vld [vmem:[%s1539_s4 + $0x28] sm:$0xff]  ;;  %1079 = vmatprep.mubr.msk.f32.mxu1 %vm1152_vm1, %v1151_v34 }
  0x6b   : > { %1015 = vmatpush3.msra.mxu0 %v569_v35  ;;  %v559_v51 = vld [vmem:[%s1539_s4 + $0x20] sm:$0xff]  ;;  %v558_v52 = vld [vmem:[%s1539_s4 + $0x18] sm:$0xff]  ;;  %v557_v53 = vld [vmem:[%s1539_s4 + $0x10] sm:$0xff] }
  0x6c   : > { %1016 = vmatprep.subr.mxu0 %v1151_v34  ;;  %v556_v54 = vld [vmem:[%s1539_s4 + $0x8] sm:$0xff]  ;;  %v555_v55 = vld [vmem:[%s1539_s4] sm:$0xff]  ;;  %v664_v61 = vld [vmem:[%s1541_s6 + $0x78] sm:$0xff] }
  0x6d   : > { %v537_v11 = vld [vmem:[#allocation2] sm:$0x1]  ;;  %1017 = vmatpush3.msra.mxu0 %v568_v36  ;;  %1048 = vmatpush3.msra.mxu1 %v664_v61  ;;  %v663_v62 = vld [vmem:[%s1541_s6 + $0x70] sm:$0xff]  ;;  %v662_v63 = vld [vmem:[%s1541_s6 + $0x68] sm:$0xff] }
  0x6e   : > { %v538_v30 = vmul.f32 0.001953125, %v537_v11  ;;  %1018 = vmatprep.subr.mxu0 %v1151_v34  ;;  %1049 = vmatprep.subr.mxu1 %v1151_v34  ;;  %v661_v0 = vld [vmem:[%s1541_s6 + $0x60] sm:$0xff]  ;;  %v660_v1 = vld [vmem:[%s1541_s6 + $0x58] sm:$0xff]  ;;  %v659_v2 = vld [vmem:[%s1541_s6 + $0x50] sm:$0xff] }
  0x6f   : > { %1019 = vmatpush3.msra.mxu0 %v567_v37  ;;  %1050 = vmatpush3.msra.mxu1 %v663_v62  ;;  %v658_v3 = vld [vmem:[%s1541_s6 + $0x48] sm:$0xff]  ;;  %v657_v4 = vld [vmem:[%s1541_s6 + $0x40] sm:$0xff]  ;;  %v656_v6 = vld [vmem:[%s1541_s6 + $0x38] sm:$0xff] }
  0x70   : > { %v539_v31 = vmul.f32 %v538_v30, %v536_v5  ;;  %1020 = vmatprep.subr.mxu0 %v1151_v34  ;;  %1051 = vmatprep.subr.mxu1 %v1151_v34  ;;  %v655_v7 = vld [vmem:[%s1541_s6 + $0x30] sm:$0xff]  ;;  %v654_v8 = vld [vmem:[%s1541_s6 + $0x28] sm:$0xff]  ;;  %v653_v9 = vld [vmem:[%s1541_s6 + $0x20] sm:$0xff] }
  0x71   : > { %1021 = vmatpush3.msra.mxu0 %v566_v38  ;;  %1052 = vmatpush3.msra.mxu1 %v662_v63  ;;  %v652_v10 = vld [vmem:[%s1541_s6 + $0x18] sm:$0xff]  ;;  %v651_v12 = vld [vmem:[%s1541_s6 + $0x10] sm:$0xff]  ;;  %v650_v13 = vld [vmem:[%s1541_s6 + $0x8] sm:$0xff] }
  0x72   : > { %v541_v32 = vsel %vm540_vm0, %v539_v31, 0.0  ;;  %1022 = vmatprep.subr.mxu0 %v1151_v34  ;;  %1053 = vmatprep.subr.mxu1 %v1151_v34  ;;  %v649_v14 = vld [vmem:[%s1541_s6] sm:$0xff]  ;;  %v758_v24 = vld [vmem:[%s1543_s8 + $0x78] sm:$0xff]  ;;  %v757_v25 = vld [vmem:[%s1543_s8 + $0x70] sm:$0xff] }
  0x73   : > { %542 = vadd.xlane.f32.xlu0 %v541_v32  ;;  %1023 = vmatpush3.msra.mxu0 %v565_v39  ;;  %v571_v15 = vld [vmem:[%s1540_s5] sm:$0x1]  ;;  %v756_v26 = vld [vmem:[%s1543_s8 + $0x68] sm:$0xff]  ;;  %v754_v28 = vld [vmem:[%s1543_s8 + $0x58] sm:$0xff] }
  0x74   : > { %1024 = vmatprep.subr.mxu0 %v1151_v34  ;;  %1054 = vmatpush3.msra.mxu1 %v661_v0  ;;  %v755_v27 = vld [vmem:[%s1543_s8 + $0x60] sm:$0xff]  ;;  %v753_v29 = vld [vmem:[%s1543_s8 + $0x50] sm:$0xff]  ;;  %v748_v32 = vld [vmem:[%s1543_s8 + $0x28] sm:$0xff] }
  0x75   : > { %1025 = vmatpush3.msra.mxu0 %v564_v46  ;;  %1055 = vmatprep.subr.mxu1 %v1151_v34  ;;  %v751_v11 = vld [vmem:[%s1543_s8 + $0x40] sm:$0xff]  ;;  %v749_v31 = vld [vmem:[%s1543_s8 + $0x30] sm:$0xff]  ;;  %v746_v35 = vld [vmem:[%s1543_s8 + $0x18] sm:$0xff] }
  0x76   : > { %1026 = vmatprep.subr.mxu0 %v1151_v34  ;;  %1056 = vmatpush3.msra.mxu1 %v660_v1  ;;  %v747_v33 = vld [vmem:[%s1543_s8 + $0x20] sm:$0xff]  ;;  %v745_v36 = vld [vmem:[%s1543_s8 + $0x10] sm:$0xff]  ;;  %v744_v37 = vld [vmem:[%s1543_s8 + $0x8] sm:$0xff] }
  0x77   : > { %1027 = vmatpush3.msra.mxu0 %v563_v47  ;;  %1057 = vmatprep.subr.mxu1 %v1151_v34  ;;  %v743_v38 = vld [vmem:[%s1543_s8] sm:$0xff] }
  0x78   : > { %1028 = vmatprep.subr.mxu0 %v1151_v34  ;;  %1058 = vmatpush3.msra.mxu1 %v659_v2  ;;  %v665_v39 = vld [vmem:[%s1542_s7] sm:$0x1] }
  0x79   : > { %1029 = vmatpush3.msra.mxu0 %v562_v48  ;;  %1059 = vmatprep.subr.mxu1 %v1151_v34 }
  0x7a   : > { %1030 = vmatprep.subr.mxu0 %v1151_v34  ;;  %1060 = vmatpush3.msra.mxu1 %v658_v3 }
  0x7b   : > { %1031 = vmatpush3.msra.mxu0 %v561_v49  ;;  %1061 = vmatprep.subr.mxu1 %v1151_v34 }
  0x7c   : > { %1032 = vmatprep.subr.mxu0 %v1151_v34  ;;  %1062 = vmatpush3.msra.mxu1 %v657_v4 }
  0x7d   : > { %1033 = vmatpush3.msra.mxu0 %v560_v50  ;;  %1063 = vmatprep.subr.mxu1 %v1151_v34 }
  0x7e   : > { %1034 = vmatprep.subr.mxu0 %v1151_v34  ;;  %1064 = vmatpush3.msra.mxu1 %v656_v6 }
  0x7f   : > { %1035 = vmatpush3.msra.mxu0 %v559_v51  ;;  %1065 = vmatprep.subr.mxu1 %v1151_v34 }
  0x80   : > { %1036 = vmatprep.subr.mxu0 %v1151_v34  ;;  %1066 = vmatpush3.msra.mxu1 %v655_v7 }
  0x81   : > { %1037 = vmatpush3.msra.mxu0 %v558_v52  ;;  %1067 = vmatprep.subr.mxu1 %v1151_v34 }
  0x82   : > { %1038 = vmatprep.subr.mxu0 %v1151_v34  ;;  %1068 = vmatpush3.msra.mxu1 %v654_v8 }
  0x83   : > { %1039 = vmatpush3.msra.mxu0 %v557_v53  ;;  %1069 = vmatprep.subr.mxu1 %v1151_v34 }
  0x84   : > { %1040 = vmatprep.subr.mxu0 %v1151_v34  ;;  %1070 = vmatpush3.msra.mxu1 %v653_v9 }
  0x85   : > { %1041 = vmatpush3.msra.mxu0 %v556_v54  ;;  %1071 = vmatprep.subr.mxu1 %v1151_v34 }
  0x86   : > { %1042 = vmatprep.subr.mxu0 %v1151_v34  ;;  %1072 = vmatpush3.msra.mxu1 %v652_v10 }
  0x87   : > { %1043 = vmatpush3.msra.mxu0 %v555_v55  ;;  %1073 = vmatprep.subr.mxu1 %v1151_v34 }
  0x88   : > { %1082 = vmatprep.subr.mxu0 %v1151_v34  ;;  %1074 = vmatpush3.msra.mxu1 %v651_v12 }
  0x89   : > { %1075 = vmatprep.subr.mxu1 %v1151_v34 }
  0x8a   : > { %1076 = vmatpush3.msra.mxu1 %v650_v13 }
  0x8b   : > { %1077 = vmatprep.subr.mxu1 %v1151_v34 }
  0x8c   : > { %1078 = vmatpush3.msra.mxu1 %v649_v14 }
  0xfc   : > { %v543_v40 = vpop.xlane.xlu0 %542 }
  0xfd   : > { %v544_v41 = vmul.f32 0.125, %v543_v40 }
  0xff   : > { %v545_v42 = vsub.f32 %v538_v30, %v544_v41  ;;  %v750_v30 = vld [vmem:[%s1543_s8 + $0x38] sm:$0xff] }
 0x101   : > { %v546_v43 = vmul.f32 %v545_v42, %v536_v5  ;;  %v752_v5 = vld [vmem:[%s1543_s8 + $0x48] sm:$0xff] }
 0x103   : > { %v547_v44 = vmul.f32 %v546_v43, %v546_v43 }
 0x105   : > { %v548_v45 = vsel %vm540_vm0, %v547_v44, 0.0 }
 0x106   : > { %549 = vadd.xlane.f32.xlu0 %v548_v45 }
 0x18f   : > { %v550_v56 = vpop.xlane.xlu0 %549 }
 0x190   : > { %v551_v57 = vmul.f32 0.125, %v550_v56 }
 0x192   : > { %v552_v58 = vadd.f32 1e-05, %v551_v57 }
 0x194   : > { %1128 = vrsqrt.f32 %v552_v58 }
 0x1a1   : > { %v1129_v59 = vpop.eup %1128 }
 0x1a2   : > { %v554_v60 = vmul.f32 %v1129_v59, %v546_v43 }
 0x1a4   : > { %1045 = vmatmul.mubr.f32.vlgmr.msra.gmra.mxu0 %v554_v60 }
 0x1a5   : > { %1114 = vmatprep.mubr.msk.f32.mxu0 %vm1152_vm1, %v1151_v34  ;;  %1083 = vmatpush3.msra.mxu0 %v758_v24 }
 0x1a6   : > { %1084 = vmatprep.subr.mxu0 %v1151_v34 }
 0x1a7   : > { %1085 = vmatpush3.msra.mxu0 %v757_v25 }
 0x1a8   : > { %1086 = vmatprep.subr.mxu0 %v1151_v34 }
 0x1a9   : > { %1087 = vmatpush3.msra.mxu0 %v756_v26 }
 0x1aa   : > { %1088 = vmatprep.subr.mxu0 %v1151_v34 }
 0x1ab   : > { %1089 = vmatpush3.msra.mxu0 %v755_v27 }
 0x1ac   : > { %1090 = vmatprep.subr.mxu0 %v1151_v34 }
 0x1ad   : > { %1091 = vmatpush3.msra.mxu0 %v754_v28 }
 0x1ae   : > { %1092 = vmatprep.subr.mxu0 %v1151_v34 }
 0x1af   : > { %1093 = vmatpush3.msra.mxu0 %v753_v29 }
 0x1b0   : > { %1094 = vmatprep.subr.mxu0 %v1151_v34 }
 0x1b1   : > { %1095 = vmatpush3.msra.mxu0 %v752_v5 }
 0x1b2   : > { %1096 = vmatprep.subr.mxu0 %v1151_v34 }
 0x1b3   : > { %1097 = vmatpush3.msra.mxu0 %v751_v11 }
 0x1b4   : > { %1098 = vmatprep.subr.mxu0 %v1151_v34 }
 0x1b5   : > { %1099 = vmatpush3.msra.mxu0 %v750_v30 }
 0x1b6   : > { %1100 = vmatprep.subr.mxu0 %v1151_v34 }
 0x1b7   : > { %1101 = vmatpush3.msra.mxu0 %v749_v31 }
 0x1b8   : > { %1102 = vmatprep.subr.mxu0 %v1151_v34 }
 0x1b9   : > { %1103 = vmatpush3.msra.mxu0 %v748_v32 }
 0x1ba   : > { %1104 = vmatprep.subr.mxu0 %v1151_v34 }
 0x1bb   : > { %1105 = vmatpush3.msra.mxu0 %v747_v33 }
 0x1bc   : > { %1106 = vmatprep.subr.mxu0 %v1151_v34 }
 0x1bd   : > { %1107 = vmatpush3.msra.mxu0 %v746_v35 }
 0x1be   : > { %1108 = vmatprep.subr.mxu0 %v1151_v34 }
 0x1bf   : > { %1109 = vmatpush3.msra.mxu0 %v745_v36 }
 0x1c0   : > { %1110 = vmatprep.subr.mxu0 %v1151_v34 }
 0x1c1   : > { %1111 = vmatpush3.msra.mxu0 %v744_v37 }
 0x1c2   : > { %1112 = vmatprep.subr.mxu0 %v1151_v34  ;;  %v759_v34 = vld [vmem:[%s1544_s9] sm:$0x1] }
 0x1c3   : > { %1113 = vmatpush3.msra.mxu0 %v743_v38 }
 0x264   : > { %v638_v16 = vpop.f32.mrf.mxu0 }
 0x265   : > { %v639_v17 = vadd.f32 %v638_v16, %v571_v15 }
 0x266   : > { %v1046_v18 = vpop.f32.mrf.mxu0 }
 0x267   : > { %v876_v19 = vmul.f32 -1.442695, %v639_v17 }
 0x269   : > { %1130 = vpow2.f32 %v876_v19 }
 0x276   : > { %v1131_v20 = vpop.eup %1130 }
 0x277   : > { %v645_v21 = vadd.f32 1.0, %v1131_v20 }
 0x279   : > { %1132 = vrcp.f32 %v645_v21 }
 0x286   : > { %v1133_v22 = vpop.eup %1132 }
 0x287   : > { %v648_v23 = vmul.f32 %v1133_v22, %v639_v17 }
 0x289   : > { %1080 = vmatmul.mubr.f32.vlgmr.msra.gmra.mxu1 %v648_v23 }
 0x349   : > { %v732_v40 = vpop.f32.mrf.mxu1 }
 0x34a   : > { %v733_v41 = vadd.f32 %v732_v40, %v665_v39 }
 0x34b   : > { %v1081_v42 = vpop.f32.mrf.mxu1 }
 0x34c   : > { %v877_v43 = vmul.f32 -1.442695, %v733_v41 }
 0x34e   : > { %1134 = vpow2.f32 %v877_v43 }
 0x35b   : > { %v1135_v44 = vpop.eup %1134 }
 0x35c   : > { %v739_v45 = vadd.f32 1.0, %v1135_v44 }
 0x35e   : > { %1136 = vrcp.f32 %v739_v45 }
 0x36b   : > { %v1137_v46 = vpop.eup %1136 }
 0x36c   : > { %v742_v47 = vmul.f32 %v1137_v46, %v733_v41 }
 0x36e   : > { %1115 = vmatmul.mubr.f32.vlgmr.msra.gmra.mxu0 %v742_v47 }
 0x42e   : > { %v826_v48 = vpop.f32.mrf.mxu0 }
 0x42f   : > { %v827_v49 = vadd.f32 %v826_v48, %v759_v34 }
 0x430   : > { %v1116_v50 = vpop.f32.mrf.mxu0 }
 0x431   : > { %v878_v51 = vmul.f32 -1.442695, %v827_v49 }
 0x433   : > { %1138 = vpow2.f32 %v878_v51 }
 0x440   : > { %v1139_v52 = vpop.eup %1138 }
 0x441   : > { %v833_v53 = vadd.f32 1.0, %v1139_v52 }
 0x443   : > { %1140 = vrcp.f32 %v833_v53 }
 0x450   : > { %v1141_v54 = vpop.eup %1140 }
 0x451   : > { %v836_v55 = vmul.f32 2.0, %v1141_v54 }
 0x453   : > { %837 = vst [vmem:[%s1545_s10] sm:$0x1] %v836_v55 }
 0x454 PF: > { %s20_s13 = sadd.s32 1, %s1148_s13  }
 0x455   : > { %p17_p6 = scmp.ge.s32.totalorder %s20_s13, 4  }
 0x457   :  { %19 = sbr.rel (!%p17_p6) target bundleno = 1 (0x1), region = 94 }

// kernel: basic_block_rn12_forward.8
= control target key start
LH: loop header
LB: loop body
LE: loop exit
PB: predicated region body
PF: predicated region fallthrough
CT: control target
= control target key end

     0   :  { %s1304_s13 = smov 0   ;;  %s1631_s0 = inlined_call_operand.vmem [shape: bf16[2,256,128], index: 0, kind: input, shape index: {}]   ;;  %s1632_s1 = inlined_call_operand.vmem [shape: f32[1,128], index: 1, kind: input, shape index: {}]   ;;  %s1633_s2 = inlined_call_operand.vmem [shape: f32[1,128], index: 2, kind: input, shape index: {}]   ;;  %s1634_s3 = inlined_call_operand.vmem [shape: f32[1,128], index: 3, kind: input, shape index: {}]   ;;  %s1635_s4 = inlined_call_operand.vmem [shape: f32[128,128], index: 4, kind: input, shape index: {}]   ;;  %s1636_s5 = inlined_call_operand.vmem [shape: f32[1,128], index: 5, kind: input, shape index: {}]   ;;  %s1637_s6 = inlined_call_operand.vmem [shape: f32[128,128], index: 6, kind: input, shape index: {}]   ;;  %s1638_s7 = inlined_call_operand.vmem [shape: f32[1,128], index: 7, kind: input, shape index: {}]   ;;  %s1639_s8 = inlined_call_operand.vmem [shape: f32[128,128], index: 8, kind: input, shape index: {}]   ;;  %s1640_s9 = inlined_call_operand.vmem [shape: f32[1,128], index: 9, kind: input, shape index: {}]   ;;  %s1641_s10 = inlined_call_operand.vmem [shape: f32[1,128], index: 10, kind: output, shape index: {}]  }
   0x1 LB: > { %s1310_s14 = sadd.s32 4294967295, %s1244_s13   ;;  %p965_p0 = scmp.ge.s32.totalorder %s1244_s13, 1  ;;  %s1244_s13 = sphi %s1304_s13, %s20_s13  }
   0x2   : > { %p307_p1 = scmp.lt.s32.totalorder %s1244_s13, 3 }
   0x4   : > { %p308_p2 = pnand %p965_p0, %p307_p1 }
   0x5   : > { %p340_p3 = scmp.lt.s32.totalorder (!%p308_p2), %s1310_s14, 1  ;;  %p968_p4 = scmp.ne.s32.totalorder (!%p308_p2), %s1310_s14, 0 }
   0x6   : > { %311 = sbr.rel (%p308_p2) target bundleno = 1112 (0x458), region = 60 }
   0xb   : > { %s341_s15 = scalar_select %p340_p3, %s1310_s14, 1 }
   0xc   : > { %348 = sbr.rel (%p968_p4) target bundleno = 19 (0x13), region = 64 }
   0xd   : > { %s977_s16 = sshll.u32 %s341_s15, 7 }
   0xe   : > { %s1319_s19 = scalar_lea.vmem %s1631_s0, %s977_s16 }
  0x11   : > { %v1246_v0 = vmov 0.0  }
  0x12   : > { %349 = vst [vmem:[#allocation2] sm:$0x1] %v1246_v0 }
  0x13 PF: > { %v979_v1 = vld [vmem:[%s1319_s19] sm:$0xff]   ;;  %v1042_v2 = vld [vmem:[%s1319_s19 + $0x8] sm:$0xff]   ;;  %v1043_v7 = vld [vmem:[%s1319_s19 + $0x10] sm:$0xff]   ;;  %p971_p5 = scmp.ne.s32.totalorder %s1310_s14, 1 }
  0x14   : > { %v980_v3 = vunpack.c.l.bf16 %v979_v1  ;;  %v981_v4 = vunpack.c.h.bf16 %v979_v1  ;;  %v1327_v5 = vld [vmem:[%s1632_s1] ss:$0 sm:$0xff]  ;;  %v984_v6 = vunpack.c.l.bf16 %v1042_v2  ;;  %v985_v8 = vunpack.c.h.bf16 %v1042_v2  ;;  %v1044_v14 = vld [vmem:[%s1319_s19 + $0x18] sm:$0xff]   ;;  %v1046_v29 = vld [vmem:[%s1319_s19 + $0x28] sm:$0xff]  }
  0x15   : > { %v1335_v11 = vld [vmem:[%s1633_s2] ss:$0 sm:$0xff]  ;;  %v988_v12 = vunpack.c.l.bf16 %v1043_v7  ;;  %v989_v15 = vunpack.c.h.bf16 %v1043_v7  ;;  %v992_v19 = vunpack.c.l.bf16 %v1044_v14  ;;  %v993_v22 = vunpack.c.h.bf16 %v1044_v14  ;;  %v1047_v40 = vld [vmem:[%s1319_s19 + $0x30] sm:$0xff]   ;;  %v1048_v53 = vld [vmem:[%s1319_s19 + $0x38] sm:$0xff]  }
  0x16   : > { %v421_v9 = vmul.f32 %v980_v3, %v1327_v5  ;;  %v422_v10 = vmul.f32 %v981_v4, %v1327_v5  ;;  %v423_v13 = vmul.f32 %v984_v6, %v1327_v5  ;;  %v424_v16 = vmul.f32 %v985_v8, %v1327_v5  ;;  %v1045_v23 = vld [vmem:[%s1319_s19 + $0x20] sm:$0xff]  }
  0x17   : > { %v425_v20 = vmul.f32 %v988_v12, %v1327_v5  ;;  %v426_v24 = vmul.f32 %v989_v15, %v1327_v5  ;;  %v996_v28 = vunpack.c.l.bf16 %v1045_v23  ;;  %v427_v30 = vmul.f32 %v992_v19, %v1327_v5  ;;  %v1049_v2 = vld [vmem:[%s1319_s19 + $0x40] sm:$0xff]  }
  0x18   : > { %v460_v17 = vadd.f32 %v1335_v11, %v421_v9  ;;  %v461_v18 = vadd.f32 %v1335_v11, %v422_v10  ;;  %v462_v21 = vadd.f32 %v1335_v11, %v423_v13  ;;  %v463_v25 = vadd.f32 %v1335_v11, %v424_v16 }
  0x19   : > { %v464_v31 = vadd.f32 %v1335_v11, %v425_v20  ;;  %v997_v33 = vunpack.c.h.bf16 %v1045_v23  ;;  %v428_v34 = vmul.f32 %v993_v22, %v1327_v5  ;;  %v465_v35 = vadd.f32 %v1335_v11, %v426_v24 }
  0x1a   : > { %v524_v26 = vmul.f32 0.1, %v460_v17  ;;  %v525_v27 = vmul.f32 0.1, %v461_v18  ;;  %vm492_vm0 = vcmp.ge.f32.partialorder %v460_v17, 0.0  ;;  %vm493_vm1 = vcmp.ge.f32.partialorder %v461_v18, 0.0 }
  0x1b   : > { %v526_v32 = vmul.f32 0.1, %v462_v21  ;;  %vm494_vm2 = vcmp.ge.f32.partialorder %v462_v21, 0.0  ;;  %v527_v36 = vmul.f32 0.1, %v463_v25  ;;  %v1000_v39 = vunpack.c.l.bf16 %v1046_v29 }
  0x1c   : > { %v556_v37 = vsel %vm492_vm0, %v460_v17, %v524_v26  ;;  %v557_v38 = vsel %vm493_vm1, %v461_v18, %v525_v27  ;;  %vm495_vm3 = vcmp.ge.f32.partialorder %v463_v25, 0.0  ;;  %v429_v41 = vmul.f32 %v996_v28, %v1327_v5  ;;  %v1050_v17 = vld [vmem:[%s1319_s19 + $0x48] sm:$0xff]  }
  0x1d   : > { %v466_v42 = vadd.f32 %v1335_v11, %v427_v30  ;;  %v528_v43 = vmul.f32 0.1, %v464_v31  ;;  %v558_v44 = vsel %vm494_vm2, %v462_v21, %v526_v32  ;;  %v1001_v45 = vunpack.c.h.bf16 %v1046_v29  ;;  %v1051_v30 = vld [vmem:[%s1319_s19 + $0x50] sm:$0xff]  }
  0x1e   : > { %vm496_vm4 = vcmp.ge.f32.partialorder %v464_v31, 0.0  ;;  %v589_v46 = vadd.f32 %v557_v38, %v556_v37  ;;  %v430_v47 = vmul.f32 %v997_v33, %v1327_v5  ;;  %v467_v48 = vadd.f32 %v1335_v11, %v428_v34 }
  0x1f   : > { %v529_v49 = vmul.f32 0.1, %v465_v35  ;;  %v559_v50 = vsel %vm495_vm3, %v463_v25, %v527_v36  ;;  %v1004_v51 = vunpack.c.l.bf16 %v1047_v40  ;;  %vm497_vm5 = vcmp.ge.f32.partialorder %v465_v35, 0.0 }
  0x20   : > { %v590_v52 = vadd.f32 %v589_v46, %v558_v44  ;;  %v431_v54 = vmul.f32 %v1000_v39, %v1327_v5  ;;  %v468_v55 = vadd.f32 %v1335_v11, %v429_v41  ;;  %v530_v56 = vmul.f32 0.1, %v466_v42 }
  0x21   : > { %v560_v57 = vsel %vm496_vm4, %v464_v31, %v528_v43  ;;  %v1005_v58 = vunpack.c.h.bf16 %v1047_v40  ;;  %vm498_vm6 = vcmp.ge.f32.partialorder %v466_v42, 0.0  ;;  %v432_v60 = vmul.f32 %v1001_v45, %v1327_v5  ;;  %v1052_v43 = vld [vmem:[%s1319_s19 + $0x58] sm:$0xff]  }
  0x22   : > { %v591_v59 = vadd.f32 %v590_v52, %v559_v50  ;;  %v469_v61 = vadd.f32 %v1335_v11, %v430_v47  ;;  %v531_v62 = vmul.f32 0.1, %v467_v48  ;;  %v561_v63 = vsel %vm497_vm5, %v465_v35, %v529_v49 }
  0x23   : > { %v1008_v0 = vunpack.c.l.bf16 %v1048_v53  ;;  %vm499_vm7 = vcmp.ge.f32.partialorder %v467_v48, 0.0  ;;  %v433_v3 = vmul.f32 %v1004_v51, %v1327_v5  ;;  %v470_v4 = vadd.f32 %v1335_v11, %v431_v54 }
  0x24   : > { %v592_v1 = vadd.f32 %v591_v59, %v560_v57  ;;  %v532_v6 = vmul.f32 0.1, %v468_v55  ;;  %v562_v7 = vsel %vm498_vm6, %v466_v42, %v530_v56  ;;  %v1009_v8 = vunpack.c.h.bf16 %v1048_v53  ;;  %v1053_v56 = vld [vmem:[%s1319_s19 + $0x60] sm:$0xff]  }
  0x25   : > { %vm500_vm8 = vcmp.ge.f32.partialorder %v468_v55, 0.0  ;;  %v434_v10 = vmul.f32 %v1005_v58, %v1327_v5  ;;  %v471_v12 = vadd.f32 %v1335_v11, %v432_v60  ;;  %v533_v13 = vmul.f32 0.1, %v469_v61 }
  0x26   : > { %v593_v9 = vadd.f32 %v592_v1, %v561_v63  ;;  %v563_v14 = vsel %vm499_vm7, %v467_v48, %v531_v62  ;;  %v1012_v15 = vunpack.c.l.bf16 %v1049_v2  ;;  %vm501_vm9 = vcmp.ge.f32.partialorder %v469_v61, 0.0 }
  0x27   : > { %v435_v18 = vmul.f32 %v1008_v0, %v1327_v5  ;;  %v472_v19 = vadd.f32 %v1335_v11, %v433_v3  ;;  %v534_v20 = vmul.f32 0.1, %v470_v4  ;;  %v564_v21 = vsel %vm500_vm8, %v468_v55, %v532_v6  ;;  %v1054_v6 = vld [vmem:[%s1319_s19 + $0x68] sm:$0xff]  }
  0x28   : > { %v594_v16 = vadd.f32 %v593_v9, %v562_v7  ;;  %v1013_v22 = vunpack.c.h.bf16 %v1049_v2  ;;  %vm502_vm10 = vcmp.ge.f32.partialorder %v470_v4, 0.0  ;;  %v436_v24 = vmul.f32 %v1009_v8, %v1327_v5 }
  0x29   : > { %v473_v25 = vadd.f32 %v1335_v11, %v434_v10  ;;  %v535_v26 = vmul.f32 0.1, %v471_v12  ;;  %v565_v27 = vsel %vm501_vm9, %v469_v61, %v533_v13  ;;  %v1016_v28 = vunpack.c.l.bf16 %v1050_v17 }
  0x2a   : > { %v595_v23 = vadd.f32 %v594_v16, %v563_v14  ;;  %vm503_vm11 = vcmp.ge.f32.partialorder %v471_v12, 0.0  ;;  %v437_v31 = vmul.f32 %v1012_v15, %v1327_v5  ;;  %v474_v32 = vadd.f32 %v1335_v11, %v435_v18 }
  0x2b   : > { %v536_v33 = vmul.f32 0.1, %v472_v19  ;;  %v566_v34 = vsel %vm502_vm10, %v470_v4, %v534_v20  ;;  %v1017_v35 = vunpack.c.h.bf16 %v1050_v17  ;;  %vm504_vm12 = vcmp.ge.f32.partialorder %v472_v19, 0.0  ;;  %v1055_v20 = vld [vmem:[%s1319_s19 + $0x70] sm:$0xff]  }
  0x2c   : > { %v596_v29 = vadd.f32 %v595_v23, %v564_v21  ;;  %v438_v37 = vmul.f32 %v1013_v22, %v1327_v5  ;;  %v475_v38 = vadd.f32 %v1335_v11, %v436_v24  ;;  %v537_v39 = vmul.f32 0.1, %v473_v25 }
  0x2d   : > { %v567_v40 = vsel %vm503_vm11, %v471_v12, %v535_v26  ;;  %v1020_v41 = vunpack.c.l.bf16 %v1051_v30  ;;  %vm505_vm13 = vcmp.ge.f32.partialorder %v473_v25, 0.0  ;;  %v439_v44 = vmul.f32 %v1016_v28, %v1327_v5 }
  0x2e   : > { %v597_v36 = vadd.f32 %v596_v29, %v565_v27  ;;  %v476_v45 = vadd.f32 %v1335_v11, %v437_v31  ;;  %v538_v46 = vmul.f32 0.1, %v474_v32  ;;  %v568_v47 = vsel %vm504_vm12, %v472_v19, %v536_v33  ;;  %v1056_v33 = vld [vmem:[%s1319_s19 + $0x78] sm:$0xff]  }
  0x2f   : > { %v1021_v48 = vunpack.c.h.bf16 %v1051_v30  ;;  %vm506_vm14 = vcmp.ge.f32.partialorder %v474_v32, 0.0  ;;  %v440_v50 = vmul.f32 %v1017_v35, %v1327_v5  ;;  %v477_v51 = vadd.f32 %v1335_v11, %v438_v37 }
  0x30   : > { %v598_v42 = vadd.f32 %v597_v36, %v566_v34  ;;  %v539_v52 = vmul.f32 0.1, %v475_v38  ;;  %v569_v53 = vsel %vm505_vm13, %v473_v25, %v537_v39  ;;  %v1024_v54 = vunpack.c.l.bf16 %v1052_v43 }
  0x31   : > { %vm507_vm15 = vcmp.ge.f32.partialorder %v475_v38, 0.0  ;;  %v441_v57 = vmul.f32 %v1020_v41, %v1327_v5  ;;  %v478_v58 = vadd.f32 %v1335_v11, %v439_v44  ;;  %v540_v59 = vmul.f32 0.1, %v476_v45 }
  0x32   : > { %v599_v49 = vadd.f32 %v598_v42, %v567_v40  ;;  %v570_v60 = vsel %vm506_vm14, %v474_v32, %v538_v46  ;;  %v1025_v61 = vunpack.c.h.bf16 %v1052_v43  ;;  %vm508_vm0 = vcmp.ge.f32.partialorder %v476_v45, 0.0 }
  0x33   : > { %v442_v63 = vmul.f32 %v1021_v48, %v1327_v5  ;;  %v479_v0 = vadd.f32 %v1335_v11, %v440_v50  ;;  %v541_v1 = vmul.f32 0.1, %v477_v51  ;;  %v571_v2 = vsel %vm507_vm15, %v475_v38, %v539_v52 }
  0x34   : > { %v600_v55 = vadd.f32 %v599_v49, %v568_v47  ;;  %v1028_v3 = vunpack.c.l.bf16 %v1053_v56  ;;  %vm509_vm1 = vcmp.ge.f32.partialorder %v477_v51, 0.0  ;;  %v443_v7 = vmul.f32 %v1024_v54, %v1327_v5 }
  0x35   : > { %v480_v8 = vadd.f32 %v1335_v11, %v441_v57  ;;  %v542_v9 = vmul.f32 0.1, %v478_v58  ;;  %v572_v10 = vsel %vm508_vm0, %v476_v45, %v540_v59  ;;  %v1029_v12 = vunpack.c.h.bf16 %v1053_v56 }
  0x36   : > { %v601_v62 = vadd.f32 %v600_v55, %v569_v53  ;;  %vm510_vm2 = vcmp.ge.f32.partialorder %v478_v58, 0.0  ;;  %v444_v14 = vmul.f32 %v1025_v61, %v1327_v5  ;;  %v481_v15 = vadd.f32 %v1335_v11, %v442_v63 }
  0x37   : > { %v543_v16 = vmul.f32 0.1, %v479_v0  ;;  %v573_v17 = vsel %vm509_vm1, %v477_v51, %v541_v1  ;;  %v1032_v18 = vunpack.c.l.bf16 %v1054_v6  ;;  %vm511_vm3 = vcmp.ge.f32.partialorder %v479_v0, 0.0 }
  0x38   : > { %v602_v4 = vadd.f32 %v601_v62, %v570_v60  ;;  %v445_v21 = vmul.f32 %v1028_v3, %v1327_v5  ;;  %v482_v22 = vadd.f32 %v1335_v11, %v443_v7  ;;  %v544_v23 = vmul.f32 0.1, %v480_v8 }
  0x39   : > { %v574_v24 = vsel %vm510_vm2, %v478_v58, %v542_v9  ;;  %v1033_v25 = vunpack.c.h.bf16 %v1054_v6  ;;  %vm512_vm4 = vcmp.ge.f32.partialorder %v480_v8, 0.0  ;;  %v446_v27 = vmul.f32 %v1029_v12, %v1327_v5 }
  0x3a   : > { %v603_v13 = vadd.f32 %v602_v4, %v571_v2  ;;  %v483_v28 = vadd.f32 %v1335_v11, %v444_v14  ;;  %v545_v29 = vmul.f32 0.1, %v481_v15  ;;  %v575_v30 = vsel %vm511_vm3, %v479_v0, %v543_v16 }
  0x3b   : > { %v1036_v31 = vunpack.c.l.bf16 %v1055_v20  ;;  %vm513_vm5 = vcmp.ge.f32.partialorder %v481_v15, 0.0  ;;  %v447_v34 = vmul.f32 %v1032_v18, %v1327_v5  ;;  %v484_v35 = vadd.f32 %v1335_v11, %v445_v21 }
  0x3c   : > { %v604_v19 = vadd.f32 %v603_v13, %v572_v10  ;;  %v546_v36 = vmul.f32 0.1, %v482_v22  ;;  %v576_v37 = vsel %vm512_vm4, %v480_v8, %v544_v23  ;;  %v1037_v38 = vunpack.c.h.bf16 %v1055_v20 }
  0x3d   : > { %vm514_vm6 = vcmp.ge.f32.partialorder %v482_v22, 0.0  ;;  %v448_v40 = vmul.f32 %v1033_v25, %v1327_v5  ;;  %v485_v41 = vadd.f32 %v1335_v11, %v446_v27  ;;  %v547_v42 = vmul.f32 0.1, %v483_v28  ;;  %v588_v27 = vld [vmem:[#allocation2] sm:$0x1] }
  0x3e   : > { %v605_v26 = vadd.f32 %v604_v19, %v573_v17  ;;  %v577_v43 = vsel %vm513_vm5, %v481_v15, %v545_v29  ;;  %v1040_v44 = vunpack.c.l.bf16 %v1056_v33  ;;  %vm515_vm7 = vcmp.ge.f32.partialorder %v483_v28, 0.0 }
  0x3f   : > { %v449_v46 = vmul.f32 %v1036_v31, %v1327_v5  ;;  %v486_v47 = vadd.f32 %v1335_v11, %v447_v34  ;;  %v548_v48 = vmul.f32 0.1, %v484_v35  ;;  %v578_v49 = vsel %vm514_vm6, %v482_v22, %v546_v36 }
  0x40   : > { %v606_v32 = vadd.f32 %v605_v26, %v574_v24  ;;  %v1041_v50 = vunpack.c.h.bf16 %v1056_v33  ;;  %vm516_vm8 = vcmp.ge.f32.partialorder %v484_v35, 0.0  ;;  %v450_v52 = vmul.f32 %v1037_v38, %v1327_v5 }
  0x41   : > { %v487_v53 = vadd.f32 %v1335_v11, %v448_v40  ;;  %v549_v54 = vmul.f32 0.1, %v485_v41  ;;  %v579_v55 = vsel %vm515_vm7, %v483_v28, %v547_v42  ;;  %vm517_vm9 = vcmp.ge.f32.partialorder %v485_v41, 0.0 }
  0x42   : > { %v607_v39 = vadd.f32 %v606_v32, %v575_v30  ;;  %v451_v57 = vmul.f32 %v1040_v44, %v1327_v5  ;;  %v488_v58 = vadd.f32 %v1335_v11, %v449_v46  ;;  %v550_v59 = vmul.f32 0.1, %v486_v47 }
  0x43   : > { %v580_v60 = vsel %vm516_vm8, %v484_v35, %v548_v48  ;;  %vm518_vm10 = vcmp.ge.f32.partialorder %v486_v47, 0.0  ;;  %v452_v62 = vmul.f32 %v1041_v50, %v1327_v5  ;;  %v489_v63 = vadd.f32 %v1335_v11, %v450_v52 }
  0x44   : > { %v608_v45 = vadd.f32 %v607_v39, %v576_v37  ;;  %v551_v0 = vmul.f32 0.1, %v487_v53  ;;  %v581_v1 = vsel %vm517_vm9, %v485_v41, %v549_v54  ;;  %vm519_vm11 = vcmp.ge.f32.partialorder %v487_v53, 0.0 }
  0x45   : > { %v490_v3 = vadd.f32 %v1335_v11, %v451_v57  ;;  %v552_v4 = vmul.f32 0.1, %v488_v58  ;;  %v582_v6 = vsel %vm518_vm10, %v486_v47, %v550_v59  ;;  %vm520_vm12 = vcmp.ge.f32.partialorder %v488_v58, 0.0 }
  0x46   : > { %v609_v51 = vadd.f32 %v608_v45, %v577_v43  ;;  %v491_v8 = vadd.f32 %v1335_v11, %v452_v62  ;;  %v553_v9 = vmul.f32 0.1, %v489_v63  ;;  %v583_v10 = vsel %vm519_vm11, %v487_v53, %v551_v0 }
  0x47   : > { %vm521_vm13 = vcmp.ge.f32.partialorder %v489_v63, 0.0  ;;  %v554_v13 = vmul.f32 0.1, %v490_v3  ;;  %v584_v5 = vsel %vm520_vm12, %v488_v58, %v552_v4  ;;  %vm522_vm14 = vcmp.ge.f32.partialorder %v490_v3, 0.0 }
  0x48   : > { %v610_v56 = vadd.f32 %v609_v51, %v578_v49  ;;  %v555_v15 = vmul.f32 0.1, %v491_v8  ;;  %v585_v16 = vsel %vm521_vm13, %v489_v63, %v553_v9  ;;  %vm523_vm15 = vcmp.ge.f32.partialorder %v491_v8, 0.0 }
  0x49   : > { %v586_v18 = vsel %vm522_vm14, %v490_v3, %v554_v13 }
  0x4a   : > { %v611_v61 = vadd.f32 %v610_v56, %v579_v55  ;;  %v587_v20 = vsel %vm523_vm15, %v491_v8, %v555_v15 }
  0x4c   : > { %v612_v2 = vadd.f32 %v611_v61, %v580_v60 }
  0x4e   : > { %v613_v7 = vadd.f32 %v612_v2, %v581_v1 }
  0x50   : > { %v614_v12 = vadd.f32 %v613_v7, %v582_v6 }
  0x52   : > { %v615_v14 = vadd.f32 %v614_v12, %v583_v10 }
  0x54   : > { %v616_v17 = vadd.f32 %v615_v14, %v584_v5 }
  0x56   : > { %v617_v19 = vadd.f32 %v616_v17, %v585_v16 }
  0x58   : > { %v618_v21 = vadd.f32 %v617_v19, %v586_v18 }
  0x5a   : > { %v619_v22 = vadd.f32 %v618_v21, %v587_v20 }
  0x5c   : > { %v620_v23 = vrot.slane %v619_v22, 4 }
  0x5e   : > { %v621_v24 = vadd.f32 %v620_v23, %v619_v22 }
  0x60   : > { %v622_v11 = vrot.slane %v621_v24, 2 }
  0x62   : > { %v623_v25 = vadd.f32 %v622_v11, %v621_v24 }
  0x64   : > { %v624_v26 = vrot.slane %v623_v25, 1 }
  0x66   : > { %v625_v28 = vadd.f32 %v624_v26, %v623_v25  ;;  %631 = sbr.rel (%p971_p5) target bundleno = 1112 (0x458), region = 68 }
  0x68   : > { %v626_v29 = vadd.f32 %v625_v28, %v588_v27 }
  0x6a   : > { %627 = vst [vmem:[#allocation2] sm:$0x1] %v626_v29 }
  0x6b   : > { %v632_v30 = vld [vmem:[%s1634_s3] sm:$0x1]  ;;  %vm636_vm0 = vcmask 1040384   ;;  %v666_v35 = vld [vmem:[%s1635_s4 + $0x78] sm:$0xff]  ;;  %v1247_v36 = vmov 0.0   ;;  %v665_v37 = vld [vmem:[%s1635_s4 + $0x70] sm:$0xff] }
  0x6c   : > { %1108 = vmatprep.subr.mxu0 %v1247_v36  ;;  %1143 = vmatprep.subr.mxu1 %v1247_v36  ;;  %v664_v38 = vld [vmem:[%s1635_s4 + $0x68] sm:$0xff]  ;;  %v663_v39 = vld [vmem:[%s1635_s4 + $0x60] sm:$0xff]  ;;  %v662_v40 = vld [vmem:[%s1635_s4 + $0x58] sm:$0xff]  ;;  %vm1248_vm1 = vmmov 0  }
  0x6d   : > { %1109 = vmatpush3.msra.mxu0 %v666_v35  ;;  %v661_v41 = vld [vmem:[%s1635_s4 + $0x50] sm:$0xff]  ;;  %v660_v48 = vld [vmem:[%s1635_s4 + $0x48] sm:$0xff]  ;;  %v659_v49 = vld [vmem:[%s1635_s4 + $0x40] sm:$0xff]  ;;  %1140 = vmatprep.mubr.msk.f32.mxu0 %vm1248_vm1, %v1247_v36 }
  0x6e   : > { %1110 = vmatprep.subr.mxu0 %v1247_v36  ;;  %v658_v50 = vld [vmem:[%s1635_s4 + $0x38] sm:$0xff]  ;;  %v657_v51 = vld [vmem:[%s1635_s4 + $0x30] sm:$0xff]  ;;  %v656_v52 = vld [vmem:[%s1635_s4 + $0x28] sm:$0xff]  ;;  %1175 = vmatprep.mubr.msk.f32.mxu1 %vm1248_vm1, %v1247_v36 }
  0x6f   : > { %1111 = vmatpush3.msra.mxu0 %v665_v37  ;;  %v655_v53 = vld [vmem:[%s1635_s4 + $0x20] sm:$0xff]  ;;  %v654_v54 = vld [vmem:[%s1635_s4 + $0x18] sm:$0xff]  ;;  %v653_v55 = vld [vmem:[%s1635_s4 + $0x10] sm:$0xff] }
  0x70   : > { %1112 = vmatprep.subr.mxu0 %v1247_v36  ;;  %v652_v56 = vld [vmem:[%s1635_s4 + $0x8] sm:$0xff]  ;;  %v651_v57 = vld [vmem:[%s1635_s4] sm:$0xff]  ;;  %v760_v63 = vld [vmem:[%s1637_s6 + $0x78] sm:$0xff] }
  0x71   : > { %v633_v31 = vld [vmem:[#allocation2] sm:$0x1]  ;;  %1113 = vmatpush3.msra.mxu0 %v664_v38  ;;  %1144 = vmatpush3.msra.mxu1 %v760_v63  ;;  %v759_v0 = vld [vmem:[%s1637_s6 + $0x70] sm:$0xff]  ;;  %v758_v1 = vld [vmem:[%s1637_s6 + $0x68] sm:$0xff] }
  0x72   : > { %v634_v32 = vmul.f32 0.001953125, %v633_v31  ;;  %1114 = vmatprep.subr.mxu0 %v1247_v36  ;;  %1145 = vmatprep.subr.mxu1 %v1247_v36  ;;  %v757_v2 = vld [vmem:[%s1637_s6 + $0x60] sm:$0xff]  ;;  %v756_v3 = vld [vmem:[%s1637_s6 + $0x58] sm:$0xff]  ;;  %v755_v4 = vld [vmem:[%s1637_s6 + $0x50] sm:$0xff] }
  0x73   : > { %1115 = vmatpush3.msra.mxu0 %v663_v39  ;;  %1146 = vmatpush3.msra.mxu1 %v759_v0  ;;  %v754_v6 = vld [vmem:[%s1637_s6 + $0x48] sm:$0xff]  ;;  %v753_v7 = vld [vmem:[%s1637_s6 + $0x40] sm:$0xff]  ;;  %v752_v8 = vld [vmem:[%s1637_s6 + $0x38] sm:$0xff] }
  0x74   : > { %v635_v33 = vmul.f32 %v634_v32, %v632_v30  ;;  %1116 = vmatprep.subr.mxu0 %v1247_v36  ;;  %1147 = vmatprep.subr.mxu1 %v1247_v36  ;;  %v751_v9 = vld [vmem:[%s1637_s6 + $0x30] sm:$0xff]  ;;  %v750_v10 = vld [vmem:[%s1637_s6 + $0x28] sm:$0xff]  ;;  %v749_v12 = vld [vmem:[%s1637_s6 + $0x20] sm:$0xff] }
  0x75   : > { %1117 = vmatpush3.msra.mxu0 %v662_v40  ;;  %1148 = vmatpush3.msra.mxu1 %v758_v1  ;;  %v748_v13 = vld [vmem:[%s1637_s6 + $0x18] sm:$0xff]  ;;  %v747_v5 = vld [vmem:[%s1637_s6 + $0x10] sm:$0xff]  ;;  %v746_v14 = vld [vmem:[%s1637_s6 + $0x8] sm:$0xff] }
  0x76   : > { %v637_v34 = vsel %vm636_vm0, %v635_v33, 0.0  ;;  %1118 = vmatprep.subr.mxu0 %v1247_v36  ;;  %1149 = vmatprep.subr.mxu1 %v1247_v36  ;;  %v745_v15 = vld [vmem:[%s1637_s6] sm:$0xff]  ;;  %v854_v11 = vld [vmem:[%s1639_s8 + $0x78] sm:$0xff]  ;;  %v853_v25 = vld [vmem:[%s1639_s8 + $0x70] sm:$0xff] }
  0x77   : > { %638 = vadd.xlane.f32.xlu0 %v637_v34  ;;  %1119 = vmatpush3.msra.mxu0 %v661_v41  ;;  %v667_v16 = vld [vmem:[%s1636_s5] sm:$0x1]  ;;  %v852_v26 = vld [vmem:[%s1639_s8 + $0x68] sm:$0xff]  ;;  %v850_v28 = vld [vmem:[%s1639_s8 + $0x58] sm:$0xff] }
  0x78   : > { %1120 = vmatprep.subr.mxu0 %v1247_v36  ;;  %1150 = vmatpush3.msra.mxu1 %v757_v2  ;;  %v851_v27 = vld [vmem:[%s1639_s8 + $0x60] sm:$0xff]  ;;  %v849_v29 = vld [vmem:[%s1639_s8 + $0x50] sm:$0xff]  ;;  %v844_v34 = vld [vmem:[%s1639_s8 + $0x28] sm:$0xff] }
  0x79   : > { %1121 = vmatpush3.msra.mxu0 %v660_v48  ;;  %1151 = vmatprep.subr.mxu1 %v1247_v36  ;;  %v847_v31 = vld [vmem:[%s1639_s8 + $0x40] sm:$0xff]  ;;  %v845_v33 = vld [vmem:[%s1639_s8 + $0x30] sm:$0xff]  ;;  %v842_v37 = vld [vmem:[%s1639_s8 + $0x18] sm:$0xff] }
  0x7a   : > { %1122 = vmatprep.subr.mxu0 %v1247_v36  ;;  %1152 = vmatpush3.msra.mxu1 %v756_v3  ;;  %v843_v35 = vld [vmem:[%s1639_s8 + $0x20] sm:$0xff]  ;;  %v841_v38 = vld [vmem:[%s1639_s8 + $0x10] sm:$0xff]  ;;  %v840_v39 = vld [vmem:[%s1639_s8 + $0x8] sm:$0xff] }
  0x7b   : > { %1123 = vmatpush3.msra.mxu0 %v659_v49  ;;  %1153 = vmatprep.subr.mxu1 %v1247_v36  ;;  %v839_v40 = vld [vmem:[%s1639_s8] sm:$0xff] }
  0x7c   : > { %1124 = vmatprep.subr.mxu0 %v1247_v36  ;;  %1154 = vmatpush3.msra.mxu1 %v755_v4  ;;  %v761_v41 = vld [vmem:[%s1638_s7] sm:$0x1] }
  0x7d   : > { %1125 = vmatpush3.msra.mxu0 %v658_v50  ;;  %1155 = vmatprep.subr.mxu1 %v1247_v36 }
  0x7e   : > { %1126 = vmatprep.subr.mxu0 %v1247_v36  ;;  %1156 = vmatpush3.msra.mxu1 %v754_v6 }
  0x7f   : > { %1127 = vmatpush3.msra.mxu0 %v657_v51  ;;  %1157 = vmatprep.subr.mxu1 %v1247_v36 }
  0x80   : > { %1128 = vmatprep.subr.mxu0 %v1247_v36  ;;  %1158 = vmatpush3.msra.mxu1 %v753_v7 }
  0x81   : > { %1129 = vmatpush3.msra.mxu0 %v656_v52  ;;  %1159 = vmatprep.subr.mxu1 %v1247_v36 }
  0x82   : > { %1130 = vmatprep.subr.mxu0 %v1247_v36  ;;  %1160 = vmatpush3.msra.mxu1 %v752_v8 }
  0x83   : > { %1131 = vmatpush3.msra.mxu0 %v655_v53  ;;  %1161 = vmatprep.subr.mxu1 %v1247_v36 }
  0x84   : > { %1132 = vmatprep.subr.mxu0 %v1247_v36  ;;  %1162 = vmatpush3.msra.mxu1 %v751_v9 }
  0x85   : > { %1133 = vmatpush3.msra.mxu0 %v654_v54  ;;  %1163 = vmatprep.subr.mxu1 %v1247_v36 }
  0x86   : > { %1134 = vmatprep.subr.mxu0 %v1247_v36  ;;  %1164 = vmatpush3.msra.mxu1 %v750_v10 }
  0x87   : > { %1135 = vmatpush3.msra.mxu0 %v653_v55  ;;  %1165 = vmatprep.subr.mxu1 %v1247_v36 }
  0x88   : > { %1136 = vmatprep.subr.mxu0 %v1247_v36  ;;  %1166 = vmatpush3.msra.mxu1 %v749_v12 }
  0x89   : > { %1137 = vmatpush3.msra.mxu0 %v652_v56  ;;  %1167 = vmatprep.subr.mxu1 %v1247_v36 }
  0x8a   : > { %1138 = vmatprep.subr.mxu0 %v1247_v36  ;;  %1168 = vmatpush3.msra.mxu1 %v748_v13 }
  0x8b   : > { %1139 = vmatpush3.msra.mxu0 %v651_v57  ;;  %1169 = vmatprep.subr.mxu1 %v1247_v36 }
  0x8c   : > { %1178 = vmatprep.subr.mxu0 %v1247_v36  ;;  %1170 = vmatpush3.msra.mxu1 %v747_v5 }
  0x8d   : > { %1171 = vmatprep.subr.mxu1 %v1247_v36 }
  0x8e   : > { %1172 = vmatpush3.msra.mxu1 %v746_v14 }
  0x8f   : > { %1173 = vmatprep.subr.mxu1 %v1247_v36 }
  0x90   : > { %1174 = vmatpush3.msra.mxu1 %v745_v15 }
 0x100   : > { %v639_v42 = vpop.xlane.xlu0 %638 }
 0x101   : > { %v640_v43 = vmul.f32 0.125, %v639_v42 }
 0x103   : > { %v641_v44 = vsub.f32 %v634_v32, %v640_v43  ;;  %v846_v32 = vld [vmem:[%s1639_s8 + $0x38] sm:$0xff] }
 0x105   : > { %v642_v45 = vmul.f32 %v641_v44, %v632_v30  ;;  %v848_v30 = vld [vmem:[%s1639_s8 + $0x48] sm:$0xff] }
 0x107   : > { %v643_v46 = vmul.f32 %v642_v45, %v642_v45 }
 0x109   : > { %v644_v47 = vsel %vm636_vm0, %v643_v46, 0.0 }
 0x10a   : > { %645 = vadd.xlane.f32.xlu0 %v644_v47 }
 0x193   : > { %v646_v58 = vpop.xlane.xlu0 %645 }
 0x194   : > { %v647_v59 = vmul.f32 0.125, %v646_v58 }
 0x196   : > { %v648_v60 = vadd.f32 1e-05, %v647_v59 }
 0x198   : > { %1224 = vrsqrt.f32 %v648_v60 }
 0x1a5   : > { %v1225_v61 = vpop.eup %1224 }
 0x1a6   : > { %v650_v62 = vmul.f32 %v1225_v61, %v642_v45 }
 0x1a8   : > { %1141 = vmatmul.mubr.f32.vlgmr.msra.gmra.mxu0 %v650_v62 }
 0x1a9   : > { %1210 = vmatprep.mubr.msk.f32.mxu0 %vm1248_vm1, %v1247_v36  ;;  %1179 = vmatpush3.msra.mxu0 %v854_v11 }
 0x1aa   : > { %1180 = vmatprep.subr.mxu0 %v1247_v36 }
 0x1ab   : > { %1181 = vmatpush3.msra.mxu0 %v853_v25 }
 0x1ac   : > { %1182 = vmatprep.subr.mxu0 %v1247_v36 }
 0x1ad   : > { %1183 = vmatpush3.msra.mxu0 %v852_v26 }
 0x1ae   : > { %1184 = vmatprep.subr.mxu0 %v1247_v36 }
 0x1af   : > { %1185 = vmatpush3.msra.mxu0 %v851_v27 }
 0x1b0   : > { %1186 = vmatprep.subr.mxu0 %v1247_v36 }
 0x1b1   : > { %1187 = vmatpush3.msra.mxu0 %v850_v28 }
 0x1b2   : > { %1188 = vmatprep.subr.mxu0 %v1247_v36 }
 0x1b3   : > { %1189 = vmatpush3.msra.mxu0 %v849_v29 }
 0x1b4   : > { %1190 = vmatprep.subr.mxu0 %v1247_v36 }
 0x1b5   : > { %1191 = vmatpush3.msra.mxu0 %v848_v30 }
 0x1b6   : > { %1192 = vmatprep.subr.mxu0 %v1247_v36 }
 0x1b7   : > { %1193 = vmatpush3.msra.mxu0 %v847_v31 }
 0x1b8   : > { %1194 = vmatprep.subr.mxu0 %v1247_v36 }
 0x1b9   : > { %1195 = vmatpush3.msra.mxu0 %v846_v32 }
 0x1ba   : > { %1196 = vmatprep.subr.mxu0 %v1247_v36 }
 0x1bb   : > { %1197 = vmatpush3.msra.mxu0 %v845_v33 }
 0x1bc   : > { %1198 = vmatprep.subr.mxu0 %v1247_v36 }
 0x1bd   : > { %1199 = vmatpush3.msra.mxu0 %v844_v34 }
 0x1be   : > { %1200 = vmatprep.subr.mxu0 %v1247_v36 }
 0x1bf   : > { %1201 = vmatpush3.msra.mxu0 %v843_v35 }
 0x1c0   : > { %1202 = vmatprep.subr.mxu0 %v1247_v36 }
 0x1c1   : > { %1203 = vmatpush3.msra.mxu0 %v842_v37 }
 0x1c2   : > { %1204 = vmatprep.subr.mxu0 %v1247_v36 }
 0x1c3   : > { %1205 = vmatpush3.msra.mxu0 %v841_v38 }
 0x1c4   : > { %1206 = vmatprep.subr.mxu0 %v1247_v36 }
 0x1c5   : > { %1207 = vmatpush3.msra.mxu0 %v840_v39 }
 0x1c6   : > { %1208 = vmatprep.subr.mxu0 %v1247_v36  ;;  %v855_v36 = vld [vmem:[%s1640_s9] sm:$0x1] }
 0x1c7   : > { %1209 = vmatpush3.msra.mxu0 %v839_v40 }
 0x268   : > { %v734_v17 = vpop.f32.mrf.mxu0 }
 0x269   : > { %v735_v18 = vadd.f32 %v734_v17, %v667_v16 }
 0x26a   : > { %v1142_v19 = vpop.f32.mrf.mxu0 }
 0x26b   : > { %v972_v20 = vmul.f32 -1.442695, %v735_v18 }
 0x26d   : > { %1226 = vpow2.f32 %v972_v20 }
 0x27a   : > { %v1227_v21 = vpop.eup %1226 }
 0x27b   : > { %v741_v22 = vadd.f32 1.0, %v1227_v21 }
 0x27d   : > { %1228 = vrcp.f32 %v741_v22 }
 0x28a   : > { %v1229_v23 = vpop.eup %1228 }
 0x28b   : > { %v744_v24 = vmul.f32 %v1229_v23, %v735_v18 }
 0x28d   : > { %1176 = vmatmul.mubr.f32.vlgmr.msra.gmra.mxu1 %v744_v24 }
 0x34d   : > { %v828_v42 = vpop.f32.mrf.mxu1 }
 0x34e   : > { %v829_v43 = vadd.f32 %v828_v42, %v761_v41 }
 0x34f   : > { %v1177_v44 = vpop.f32.mrf.mxu1 }
 0x350   : > { %v973_v45 = vmul.f32 -1.442695, %v829_v43 }
 0x352   : > { %1230 = vpow2.f32 %v973_v45 }
 0x35f   : > { %v1231_v46 = vpop.eup %1230 }
 0x360   : > { %v835_v47 = vadd.f32 1.0, %v1231_v46 }
 0x362   : > { %1232 = vrcp.f32 %v835_v47 }
 0x36f   : > { %v1233_v48 = vpop.eup %1232 }
 0x370   : > { %v838_v49 = vmul.f32 %v1233_v48, %v829_v43 }
 0x372   : > { %1211 = vmatmul.mubr.f32.vlgmr.msra.gmra.mxu0 %v838_v49 }
 0x432   : > { %v922_v50 = vpop.f32.mrf.mxu0 }
 0x433   : > { %v923_v51 = vadd.f32 %v922_v50, %v855_v36 }
 0x434   : > { %v1212_v52 = vpop.f32.mrf.mxu0 }
 0x435   : > { %v974_v53 = vmul.f32 -1.442695, %v923_v51 }
 0x437   : > { %1234 = vpow2.f32 %v974_v53 }
 0x444   : > { %v1235_v54 = vpop.eup %1234 }
 0x445   : > { %v929_v55 = vadd.f32 1.0, %v1235_v54 }
 0x447   : > { %1236 = vrcp.f32 %v929_v55 }
 0x454   : > { %v1237_v56 = vpop.eup %1236 }
 0x455   : > { %v932_v57 = vmul.f32 2.0, %v1237_v56 }
 0x457   : > { %933 = vst [vmem:[%s1641_s10] sm:$0x1] %v932_v57 }
 0x458 PF: > { %s20_s13 = sadd.s32 1, %s1244_s13  }
 0x459   : > { %p17_p6 = scmp.ge.s32.totalorder %s20_s13, 4  }
 0x45b   :  { %19 = sbr.rel (!%p17_p6) target bundleno = 1 (0x1), region = 94 }

// kernel: basic_block_rn12_forward.13
= control target key start
LH: loop header
LB: loop body
LE: loop exit
PB: predicated region body
PF: predicated region fallthrough
CT: control target
= control target key end

     0   :  { %s916_s21 = smov 0   ;;  %s1158_s0 = inlined_call_operand.vmem [shape: bf16[2,256,128], index: 0, kind: input, shape index: {}]   ;;  %s1159_s1 = inlined_call_operand.vmem [shape: bf16[2,256,128], index: 1, kind: input, shape index: {}]   ;;  %s1160_s2 = inlined_call_operand.vmem [shape: f32[1,128], index: 2, kind: input, shape index: {}]   ;;  %s1161_s3 = inlined_call_operand.vmem [shape: f32[1,128], index: 3, kind: input, shape index: {}]   ;;  %s1162_s4 = inlined_call_operand.vmem [shape: f32[1,128], index: 4, kind: input, shape index: {}]   ;;  %s1163_s5 = inlined_call_operand.vmem [shape: f32[1,128], index: 5, kind: input, shape index: {}]   ;;  %s1164_s6 = inlined_call_operand.vmem [shape: f32[2,256,128], index: 6, kind: output, shape index: {}]  }
   0x1 LB: > { %s687_s22 = sadd.s32 4294967295, %s879_s21   ;;  %p691_p0 = scmp.ge.s32.totalorder %s879_s21, 1  ;;  %s879_s21 = sphi %s916_s21, %s16_s21  }
   0x2   : > { %p222_p1 = scmp.lt.s32.totalorder %s879_s21, 3 }
   0x4   : > { %p223_p2 = pnand %p691_p0, %p222_p1 }
   0x5   : > { %p257_p3 = scmp.lt.s32.totalorder (!%p223_p2), %s687_s22, 1 }
   0x6   : > { %226 = sbr.rel (%p223_p2) target bundleno = 77 (0x4d), region = 44 }
   0xb   : > { %s1166_s22 = smov (!%p257_p3, %s687_s22), 1  ;;  %v940_v0 = vld [vmem:[%s1160_s2] ss:$0 sm:$0xff] }
   0xc   : > { %s704_s23 = sshll.u32 %s1166_s22, 7  ;;  %v945_v1 = vld [vmem:[%s1162_s4] ss:$0 sm:$0xff]  ;;  %s706_s12 = sshll.u32 %s1166_s22, 8 }
   0xd   : > { %s930_s26 = scalar_lea.vmem %s1158_s0, %s704_s23  ;;  %s935_s29 = scalar_lea.vmem %s1159_s1, %s704_s23  ;;  %v954_v10 = vld [vmem:[%s1161_s3] ss:$0 sm:$0xff] }
   0xe   : > { %v708_v2 = vld [vmem:[%s930_s26] sm:$0xff]   ;;  %v835_v4 = vld [vmem:[%s930_s26 + $0x8] sm:$0xff]   ;;  %v836_v15 = vld [vmem:[%s930_s26 + $0x10] sm:$0xff]   ;;  %s983_s17 = scalar_lea.vmem %s1164_s6, %s706_s12 }
   0xf   : > { %v772_v3 = vld [vmem:[%s935_s29] sm:$0xff]   ;;  %v709_v5 = vunpack.c.l.bf16 %v708_v2  ;;  %v710_v7 = vunpack.c.h.bf16 %v708_v2  ;;  %v850_v9 = vld [vmem:[%s935_s29 + $0x8] sm:$0xff]   ;;  %v713_v11 = vunpack.c.l.bf16 %v835_v4  ;;  %v714_v13 = vunpack.c.h.bf16 %v835_v4  ;;  %v851_v16 = vld [vmem:[%s935_s29 + $0x10] sm:$0xff]  }
  0x10   : > { %v773_v6 = vunpack.c.l.bf16 %v772_v3  ;;  %v774_v8 = vunpack.c.h.bf16 %v772_v3  ;;  %v777_v12 = vunpack.c.l.bf16 %v850_v9  ;;  %v778_v14 = vunpack.c.h.bf16 %v850_v9  ;;  %v972_v29 = vld [vmem:[%s1163_s5] ss:$0 sm:$0xff]  ;;  %v837_v34 = vld [vmem:[%s930_s26 + $0x18] sm:$0xff]   ;;  %v839_v62 = vld [vmem:[%s930_s26 + $0x28] sm:$0xff]  }
  0x11   : > { %v407_v17 = vmul.f32 %v709_v5, %v940_v0  ;;  %v408_v19 = vmul.f32 %v710_v7, %v940_v0  ;;  %v409_v21 = vmul.f32 %v713_v11, %v940_v0  ;;  %v410_v23 = vmul.f32 %v714_v13, %v940_v0  ;;  %v852_v39 = vld [vmem:[%s935_s29 + $0x18] sm:$0xff]   ;;  %v838_v48 = vld [vmem:[%s930_s26 + $0x20] sm:$0xff]   ;;  %v854_v5 = vld [vmem:[%s935_s29 + $0x28] sm:$0xff]  }
  0x12   : > { %v485_v18 = vmul.f32 %v773_v6, %v945_v1  ;;  %v486_v20 = vmul.f32 %v774_v8, %v945_v1  ;;  %v487_v22 = vmul.f32 %v777_v12, %v945_v1  ;;  %v488_v24 = vmul.f32 %v778_v14, %v945_v1  ;;  %v853_v49 = vld [vmem:[%s935_s29 + $0x20] sm:$0xff]  }
  0x13   : > { %v446_v25 = vadd.f32 %v954_v10, %v407_v17  ;;  %v447_v26 = vadd.f32 %v954_v10, %v408_v19  ;;  %v717_v27 = vunpack.c.l.bf16 %v836_v15  ;;  %v781_v28 = vunpack.c.l.bf16 %v851_v16  ;;  %v840_v19 = vld [vmem:[%s930_s26 + $0x30] sm:$0xff]  }
  0x14   : > { %v448_v30 = vadd.f32 %v954_v10, %v409_v21  ;;  %v449_v31 = vadd.f32 %v954_v10, %v410_v23  ;;  %v718_v32 = vunpack.c.h.bf16 %v836_v15  ;;  %v782_v33 = vunpack.c.h.bf16 %v851_v16 }
  0x15   : > { %v517_v35 = vadd.f32 %v485_v18, %v446_v25  ;;  %v518_v36 = vadd.f32 %v486_v20, %v447_v26  ;;  %v411_v37 = vmul.f32 %v717_v27, %v940_v0  ;;  %v489_v38 = vmul.f32 %v781_v28, %v945_v1 }
  0x16   : > { %v519_v40 = vadd.f32 %v487_v22, %v448_v30  ;;  %v520_v41 = vadd.f32 %v488_v24, %v449_v31  ;;  %v412_v42 = vmul.f32 %v718_v32, %v940_v0  ;;  %v490_v43 = vmul.f32 %v782_v33, %v945_v1  ;;  %v855_v24 = vld [vmem:[%s935_s29 + $0x30] sm:$0xff]  }
  0x17   : > { %v556_v44 = vadd.f32 %v972_v29, %v517_v35  ;;  %v557_v45 = vadd.f32 %v972_v29, %v518_v36  ;;  %v450_v46 = vadd.f32 %v954_v10, %v411_v37  ;;  %v721_v47 = vunpack.c.l.bf16 %v837_v34 }
  0x18   : > { %v558_v50 = vadd.f32 %v972_v29, %v519_v40  ;;  %v559_v51 = vadd.f32 %v972_v29, %v520_v41  ;;  %v451_v52 = vadd.f32 %v954_v10, %v412_v42  ;;  %v785_v53 = vunpack.c.l.bf16 %v852_v39 }
  0x19   : > { %588 = vst [vmem:[%s983_s17] sm:$0xff] %v556_v44  ;;  %589 = vst [vmem:[%s983_s17 + $0x8] sm:$0xff] %v557_v45  ;;  %v521_v54 = vadd.f32 %v489_v38, %v450_v46  ;;  %v413_v55 = vmul.f32 %v721_v47, %v940_v0  ;;  %v722_v56 = vunpack.c.h.bf16 %v837_v34  ;;  %v786_v57 = vunpack.c.h.bf16 %v852_v39  ;;  %v841_v34 = vld [vmem:[%s930_s26 + $0x38] sm:$0xff]  }
  0x1a   : > { %590 = vst [vmem:[%s983_s17 + $0x10] sm:$0xff] %v558_v50  ;;  %591 = vst [vmem:[%s983_s17 + $0x18] sm:$0xff] %v559_v51  ;;  %v522_v58 = vadd.f32 %v490_v43, %v451_v52  ;;  %v491_v59 = vmul.f32 %v785_v53, %v945_v1  ;;  %v725_v60 = vunpack.c.l.bf16 %v838_v48  ;;  %v789_v61 = vunpack.c.l.bf16 %v853_v49  ;;  %v856_v43 = vld [vmem:[%s935_s29 + $0x38] sm:$0xff]   ;;  %v842_v52 = vld [vmem:[%s930_s26 + $0x40] sm:$0xff]  }
  0x1b   : > { %v560_v63 = vadd.f32 %v972_v29, %v521_v54  ;;  %v452_v2 = vadd.f32 %v954_v10, %v413_v55  ;;  %v414_v3 = vmul.f32 %v722_v56, %v940_v0  ;;  %v492_v4 = vmul.f32 %v786_v57, %v945_v1  ;;  %v857_v57 = vld [vmem:[%s935_s29 + $0x40] sm:$0xff]  }
  0x1c   : > { %v561_v6 = vadd.f32 %v972_v29, %v522_v58  ;;  %v415_v7 = vmul.f32 %v725_v60, %v940_v0  ;;  %v493_v8 = vmul.f32 %v789_v61, %v945_v1  ;;  %v726_v9 = vunpack.c.h.bf16 %v838_v48 }
  0x1d   : > { %592 = vst [vmem:[%s983_s17 + $0x20] sm:$0xff] %v560_v63  ;;  %v523_v11 = vadd.f32 %v491_v59, %v452_v2  ;;  %v453_v12 = vadd.f32 %v954_v10, %v414_v3  ;;  %v790_v13 = vunpack.c.h.bf16 %v853_v49  ;;  %v729_v14 = vunpack.c.l.bf16 %v839_v62 }
  0x1e   : > { %593 = vst [vmem:[%s983_s17 + $0x28] sm:$0xff] %v561_v6  ;;  %v454_v15 = vadd.f32 %v954_v10, %v415_v7  ;;  %v416_v16 = vmul.f32 %v726_v9, %v940_v0  ;;  %v793_v17 = vunpack.c.l.bf16 %v854_v5  ;;  %v730_v18 = vunpack.c.h.bf16 %v839_v62 }
  0x1f   : > { %v562_v20 = vadd.f32 %v972_v29, %v523_v11  ;;  %v524_v21 = vadd.f32 %v492_v4, %v453_v12  ;;  %v494_v22 = vmul.f32 %v790_v13, %v945_v1  ;;  %v417_v23 = vmul.f32 %v729_v14, %v940_v0  ;;  %v843_v4 = vld [vmem:[%s930_s26 + $0x48] sm:$0xff]  }
  0x20   : > { %v525_v25 = vadd.f32 %v493_v8, %v454_v15  ;;  %v455_v26 = vadd.f32 %v954_v10, %v416_v16  ;;  %v495_v27 = vmul.f32 %v793_v17, %v945_v1  ;;  %v794_v28 = vunpack.c.h.bf16 %v854_v5  ;;  %v858_v14 = vld [vmem:[%s935_s29 + $0x48] sm:$0xff]  }
  0x21   : > { %594 = vst [vmem:[%s983_s17 + $0x30] sm:$0xff] %v562_v20  ;;  %v563_v30 = vadd.f32 %v972_v29, %v524_v21  ;;  %v456_v31 = vadd.f32 %v954_v10, %v417_v23  ;;  %v418_v32 = vmul.f32 %v730_v18, %v940_v0  ;;  %v733_v33 = vunpack.c.l.bf16 %v840_v19  ;;  %v844_v23 = vld [vmem:[%s930_s26 + $0x50] sm:$0xff]  }
  0x22   : > { %v564_v35 = vadd.f32 %v972_v29, %v525_v25  ;;  %v526_v36 = vadd.f32 %v494_v22, %v455_v26  ;;  %v496_v37 = vmul.f32 %v794_v28, %v945_v1  ;;  %v797_v38 = vunpack.c.l.bf16 %v855_v24  ;;  %v859_v28 = vld [vmem:[%s935_s29 + $0x50] sm:$0xff]  }
  0x23   : > { %595 = vst [vmem:[%s983_s17 + $0x38] sm:$0xff] %v563_v30  ;;  %v527_v39 = vadd.f32 %v495_v27, %v456_v31  ;;  %v457_v40 = vadd.f32 %v954_v10, %v418_v32  ;;  %v419_v41 = vmul.f32 %v733_v33, %v940_v0  ;;  %v734_v42 = vunpack.c.h.bf16 %v840_v19 }
  0x24   : > { %596 = vst [vmem:[%s983_s17 + $0x40] sm:$0xff] %v564_v35  ;;  %v565_v44 = vadd.f32 %v972_v29, %v526_v36  ;;  %v497_v45 = vmul.f32 %v797_v38, %v945_v1  ;;  %v798_v46 = vunpack.c.h.bf16 %v855_v24  ;;  %v737_v47 = vunpack.c.l.bf16 %v841_v34  ;;  %v845_v38 = vld [vmem:[%s930_s26 + $0x58] sm:$0xff]  }
  0x25   : > { %v566_v48 = vadd.f32 %v972_v29, %v527_v39  ;;  %v528_v49 = vadd.f32 %v496_v37, %v457_v40  ;;  %v458_v50 = vadd.f32 %v954_v10, %v419_v41  ;;  %v420_v51 = vmul.f32 %v734_v42, %v940_v0 }
  0x26   : > { %597 = vst [vmem:[%s983_s17 + $0x48] sm:$0xff] %v565_v44  ;;  %v498_v53 = vmul.f32 %v798_v46, %v945_v1  ;;  %v801_v54 = vunpack.c.l.bf16 %v856_v43  ;;  %v421_v55 = vmul.f32 %v737_v47, %v940_v0  ;;  %v738_v56 = vunpack.c.h.bf16 %v841_v34  ;;  %v860_v47 = vld [vmem:[%s935_s29 + $0x58] sm:$0xff]  }
  0x27   : > { %598 = vst [vmem:[%s983_s17 + $0x50] sm:$0xff] %v566_v48  ;;  %v567_v58 = vadd.f32 %v972_v29, %v528_v49  ;;  %v529_v59 = vadd.f32 %v497_v45, %v458_v50  ;;  %v459_v60 = vadd.f32 %v954_v10, %v420_v51  ;;  %v802_v61 = vunpack.c.h.bf16 %v856_v43 }
  0x28   : > { %v460_v62 = vadd.f32 %v954_v10, %v421_v55  ;;  %v499_v63 = vmul.f32 %v801_v54, %v945_v1  ;;  %v422_v2 = vmul.f32 %v738_v56, %v940_v0  ;;  %v741_v3 = vunpack.c.l.bf16 %v842_v52  ;;  %v846_v56 = vld [vmem:[%s930_s26 + $0x60] sm:$0xff]  }
  0x29   : > { %599 = vst [vmem:[%s983_s17 + $0x58] sm:$0xff] %v567_v58  ;;  %v568_v5 = vadd.f32 %v972_v29, %v529_v59  ;;  %v530_v6 = vadd.f32 %v498_v53, %v459_v60  ;;  %v500_v7 = vmul.f32 %v802_v61, %v945_v1  ;;  %v805_v8 = vunpack.c.l.bf16 %v857_v57  ;;  %v861_v61 = vld [vmem:[%s935_s29 + $0x60] sm:$0xff]  }
  0x2a   : > { %v531_v9 = vadd.f32 %v499_v63, %v460_v62  ;;  %v461_v11 = vadd.f32 %v954_v10, %v422_v2  ;;  %v423_v12 = vmul.f32 %v741_v3, %v940_v0  ;;  %v742_v13 = vunpack.c.h.bf16 %v842_v52 }
  0x2b   : > { %600 = vst [vmem:[%s983_s17 + $0x60] sm:$0xff] %v568_v5  ;;  %v569_v15 = vadd.f32 %v972_v29, %v530_v6  ;;  %v501_v16 = vmul.f32 %v805_v8, %v945_v1  ;;  %v806_v17 = vunpack.c.h.bf16 %v857_v57  ;;  %v745_v18 = vunpack.c.l.bf16 %v843_v4  ;;  %v847_v8 = vld [vmem:[%s930_s26 + $0x68] sm:$0xff]  }
  0x2c   : > { %v570_v19 = vadd.f32 %v972_v29, %v531_v9  ;;  %v532_v20 = vadd.f32 %v500_v7, %v461_v11  ;;  %v462_v21 = vadd.f32 %v954_v10, %v423_v12  ;;  %v424_v22 = vmul.f32 %v742_v13, %v940_v0 }
  0x2d   : > { %601 = vst [vmem:[%s983_s17 + $0x68] sm:$0xff] %v569_v15  ;;  %v502_v24 = vmul.f32 %v806_v17, %v945_v1  ;;  %v809_v25 = vunpack.c.l.bf16 %v858_v14  ;;  %v425_v26 = vmul.f32 %v745_v18, %v940_v0  ;;  %v746_v27 = vunpack.c.h.bf16 %v843_v4  ;;  %v862_v18 = vld [vmem:[%s935_s29 + $0x68] sm:$0xff]  }
  0x2e   : > { %602 = vst [vmem:[%s983_s17 + $0x70] sm:$0xff] %v570_v19  ;;  %v571_v30 = vadd.f32 %v972_v29, %v532_v20  ;;  %v533_v31 = vadd.f32 %v501_v16, %v462_v21  ;;  %v463_v32 = vadd.f32 %v954_v10, %v424_v22  ;;  %v810_v33 = vunpack.c.h.bf16 %v858_v14 }
  0x2f   : > { %v464_v34 = vadd.f32 %v954_v10, %v425_v26  ;;  %v503_v35 = vmul.f32 %v809_v25, %v945_v1  ;;  %v426_v36 = vmul.f32 %v746_v27, %v940_v0  ;;  %v749_v37 = vunpack.c.l.bf16 %v844_v23  ;;  %v848_v27 = vld [vmem:[%s930_s26 + $0x70] sm:$0xff]  }
  0x30   : > { %603 = vst [vmem:[%s983_s17 + $0x78] sm:$0xff] %v571_v30  ;;  %v572_v39 = vadd.f32 %v972_v29, %v533_v31  ;;  %v534_v40 = vadd.f32 %v502_v24, %v463_v32  ;;  %v504_v41 = vmul.f32 %v810_v33, %v945_v1  ;;  %v813_v42 = vunpack.c.l.bf16 %v859_v28  ;;  %v863_v33 = vld [vmem:[%s935_s29 + $0x70] sm:$0xff]  }
  0x31   : > { %v535_v43 = vadd.f32 %v503_v35, %v464_v34  ;;  %v465_v44 = vadd.f32 %v954_v10, %v426_v36  ;;  %v427_v45 = vmul.f32 %v749_v37, %v940_v0  ;;  %v750_v46 = vunpack.c.h.bf16 %v844_v23 }
  0x32   : > { %604 = vst [vmem:[%s983_s17 + $0x80] sm:$0xff] %v572_v39  ;;  %v573_v48 = vadd.f32 %v972_v29, %v534_v40  ;;  %v505_v49 = vmul.f32 %v813_v42, %v945_v1  ;;  %v814_v50 = vunpack.c.h.bf16 %v859_v28  ;;  %v753_v51 = vunpack.c.l.bf16 %v845_v38  ;;  %v849_v42 = vld [vmem:[%s930_s26 + $0x78] sm:$0xff]  }
  0x33   : > { %v574_v52 = vadd.f32 %v972_v29, %v535_v43  ;;  %v536_v53 = vadd.f32 %v504_v41, %v465_v44  ;;  %v466_v54 = vadd.f32 %v954_v10, %v427_v45  ;;  %v428_v55 = vmul.f32 %v750_v46, %v940_v0 }
  0x34   : > { %605 = vst [vmem:[%s983_s17 + $0x88] sm:$0xff] %v573_v48  ;;  %v506_v57 = vmul.f32 %v814_v50, %v945_v1  ;;  %v817_v58 = vunpack.c.l.bf16 %v860_v47  ;;  %v429_v59 = vmul.f32 %v753_v51, %v940_v0  ;;  %v754_v60 = vunpack.c.h.bf16 %v845_v38  ;;  %v864_v51 = vld [vmem:[%s935_s29 + $0x78] sm:$0xff]  }
  0x35   : > { %606 = vst [vmem:[%s983_s17 + $0x90] sm:$0xff] %v574_v52  ;;  %v575_v62 = vadd.f32 %v972_v29, %v536_v53  ;;  %v537_v63 = vadd.f32 %v505_v49, %v466_v54  ;;  %v467_v2 = vadd.f32 %v954_v10, %v428_v55  ;;  %v818_v3 = vunpack.c.h.bf16 %v860_v47 }
  0x36   : > { %v468_v4 = vadd.f32 %v954_v10, %v429_v59  ;;  %v507_v5 = vmul.f32 %v817_v58, %v945_v1  ;;  %v430_v6 = vmul.f32 %v754_v60, %v940_v0  ;;  %v757_v7 = vunpack.c.l.bf16 %v846_v56 }
  0x37   : > { %607 = vst [vmem:[%s983_s17 + $0x98] sm:$0xff] %v575_v62  ;;  %v576_v9 = vadd.f32 %v972_v29, %v537_v63  ;;  %v538_v11 = vadd.f32 %v506_v57, %v467_v2  ;;  %v508_v12 = vmul.f32 %v818_v3, %v945_v1  ;;  %v821_v13 = vunpack.c.l.bf16 %v861_v61 }
  0x38   : > { %v539_v14 = vadd.f32 %v507_v5, %v468_v4  ;;  %v469_v15 = vadd.f32 %v954_v10, %v430_v6  ;;  %v431_v16 = vmul.f32 %v757_v7, %v940_v0  ;;  %v758_v17 = vunpack.c.h.bf16 %v846_v56 }
  0x39   : > { %608 = vst [vmem:[%s983_s17 + $0xa0] sm:$0xff] %v576_v9  ;;  %v577_v19 = vadd.f32 %v972_v29, %v538_v11  ;;  %v509_v20 = vmul.f32 %v821_v13, %v945_v1  ;;  %v822_v21 = vunpack.c.h.bf16 %v861_v61  ;;  %v761_v22 = vunpack.c.l.bf16 %v847_v8 }
  0x3a   : > { %v578_v23 = vadd.f32 %v972_v29, %v539_v14  ;;  %v540_v24 = vadd.f32 %v508_v12, %v469_v15  ;;  %v470_v25 = vadd.f32 %v954_v10, %v431_v16  ;;  %v432_v26 = vmul.f32 %v758_v17, %v940_v0 }
  0x3b   : > { %609 = vst [vmem:[%s983_s17 + $0xa8] sm:$0xff] %v577_v19  ;;  %v510_v28 = vmul.f32 %v822_v21, %v945_v1  ;;  %v825_v30 = vunpack.c.l.bf16 %v862_v18  ;;  %v433_v31 = vmul.f32 %v761_v22, %v940_v0  ;;  %v762_v32 = vunpack.c.h.bf16 %v847_v8 }
  0x3c   : > { %610 = vst [vmem:[%s983_s17 + $0xb0] sm:$0xff] %v578_v23  ;;  %v579_v34 = vadd.f32 %v972_v29, %v540_v24  ;;  %v541_v35 = vadd.f32 %v509_v20, %v470_v25  ;;  %v471_v36 = vadd.f32 %v954_v10, %v432_v26  ;;  %v826_v37 = vunpack.c.h.bf16 %v862_v18 }
  0x3d   : > { %v472_v38 = vadd.f32 %v954_v10, %v433_v31  ;;  %v511_v39 = vmul.f32 %v825_v30, %v945_v1  ;;  %v434_v40 = vmul.f32 %v762_v32, %v940_v0  ;;  %v765_v41 = vunpack.c.l.bf16 %v848_v27 }
  0x3e   : > { %611 = vst [vmem:[%s983_s17 + $0xb8] sm:$0xff] %v579_v34  ;;  %v580_v43 = vadd.f32 %v972_v29, %v541_v35  ;;  %v542_v44 = vadd.f32 %v510_v28, %v471_v36  ;;  %v512_v45 = vmul.f32 %v826_v37, %v945_v1  ;;  %v829_v46 = vunpack.c.l.bf16 %v863_v33 }
  0x3f   : > { %v543_v47 = vadd.f32 %v511_v39, %v472_v38  ;;  %v473_v48 = vadd.f32 %v954_v10, %v434_v40  ;;  %v435_v49 = vmul.f32 %v765_v41, %v940_v0  ;;  %v766_v50 = vunpack.c.h.bf16 %v848_v27 }
  0x40   : > { %612 = vst [vmem:[%s983_s17 + $0xc0] sm:$0xff] %v580_v43  ;;  %v581_v52 = vadd.f32 %v972_v29, %v542_v44  ;;  %v513_v53 = vmul.f32 %v829_v46, %v945_v1  ;;  %v830_v54 = vunpack.c.h.bf16 %v863_v33  ;;  %v769_v55 = vunpack.c.l.bf16 %v849_v42 }
  0x41   : > { %v582_v56 = vadd.f32 %v972_v29, %v543_v47  ;;  %v544_v57 = vadd.f32 %v512_v45, %v473_v48  ;;  %v474_v58 = vadd.f32 %v954_v10, %v435_v49  ;;  %v436_v59 = vmul.f32 %v766_v50, %v940_v0 }
  0x42   : > { %613 = vst [vmem:[%s983_s17 + $0xc8] sm:$0xff] %v581_v52  ;;  %v514_v60 = vmul.f32 %v830_v54, %v945_v1  ;;  %v833_v61 = vunpack.c.l.bf16 %v864_v51  ;;  %v437_v62 = vmul.f32 %v769_v55, %v940_v0  ;;  %v770_v63 = vunpack.c.h.bf16 %v849_v42 }
  0x43   : > { %614 = vst [vmem:[%s983_s17 + $0xd0] sm:$0xff] %v582_v56  ;;  %v583_v2 = vadd.f32 %v972_v29, %v544_v57  ;;  %v545_v3 = vadd.f32 %v513_v53, %v474_v58  ;;  %v475_v4 = vadd.f32 %v954_v10, %v436_v59  ;;  %v834_v5 = vunpack.c.h.bf16 %v864_v51 }
  0x44   : > { %v476_v6 = vadd.f32 %v954_v10, %v437_v62  ;;  %v515_v7 = vmul.f32 %v833_v61, %v945_v1  ;;  %v438_v8 = vmul.f32 %v770_v63, %v940_v0 }
  0x45   : > { %615 = vst [vmem:[%s983_s17 + $0xd8] sm:$0xff] %v583_v2  ;;  %v584_v9 = vadd.f32 %v972_v29, %v545_v3  ;;  %v546_v11 = vadd.f32 %v514_v60, %v475_v4  ;;  %v516_v12 = vmul.f32 %v834_v5, %v945_v1 }
  0x46   : > { %v547_v13 = vadd.f32 %v515_v7, %v476_v6  ;;  %v477_v14 = vadd.f32 %v954_v10, %v438_v8 }
  0x47   : > { %616 = vst [vmem:[%s983_s17 + $0xe0] sm:$0xff] %v584_v9  ;;  %v585_v15 = vadd.f32 %v972_v29, %v546_v11 }
  0x48   : > { %v586_v16 = vadd.f32 %v972_v29, %v547_v13  ;;  %v548_v17 = vadd.f32 %v516_v12, %v477_v14 }
  0x49   : > { %617 = vst [vmem:[%s983_s17 + $0xe8] sm:$0xff] %v585_v15 }
  0x4a   : > { %618 = vst [vmem:[%s983_s17 + $0xf0] sm:$0xff] %v586_v16  ;;  %v587_v18 = vadd.f32 %v972_v29, %v548_v17 }
  0x4c   : > { %619 = vst [vmem:[%s983_s17 + $0xf8] sm:$0xff] %v587_v18 }
  0x4d PF: > { %s16_s21 = sadd.s32 1, %s879_s21  }
  0x4e   : > { %p13_p4 = scmp.ge.s32.totalorder %s16_s21, 4  }
  0x50   :  { %15 = sbr.rel (!%p13_p4) target bundleno = 1 (0x1), region = 77 }

// kernel: basic_block_rn12_forward.7
= control target key start
LH: loop header
LB: loop body
LE: loop exit
PB: predicated region body
PF: predicated region fallthrough
CT: control target
= control target key end

     0   :  { %s6342_s27 = smov 0   ;;  %s8304_s0 = inlined_call_operand.vmem [shape: bf16[2,18,18,128], index: 0, kind: input, shape index: {}]   ;;  %s8305_s1 = inlined_call_operand.vmem [shape: bf16[1152,128], index: 1, kind: input, shape index: {}]   ;;  %s8306_s2 = inlined_call_operand.vmem [shape: bf16[128,128], index: 2, kind: input, shape index: {}]   ;;  %s8307_s3 = inlined_call_operand.vmem [shape: bf16[2,256,128], index: 3, kind: output, shape index: {0}]   ;;  %s8308_s4 = inlined_call_operand.vmem [shape: f32[2,1,128], index: 4, kind: output, shape index: {1}]   ;;  %s8309_s5 = inlined_call_operand.vmem [shape: f32[2,1,128], index: 5, kind: output, shape index: {2}]   ;;  %s8310_s6 = inlined_call_operand.vmem [shape: bf16[2,256,128], index: 6, kind: output, shape index: {3}]   ;;  %s8311_s7 = inlined_call_operand.vmem [shape: f32[2,1,128], index: 7, kind: output, shape index: {4}]   ;;  %s8312_s8 = inlined_call_operand.vmem [shape: f32[2,1,128], index: 8, kind: output, shape index: {5}]  }
   0x1 LB: > { %s4721_s28 = sadd.s32 4294967295, %s6295_s27   ;;  %p4725_p0 = scmp.ge.s32.totalorder %s6295_s27, 1  ;;  %s6295_s27 = sphi %s6342_s27, %s19_s27  }
   0x2   : > { %p273_p1 = scmp.lt.s32.totalorder %s6295_s27, 3 }
   0x4   : > { %p274_p2 = pnand %p4725_p0, %p273_p1 }
   0x6   : > { %277 = sbr.rel (%p274_p2) target bundleno = 582 (0x246), region = 32 }
   0xb   : > { %v6022_v0 = vld [vmem:[%s8305_s1 + $0x78] sm:$0xff]   ;;  %v6026_v4 = vld [vmem:[%s8305_s1 + $0x70] sm:$0xff]   ;;  %v6030_v8 = vld [vmem:[%s8305_s1 + $0x68] sm:$0xff]   ;;  %p324_p3 = scmp.lt.s32.totalorder %s4721_s28, 1  ;;  %vm947_vm0 = vcmask 1046528  }
   0xc   : > { %v6023_v1 = vld [vmem:[%s8305_s1 + $0xf8] sm:$0xff]   ;;  %5421 = vmatprep.subr.bf16.mxu0 %v6022_v0  ;;  %v6027_v5 = vld [vmem:[%s8305_s1 + $0xf0] sm:$0xff]   ;;  %v6031_v9 = vld [vmem:[%s8305_s1 + $0xe8] sm:$0xff]   ;;  %vm690_vm1 = vsmask.f32 7424 }
   0xd   : > { %v6024_v2 = vld [vmem:[%s8305_s1 + $0x38] sm:$0xff]   ;;  %5533 = vmatprep.subr.bf16.mxu1 %v6023_v1  ;;  %v6028_v6 = vld [vmem:[%s8305_s1 + $0x30] sm:$0xff]   ;;  %v6032_v10 = vld [vmem:[%s8305_s1 + $0x28] sm:$0xff]   ;;  %s8526_s28 = smov (!%p324_p3, %s4721_s28), 1  ;;  %vm3589_vm2 = vsmask.f32 3328 }
   0xe   : > { %v6025_v3 = vld [vmem:[%s8305_s1 + $0xb8] sm:$0xff]   ;;  %5422 = vmatpush3.bf16.msra.mxu0 %v6024_v2  ;;  %v6029_v7 = vld [vmem:[%s8305_s1 + $0xb0] sm:$0xff]   ;;  %v6033_v11 = vld [vmem:[%s8305_s1 + $0xa8] sm:$0xff]   ;;  %s6013_s19 = smul.u32 216, %s8526_s28  ;;  %vm3590_vm3 = vsmask.f32 7440  ;;  %s347_s24 = scalar_lea.vmem %s8311_s7, %s8526_s28 }
   0xf   : > { %5534 = vmatpush3.bf16.msra.mxu1 %v6025_v3  ;;  %5423 = vmatprep.subr.bf16.mxu0 %v6026_v4  ;;  %v6034_v12 = vld [vmem:[%s8305_s1 + $0x60] sm:$0xff]   ;;  %v6038_v16 = vld [vmem:[%s8305_s1 + $0x58] sm:$0xff]   ;;  %v6042_v20 = vld [vmem:[%s8305_s1 + $0x50] sm:$0xff]   ;;  %s336_s29 = scalar_lea.vmem %s8308_s4, %s8526_s28  ;;  %s350_s11 = scalar_lea.vmem %s8312_s8, %s8526_s28 }
  0x10   : > { %5535 = vmatprep.subr.bf16.mxu1 %v6027_v5  ;;  %v6035_v13 = vld [vmem:[%s8305_s1 + $0xe0] sm:$0xff]   ;;  %v6039_v17 = vld [vmem:[%s8305_s1 + $0xd8] sm:$0xff]   ;;  %v6043_v21 = vld [vmem:[%s8305_s1 + $0xd0] sm:$0xff]   ;;  %s6450_s10 = scalar_lea.vmem %s8304_s0, %s6013_s19  ;;  %s339_s14 = scalar_lea.vmem %s8309_s5, %s8526_s28 }
  0x11   : > { %v6036_v14 = vld [vmem:[%s8305_s1 + $0x20] sm:$0xff]   ;;  %v6040_v18 = vld [vmem:[%s8305_s1 + $0x18] sm:$0xff]   ;;  %v6044_v22 = vld [vmem:[%s8305_s1 + $0x10] sm:$0xff]  }
  0x12   : > { %5424 = vmatpush3.bf16.msra.mxu0 %v6028_v6  ;;  %v6037_v15 = vld [vmem:[%s8305_s1 + $0xa0] sm:$0xff]   ;;  %v6041_v19 = vld [vmem:[%s8305_s1 + $0x98] sm:$0xff]   ;;  %v6045_v23 = vld [vmem:[%s8305_s1 + $0x90] sm:$0xff]  }
  0x13   : > { %5536 = vmatpush3.bf16.msra.mxu1 %v6029_v7  ;;  %5425 = vmatprep.subr.bf16.mxu0 %v6030_v8  ;;  %v6046_v24 = vld [vmem:[%s8305_s1 + $0x48] sm:$0xff]   ;;  %v6050_v28 = vld [vmem:[%s8305_s1 + $0x40] sm:$0xff]   ;;  %v6058_v36 = vld [vmem:[%s8305_s1 + $0x178] sm:$0xff]  }
  0x14   : > { %5537 = vmatprep.subr.bf16.mxu1 %v6031_v9  ;;  %v6047_v25 = vld [vmem:[%s8305_s1 + $0xc8] sm:$0xff]   ;;  %v6051_v29 = vld [vmem:[%s8305_s1 + $0xc0] sm:$0xff]   ;;  %v6468_v38 = vld [vmem:[%s6450_s10 + $0x10] sm:$0xf] }
  0x15   : > { %v6048_v26 = vld [vmem:[%s8305_s1 + $0x8] sm:$0xff]   ;;  %v6052_v30 = vld [vmem:[%s8305_s1] sm:$0xff]   ;;  %8351 = vst [vmem:[#allocation2_spill] sm:$0xff] %v6468_v38  ;;  %v6060_v45 = vld [vmem:[%s8305_s1 + $0x1f8] sm:$0xff]  }
  0x16   : > { %5426 = vmatpush3.bf16.msra.mxu0 %v6032_v10  ;;  %v6049_v27 = vld [vmem:[%s8305_s1 + $0x88] sm:$0xff]   ;;  %v6053_v31 = vld [vmem:[%s8305_s1 + $0x80] sm:$0xff]   ;;  %v6059_v50 = vld [vmem:[%s8305_s1 + $0x138] sm:$0xff]  }
  0x17   : > { %5538 = vmatpush3.bf16.msra.mxu1 %v6033_v11  ;;  %5427 = vmatprep.subr.bf16.mxu0 %v6034_v12  ;;  %v352_v32 = vld [vmem:[%s6450_s10] sm:$0xf]  ;;  %v353_v33 = vld [vmem:[%s6450_s10 + $0x4] sm:$0xf]  ;;  %v6465_v37 = vld [vmem:[%s6450_s10 + $0xc] sm:$0xf] }
  0x18   : > { %5539 = vmatprep.subr.bf16.mxu1 %v6035_v13  ;;  %v4859_v34 = vcombine.low %v352_v32, %v353_v33  ;;  %v6055_v35 = vld [vmem:[%s6450_s10 + $0x8] ss:$0 sps:$4 sm:$0x11]   ;;  %v400_v39 = vld [vmem:[%s6450_s10] sm:$0xe]  ;;  %v6473_v43 = vcombine.low %v6465_v37, %v6468_v38  ;;  %v6061_v52 = vld [vmem:[%s8305_s1 + $0x1b8] sm:$0xff]  }
  0x19   : > { %v699_v42 = vshll.u32 %v6055_v35, 16  ;;  %v4891_v44 = vcombine.low %v400_v39, %v353_v33  ;;  %v949_v49 = vrot.slane %v6055_v35, 1  ;;  %v354_v54 = vld [vmem:[%s6450_s10 + $0xc] sm:$0xf]  ;;  %v355_v56 = vld [vmem:[%s6450_s10 + $0x10] sm:$0xf]  ;;  %vm7035_vm4 = vmor %vm3589_vm2, %vm3590_vm3 }
  0x1a   : > { %5428 = vmatpush3.bf16.msra.mxu0 %v6036_v14  ;;  %v692_v40 = vshrl.u32 %v4859_v34, 16  ;;  %v694_v41 = vshll.u32 %v4859_v34, 16  ;;  %2709 = vmatprep.mubr.bf16.mxu1 %v6473_v43  ;;  %v6490_v57 = vld [vmem:[%s6450_s10 + $0x18] sm:$0xf]  ;;  %v4860_v58 = vcombine.low %v354_v54, %v355_v56  ;;  %v6494_v60 = vld [vmem:[%s6450_s10 + $0x1c] sm:$0xf] }
  0x1b   : > { %5540 = vmatpush3.bf16.msra.mxu1 %v6037_v15  ;;  %5429 = vmatprep.subr.bf16.mxu0 %v6038_v16  ;;  %v701_v47 = vrot.slane %v699_v42, 1  ;;  %v948_v48 = vrot.slane %v4891_v44, 1  ;;  %v6063_v59 = vld [vmem:[%s6450_s10 + $0x14] ss:$0 sps:$4 sm:$0x11]   ;;  %v6498_v61 = vcombine.low %v6490_v57, %v6494_v60  ;;  %v6083_v32 = vld [vmem:[%s8305_s1 + $0x128] sm:$0xff]  }
  0x1c   : > { %5541 = vmatprep.subr.bf16.mxu1 %v6039_v17  ;;  %v696_v46 = vrot.slane %v694_v41, 1  ;;  %v6070_v62 = vld [vmem:[%s8305_s1 + $0x170] sm:$0xff]   ;;  %v704_v63 = vshrl.u32 %v4860_v58, 16  ;;  %v706_v0 = vshll.u32 %v4860_v58, 16  ;;  %v711_v1 = vshll.u32 %v6063_v59, 16  ;;  %v6084_v39 = vld [vmem:[%s8305_s1 + $0x1e8] sm:$0xff]  }
  0x1d   : > { %v950_v53 = vsel %vm947_vm0, %v948_v48, %v949_v49  ;;  %v401_v2 = vld [vmem:[%s6450_s10 + $0xc] sm:$0xe]  ;;  %v356_v3 = vld [vmem:[%s6450_s10 + $0x18] sm:$0xf]  ;;  %v952_v7 = vrot.slane %v6063_v59, 1  ;;  %v6071_v9 = vld [vmem:[%s8305_s1 + $0x130] sm:$0xff]  }
  0x1e   : > { %5430 = vmatpush3.bf16.msra.mxu0 %v6040_v18  ;;  %v697_v51 = vor.u32 %v696_v46, %v692_v40  ;;  %v708_v4 = vrot.slane %v706_v0, 1  ;;  %v713_v5 = vrot.slane %v711_v1, 1  ;;  %v4892_v6 = vcombine.low %v401_v2, %v355_v56  ;;  %v357_v8 = vld [vmem:[%s6450_s10 + $0x1c] sm:$0xf]  ;;  %v6511_v11 = vld [vmem:[%s6450_s10 + $0x24] sm:$0xf] }
  0x1f   : > { %5542 = vmatpush3.bf16.msra.mxu1 %v6041_v19  ;;  %5431 = vmatprep.subr.bf16.mxu0 %v6042_v20  ;;  %v4861_v10 = vcombine.low %v356_v3, %v357_v8  ;;  %v6067_v14 = vld [vmem:[%s6450_s10 + $0x20] ss:$0 sps:$4 sm:$0x11]   ;;  %v6515_v15 = vld [vmem:[%s6450_s10 + $0x28] sm:$0xf]  ;;  %v6072_v19 = vld [vmem:[%s8305_s1 + $0x1f0] sm:$0xff]  }
  0x20   : > { %5543 = vmatprep.subr.bf16.mxu1 %v6043_v21  ;;  %v702_v55 = vsel %vm690_vm1, %v697_v51, %v701_v47  ;;  %v709_v12 = vor.u32 %v708_v4, %v704_v63  ;;  %v951_v13 = vrot.slane %v4892_v6, 1  ;;  %8352 = vst [vmem:[#allocation3_spill] sm:$0xff] %v6515_v15  ;;  %v402_v18 = vld [vmem:[%s6450_s10 + $0x18] sm:$0xe]  ;;  %v358_v35 = vld [vmem:[%s6450_s10 + $0x24] sm:$0xf] }
  0x21   : > { %2548 = vmatprep.mubr.bf16.mxu0 %v702_v55  ;;  %v716_v16 = vshrl.u32 %v4861_v10, 16  ;;  %v718_v17 = vshll.u32 %v4861_v10, 16  ;;  %v6075_v41 = vld [vmem:[%s6450_s10 + $0x2c] ss:$0 sps:$4 sm:$0x11]   ;;  %v6095_v0 = vld [vmem:[%s8305_s1 + $0x120] sm:$0xff]  }
  0x22   : > { %5432 = vmatpush3.bf16.msra.mxu0 %v6044_v22  ;;  %v714_v20 = vsel %vm690_vm1, %v709_v12, %v713_v5  ;;  %v953_v21 = vsel %vm947_vm0, %v951_v13, %v952_v7  ;;  %v723_v22 = vshll.u32 %v6067_v14, 16  ;;  %v6085_v42 = vld [vmem:[%s8305_s1 + $0x1a8] sm:$0xff]   ;;  %v6555_v46 = vld [vmem:[%s6450_s10 + $0x34] sm:$0xf]  ;;  %v403_v47 = vld [vmem:[%s6450_s10 + $0x24] sm:$0xe] }
  0x23   : > { %5544 = vmatpush3.bf16.msra.mxu1 %v6045_v23  ;;  %5433 = vmatprep.subr.bf16.mxu0 %v6046_v24  ;;  %v6525_v23 = vcombine.low %v6511_v11, %v6515_v15  ;;  %v6073_v24 = vld [vmem:[%s8305_s1 + $0x1b0] sm:$0xff]   ;;  %v3617_v1 = vshrl.u32 %v6490_v57, 16  ;;  %v3620_v2 = vshll.u32 %v6490_v57, 16  ;;  %v3626_v3 = vshll.u32 %v6494_v60, 16  ;;  %v6581_v4 = vld [vmem:[%s6450_s10 + $0x3c] sm:$0xf] }
  0x24   : > { %5545 = vmatprep.subr.bf16.mxu1 %v6047_v25  ;;  %v720_v25 = vrot.slane %v718_v17, 1  ;;  %v360_v55 = vld [vmem:[%s6450_s10 + $0x30] sm:$0xf]  ;;  %v361_v56 = vld [vmem:[%s6450_s10 + $0x34] sm:$0xf]  ;;  %8353 = vst [vmem:[#allocation4_spill] sm:$0xff] %v6581_v4 }
  0x25   : > { %v958_v7 = vrot.slane %v6075_v41, 1  ;;  %v3630_v57 = vshrl.u32 %v6494_v60, 16  ;;  %v4740_v13 = vld [vmem:[%s6450_s10 + $0x40] sm:$0xf]  ;;  %v374_v54 = vld [vmem:[%s6450_s10 + $0x84] sm:$0xf] }
  0x26   : > { %5434 = vmatpush3.bf16.msra.mxu0 %v6048_v26  ;;  %v6082_v26 = vld [vmem:[%s8305_s1 + $0x168] sm:$0xff]   ;;  %v6097_v60 = vld [vmem:[%s8305_s1 + $0x1a0] sm:$0xff]  }
  0x27   : > { %5546 = vmatpush3.bf16.msra.mxu1 %v6049_v27  ;;  %5435 = vmatprep.subr.bf16.mxu0 %v6050_v28  ;;  %v725_v27 = vrot.slane %v723_v22, 1  ;;  %v721_v28 = vor.u32 %v720_v25, %v716_v16  ;;  %v3622_v25 = vrot.slane %v3620_v2, 5  ;;  %v1171_v2 = vshll.u32 %v6498_v61, 16  ;;  %v6948_v15 = vld [vmem:[%s6450_s10 + $0xac] sm:$0xf] }
  0x28   : > { %5547 = vmatprep.subr.bf16.mxu1 %v6051_v29  ;;  %v4893_v29 = vcombine.low %v402_v18, %v357_v8  ;;  %v6583_v8 = vcombine.low %v360_v55, %v361_v56  ;;  %v405_v55 = vld [vmem:[%s6450_s10 + $0x3c] sm:$0xe] }
  0x29   : > { %v726_v33 = vsel %vm690_vm1, %v721_v28, %v725_v27 }
  0x2a   : > { %5436 = vmatpush3.bf16.msra.mxu0 %v6052_v30  ;;  %v955_v30 = vrot.slane %v6067_v14, 1  ;;  %v404_v14 = vld [vmem:[%s6450_s10 + $0x30] sm:$0xe]  ;;  %v740_v18 = vshrl.u32 %v6583_v8, 16 }
  0x2b   : > { %5548 = vmatpush3.bf16.msra.mxu1 %v6053_v31  ;;  %5645 = vmatprep.subr.bf16.mxu0 %v6058_v36  ;;  %v3593_v31 = vshrl.u32 %v6465_v37, 16  ;;  %v359_v36 = vld [vmem:[%s6450_s10 + $0x28] sm:$0xf]  ;;  %v4895_v28 = vcombine.low %v404_v14, %v361_v56  ;;  %v3641_v14 = vshrl.u32 %v6511_v11, 16 }
  0x2c   : > { %5757 = vmatprep.subr.bf16.mxu1 %v6060_v45  ;;  %v6544_v40 = vcombine.low %v358_v35, %v359_v36  ;;  %v6552_v45 = vld [vmem:[%s6450_s10 + $0x30] sm:$0xf]  ;;  %v4894_v63 = vcombine.low %v403_v47, %v359_v36  ;;  %v6108_v36 = vld [vmem:[%s8305_s1 + $0x1d8] sm:$0xff]  }
  0x2d   : > { %2549 = vmatmul.mubr.bf16.vlgmr.msra.gmra.mxu0 %v4859_v34  ;;  %v954_v34 = vrot.slane %v4893_v29, 1  ;;  %v6562_v51 = vcombine.low %v6552_v45, %v6555_v46  ;;  %v6589_v12 = vrot.slane %v3593_v31, 4  ;;  %v6106_v29 = vld [vmem:[%s8305_s1 + $0x158] sm:$0xff]   ;;  %v960_v35 = vrot.slane %v4895_v28, 1  ;;  %v406_v28 = vld [vmem:[%s6450_s10 + $0x48] sm:$0xe] }
  0x2e   : > { %2710 = vmatmul.mubr.bf16.vlgmr.msra.gmra.mxu1 %v950_v53  ;;  %5646 = vmatpush3.bf16.msra.mxu0 %v6059_v50  ;;  %v728_v48 = vshrl.u32 %v6544_v40, 16  ;;  %v730_v49 = vshll.u32 %v6544_v40, 16  ;;  %v735_v50 = vshll.u32 %v6075_v41, 16  ;;  %v3596_v53 = vshll.u32 %v6465_v37, 16  ;;  %v363_v41 = vld [vmem:[%s6450_s10 + $0x40] sm:$0xf] }
  0x2f   : > { %5758 = vmatpush3.bf16.msra.mxu1 %v6061_v52  ;;  %2717 = vmatprep.mubr.bf16.mxu1 %v6498_v61  ;;  %v956_v44 = vsel %vm947_vm0, %v954_v34, %v955_v30  ;;  %v6094_v52 = vld [vmem:[%s8305_s1 + $0x160] sm:$0xff]   ;;  %v1159_v37 = vshll.u32 %v6473_v43, 16  ;;  %v957_v6 = vrot.slane %v4894_v63, 1  ;;  %v3632_v30 = vrot.slane %v3630_v57, 4  ;;  %v6119_v57 = vld [vmem:[%s8305_s1 + $0x110] sm:$0xff]  }
  0x30   : > { %5647 = vmatprep.subr.bf16.mxu0 %v6070_v62  ;;  %2556 = vmatprep.mubr.bf16.mxu0 %v714_v20  ;;  %v732_v59 = vrot.slane %v730_v49, 1  ;;  %v737_v62 = vrot.slane %v735_v50, 1  ;;  %v6598_v20 = vrot.slane %v3596_v53, 5  ;;  %v6634_v53 = vld [vmem:[%s6450_s10 + $0x4c] sm:$0xf] }
  0x31   : > { %5759 = vmatprep.subr.bf16.mxu1 %v6072_v19  ;;  %v959_v17 = vsel %vm947_vm0, %v957_v6, %v958_v7  ;;  %v742_v19 = vshll.u32 %v6583_v8, 16 }
  0x32   : > { %5648 = vmatpush3.bf16.msra.mxu0 %v6071_v9  ;;  %v733_v5 = vor.u32 %v732_v59, %v728_v48  ;;  %v6079_v9 = vld [vmem:[%s6450_s10 + $0x38] ss:$0 sps:$4 sm:$0x11]  }
  0x33   : > { %5649 = vmatprep.subr.bf16.mxu0 %v6082_v26  ;;  %5760 = vmatpush3.bf16.msra.mxu1 %v6073_v24  ;;  %v747_v22 = vshll.u32 %v6079_v9, 16  ;;  %v6601_v24 = vcombine.low %v6581_v4, %v4740_v13  ;;  %v6606_v26 = vrot.slane %v3626_v3, 5  ;;  %v744_v27 = vrot.slane %v742_v19, 1  ;;  %v6109_v48 = vld [vmem:[%s8305_s1 + $0x198] sm:$0xff]   ;;  %v364_v3 = vld [vmem:[%s6450_s10 + $0x48] sm:$0xf] }
  0x34   : > { %5761 = vmatprep.subr.bf16.mxu1 %v6084_v39  ;;  %v738_v16 = vsel %vm690_vm1, %v733_v5, %v737_v62  ;;  %v362_v39 = vld [vmem:[%s6450_s10 + $0x3c] sm:$0xf]  ;;  %v365_v5 = vld [vmem:[%s6450_s10 + $0x4c] sm:$0xf] }
  0x35   : > { %2557 = vmatmul.mubr.bf16.gmra.mxu0 %v4860_v58  ;;  %v749_v31 = vrot.slane %v747_v22, 1  ;;  %v745_v34 = vor.u32 %v744_v27, %v740_v18  ;;  %v6622_v47 = vcombine.low %v362_v39, %v363_v41  ;;  %v3633_v49 = vor.u32 %v3632_v30, %v6606_v26  ;;  %v6091_v22 = vld [vmem:[%s6450_s10 + $0x50] ss:$0 sps:$4 sm:$0x11]   ;;  %v4744_v27 = vld [vmem:[%s6450_s10 + $0x58] sm:$0xf] }
  0x36   : > { %2718 = vmatmul.mubr.bf16.gmra.mxu1 %v953_v21  ;;  %2564 = vmatprep.mubr.bf16.mxu0 %v726_v33  ;;  %v3619_v21 = vrot.slane %v3617_v1, 4  ;;  %v6107_v33 = vld [vmem:[%s8305_s1 + $0x118] sm:$0xff]   ;;  %v6648_v1 = vrot.slane %v1159_v37, 1  ;;  %v4897_v39 = vcombine.low %v406_v28, %v365_v5 }
  0x37   : > { %2725 = vmatprep.mubr.bf16.mxu1 %v6525_v23  ;;  %5650 = vmatpush3.bf16.msra.mxu0 %v6083_v32  ;;  %v961_v32 = vrot.slane %v6079_v9, 1  ;;  %v752_v56 = vshrl.u32 %v6622_v47, 16  ;;  %v754_v59 = vshll.u32 %v6622_v47, 16  ;;  %v6658_v37 = vrot.slane %v3633_v49, 4 }
  0x38   : > { %5762 = vmatpush3.bf16.msra.mxu1 %v6085_v42  ;;  %5651 = vmatprep.subr.bf16.mxu0 %v6094_v52  ;;  %v3623_v42 = vor.u32 %v3622_v25, %v3619_v21  ;;  %v6631_v52 = vld [vmem:[%s6450_s10 + $0x48] sm:$0xf]  ;;  %v6665_v21 = vcombine.low %v364_v3, %v365_v5  ;;  %v4743_v25 = vld [vmem:[%s6450_s10 + $0x54] sm:$0xf]  ;;  %v6709_v5 = vld [vmem:[%s6450_s10 + $0x60] sm:$0xf] }
  0x39   : > { %v962_v50 = vsel %vm947_vm0, %v960_v35, %v961_v32  ;;  %v6641_v63 = vcombine.low %v6631_v52, %v6634_v53  ;;  %v756_v7 = vrot.slane %v754_v59, 1  ;;  %v771_v32 = vshll.u32 %v6091_v22, 16  ;;  %v6133_v3 = vld [vmem:[%s8305_s1 + $0x188] sm:$0xff]  }
  0x3a   : > { %v6653_v6 = vrot.slane %v3623_v42, 4  ;;  %v3668_v42 = vshll.u32 %v6552_v45, 16 }
  0x3b   : > { %5652 = vmatpush3.bf16.msra.mxu0 %v6095_v0  ;;  %v6118_v0 = vld [vmem:[%s8305_s1 + $0x150] sm:$0xff]  }
  0x3c   : > { %5653 = vmatprep.subr.bf16.mxu0 %v6106_v29  ;;  %v766_v29 = vshll.u32 %v6665_v21, 16 }
  0x3d   : > { %2565 = vmatmul.mubr.bf16.gmra.mxu0 %v4861_v10  ;;  %v6096_v10 = vld [vmem:[%s8305_s1 + $0x1e0] sm:$0xff]  }
  0x3e   : > { %2726 = vmatmul.mubr.bf16.gmra.mxu1 %v956_v44  ;;  %5763 = vmatprep.subr.bf16.mxu1 %v6096_v10  ;;  %v750_v44 = vsel %vm690_vm1, %v745_v34, %v749_v31  ;;  %v4896_v10 = vcombine.low %v405_v55, %v363_v41  ;;  %v3665_v31 = vshrl.u32 %v6552_v45, 16  ;;  %v768_v35 = vrot.slane %v766_v29, 1  ;;  %v6130_v41 = vld [vmem:[%s8305_s1 + $0x148] sm:$0xff]   ;;  %v366_v45 = vld [vmem:[%s6450_s10 + $0x54] sm:$0xf] }
  0x3f   : > { %2733 = vmatprep.mubr.bf16.mxu1 %v6562_v51  ;;  %2572 = vmatprep.mubr.bf16.mxu0 %v738_v16  ;;  %v3644_v16 = vshll.u32 %v6511_v11, 16  ;;  %v6132_v55 = vld [vmem:[%s8305_s1 + $0x1c8] sm:$0xff]   ;;  %v6885_v29 = vld [vmem:[%s6450_s10 + $0x98] ss:$0 sps:$4 sm:$0x11]  }
  0x40   : > { %5764 = vmatpush3.bf16.msra.mxu1 %v6097_v60  ;;  %5654 = vmatpush3.bf16.msra.mxu0 %v6107_v33  ;;  %v963_v18 = vrot.slane %v4896_v10, 1  ;;  %v6120_v60 = vld [vmem:[%s8305_s1 + $0x1d0] sm:$0xff]  }
  0x41   : > { %5765 = vmatprep.subr.bf16.mxu1 %v6108_v36  ;;  %5655 = vmatprep.subr.bf16.mxu0 %v6118_v0  ;;  %v6121_v33 = vld [vmem:[%s8305_s1 + $0x190] sm:$0xff]   ;;  %v6683_v36 = vcombine.low %v4743_v25, %v4744_v27  ;;  %v6703_v0 = vld [vmem:[%s6450_s10 + $0x5c] ss:$0 sps:$4 sm:$0x11]   ;;  %v368_v25 = vld [vmem:[%s6450_s10 + $0x60] sm:$0xf] }
  0x44   : > { %5766 = vmatpush3.bf16.msra.mxu1 %v6109_v48  ;;  %5656 = vmatpush3.bf16.msra.mxu0 %v6119_v57  ;;  %v6131_v48 = vld [vmem:[%s8305_s1 + $0x108] sm:$0xff]  }
  0x45   : > { %2573 = vmatmul.mubr.bf16.gmra.mxu0 %v6544_v40  ;;  %v6087_v40 = vld [vmem:[%s6450_s10 + $0x44] ss:$0 sps:$4 sm:$0x11]   ;;  %5767 = vmatprep.subr.bf16.mxu1 %v6120_v60 }
  0x46   : > { %2734 = vmatmul.mubr.bf16.gmra.mxu1 %v959_v17  ;;  %2580 = vmatprep.mubr.bf16.mxu0 %v750_v44  ;;  %v759_v62 = vshll.u32 %v6087_v40, 16  ;;  %v757_v17 = vor.u32 %v756_v7, %v752_v56  ;;  %v964_v19 = vrot.slane %v6087_v40, 1  ;;  %v773_v44 = vrot.slane %v771_v32, 1  ;;  %v367_v56 = vld [vmem:[%s6450_s10 + $0x58] sm:$0xf] }
  0x47   : > { %2741 = vmatprep.mubr.bf16.mxu1 %v6601_v24  ;;  %v967_v40 = vrot.slane %v6091_v22, 1  ;;  %5657 = vmatprep.subr.bf16.mxu0 %v6130_v41  ;;  %v6712_v7 = vld [vmem:[%s6450_s10 + $0x64] sm:$0xf]  ;;  %v3674_v22 = vshll.u32 %v6555_v46, 16  ;;  %v3667_v32 = vrot.slane %v3665_v31, 4 }
  0x48   : > { %v761_v9 = vrot.slane %v759_v62, 1  ;;  %v965_v34 = vsel %vm947_vm0, %v963_v18, %v964_v19  ;;  %5768 = vmatpush3.bf16.msra.mxu1 %v6121_v33  ;;  %5658 = vmatpush3.bf16.msra.mxu0 %v6131_v48  ;;  %v6700_v62 = vcombine.low %v366_v45, %v367_v56  ;;  %v6142_v18 = vld [vmem:[%s8305_s1 + $0x140] sm:$0xff]   ;;  %v6723_v19 = vrot.slane %v3644_v16, 5 }
  0x49   : > { %5769 = vmatprep.subr.bf16.mxu1 %v6132_v55  ;;  %5659 = vmatprep.subr.bf16.mxu0 %v6142_v18  ;;  %v6143_v16 = vld [vmem:[%s8305_s1 + $0x100] sm:$0xff]   ;;  %v3670_v33 = vrot.slane %v3668_v42, 5  ;;  %v970_v42 = vrot.slane %v6703_v0, 1 }
  0x4a   : > { %v762_v11 = vsel %vm690_vm1, %v757_v17, %v761_v9  ;;  %v6715_v9 = vrot.slane %v3641_v14, 4  ;;  %v776_v10 = vshrl.u32 %v6700_v62, 16  ;;  %v778_v57 = vshll.u32 %v6700_v62, 16  ;;  %8355 = vst [vmem:[#allocation6_spill] sm:$0xff] %v6723_v19  ;;  %v369_v14 = vld [vmem:[%s6450_s10 + $0x64] sm:$0xf] }
  0x4b   : > { %v783_v17 = vshll.u32 %v6703_v0, 16  ;;  %v6144_v48 = vld [vmem:[%s8305_s1 + $0x1c0] sm:$0xff]   ;;  %v6761_v0 = vrot.slane %v3674_v22, 5  ;;  %v6773_v22 = vld [vmem:[%s8306_s2 + $0x38] sm:$0xff]  }
  0x4c   : > { %8354 = vst [vmem:[#allocation5_spill] sm:$0xff] %v6715_v9  ;;  %5770 = vmatpush3.bf16.msra.mxu1 %v6133_v3  ;;  %v780_v27 = vrot.slane %v778_v57, 1  ;;  %5660 = vmatpush3.bf16.msra.mxu0 %v6143_v16  ;;  %v371_v16 = vld [vmem:[%s6450_s10 + $0x70] sm:$0xf] }
  0x4d   : > { %2581 = vmatmul.mubr.bf16.gmra.mxu0 %v6583_v8  ;;  %v764_v8 = vshrl.u32 %v6665_v21, 16  ;;  %v785_v28 = vrot.slane %v783_v17, 1  ;;  %5771 = vmatprep.subr.bf16.mxu1 %v6144_v48  ;;  %v6927_v19 = vld [vmem:[%s6450_s10 + $0xa4] ss:$0 sps:$4 sm:$0x11]  }
  0x4e   : > { %2742 = vmatmul.mubr.bf16.gmra.mxu1 %v962_v50  ;;  %2588 = vmatprep.mubr.bf16.mxu0 %v762_v11  ;;  %v966_v50 = vrot.slane %v4897_v39, 1  ;;  %v6731_v11 = vcombine.low %v6709_v5, %v6712_v7  ;;  %v3716_v39 = vshll.u32 %v6631_v52, 16  ;;  %v781_v41 = vor.u32 %v780_v27, %v776_v10 }
  0x4f   : > { %2749 = vmatprep.mubr.bf16.mxu1 %v6641_v63  ;;  %v769_v49 = vor.u32 %v768_v35, %v764_v8  ;;  %v3713_v35 = vshrl.u32 %v6631_v52, 16  ;;  %v3671_v10 = vor.u32 %v3670_v33, %v3667_v32 }
  0x50   : > { %v968_v60 = vsel %vm947_vm0, %v966_v50, %v967_v40  ;;  %v6743_v40 = vld [vmem:[%s6450_s10 + $0x68] ss:$0 sps:$4 sm:$0x11]   ;;  %v786_v52 = vsel %vm690_vm1, %v781_v41, %v785_v28 }
  0x51   : > { %v774_v59 = vsel %vm690_vm1, %v769_v49, %v773_v44  ;;  %v6740_v44 = vcombine.low %v368_v25, %v369_v14  ;;  %v408_v49 = vld [vmem:[%s6450_s10 + $0x60] sm:$0xe]  ;;  %v795_v45 = vshll.u32 %v6743_v40, 16  ;;  %v3715_v57 = vrot.slane %v3713_v35, 4 }
  0x52   : > { %v4899_v18 = vcombine.low %v408_v49, %v369_v14  ;;  %v6787_v35 = vrot.slane %v3671_v10, 4  ;;  %v973_v48 = vrot.slane %v6743_v40, 1  ;;  %v372_v40 = vld [vmem:[%s6450_s10 + $0x78] sm:$0xf] }
  0x53   : > { %v788_v50 = vshrl.u32 %v6740_v44, 16  ;;  %v790_v55 = vshll.u32 %v6740_v44, 16  ;;  %v797_v17 = vrot.slane %v795_v45, 1  ;;  %v409_v45 = vld [vmem:[%s6450_s10 + $0x6c] sm:$0xe] }
  0x54   : > { %8357 = vst [vmem:[#allocation8_spill] sm:$0xff] %v6787_v35  ;;  %v972_v41 = vrot.slane %v4899_v18, 1  ;;  %v3764_v18 = vshll.u32 %v6709_v5, 16 }
  0x55   : > { %2589 = vmatmul.mubr.bf16.gmra.mxu0 %v6622_v47  ;;  %v407_v47 = vld [vmem:[%s6450_s10 + $0x54] sm:$0xe]  ;;  %v792_v3 = vrot.slane %v790_v55, 1 }
  0x56   : > { %2750 = vmatmul.mubr.bf16.gmra.mxu1 %v965_v34  ;;  %2596 = vmatprep.mubr.bf16.mxu0 %v774_v59  ;;  %v4898_v8 = vcombine.low %v407_v47, %v367_v56  ;;  %v3678_v34 = vshrl.u32 %v6555_v46, 16  ;;  %v4747_v46 = vld [vmem:[%s6450_s10 + $0x6c] sm:$0xf]  ;;  %v4748_v56 = vld [vmem:[%s6450_s10 + $0x70] sm:$0xf]  ;;  %v6145_v59 = vld [vmem:[%s8305_s1 + $0x180] sm:$0xff]  }
  0x57   : > { %2757 = vmatprep.mubr.bf16.mxu1 %v6683_v36  ;;  %v6768_v47 = vld [vmem:[%s8305_s1 + $0x238] sm:$0xff]   ;;  %5772 = vmatpush3.bf16.msra.mxu1 %v6145_v59  ;;  %v793_v27 = vor.u32 %v792_v3, %v788_v50  ;;  %v6776_v28 = vcombine.low %v4747_v46, %v4748_v56 }
  0x58   : > { %v969_v31 = vrot.slane %v4898_v8, 1  ;;  %5917 = vmatprep.subr.bf16.mxu0 %v6768_v47  ;;  %v370_v8 = vld [vmem:[%s6450_s10 + $0x6c] sm:$0xf]  ;;  %5965 = vmatprep.subr.bf16.mxu1 %v6773_v22  ;;  %v6800_v50 = vld [vmem:[%s6450_s10 + $0x7c] sm:$0xf] }
  0x59   : > { %v798_v32 = vsel %vm690_vm1, %v793_v27, %v797_v17  ;;  %v6784_v33 = vcombine.low %v370_v8, %v371_v16  ;;  %v373_v56 = vld [vmem:[%s6450_s10 + $0x7c] sm:$0xf]  ;;  %v3761_v17 = vshrl.u32 %v6709_v5, 16  ;;  %v4900_v27 = vcombine.low %v409_v45, %v371_v16 }
  0x5a   : > { %v971_v25 = vsel %vm947_vm0, %v969_v31, %v970_v42  ;;  %v6792_v31 = vld [vmem:[%s6450_s10 + $0x78] sm:$0xf]  ;;  %v3726_v42 = vshrl.u32 %v6634_v53, 16  ;;  %v6816_v8 = vcombine.low %v372_v40, %v373_v56  ;;  %v3770_v5 = vshll.u32 %v6712_v7, 16 }
  0x5b   : > { %v800_v46 = vshrl.u32 %v6784_v33, 16  ;;  %v802_v49 = vshll.u32 %v6784_v33, 16  ;;  %v3766_v45 = vrot.slane %v3764_v18, 5  ;;  %v975_v40 = vrot.slane %v4900_v27, 1 }
  0x5c   : > { %v814_v16 = vshll.u32 %v6816_v8, 16 }
  0x5d   : > { %2597 = vmatmul.mubr.bf16.gmra.mxu0 %v6665_v21  ;;  %v6763_v21 = vrot.slane %v3678_v34, 4  ;;  %v6111_v34 = vld [vmem:[%s6450_s10 + $0x74] ss:$0 sps:$4 sm:$0x11]  }
  0x5e   : > { %2758 = vmatmul.mubr.bf16.gmra.mxu1 %v968_v60  ;;  %2604 = vmatprep.mubr.bf16.mxu0 %v786_v52  ;;  %v3718_v60 = vrot.slane %v3716_v39, 5  ;;  %v3722_v39 = vshll.u32 %v6634_v53, 16  ;;  %v807_v52 = vshll.u32 %v6111_v34, 16 }
  0x5f   : > { %2765 = vmatprep.mubr.bf16.mxu1 %v6731_v11  ;;  %8356 = vst [vmem:[#allocation7_spill] sm:$0xff] %v6763_v21 }
  0x60   : > { %v3719_v55 = vor.u32 %v3718_v60, %v3715_v57  ;;  %v809_v3 = vrot.slane %v807_v52, 1  ;;  %v6807_v10 = vrot.slane %v3722_v39, 5  ;;  %v6814_v60 = vcombine.low %v6792_v31, %v6800_v50  ;;  %v375_v52 = vld [vmem:[%s6450_s10 + $0x88] sm:$0xf] }
  0x61   : > { %v6823_v39 = vrot.slane %v3726_v42, 4  ;;  %v6832_v42 = vld [vmem:[%s6450_s10 + $0x84] sm:$0xf]  ;;  %v6848_v27 = vcombine.low %v374_v54, %v375_v52 }
  0x62   : > { %8358 = vst [vmem:[#allocation9_spill] sm:$0xff] %v6807_v10 }
  0x63   : > { %8360 = vst [vmem:[#allocation11_spill] sm:$0xff] %v6823_v39  ;;  %v4797_v39 = vld [vmem:[%s6450_s10 + $0x24] sm:$0xf] }
  0x65   : > { %2605 = vmatmul.mubr.bf16.gmra.mxu0 %v6700_v62  ;;  %v804_v62 = vrot.slane %v802_v49, 1  ;;  %v6821_v49 = vrot.slane %v3719_v55, 4 }
  0x66   : > { %2766 = vmatmul.mubr.bf16.gmra.mxu1 %v971_v25  ;;  %2612 = vmatprep.mubr.bf16.mxu0 %v798_v32  ;;  %v974_v25 = vsel %vm947_vm0, %v972_v41, %v973_v48  ;;  %v6819_v32 = vld [vmem:[%s6450_s10 + $0x80] ss:$0 sps:$4 sm:$0x11]   ;;  %v812_v48 = vshrl.u32 %v6816_v8, 16 }
  0x67   : > { %2773 = vmatprep.mubr.bf16.mxu1 %v6776_v28  ;;  %v805_v57 = vor.u32 %v804_v62, %v800_v46  ;;  %8359 = vst [vmem:[#allocation10_spill] sm:$0xff] %v6821_v49  ;;  %v3763_v46 = vrot.slane %v3761_v17, 4  ;;  %v819_v55 = vshll.u32 %v6819_v32, 16  ;;  %v976_v62 = vrot.slane %v6111_v34, 1  ;;  %v410_v17 = vld [vmem:[%s6450_s10 + $0x78] sm:$0xe] }
  0x68   : > { %v4901_v34 = vcombine.low %v410_v17, %v373_v56  ;;  %v3812_v56 = vshll.u32 %v6792_v31, 16  ;;  %v411_v17 = vld [vmem:[%s6450_s10 + $0x84] sm:$0xe]  ;;  %v4798_v49 = vld [vmem:[%s6450_s10 + $0x28] sm:$0xf] }
  0x69   : > { %v810_v41 = vsel %vm690_vm1, %v805_v57, %v809_v3  ;;  %v816_v3 = vrot.slane %v814_v16, 1  ;;  %v6837_v57 = vld [vmem:[%s6450_s10 + $0x88] sm:$0xf]  ;;  %v821_v30 = vrot.slane %v819_v55, 1  ;;  %v977_v18 = vsel %vm947_vm0, %v975_v40, %v976_v62 }
  0x6a   : > { %8361 = vst [vmem:[#allocation12_spill] sm:$0xff] %v6837_v57  ;;  %v3809_v55 = vshrl.u32 %v6792_v31, 16  ;;  %v824_v62 = vshrl.u32 %v6848_v27, 16  ;;  %v6875_v31 = vld [vmem:[%s6450_s10 + $0x90] sm:$0xf] }
  0x6b   : > { %v817_v14 = vor.u32 %v816_v3, %v812_v48  ;;  %v6854_v48 = vrot.slane %v3770_v5, 5  ;;  %v826_v3 = vshll.u32 %v6848_v27, 16  ;;  %v6865_v5 = vld [vmem:[%s6450_s10 + $0x94] sm:$0xf] }
  0x6d   : > { %2613 = vmatmul.mubr.bf16.gmra.mxu0 %v6740_v44  ;;  %v6846_v44 = vcombine.low %v6832_v42, %v6837_v57  ;;  %8362 = vst [vmem:[#allocation13_spill] sm:$0xff] %v6854_v48  ;;  %v822_v40 = vsel %vm690_vm1, %v817_v14, %v821_v30  ;;  %v978_v30 = vrot.slane %v4901_v34, 1  ;;  %v828_v14 = vrot.slane %v826_v3, 1 }
  0x6e   : > { %2774 = vmatmul.mubr.bf16.gmra.mxu1 %v974_v25  ;;  %2620 = vmatprep.mubr.bf16.mxu0 %v810_v41  ;;  %v3774_v25 = vshrl.u32 %v6712_v7, 16  ;;  %v6851_v41 = vld [vmem:[%s6450_s10 + $0x8c] ss:$0 sps:$4 sm:$0x11]   ;;  %v3767_v7 = vor.u32 %v3766_v45, %v3763_v46  ;;  %v979_v46 = vrot.slane %v6819_v32, 1  ;;  %v3811_v34 = vrot.slane %v3809_v55, 4 }
  0x6f   : > { %2781 = vmatprep.mubr.bf16.mxu1 %v6814_v60  ;;  %v831_v54 = vshll.u32 %v6851_v41, 16  ;;  %v376_v45 = vld [vmem:[%s6450_s10 + $0x90] sm:$0xf]  ;;  %v829_v59 = vor.u32 %v828_v14, %v824_v62  ;;  %v3814_v3 = vrot.slane %v3812_v56, 5  ;;  %v3818_v55 = vshll.u32 %v6800_v50, 16 }
  0x70   : > { %v6870_v16 = vrot.slane %v3767_v7, 4  ;;  %v6872_v53 = vrot.slane %v3774_v25, 4  ;;  %v4902_v7 = vcombine.low %v411_v17, %v375_v52  ;;  %v3822_v52 = vshrl.u32 %v6800_v50, 16  ;;  %v6907_v50 = vld [vmem:[%s6450_s10 + $0x9c] sm:$0xf] }
  0x71   : > { %v833_v58 = vrot.slane %v831_v54, 1  ;;  %v6896_v54 = vrot.slane %v1171_v2, 1  ;;  %v3833_v56 = vshrl.u32 %v6832_v42, 16  ;;  %v843_v2 = vshll.u32 %v6885_v29, 16 }
  0x72   : > { %8363 = vst [vmem:[#allocation14_spill] sm:$0xff] %v6870_v16  ;;  %8364 = vst [vmem:[#allocation15_spill] sm:$0xff] %v6872_v53  ;;  %v3815_v17 = vor.u32 %v3814_v3, %v3811_v34  ;;  %v981_v32 = vrot.slane %v4902_v7, 1  ;;  %v982_v25 = vrot.slane %v6851_v41, 1  ;;  %v379_v3 = vld [vmem:[%s6450_s10 + $0xa0] sm:$0xf] }
  0x73   : > { %v845_v34 = vrot.slane %v843_v2, 1  ;;  %v6920_v41 = vrot.slane %v3818_v55, 5  ;;  %v3860_v2 = vshll.u32 %v6875_v31, 16  ;;  %v8381_v48 = vshll.u32 %v6562_v51, 16 }
  0x74   : > { %v6918_v7 = vrot.slane %v3815_v17, 4 }
  0x75   : > { %2621 = vmatmul.mubr.bf16.gmra.mxu0 %v6784_v33  ;;  %v6882_v33 = vcombine.low %v376_v45, %v6865_v5  ;;  %v834_v45 = vsel %vm690_vm1, %v829_v59, %v833_v58  ;;  %v412_v58 = vld [vmem:[%s6450_s10 + $0x90] sm:$0xe]  ;;  %v378_v59 = vld [vmem:[%s6450_s10 + $0x9c] sm:$0xf]  ;;  %8368 = vst [vmem:[#allocation19_spill] sm:$0xff] %v6920_v41 }
  0x76   : > { %2782 = vmatmul.mubr.bf16.gmra.mxu1 %v977_v18  ;;  %2628 = vmatprep.mubr.bf16.mxu0 %v822_v40  ;;  %v6878_v18 = vld [vmem:[%s6450_s10 + $0x94] sm:$0xf]  ;;  %v980_v40 = vsel %vm947_vm0, %v978_v30, %v979_v46  ;;  %v3836_v46 = vshll.u32 %v6832_v42, 16  ;;  %v6912_v42 = vld [vmem:[%s6450_s10 + $0xa0] sm:$0xf]  ;;  %8367 = vst [vmem:[#allocation18_spill] sm:$0xff] %v6918_v7 }
  0x77   : > { %2789 = vmatprep.mubr.bf16.mxu1 %v6846_v44  ;;  %v6891_v13 = vcombine.low %v6875_v31, %v6878_v18  ;;  %v838_v62 = vshll.u32 %v6882_v33, 16  ;;  %v836_v30 = vshrl.u32 %v6882_v33, 16  ;;  %8366 = vst [vmem:[#allocation17_spill] sm:$0xff] %v6912_v42  ;;  %v7013_v7 = vld [vmem:[%s6450_s10 + $0xbc] ss:$0 sps:$4 sm:$0x11]  }
  0x78   : > { %v6937_v55 = vrot.slane %v3836_v46, 5  ;;  %v6961_v46 = vld [vmem:[%s6450_s10 + $0xa8] sm:$0xf] }
  0x79   : > { %8365 = vst [vmem:[#allocation16_spill] sm:$0xff] %v6891_v13  ;;  %v840_v14 = vrot.slane %v838_v62, 1  ;;  %v983_v62 = vsel %vm947_vm0, %v981_v32, %v982_v25  ;;  %v855_v32 = vshll.u32 %v6927_v19, 16  ;;  %v413_v25 = vld [vmem:[%s6450_s10 + $0x9c] sm:$0xe] }
  0x7a   : > { %8371 = vst [vmem:[#allocation22_spill] sm:$0xff] %v6937_v55  ;;  %v985_v55 = vrot.slane %v6885_v29, 1 }
  0x7b   : > { %v841_v4 = vor.u32 %v840_v14, %v836_v30  ;;  %v6934_v30 = vcombine.low %v6907_v50, %v6912_v42  ;;  %v4903_v14 = vcombine.low %v412_v58, %v6865_v5  ;;  %v8372_v58 = vshll.u32 %v6525_v23, 16  ;;  %v7046_v42 = vld [vmem:[%s6450_s10 + $0xc4] sm:$0xf] }
  0x7d   : > { %2629 = vmatmul.mubr.bf16.gmra.mxu0 %v6816_v8  ;;  %v6924_v8 = vcombine.low %v378_v59, %v379_v3  ;;  %v380_v59 = vld [vmem:[%s6450_s10 + $0xa8] sm:$0xf]  ;;  %v6968_v57 = vrot.slane %v8372_v58, 1 }
  0x7e   : > { %2790 = vmatmul.mubr.bf16.gmra.mxu1 %v980_v40  ;;  %2636 = vmatprep.mubr.bf16.mxu0 %v834_v45  ;;  %v6922_v40 = vrot.slane %v3822_v52, 4  ;;  %v6929_v45 = vrot.slane %v3833_v56, 4  ;;  %v3857_v52 = vshrl.u32 %v6875_v31, 16  ;;  %v846_v56 = vsel %vm690_vm1, %v841_v4, %v845_v34 }
  0x7f   : > { %2797 = vmatprep.mubr.bf16.mxu1 %v6891_v13  ;;  %v850_v17 = vshll.u32 %v6924_v8, 16  ;;  %v848_v9 = vshrl.u32 %v6924_v8, 16  ;;  %v3866_v4 = vshll.u32 %v6878_v18, 16  ;;  %v984_v34 = vrot.slane %v4903_v14, 1 }
  0x80   : > { %8369 = vst [vmem:[#allocation20_spill] sm:$0xff] %v6922_v40  ;;  %8370 = vst [vmem:[#allocation21_spill] sm:$0xff] %v6929_v45  ;;  %v6958_v45 = vcombine.low %v380_v59, %v6948_v15  ;;  %v3859_v5 = vrot.slane %v3857_v52, 4  ;;  %v857_v40 = vrot.slane %v855_v32, 1  ;;  %v3870_v59 = vshrl.u32 %v6878_v18, 16 }
  0x81   : > { %v852_v31 = vrot.slane %v850_v17, 1  ;;  %v4904_v17 = vcombine.low %v413_v25, %v379_v3  ;;  %v6971_v14 = vld [vmem:[%s6450_s10 + $0xb0] ss:$0 sps:$4 sm:$0x11]   ;;  %v3881_v3 = vshrl.u32 %v6907_v50, 16  ;;  %v3884_v32 = vshll.u32 %v6907_v50, 16 }
  0x82   : > { %v862_v29 = vshll.u32 %v6958_v45, 16  ;;  %v860_v18 = vshrl.u32 %v6958_v45, 16  ;;  %v382_v50 = vld [vmem:[%s6450_s10 + $0xb4] sm:$0xf] }
  0x83   : > { %v853_v38 = vor.u32 %v852_v31, %v848_v9  ;;  %v986_v9 = vsel %vm947_vm0, %v984_v34, %v985_v55  ;;  %v987_v25 = vrot.slane %v4904_v17, 1  ;;  %v988_v31 = vrot.slane %v6927_v19, 1  ;;  %v414_v55 = vld [vmem:[%s6450_s10 + $0xa8] sm:$0xe]  ;;  %v6994_v34 = vld [vmem:[%s6450_s10 + $0xb8] sm:$0xf] }
  0x84   : > { %v864_v52 = vrot.slane %v862_v29, 1  ;;  %v6996_v19 = vrot.slane %v3870_v59, 4  ;;  %v1303_v17 = vshll.u32 %v6934_v30, 16  ;;  %v7015_v59 = vrot.slane %v3884_v32, 5 }
  0x85   : > { %2637 = vmatmul.mubr.bf16.gmra.mxu0 %v6848_v27  ;;  %v3862_v27 = vrot.slane %v3860_v2, 5 }
  0x86   : > { %2798 = vmatmul.mubr.bf16.gmra.mxu1 %v983_v62  ;;  %2644 = vmatprep.mubr.bf16.mxu0 %v846_v56  ;;  %v6964_v62 = vld [vmem:[%s6450_s10 + $0xac] sm:$0xf]  ;;  %v6976_v56 = vrot.slane %v3866_v4, 5  ;;  %v858_v4 = vsel %vm690_vm1, %v853_v38, %v857_v40  ;;  %8374 = vst [vmem:[#allocation24_spill] sm:$0xff] %v6996_v19  ;;  %v7003_v38 = vld [vmem:[%s6450_s10 + $0xb8] sm:$0xf]  ;;  %v7006_v40 = vcombine.low %v382_v50, %v6994_v34 }
  0x87   : > { %2805 = vmatprep.mubr.bf16.mxu1 %v6934_v30  ;;  %v6982_v2 = vcombine.low %v6961_v46, %v6964_v62  ;;  %v3863_v58 = vor.u32 %v3862_v27, %v3859_v5  ;;  %v7000_v5 = vld [vmem:[%s6450_s10 + $0xb4] sm:$0xf]  ;;  %8375 = vst [vmem:[#allocation25_spill] sm:$0xff] %v7003_v38  ;;  %v865_v29 = vor.u32 %v864_v52, %v860_v18  ;;  %8378 = vst [vmem:[#allocation28_spill] sm:$0xff] %v7015_v59  ;;  %v4796_v50 = vld [vmem:[%s6450_s10 + $0x1c] sm:$0xf] }
  0x88   : > { %8373 = vst [vmem:[#allocation23_spill] sm:$0xff] %v6976_v56  ;;  %v867_v56 = vshll.u32 %v6971_v14, 16  ;;  %v4905_v19 = vcombine.low %v414_v55, %v6948_v15  ;;  %v874_v41 = vshll.u32 %v7006_v40, 16  ;;  %v7024_v52 = vcombine.low %v7000_v5, %v7003_v38  ;;  %v4795_v55 = vld [vmem:[%s6450_s10 + $0x18] sm:$0xf] }
  0x89   : > { %v7008_v27 = vrot.slane %v3863_v58, 4  ;;  %v7027_v32 = vrot.slane %v1303_v17, 1  ;;  %v3905_v18 = vshrl.u32 %v6961_v46, 16  ;;  %v991_v15 = vrot.slane %v6971_v14, 1  ;;  %v7043_v14 = vld [vmem:[%s6450_s10 + $0xc0] sm:$0xf] }
  0x8a   : > { %v872_v58 = vshrl.u32 %v7006_v40, 16  ;;  %v876_v17 = vrot.slane %v874_v41, 1  ;;  %v6153_v59 = vld [vmem:[%s6450_s10 + $0x20] ss:$0 sps:$4 sm:$0x11]   ;;  %v3629_v41 = vsel %vm7035_vm4, %v6653_v6, %v6606_v26  ;;  %v7066_v26 = vrot.slane %v8381_v48, 1 }
  0x8b   : > { %8376 = vst [vmem:[#allocation26_spill] sm:$0xff] %v7008_v27  ;;  %v7052_v27 = vcombine.low %v4795_v55, %v4796_v50  ;;  %v3914_v50 = vshll.u32 %v6964_v62, 16  ;;  %v1628_v16 = vshll.u32 %v6153_v59, 16  ;;  %v7070_v6 = vcombine.low %v7043_v14, %v7046_v42  ;;  %v6247_v48 = vld [vmem:[%s6450_s10 + $0x1c] sm:$0xf] }
  0x8c   : > { %v3918_v10 = vshrl.u32 %v6964_v62, 16  ;;  %v3907_v13 = vrot.slane %v3905_v18, 4  ;;  %v7083_v62 = vcombine.low %v4797_v39, %v4798_v49  ;;  %v4799_v39 = vld [vmem:[%s6450_s10 + $0x30] sm:$0xf] }
  0x8d   : > { %2645 = vmatmul.mubr.bf16.gmra.mxu0 %v6882_v33  ;;  %v7010_v33 = vrot.slane %v3881_v3, 4  ;;  %v989_v3 = vsel %vm947_vm0, %v987_v25, %v988_v31  ;;  %v1623_v53 = vshll.u32 %v7052_v27, 16  ;;  %8382 = vst [vmem:[#allocation29_spill] sm:$0xff] %v7070_v6  ;;  %v1621_v59 = vshrl.u32 %v7052_v27, 16 }
  0x8e   : > { %2806 = vmatmul.mubr.bf16.gmra.mxu1 %v986_v9  ;;  %2652 = vmatprep.mubr.bf16.mxu0 %v858_v4  ;;  %v869_v9 = vrot.slane %v867_v56, 1  ;;  %v879_v4 = vshll.u32 %v7013_v7, 16  ;;  %v990_v56 = vrot.slane %v4905_v19, 1  ;;  %v4763_v19 = vld [vmem:[%s6450_s10 + $0x14] sm:$0x1] }
  0x8f   : > { %2813 = vmatprep.mubr.bf16.mxu1 %v6982_v2  ;;  %8377 = vst [vmem:[#allocation27_spill] sm:$0xff] %v7010_v33  ;;  %v415_v33 = vld [vmem:[%s6450_s10 + $0xb4] sm:$0xe] }
  0x90   : > { %v870_v31 = vsel %vm690_vm1, %v865_v29, %v869_v9  ;;  %v4779_v29 = vld [vmem:[%s6450_s10 + $0xc] sm:$0xe]  ;;  %v3908_v9 = vshll.u32 %v6961_v46, 16  ;;  %v992_v55 = vsel %vm947_vm0, %v990_v56, %v991_v15  ;;  %v4923_v46 = vcombine.low %v4763_v19, %v4763_v19 }
  0x91   : > { %v1625_v56 = vrot.slane %v1623_v53, 1 }
  0x92   : > { %v3910_v21 = vrot.slane %v3908_v9, 5  ;;  %v1630_v9 = vrot.slane %v1628_v16, 1 }
  0x95   : > { %2653 = vmatmul.mubr.bf16.gmra.mxu0 %v6924_v8  ;;  %v877_v8 = vor.u32 %v876_v17, %v872_v58  ;;  %v6246_v58 = vld [vmem:[%s6450_s10 + $0x10] sm:$0xf]  ;;  %v4764_v17 = vld [vmem:[%s6450_s10 + $0x20] sm:$0x1] }
  0x96   : > { %2814 = vmatmul.mubr.bf16.gmra.mxu1 %v989_v3  ;;  %2660 = vmatprep.mubr.bf16.mxu0 %v870_v31  ;;  %v881_v3 = vrot.slane %v879_v4, 1  ;;  %v4906_v31 = vcombine.low %v415_v33, %v6994_v34  ;;  %v4939_v4 = vcombine.low %v4779_v29, %v6246_v58  ;;  %v3636_v15 = vshll.u32 %v4764_v17, 16 }
  0x97   : > { %2821 = vmatprep.mubr.bf16.mxu1 %v7024_v52  ;;  %v1315_v34 = vshll.u32 %v6982_v2, 16  ;;  %v994_v33 = vrot.slane %v7013_v7, 1  ;;  %v1413_v29 = vrot.slane %v4923_v46, 1  ;;  %v3911_v58 = vor.u32 %v3910_v21, %v3907_v13 }
  0x98   : > { %v882_v35 = vsel %vm690_vm1, %v877_v8, %v881_v3  ;;  %v3638_v19 = vrot.slane %v3636_v15, 5  ;;  %v993_v53 = vrot.slane %v4906_v31, 1  ;;  %v1412_v18 = vrot.slane %v4939_v4, 1  ;;  %v4780_v3 = vld [vmem:[%s6450_s10 + $0x18] sm:$0xe] }
  0x99   : > { %v1626_v8 = vor.u32 %v1625_v56, %v1621_v59  ;;  %v7096_v15 = vrot.slane %v3914_v50, 5  ;;  %v8385_v31 = vshrl.u32 %v6473_v43, 16  ;;  %v1164_v59 = vshll.u32 %v4923_v46, 16 }
  0x9a   : > { %v3639_v7 = vsel %vm7035_vm4, %v6658_v37, %v3638_v19  ;;  %v995_v4 = vsel %vm947_vm0, %v993_v53, %v994_v33  ;;  %v4924_v56 = vcombine.low %v4764_v17, %v4764_v17  ;;  %v4940_v37 = vcombine.low %v4780_v3, %v6247_v48  ;;  %v4801_v3 = vld [vmem:[%s6450_s10 + $0x3c] sm:$0xf] }
  0x9b   : > { %v7092_v49 = vcombine.low %v3629_v41, %v3639_v7  ;;  %8384 = vst [vmem:[#allocation31_spill] sm:$0xff] %v7096_v15  ;;  %v1162_v16 = vor.u32 %v6648_v1, %v8385_v31  ;;  %v7104_v19 = vrot.slane %v1315_v34, 1  ;;  %v7106_v13 = vrot.slane %v3918_v10, 4  ;;  %v4802_v7 = vld [vmem:[%s6450_s10 + $0x40] sm:$0xf] }
  0x9c   : > { %v1631_v21 = vsel %vm690_vm1, %v1626_v8, %v1630_v9  ;;  %v7111_v50 = vrot.slane %v3911_v58, 4  ;;  %v3929_v43 = vshrl.u32 %v7000_v5, 16  ;;  %v1414_v1 = vsel %vm947_vm0, %v1412_v18, %v1413_v29  ;;  %v4765_v29 = vld [vmem:[%s6450_s10 + $0x2c] sm:$0x1]  ;;  %v4781_v31 = vld [vmem:[%s6450_s10 + $0x24] sm:$0xe] }
  0x9d   : > { %2661 = vmatmul.mubr.bf16.gmra.mxu0 %v6958_v45  ;;  %8383 = vst [vmem:[#allocation30_spill] sm:$0xff] %v7092_v49  ;;  %v4800_v45 = vld [vmem:[%s6450_s10 + $0x34] sm:$0xf]  ;;  %8386 = vst [vmem:[#allocation32_spill] sm:$0xff] %v7106_v13  ;;  %v3932_v17 = vshll.u32 %v7000_v5, 16  ;;  %v1633_v10 = vshrl.u32 %v7083_v62, 16  ;;  %v7132_v46 = vcombine.low %v4801_v3, %v4802_v7 }
  0x9e   : > { %2822 = vmatmul.mubr.bf16.gmra.mxu1 %v992_v55  ;;  %2668 = vmatprep.mubr.bf16.mxu0 %v882_v35  ;;  %v6159_v55 = vld [vmem:[%s6450_s10 + $0x2c] ss:$0 sps:$4 sm:$0x11]   ;;  %v1635_v35 = vshll.u32 %v7083_v62, 16  ;;  %v7109_v41 = vcombine.low %v4799_v39, %v4800_v45  ;;  %8387 = vst [vmem:[#allocation33_spill] sm:$0xff] %v7111_v50  ;;  %v1327_v33 = vshll.u32 %v7024_v52, 16 }
  0x9f   : > { %2829 = vmatprep.mubr.bf16.mxu1 %v7070_v6  ;;  %v1640_v34 = vshll.u32 %v6159_v55, 16  ;;  %v1166_v53 = vrot.slane %v1164_v59, 1  ;;  %v1415_v9 = vrot.slane %v4940_v37, 1  ;;  %v1416_v18 = vrot.slane %v4924_v56, 1  ;;  %v6174_v3 = vld [vmem:[%s8305_s1 + $0x228] sm:$0xff]  }
  0xa0   : > { %v1637_v48 = vrot.slane %v1635_v35, 1  ;;  %v6163_v8 = vld [vmem:[%s6450_s10 + $0x38] ss:$0 sps:$4 sm:$0x11]   ;;  %v1647_v5 = vshll.u32 %v7109_v41, 16  ;;  %v4925_v59 = vcombine.low %v4765_v29, %v4765_v29  ;;  %v1645_v37 = vshrl.u32 %v7109_v41, 16 }
  0xa1   : > { %v1642_v45 = vrot.slane %v1640_v34, 1  ;;  %v1167_v35 = vsel %vm690_vm1, %v1162_v16, %v1166_v53  ;;  %v7134_v49 = vrot.slane %v1327_v33, 1  ;;  %v7136_v58 = vrot.slane %v3932_v17, 5  ;;  %v6164_v16 = vld [vmem:[%s8305_s1 + $0x230] sm:$0xff]   ;;  %v7412_v15 = vld [vmem:[%s6450_s10 + $0x8c] sm:$0x1] }
  0xa2   : > { %v1638_v39 = vor.u32 %v1637_v48, %v1633_v10  ;;  %v1417_v10 = vsel %vm947_vm0, %v1415_v9, %v1416_v18  ;;  %v6248_v48 = vld [vmem:[%s6450_s10 + $0x28] sm:$0xf]  ;;  %v3956_v34 = vshll.u32 %v7043_v14, 16  ;;  %v6165_v17 = vld [vmem:[%s8306_s2 + $0x30] sm:$0xff]   ;;  %v8390_v53 = vshll.u32 %v6601_v24, 16 }
  0xa3   : > { %8389 = vst [vmem:[#allocation35_spill] sm:$0xff] %v7136_v58  ;;  %v7157_v18 = vld [vmem:[%s8306_s2 + $0x28] sm:$0xff]   ;;  %v1419_v7 = vrot.slane %v4925_v59, 1 }
  0xa4   : > { %v1643_v33 = vsel %vm690_vm1, %v1638_v39, %v1642_v45  ;;  %v7152_v9 = vrot.slane %v8390_v53, 1  ;;  %v6169_v45 = vld [vmem:[%s6450_s10 + $0x44] ss:$0 sps:$4 sm:$0x11]  }
  0xa5   : > { %2669 = vmatmul.mubr.bf16.gmra.mxu0 %v7006_v40  ;;  %v7128_v40 = vrot.slane %v3929_v43, 4  ;;  %v4941_v43 = vcombine.low %v4781_v31, %v6248_v48  ;;  %v1188_v31 = vshll.u32 %v4925_v59, 16 }
  0xa6   : > { %2830 = vmatmul.mubr.bf16.gmra.mxu1 %v995_v4  ;;  %2870 = vmatprep.mubr.bf16.mxu0 %v1414_v1  ;;  %v1176_v4 = vshll.u32 %v4924_v56, 16  ;;  %v1652_v1 = vshll.u32 %v6163_v8, 16  ;;  %v3953_v56 = vshrl.u32 %v7043_v14, 16  ;;  %v3962_v14 = vshll.u32 %v7046_v42, 16 }
  0xa7   : > { %3031 = vmatprep.mubr.bf16.mxu1 %v1631_v21  ;;  %8388 = vst [vmem:[#allocation34_spill] sm:$0xff] %v7128_v40  ;;  %v1649_v21 = vrot.slane %v1647_v5, 1  ;;  %v7165_v5 = vld [vmem:[%s6450_s10 + $0x38] sm:$0x1]  ;;  %v8405_v40 = vshll.u32 %v6731_v11, 16 }
  0xa8   : > { %v1178_v8 = vrot.slane %v1176_v4, 1  ;;  %v4804_v4 = vld [vmem:[%s6450_s10 + $0x4c] sm:$0xf]  ;;  %v3955_v53 = vrot.slane %v3953_v56, 4  ;;  %v7182_v59 = vcombine.low %v7165_v5, %v7165_v5  ;;  %v3684_v55 = vshll.u32 %v7165_v5, 16 }
  0xa9   : > { %v1650_v39 = vor.u32 %v1649_v21, %v1645_v37  ;;  %v1339_v37 = vshll.u32 %v7070_v6, 16  ;;  %v1245_v13 = vrot.slane %v8405_v40, 1 }
  0xab   : > { %v7215_v5 = vrot.slane %v1339_v37, 1 }
  0xad   : > { %2871 = vmatmul.mubr.bf16.vlgmr.msra.gmra.mxu0 %v1167_v35  ;;  %v4803_v35 = vld [vmem:[%s6450_s10 + $0x48] sm:$0xf]  ;;  %8395 = vst [vmem:[#allocation38_spill] sm:$0xff] %v7215_v5 }
  0xae   : > { %3032 = vmatmul.mubr.bf16.vlgmr.msra.gmra.mxu1 %v7052_v27  ;;  %v8391_v27 = vshrl.u32 %v6498_v61, 16  ;;  %5918 = vmatpush3.bf16.msra.mxu0 %v6768_v47  ;;  %v1659_v61 = vshll.u32 %v7132_v46, 16  ;;  %v3966_v47 = vshrl.u32 %v7046_v42, 16  ;;  %v1664_v42 = vshll.u32 %v6169_v45, 16 }
  0xaf   : > { %5966 = vmatpush3.bf16.msra.mxu1 %v6773_v22  ;;  %2878 = vmatprep.mubr.bf16.mxu0 %v1417_v10  ;;  %v1654_v22 = vrot.slane %v1652_v1, 1  ;;  %v4782_v10 = vld [vmem:[%s6450_s10 + $0x30] sm:$0xe]  ;;  %v1657_v1 = vshrl.u32 %v7132_v46, 16 }
  0xb0   : > { %v1174_v29 = vor.u32 %v6896_v54, %v8391_v27  ;;  %3039 = vmatprep.mubr.bf16.mxu1 %v1643_v33  ;;  %v1418_v54 = vrot.slane %v4941_v43, 1  ;;  %5919 = vmatprep.subr.bf16.mxu0 %v6164_v16  ;;  %v3958_v27 = vrot.slane %v3956_v34, 5  ;;  %v1661_v56 = vrot.slane %v1659_v61, 1  ;;  %v4767_v34 = vld [vmem:[%s6450_s10 + $0x44] sm:$0x1] }
  0xb1   : > { %5967 = vmatprep.subr.bf16.mxu1 %v6165_v17  ;;  %v1655_v43 = vsel %vm690_vm1, %v1650_v39, %v1654_v22  ;;  %v7187_v33 = vcombine.low %v4803_v35, %v4804_v4  ;;  %v1190_v39 = vrot.slane %v1188_v31, 1  ;;  %v6249_v22 = vld [vmem:[%s6450_s10 + $0x34] sm:$0xf]  ;;  %v4783_v61 = vld [vmem:[%s6450_s10 + $0x3c] sm:$0xe]  ;;  %v8393_v4 = vshrl.u32 %v6525_v23, 16 }
  0xb2   : > { %v1179_v21 = vsel %vm690_vm1, %v1174_v29, %v1178_v8  ;;  %5920 = vmatpush3.bf16.msra.mxu0 %v6164_v16  ;;  %v6185_v29 = vld [vmem:[%s8306_s2 + $0x20] sm:$0xff]   ;;  %v7196_v8 = vrot.slane %v3962_v14, 5  ;;  %v1420_v16 = vsel %vm947_vm0, %v1418_v54, %v1419_v7  ;;  %v4942_v45 = vcombine.low %v4782_v10, %v6249_v22  ;;  %v6173_v14 = vld [vmem:[%s6450_s10 + $0x50] ss:$0 sps:$4 sm:$0x11]  }
  0xb3   : > { %5968 = vmatpush3.bf16.msra.mxu1 %v6165_v17  ;;  %v6184_v17 = vld [vmem:[%s8305_s1 + $0x220] sm:$0xff]   ;;  %5921 = vmatprep.subr.bf16.mxu0 %v6174_v3  ;;  %v3959_v35 = vor.u32 %v3958_v27, %v3955_v53  ;;  %v1186_v48 = vor.u32 %v6968_v57, %v8393_v4  ;;  %v7207_v6 = vrot.slane %v3966_v47, 4  ;;  %v1200_v7 = vshll.u32 %v7182_v59, 16  ;;  %v4805_v23 = vld [vmem:[%s6450_s10 + $0x54] sm:$0xf] }
  0xb4   : > { %5969 = vmatprep.subr.bf16.mxu1 %v7157_v18  ;;  %8392 = vst [vmem:[#allocation36_spill] sm:$0xff] %v7196_v8  ;;  %v7210_v54 = vcombine.low %v4767_v34, %v4767_v34  ;;  %v1662_v31 = vor.u32 %v1661_v56, %v1657_v1  ;;  %v1666_v53 = vrot.slane %v1664_v42, 1  ;;  %v4806_v57 = vld [vmem:[%s6450_s10 + $0x58] sm:$0xf]  ;;  %v1421_v27 = vrot.slane %v4942_v45, 1  ;;  %v6204_v22 = vld [vmem:[%s8305_s1 + $0x210] sm:$0xff]  }
  0xb5   : > { %8394 = vst [vmem:[#allocation37_spill] sm:$0xff] %v7207_v6  ;;  %2879 = vmatmul.mubr.bf16.gmra.mxu0 %v1179_v21  ;;  %v1422_v47 = vrot.slane %v7182_v59, 1  ;;  %v6250_v10 = vld [vmem:[%s6450_s10 + $0x40] sm:$0xf]  ;;  %v6194_v1 = vld [vmem:[%s8305_s1 + $0x218] sm:$0xff]   ;;  %v1191_v37 = vsel %vm690_vm1, %v1186_v48, %v1190_v39  ;;  %v7229_v56 = vrot.slane %v3684_v55, 5 }
  0xb6   : > { %3040 = vmatmul.mubr.bf16.gmra.mxu1 %v7083_v62  ;;  %2886 = vmatprep.mubr.bf16.mxu0 %v1420_v16  ;;  %v1671_v62 = vshll.u32 %v7187_v33, 16  ;;  %v4943_v21 = vcombine.low %v4783_v61, %v6250_v10  ;;  %v4768_v59 = vld [vmem:[%s6450_s10 + $0x50] sm:$0x1]  ;;  %v1425_v42 = vrot.slane %v7210_v54, 1  ;;  %v1212_v34 = vshll.u32 %v7210_v54, 16 }
  0xb7   : > { %3047 = vmatprep.mubr.bf16.mxu1 %v1655_v43  ;;  %5922 = vmatpush3.bf16.msra.mxu0 %v6174_v3  ;;  %v6195_v3 = vld [vmem:[%s8306_s2 + $0x18] sm:$0xff]   ;;  %v7226_v43 = vrot.slane %v3959_v35, 4  ;;  %v7234_v16 = vcombine.low %v4805_v23, %v4806_v57  ;;  %v1667_v48 = vsel %vm690_vm1, %v1662_v31, %v1666_v53  ;;  %v1669_v55 = vshrl.u32 %v7187_v33, 16  ;;  %v4784_v61 = vld [vmem:[%s6450_s10 + $0x48] sm:$0xe]  ;;  %v6205_v35 = vld [vmem:[%s8306_s2 + $0x10] sm:$0xff]  }
  0xb8   : > { %5970 = vmatpush3.bf16.msra.mxu1 %v7157_v18  ;;  %5923 = vmatprep.subr.bf16.mxu0 %v6184_v17  ;;  %v1202_v18 = vrot.slane %v1200_v7, 1  ;;  %v1673_v39 = vrot.slane %v1671_v62, 1  ;;  %v1676_v45 = vshll.u32 %v6173_v14, 16  ;;  %v1423_v4 = vsel %vm947_vm0, %v1421_v27, %v1422_v47  ;;  %v6179_v23 = vld [vmem:[%s6450_s10 + $0x5c] ss:$0 sps:$4 sm:$0x11]  }
  0xb9   : > { %8396 = vst [vmem:[#allocation39_spill] sm:$0xff] %v7226_v43  ;;  %5971 = vmatprep.subr.bf16.mxu1 %v6185_v29  ;;  %v1424_v7 = vrot.slane %v4943_v21, 1  ;;  %v7246_v54 = vcombine.low %v4768_v59, %v4768_v59  ;;  %v4807_v31 = vld [vmem:[%s6450_s10 + $0x60] sm:$0xf]  ;;  %v4808_v14 = vld [vmem:[%s6450_s10 + $0x64] sm:$0xf] }
  0xba   : > { %v6251_v62 = vld [vmem:[%s6450_s10 + $0x4c] sm:$0xf]  ;;  %v3732_v27 = vshll.u32 %v4768_v59, 16  ;;  %v1683_v47 = vshll.u32 %v7234_v16, 16  ;;  %v4769_v10 = vld [vmem:[%s6450_s10 + $0x5c] sm:$0x1] }
  0xbb   : > { %5924 = vmatpush3.bf16.msra.mxu0 %v6184_v17  ;;  %v8397_v17 = vshrl.u32 %v6562_v51, 16  ;;  %v4944_v57 = vcombine.low %v4784_v61, %v6251_v62  ;;  %v4785_v21 = vld [vmem:[%s6450_s10 + $0x54] sm:$0xe]  ;;  %v1678_v5 = vrot.slane %v1676_v45, 1  ;;  %v6214_v51 = vld [vmem:[%s8305_s1 + $0x208] sm:$0xff]   ;;  %v8398_v59 = vshll.u32 %v6641_v63, 16 }
  0xbc   : > { %5972 = vmatpush3.bf16.msra.mxu1 %v6185_v29  ;;  %5925 = vmatprep.subr.bf16.mxu0 %v6194_v1  ;;  %v1674_v29 = vor.u32 %v1673_v39, %v1669_v55  ;;  %v1224_v61 = vshll.u32 %v7246_v54, 16  ;;  %v7270_v55 = vcombine.low %v4807_v31, %v4808_v14  ;;  %v7276_v39 = vcombine.low %v4769_v10, %v4769_v10  ;;  %v6252_v45 = vld [vmem:[%s6450_s10 + $0x58] sm:$0xf]  ;;  %v7284_v14 = vld [vmem:[%s6450_s10 + $0x68] sm:$0x1] }
  0xbd   : > { %5973 = vmatprep.subr.bf16.mxu1 %v6195_v3  ;;  %2887 = vmatmul.mubr.bf16.gmra.mxu0 %v1191_v37  ;;  %v1198_v53 = vor.u32 %v7066_v26, %v8397_v17  ;;  %v1688_v26 = vshll.u32 %v6179_v23, 16  ;;  %v6183_v23 = vld [vmem:[%s6450_s10 + $0x68] ss:$0 sps:$4 sm:$0x11]   ;;  %v1427_v17 = vrot.slane %v4944_v57, 1  ;;  %v7280_v62 = vrot.slane %v3732_v27, 5 }
  0xbe   : > { %3048 = vmatmul.mubr.bf16.gmra.mxu1 %v7109_v41  ;;  %2894 = vmatprep.mubr.bf16.mxu0 %v1423_v4  ;;  %v7259_v41 = vrot.slane %v1212_v34, 1  ;;  %v4945_v4 = vcombine.low %v4785_v21, %v6252_v45  ;;  %v1685_v31 = vrot.slane %v1683_v47, 1  ;;  %v1426_v37 = vsel %vm947_vm0, %v1424_v7, %v1425_v42  ;;  %v4809_v10 = vld [vmem:[%s6450_s10 + $0x6c] sm:$0xf]  ;;  %v7291_v43 = vld [vmem:[%s6450_s10 + $0x70] sm:$0xf] }
  0xbf   : > { %3055 = vmatprep.mubr.bf16.mxu1 %v1667_v48  ;;  %5926 = vmatpush3.bf16.msra.mxu0 %v6194_v1  ;;  %v7267_v48 = vrot.slane %v8398_v59, 1  ;;  %v6215_v1 = vld [vmem:[%s8306_s2 + $0x8] sm:$0xff]   ;;  %v1203_v59 = vsel %vm690_vm1, %v1198_v53, %v1202_v18  ;;  %v1679_v34 = vsel %vm690_vm1, %v1674_v29, %v1678_v5  ;;  %v1690_v21 = vrot.slane %v1688_v26, 1  ;;  %v6224_v5 = vld [vmem:[%s8305_s1 + $0x200] sm:$0xff]   ;;  %v4771_v47 = vld [vmem:[%s6450_s10 + $0x74] sm:$0x1] }
  0xc0   : > { %5974 = vmatpush3.bf16.msra.mxu1 %v6195_v3  ;;  %5927 = vmatprep.subr.bf16.mxu0 %v6204_v22  ;;  %v1681_v3 = vshrl.u32 %v7234_v16, 16  ;;  %v7293_v57 = vrot.slane %v1224_v61, 1  ;;  %v1695_v27 = vshll.u32 %v7270_v55, 16  ;;  %v6225_v18 = vld [vmem:[%s8306_s2] sm:$0xff]   ;;  %v8399_v42 = vshrl.u32 %v6601_v24, 16 }
  0xc1   : > { %5975 = vmatprep.subr.bf16.mxu1 %v6205_v35  ;;  %v7307_v7 = vrot.slane %v4945_v4, 1  ;;  %v1700_v53 = vshll.u32 %v6183_v23, 16  ;;  %v7311_v29 = vld [vmem:[%s6450_s10 + $0x74] ss:$0 sps:$4 sm:$0x11]   ;;  %v7319_v24 = vcombine.low %v4809_v10, %v7291_v43  ;;  %v1693_v4 = vshrl.u32 %v7270_v55, 16 }
  0xc2   : > { %v4786_v26 = vld [vmem:[%s6450_s10 + $0x60] sm:$0xe]  ;;  %v7323_v61 = vld [vmem:[%s6450_s10 + $0x7c] sm:$0xf]  ;;  %v1686_v45 = vor.u32 %v1685_v31, %v1681_v3  ;;  %v8401_v23 = vshll.u32 %v6683_v36, 16  ;;  %v7354_v10 = vcombine.low %v4771_v47, %v4771_v47 }
  0xc3   : > { %5928 = vmatpush3.bf16.msra.mxu0 %v6204_v22  ;;  %v1210_v22 = vor.u32 %v7152_v9, %v8399_v42  ;;  %v4811_v9 = vld [vmem:[%s6450_s10 + $0x78] sm:$0xf]  ;;  %8400 = vst [vmem:[#allocation40_spill] sm:$0xff] %v7323_v61  ;;  %v1697_v42 = vrot.slane %v1695_v27, 1  ;;  %v1702_v3 = vrot.slane %v1700_v53, 1  ;;  %v1712_v27 = vshll.u32 %v7311_v29, 16 }
  0xc4   : > { %5976 = vmatpush3.bf16.msra.mxu1 %v6205_v35  ;;  %5929 = vmatprep.subr.bf16.mxu0 %v6214_v51  ;;  %v4787_v35 = vld [vmem:[%s6450_s10 + $0x6c] sm:$0xe]  ;;  %v6253_v31 = vld [vmem:[%s6450_s10 + $0x64] sm:$0xf] }
  0xc5   : > { %5977 = vmatprep.subr.bf16.mxu1 %v6215_v1  ;;  %2895 = vmatmul.mubr.bf16.gmra.mxu0 %v1203_v59  ;;  %v1236_v59 = vshll.u32 %v7276_v39, 16  ;;  %v4946_v6 = vcombine.low %v4786_v26, %v6253_v31  ;;  %v7341_v8 = vld [vmem:[%s6450_s10 + $0x80] ss:$0 sps:$4 sm:$0x11]   ;;  %v1691_v26 = vsel %vm690_vm1, %v1686_v45, %v1690_v21  ;;  %v1698_v38 = vor.u32 %v1697_v42, %v1693_v4  ;;  %v6255_v45 = vld [vmem:[%s6450_s10 + $0x7c] sm:$0xf] }
  0xc6   : > { %3056 = vmatmul.mubr.bf16.gmra.mxu1 %v7132_v46  ;;  %v7316_v46 = vcombine.low %v7284_v14, %v7284_v14  ;;  %2902 = vmatprep.mubr.bf16.mxu0 %v1426_v37  ;;  %v1215_v37 = vsel %vm690_vm1, %v1210_v22, %v7259_v41  ;;  %8402 = vst [vmem:[#allocation41_spill] sm:$0xff] %v7341_v8  ;;  %v8403_v22 = vrot.slane %v7246_v54, 1  ;;  %v6254_v54 = vld [vmem:[%s6450_s10 + $0x70] sm:$0xf]  ;;  %v1724_v47 = vshll.u32 %v7341_v8, 16 }
  0xc7   : > { %3063 = vmatprep.mubr.bf16.mxu1 %v1679_v34  ;;  %v7328_v34 = vrot.slane %v8401_v23, 1  ;;  %5930 = vmatpush3.bf16.msra.mxu0 %v6214_v51  ;;  %v7338_v23 = vcombine.low %v4811_v9, %v7323_v61  ;;  %v3780_v51 = vshll.u32 %v7284_v14, 16  ;;  %v8404_v9 = vshrl.u32 %v6641_v63, 16  ;;  %v7357_v14 = vld [vmem:[%s6450_s10 + $0x80] sm:$0x1] }
  0xc8   : > { %5978 = vmatpush3.bf16.msra.mxu1 %v6215_v1  ;;  %5931 = vmatprep.subr.bf16.mxu0 %v6224_v5  ;;  %v1707_v1 = vshll.u32 %v7319_v24, 16  ;;  %v1248_v41 = vshll.u32 %v7316_v46, 16  ;;  %v1429_v53 = vsel %vm947_vm0, %v1427_v17, %v8403_v22  ;;  %v7359_v58 = vrot.slane %v1236_v59, 1  ;;  %v4813_v17 = vld [vmem:[%s6450_s10 + $0x84] sm:$0xf] }
  0xc9   : > { %5979 = vmatprep.subr.bf16.mxu1 %v6225_v18  ;;  %v1222_v31 = vor.u32 %v7267_v48, %v8404_v9  ;;  %v4947_v50 = vcombine.low %v4787_v35, %v6254_v54  ;;  %v7366_v22 = vld [vmem:[%s6450_s10 + $0x88] sm:$0xf]  ;;  %v7369_v63 = vrot.slane %v4946_v6, 1  ;;  %v1719_v21 = vshll.u32 %v7338_v23, 16  ;;  %v7441_v61 = vld [vmem:[%s6450_s10 + $0xa0] sm:$0xf] }
  0xca   : > { %8406 = vst [vmem:[#allocation42_spill] sm:$0xff] %v7366_v22  ;;  %v7374_v40 = vrot.slane %v3780_v51, 5  ;;  %v1709_v35 = vrot.slane %v1707_v1, 1  ;;  %v7381_v6 = vrot.slane %v1712_v27, 1  ;;  %v7387_v4 = vcombine.low %v4813_v17, %v7366_v22  ;;  %v4789_v22 = vld [vmem:[%s6450_s10 + $0x84] sm:$0xe] }
  0xcb   : > { %5932 = vmatpush3.bf16.msra.mxu0 %v6224_v5  ;;  %v1705_v5 = vshrl.u32 %v7319_v24, 16  ;;  %v7390_v59 = vld [vmem:[%s6450_s10 + $0x8c] ss:$0 sps:$4 sm:$0x11]   ;;  %v7392_v42 = vrot.slane %v4947_v50, 1  ;;  %v1253_v51 = vshrl.u32 %v6776_v28, 16  ;;  %v1227_v54 = vsel %vm690_vm1, %v1222_v31, %v7293_v57 }
  0xcc   : > { %5980 = vmatpush3.bf16.msra.mxu1 %v6225_v18  ;;  %8407 = vst [vmem:[#allocation43_spill] sm:$0xff] %v7374_v40  ;;  %v7383_v18 = vrot.slane %v1248_v41, 1  ;;  %8408 = vst [vmem:[#allocation44_spill] sm:$0xff] %v7390_v59  ;;  %v8409_v1 = vshll.u32 %v6776_v28, 16  ;;  %v4788_v41 = vld [vmem:[%s6450_s10 + $0x78] sm:$0xe] }
  0xcd   : > { %2903 = vmatmul.mubr.bf16.gmra.mxu0 %v1215_v37  ;;  %v1717_v37 = vshrl.u32 %v7338_v23, 16  ;;  %v1260_v9 = vshll.u32 %v7354_v10, 16  ;;  %v3828_v17 = vshll.u32 %v7357_v14, 16  ;;  %v1736_v48 = vshll.u32 %v7390_v59, 16  ;;  %v4815_v50 = vld [vmem:[%s6450_s10 + $0x90] sm:$0xf] }
  0xce   : > { %3064 = vmatmul.mubr.bf16.gmra.mxu1 %v7187_v33  ;;  %v7379_v33 = vcombine.low %v7357_v14, %v7357_v14  ;;  %2910 = vmatprep.mubr.bf16.mxu0 %v1429_v53  ;;  %v1257_v27 = vrot.slane %v8409_v1, 1  ;;  %v1721_v53 = vrot.slane %v1719_v21, 1  ;;  %v1703_v1 = vsel %vm690_vm1, %v1698_v38, %v1702_v3  ;;  %v7421_v31 = vld [vmem:[%s6450_s10 + $0x94] sm:$0xf]  ;;  %v4817_v38 = vld [vmem:[%s6450_s10 + $0x9c] sm:$0xf] }
  0xcf   : > { %3071 = vmatprep.mubr.bf16.mxu1 %v1691_v26  ;;  %v7399_v26 = vrot.slane %v1724_v47, 1  ;;  %v4948_v21 = vcombine.low %v4788_v41, %v6255_v45  ;;  %v1731_v47 = vshll.u32 %v7387_v4, 16  ;;  %v8410_v40 = vrot.slane %v7276_v39, 1 }
  0xd0   : > { %v1272_v28 = vshll.u32 %v7379_v33, 16  ;;  %v8411_v3 = vshrl.u32 %v6934_v30, 16  ;;  %v8412_v45 = vshrl.u32 %v6982_v2, 16  ;;  %v8413_v39 = vshrl.u32 %v6683_v36, 16 }
  0xd1   : > { %v1432_v57 = vsel %vm947_vm0, %v7307_v7, %v8410_v40  ;;  %v1710_v40 = vor.u32 %v1709_v35, %v1705_v5  ;;  %v8414_v59 = vshrl.u32 %v6731_v11, 16  ;;  %v8415_v30 = vshrl.u32 %v7024_v52, 16 }
  0xd2   : > { %v7427_v14 = vor.u32 %v7027_v32, %v8411_v3  ;;  %v7432_v41 = vor.u32 %v7104_v19, %v8412_v45  ;;  %v1234_v7 = vor.u32 %v7328_v34, %v8413_v39  ;;  %v1722_v2 = vor.u32 %v1721_v53, %v1717_v37  ;;  %v7449_v3 = vld [vmem:[%s6450_s10 + $0x88] sm:$0xf]  ;;  %v4790_v39 = vld [vmem:[%s6450_s10 + $0x90] sm:$0xe] }
  0xd3   : > { %v1246_v8 = vor.u32 %v1245_v13, %v8414_v59  ;;  %v7446_v32 = vor.u32 %v7134_v49, %v8415_v30  ;;  %v1258_v19 = vor.u32 %v1257_v27, %v1253_v51  ;;  %v4949_v36 = vcombine.low %v4789_v22, %v7449_v3  ;;  %v7490_v30 = vld [vmem:[%s6450_s10 + $0xa4] ss:$0 sps:$4 sm:$0x11]  }
  0xd4   : > { %v1439_v11 = vrot.slane %v4948_v21, 1  ;;  %v1440_v13 = vrot.slane %v7379_v33, 1  ;;  %v8416_v52 = vshll.u32 %v6814_v60, 16  ;;  %v7456_v49 = vcombine.low %v4815_v50, %v7421_v31  ;;  %v4774_v50 = vld [vmem:[%s6450_s10 + $0x98] sm:$0x1]  ;;  %v8418_v21 = vld [vmem:[#allocation7_spill] sm:$0xff] }
  0xd5   : > { %2911 = vmatmul.mubr.bf16.gmra.mxu0 %v1227_v54  ;;  %v7458_v5 = vrot.slane %v3828_v17, 5  ;;  %v1729_v35 = vshrl.u32 %v7387_v4, 16  ;;  %v4933_v59 = vcombine.low %v7412_v15, %v7412_v15  ;;  %v7464_v22 = vcombine.low %v4817_v38, %v7441_v61  ;;  %v8417_v17 = vld [vmem:[#allocation8_spill] sm:$0xff] }
  0xd6   : > { %3072 = vmatmul.mubr.bf16.gmra.mxu1 %v7234_v16  ;;  %v1262_v16 = vrot.slane %v1260_v9, 1  ;;  %2918 = vmatprep.mubr.bf16.mxu0 %v1432_v57  ;;  %v1269_v34 = vrot.slane %v8416_v52, 1  ;;  %v1733_v37 = vrot.slane %v1731_v47, 1  ;;  %v1738_v33 = vrot.slane %v1736_v48, 1  ;;  %8420 = vst [vmem:[#allocation8_spill] sm:$0xff] %v7490_v30 }
  0xd7   : > { %3079 = vmatprep.mubr.bf16.mxu1 %v1703_v1  ;;  %v1274_v51 = vrot.slane %v1272_v28, 1  ;;  %v1277_v27 = vshrl.u32 %v6846_v44, 16  ;;  %v1442_v53 = vrot.slane %v4949_v36, 1  ;;  %v7468_v9 = vld [vmem:[%s6450_s10 + $0x98] ss:$0 sps:$4 sm:$0x11]   ;;  %v1239_v48 = vsel %vm690_vm1, %v1234_v7, %v7359_v58 }
  0xd8   : > { %v8419_v28 = vrot.slane %v7316_v46, 1  ;;  %v1715_v38 = vsel %vm690_vm1, %v1710_v40, %v7381_v6  ;;  %v1743_v45 = vshll.u32 %v7456_v49, 16  ;;  %v1251_v36 = vsel %vm690_vm1, %v1246_v8, %v7383_v18  ;;  %v7500_v52 = vld [vmem:[%s6450_s10 + $0xa4] sm:$0x1] }
  0xd9   : > { %v8421_v58 = vrot.slane %v7354_v10, 1  ;;  %v1443_v7 = vrot.slane %v4933_v59, 1  ;;  %8422 = vst [vmem:[#allocation7_spill] sm:$0xff] %v7500_v52  ;;  %v1727_v6 = vsel %vm690_vm1, %v1722_v2, %v7399_v26  ;;  %v7506_v40 = vsel %vm690_vm1, %v1258_v19, %v1262_v16 }
  0xda   : > { %v1435_v57 = vsel %vm947_vm0, %v7369_v63, %v8419_v28  ;;  %v1755_v63 = vshll.u32 %v7464_v22, 16  ;;  %v8423_v8 = vshrl.u32 %v6814_v60, 16  ;;  %v7510_v18 = vcombine.low %v4774_v50, %v4774_v50  ;;  %v7514_v28 = vld [vmem:[%s6450_s10 + $0xac] sm:$0xf] }
  0xdb   : > { %v1438_v46 = vsel %vm947_vm0, %v7392_v42, %v8421_v58  ;;  %v4819_v42 = vld [vmem:[%s6450_s10 + $0xa8] sm:$0xf]  ;;  %8424 = vst [vmem:[#allocation45_spill] sm:$0xff] %v7514_v28  ;;  %v1748_v58 = vshll.u32 %v7468_v9, 16  ;;  %v8425_v26 = vshll.u32 %v6846_v44, 16  ;;  %v1284_v19 = vshll.u32 %v4933_v59, 16 }
  0xdc   : > { %v1270_v10 = vor.u32 %v1269_v34, %v8423_v8  ;;  %v1734_v60 = vor.u32 %v1733_v37, %v1729_v35  ;;  %v1745_v16 = vrot.slane %v1743_v45, 1  ;;  %v8426_v34 = vld [vmem:[#allocation16_spill] sm:$0xff]  ;;  %v7523_v1 = vcombine.low %v7500_v52, %v7500_v52 }
  0xdd   : > { %2919 = vmatmul.mubr.bf16.gmra.mxu0 %v1239_v48  ;;  %v1281_v2 = vrot.slane %v8425_v26, 1  ;;  %v1289_v8 = vshrl.u32 %v8426_v34, 16  ;;  %v6257_v48 = vld [vmem:[%s6450_s10 + $0x94] sm:$0xf]  ;;  %v3876_v47 = vshll.u32 %v4774_v50, 16  ;;  %v8427_v54 = vshll.u32 %v8426_v34, 16 }
  0xde   : > { %3080 = vmatmul.mubr.bf16.gmra.mxu1 %v7270_v55  ;;  %v1741_v55 = vshrl.u32 %v7456_v49, 16  ;;  %2926 = vmatprep.mubr.bf16.mxu0 %v1435_v57  ;;  %v4791_v26 = vld [vmem:[%s6450_s10 + $0x9c] sm:$0xe]  ;;  %v7530_v35 = vcombine.low %v4819_v42, %v7514_v28  ;;  %v1753_v59 = vshrl.u32 %v7464_v22, 16  ;;  %v1757_v37 = vrot.slane %v1755_v63, 1 }
  0xdf   : > { %3087 = vmatprep.mubr.bf16.mxu1 %v1715_v38  ;;  %v4950_v38 = vcombine.low %v4790_v39, %v6257_v48  ;;  %v1293_v44 = vrot.slane %v8427_v54, 1  ;;  %v1760_v57 = vshll.u32 %v7490_v30, 16  ;;  %v1296_v45 = vshll.u32 %v7510_v18, 16  ;;  %v4821_v34 = vld [vmem:[%s6450_s10 + $0xb4] sm:$0xf] }
  0xe0   : > { %8428 = vst [vmem:[#allocation16_spill] sm:$0xff] %v7530_v35  ;;  %v7536_v52 = vsel %vm947_vm0, %v1439_v11, %v1440_v13  ;;  %v7539_v50 = vsel %vm690_vm1, %v1270_v10, %v1274_v51  ;;  %v7542_v54 = vsel %vm947_vm0, %v1442_v53, %v1443_v7  ;;  %v1282_v39 = vor.u32 %v1281_v2, %v1277_v27  ;;  %v7546_v42 = vld [vmem:[%s6450_s10 + $0xb8] sm:$0xf]  ;;  %v7552_v28 = vld [vmem:[%s6450_s10 + $0xa0] sm:$0xf] }
  0xe1   : > { %8429 = vst [vmem:[#allocation46_spill] sm:$0xff] %v7546_v42  ;;  %v7549_v48 = vsel %vm690_vm1, %v1734_v60, %v1738_v33  ;;  %v1286_v63 = vrot.slane %v1284_v19, 1  ;;  %8430 = vst [vmem:[#allocation47_spill] sm:$0xff] %v7552_v28  ;;  %v4951_v30 = vcombine.low %v4791_v26, %v7552_v28  ;;  %v7556_v11 = vld [vmem:[%s6450_s10 + $0xb0] ss:$0 sps:$4 sm:$0x11]   ;;  %v1746_v51 = vor.u32 %v1745_v16, %v1741_v55 }
  0xe2   : > { %8431 = vst [vmem:[#allocation48_spill] sm:$0xff] %v7556_v11  ;;  %v1308_v13 = vshll.u32 %v7523_v1, 16  ;;  %v1750_v53 = vrot.slane %v1748_v58, 1  ;;  %v1445_v7 = vrot.slane %v4950_v38, 1  ;;  %v1767_v27 = vshll.u32 %v7530_v35, 16 }
  0xe3   : > { %v1446_v33 = vrot.slane %v7510_v18, 1  ;;  %v7562_v10 = vrot.slane %v3876_v47, 5  ;;  %v1294_v2 = vor.u32 %v1293_v44, %v1289_v8  ;;  %v7565_v19 = vcombine.low %v4821_v34, %v7546_v42  ;;  %v7569_v38 = vld [vmem:[%s6450_s10 + $0xb0] sm:$0x1]  ;;  %v8440_v42 = vld [vmem:[#allocation13_spill] sm:$0xff] }
  0xe4   : > { %v1758_v55 = vor.u32 %v1757_v37, %v1753_v59  ;;  %v1762_v58 = vrot.slane %v1760_v57, 1  ;;  %v1298_v60 = vrot.slane %v1296_v45, 1  ;;  %v1449_v16 = vrot.slane %v7523_v1, 1  ;;  %v7578_v26 = vld [vmem:[%s6450_s10 + $0xbc] ss:$0 sps:$4 sm:$0x11]  }
  0xe5   : > { %8432 = vst [vmem:[#allocation49_spill] sm:$0xff] %v7562_v10  ;;  %8433 = vst [vmem:[#allocation50_spill] sm:$0xff] %v7565_v19  ;;  %2927 = vmatmul.mubr.bf16.gmra.mxu0 %v1251_v36  ;;  %v1765_v47 = vshrl.u32 %v7530_v35, 16  ;;  %v1772_v18 = vshll.u32 %v7556_v11, 16  ;;  %v1310_v8 = vrot.slane %v1308_v13, 1  ;;  %v1769_v44 = vrot.slane %v1767_v27, 1 }
  0xe6   : > { %3088 = vmatmul.mubr.bf16.gmra.mxu1 %v7319_v24  ;;  %2934 = vmatprep.mubr.bf16.mxu0 %v1438_v46  ;;  %v1448_v24 = vrot.slane %v4951_v30, 1  ;;  %v4792_v36 = vld [vmem:[%s6450_s10 + $0xa8] sm:$0xe]  ;;  %8434 = vst [vmem:[#allocation51_spill] sm:$0xff] %v7578_v26  ;;  %v7581_v1 = vld [vmem:[%s6450_s10 + $0xbc] sm:$0x1]  ;;  %v7590_v45 = vsel %vm690_vm1, %v1746_v51, %v1750_v53  ;;  %v7593_v34 = vsel %vm947_vm0, %v1445_v7, %v1446_v33 }
  0xe7   : > { %3095 = vmatprep.mubr.bf16.mxu1 %v1727_v6  ;;  %v7575_v6 = vsel %vm690_vm1, %v1282_v39, %v1286_v63  ;;  %8435 = vst [vmem:[#allocation52_spill] sm:$0xff] %v7581_v1  ;;  %v8436_v59 = vld [vmem:[#allocation9_spill] sm:$0xff]  ;;  %v8437_v46 = vld [vmem:[#allocation10_spill] sm:$0xff]  ;;  %v8438_v37 = vld [vmem:[#allocation11_spill] sm:$0xff]  ;;  %v4936_v39 = vcombine.low %v7569_v38, %v7569_v38  ;;  %v1779_v63 = vshll.u32 %v7565_v19, 16  ;;  %v7603_v30 = vsel %vm690_vm1, %v1758_v55, %v1762_v58 }
  0xe8   : > { %v4823_v13 = vld [vmem:[%s6450_s10 + $0xc0] sm:$0xf]  ;;  %v7600_v27 = vld [vmem:[%s6450_s10 + $0xc4] sm:$0xf]  ;;  %v7606_v57 = vsel %vm690_vm1, %v1294_v2, %v1298_v60  ;;  %v6259_v51 = vld [vmem:[%s6450_s10 + $0xac] sm:$0xf]  ;;  %v7614_v35 = vsel %vm947_vm0, %v1448_v24, %v1449_v16  ;;  %v7618_v11 = vsel %vm690_vm1, %v7427_v14, %v1310_v8  ;;  %v8442_v2 = vor.u32 %v6598_v20, %v6589_v12 }
  0xe9   : > { %8439 = vst [vmem:[#allocation9_spill] sm:$0xff] %v7600_v27  ;;  %v4952_v53 = vcombine.low %v4792_v36, %v6259_v51  ;;  %v8441_v7 = vld [vmem:[#allocation14_spill] sm:$0xff]  ;;  %v1774_v28 = vrot.slane %v1772_v18, 1  ;;  %v1770_v58 = vor.u32 %v1769_v44, %v1765_v47  ;;  %v4793_v60 = vld [vmem:[%s6450_s10 + $0xb4] sm:$0xe]  ;;  %v7628_v36 = vcombine.low %v7581_v1, %v7581_v1 }
  0xea   : > { %v7623_v55 = vrot.slane %v8442_v2, 4  ;;  %v7631_v51 = vcombine.low %v4823_v13, %v7600_v27  ;;  %v8444_v16 = vor.u32 %v8418_v21, %v6761_v0  ;;  %v1777_v20 = vshrl.u32 %v7565_v19, 16  ;;  %v7644_v33 = vld [vmem:[%s6450_s10 + $0xb8] sm:$0xf]  ;;  %v6261_v1 = vld [vmem:[%s6450_s10 + $0x10] sm:$0xf] }
  0xeb   : > { %v1781_v47 = vrot.slane %v1779_v63, 1  ;;  %v1784_v18 = vshll.u32 %v7578_v26, 16  ;;  %v1320_v8 = vshll.u32 %v4936_v39, 16  ;;  %v1451_v21 = vrot.slane %v4952_v53, 1  ;;  %8445 = vst [vmem:[#allocation11_spill] sm:$0xff] %v7644_v33 }
  0xec   : > { %8443 = vst [vmem:[#allocation10_spill] sm:$0xff] %v7623_v55  ;;  %v3682_v24 = vrot.slane %v8444_v16, 4  ;;  %v1452_v13 = vrot.slane %v4936_v39, 1  ;;  %v3924_v2 = vshll.u32 %v7569_v38, 16  ;;  %v4953_v63 = vcombine.low %v4793_v60, %v7644_v33 }
  0xed   : > { %v5437_v14 = vpop.f32.mrf.mxu0  ;;  %2935 = vmatmul.mubr.bf16.gmra.mxu0 %v7506_v40  ;;  %v7648_v55 = vld [vmem:[%s6450_s10 + $0xc8] ss:$0 sps:$4 sm:$0x11]   ;;  %v3602_v19 = vshll.u32 %v6261_v1, 16  ;;  %v1791_v39 = vshll.u32 %v7631_v51, 16  ;;  %v8447_v53 = vsel %vm7035_vm4, %v8417_v17, %v6761_v0 }
  0xee   : > { %v5549_v10 = vpop.f32.mrf.mxu1  ;;  %3096 = vmatmul.mubr.bf16.gmra.mxu1 %v7338_v23  ;;  %2942 = vmatprep.mubr.bf16.mxu0 %v7536_v52  ;;  %v3687_v40 = vsel %vm7035_vm4, %v3682_v24, %v7229_v56  ;;  %v1332_v52 = vshll.u32 %v7628_v36, 16  ;;  %v7666_v56 = vsel %vm690_vm1, %v1770_v58, %v1774_v28  ;;  %v1782_v24 = vor.u32 %v1781_v47, %v1777_v20  ;;  %v4794_v58 = vld [vmem:[%s6450_s10 + $0xc0] sm:$0xe] }
  0xef   : > { %3103 = vmatprep.mubr.bf16.mxu1 %v7549_v48  ;;  %v5438_v16 = vpop.f32.mrf.mxu0  ;;  %v8446_v48 = vld [vmem:[#allocation15_spill] sm:$0xff]  ;;  %v7663_v60 = vcombine.low %v8447_v53, %v3687_v40  ;;  %v7671_v27 = vsel %vm947_vm0, %v1451_v21, %v1452_v13  ;;  %v7673_v26 = vrot.slane %v3924_v2, 5  ;;  %v1454_v17 = vrot.slane %v4953_v63, 1  ;;  %v8450_v63 = vld [vmem:[#allocation18_spill] sm:$0xff] }
  0xf0   : > { %v5550_v12 = vpop.f32.mrf.mxu1  ;;  %v5439_v38 = vadd.f32 %v5438_v16, %v5437_v14  ;;  %v1786_v14 = vrot.slane %v1784_v18, 1  ;;  %v1322_v16 = vrot.slane %v1320_v8, 1  ;;  %v1455_v40 = vrot.slane %v7628_v36, 1  ;;  %v7680_v8 = vld [vmem:[%s6450_s10 + $0xc8] sm:$0x1] }
  0xf1   : > { %v5551_v44 = vadd.f32 %v5550_v12, %v5549_v10  ;;  %v3777_v10 = vor.u32 %v8446_v48, %v8440_v42  ;;  %v5440_v1 = vpop.f32.mrf.mxu0  ;;  %v1789_v53 = vshrl.u32 %v7631_v51, 16  ;;  %v1796_v28 = vshll.u32 %v7648_v55, 16 }
  0xf2   : > { %v5552_v23 = vpop.f32.mrf.mxu1  ;;  %v1793_v47 = vrot.slane %v1791_v39, 1  ;;  %v1334_v18 = vrot.slane %v1332_v52, 1  ;;  %v7687_v36 = vsel %vm690_vm1, %v1782_v24, %v1786_v14  ;;  %v7691_v2 = vsel %vm690_vm1, %v7432_v41, %v1322_v16  ;;  %v8451_v39 = vld [vmem:[#allocation20_spill] sm:$0xff]  ;;  %v4825_v41 = vld [vmem:[%s6450_s10 + $0xcc] sm:$0xf] }
  0xf3   : > { %v7668_v48 = vadd.f32 %v5551_v44, %v5439_v38  ;;  %v5441_v0 = vpop.f32.mrf.mxu0  ;;  %v8448_v44 = vor.u32 %v8438_v37, %v8436_v59  ;;  %v7706_v24 = vld [vmem:[%s6450_s10 + $0xd0] sm:$0xf]  ;;  %v4850_v16 = vld [vmem:[%s6450_s10 + $0x6c] sm:$0xe] }
  0xf4   : > { %v5553_v12 = vpop.f32.mrf.mxu1  ;;  %v5442_v20 = vadd.f32 %v5441_v0, %v5440_v1  ;;  %v7736_v37 = vcombine.low %v4825_v41, %v7706_v24  ;;  %v8455_v41 = vld [vmem:[#allocation41_spill] sm:$0xff] }
  0xf5   : > { %v5554_v33 = vadd.f32 %v5553_v12, %v5552_v23  ;;  %v3730_v21 = vrot.slane %v8448_v44, 4  ;;  %v8449_v23 = vld [vmem:[#allocation19_spill] sm:$0xff]  ;;  %v5443_v1 = vpop.f32.mrf.mxu0  ;;  %2943 = vmatmul.mubr.bf16.gmra.mxu0 %v7539_v50  ;;  %v7718_v50 = vcombine.low %v7680_v8, %v7680_v8 }
  0xf6   : > { %v5555_v13 = vpop.f32.mrf.mxu1  ;;  %3104 = vmatmul.mubr.bf16.gmra.mxu1 %v7387_v4  ;;  %v6262_v4 = vld [vmem:[%s6450_s10 + $0xc4] sm:$0xf]  ;;  %2950 = vmatprep.mubr.bf16.mxu0 %v7542_v54  ;;  %v1794_v54 = vor.u32 %v1793_v47, %v1789_v53  ;;  %v3778_v53 = vrot.slane %v3777_v10, 4 }
  0xf7   : > { %v7699_v52 = vadd.f32 %v5554_v33, %v5442_v20  ;;  %3111 = vmatprep.mubr.bf16.mxu1 %v7590_v45  ;;  %v4954_v12 = vcombine.low %v4794_v58, %v6262_v4  ;;  %v3735_v14 = vsel %vm7035_vm4, %v3730_v21, %v7280_v62  ;;  %v7714_v33 = vsel %vm947_vm0, %v1454_v17, %v1455_v40  ;;  %v4851_v62 = vld [vmem:[%s6450_s10 + $0x78] sm:$0xe]  ;;  %v5444_v44 = vpop.f32.mrf.mxu0 }
  0xf8   : > { %v5556_v0 = vpop.f32.mrf.mxu1  ;;  %v7720_v45 = vrot.slane %v3602_v19, 5  ;;  %v8452_v58 = vsel %vm7035_vm4, %v8437_v46, %v8436_v59  ;;  %v1798_v4 = vrot.slane %v1796_v28, 1  ;;  %v7732_v17 = vsel %vm690_vm1, %v7446_v32, %v1334_v18  ;;  %v8453_v28 = vld [vmem:[#allocation40_spill] sm:$0xff] }
  0xf9   : > { %v7727_v20 = vcombine.low %v8452_v58, %v3735_v14  ;;  %v5557_v21 = vadd.f32 %v5556_v0, %v5555_v13  ;;  %v5445_v40 = vadd.f32 %v5444_v44, %v5443_v1  ;;  %v3972_v19 = vshll.u32 %v7680_v8, 16  ;;  %v5446_v46 = vpop.f32.mrf.mxu0  ;;  %v4852_v44 = vld [vmem:[%s6450_s10 + $0x84] sm:$0xe] }
  0xfa   : > { %v5558_v38 = vpop.f32.mrf.mxu1  ;;  %v4994_v59 = vcombine.low %v4850_v16, %v7291_v43  ;;  %v1457_v14 = vrot.slane %v4954_v12, 1  ;;  %v1898_v13 = vrot.slane %v7311_v29, 1  ;;  %v4995_v47 = vcombine.low %v4851_v62, %v8453_v28  ;;  %v8456_v12 = vld [vmem:[#allocation43_spill] sm:$0xff]  ;;  %v8457_v28 = vld [vmem:[#allocation2_spill] sm:$0xff] }
  0xfb   : > { %v7741_v32 = vadd.f32 %v5557_v21, %v5445_v40  ;;  %v1458_v1 = vrot.slane %v7718_v50, 1  ;;  %v1901_v0 = vrot.slane %v8455_v41, 1  ;;  %v5447_v58 = vpop.f32.mrf.mxu0  ;;  %v3783_v29 = vsel %vm7035_vm4, %v3778_v53, %v8456_v12  ;;  %v7752_v40 = vld [vmem:[%s6450_s10 + $0xd4] ss:$0 sps:$4 sm:$0x11]  }
  0xfc   : > { %v5559_v18 = vpop.f32.mrf.mxu1  ;;  %v1897_v8 = vrot.slane %v4994_v59, 1  ;;  %v1900_v10 = vrot.slane %v4995_v47, 1  ;;  %v5448_v62 = vadd.f32 %v5447_v58, %v5446_v46  ;;  %v8458_v59 = vshrl.u32 %v8457_v28, 16  ;;  %v4853_v46 = vld [vmem:[%s6450_s10 + $0x90] sm:$0xe] }
  0xfd   : > { %8454 = vst [vmem:[#allocation13_spill] sm:$0xff] %v7741_v32  ;;  %v5560_v43 = vadd.f32 %v5559_v18, %v5558_v38  ;;  %v8459_v53 = vsel %vm7035_vm4, %v8441_v7, %v8440_v42  ;;  %v5449_v18 = vpop.f32.mrf.mxu0  ;;  %2951 = vmatmul.mubr.bf16.gmra.mxu0 %v7575_v6  ;;  %v7774_v41 = vrot.slane %v3972_v19, 5  ;;  %v1801_v7 = vshrl.u32 %v7736_v37, 16  ;;  %v8460_v6 = vld [vmem:[#allocation42_spill] sm:$0xff] }
  0xfe   : > { %v5561_v21 = vpop.f32.mrf.mxu1  ;;  %3112 = vmatmul.mubr.bf16.gmra.mxu1 %v7456_v49  ;;  %v7756_v32 = vrot.slane %v8458_v59, 4  ;;  %v7759_v38 = vsel %vm947_vm0, %v1897_v8, %v1898_v13  ;;  %v7766_v47 = vcombine.low %v8459_v53, %v3783_v29  ;;  %v7772_v49 = vsel %vm690_vm1, %v1794_v54, %v1798_v4  ;;  %2958 = vmatprep.mubr.bf16.mxu0 %v7593_v34 }
  0xff   : > { %3119 = vmatprep.mubr.bf16.mxu1 %v7603_v30  ;;  %v1803_v13 = vshll.u32 %v7736_v37, 16  ;;  %v7778_v8 = vsel %vm947_vm0, %v1900_v10, %v1901_v0  ;;  %v7780_v58 = vadd.f32 %v5560_v43, %v5448_v62  ;;  %v4996_v12 = vcombine.low %v4852_v44, %v8460_v6  ;;  %v8461_v30 = vld [vmem:[#allocation44_spill] sm:$0xff]  ;;  %v5450_v54 = vpop.f32.mrf.mxu0  ;;  %v8465_v6 = vld [vmem:[#allocation22_spill] sm:$0xff] }
 0x100   : > { %v5562_v42 = vpop.f32.mrf.mxu1  ;;  %v1904_v29 = vrot.slane %v8461_v30, 1  ;;  %v7787_v19 = vsel %vm947_vm0, %v1457_v14, %v1458_v1  ;;  %v8462_v0 = vor.u32 %v8451_v39, %v8449_v23  ;;  %v4997_v43 = vcombine.low %v4853_v46, %v7421_v31  ;;  %v4854_v30 = vld [vmem:[%s6450_s10 + $0x9c] sm:$0xe] }
 0x101   : > { %v5563_v4 = vadd.f32 %v5562_v42, %v5561_v21  ;;  %v5451_v62 = vadd.f32 %v5450_v54, %v5449_v18  ;;  %v1808_v28 = vshll.u32 %v7752_v40, 16  ;;  %v1903_v44 = vrot.slane %v4996_v12, 1  ;;  %v5452_v53 = vpop.f32.mrf.mxu0  ;;  %v8464_v42 = vld [vmem:[#allocation21_spill] sm:$0xff] }
 0x102   : > { %v3826_v10 = vrot.slane %v8462_v0, 4  ;;  %v5564_v34 = vpop.f32.mrf.mxu1  ;;  %v1907_v59 = vrot.slane %v7468_v9, 1  ;;  %v1805_v21 = vrot.slane %v1803_v13, 1  ;;  %v1906_v1 = vrot.slane %v4997_v43, 1  ;;  %v7816_v0 = vld [vmem:[%s6450_s10 + $0x14] sm:$0x1] }
 0x103   : > { %v7800_v31 = vadd.f32 %v5563_v4, %v5451_v62  ;;  %v7803_v18 = vsel %vm947_vm0, %v1903_v44, %v1904_v29  ;;  %v8463_v9 = vsel %vm7035_vm4, %v8450_v63, %v8449_v23  ;;  %v3839_v12 = vor.u32 %v8465_v6, %v8464_v42  ;;  %v5453_v54 = vpop.f32.mrf.mxu0  ;;  %v8466_v62 = vld [vmem:[#allocation12_spill] sm:$0xff]  ;;  %v4855_v42 = vld [vmem:[%s6450_s10 + $0xa8] sm:$0xe] }
 0x104   : > { %v3831_v39 = vsel %vm7035_vm4, %v3826_v10, %v7458_v5  ;;  %v5565_v46 = vpop.f32.mrf.mxu1  ;;  %v7820_v29 = vsel %vm947_vm0, %v1906_v1, %v1907_v59  ;;  %v3842_v10 = vshll.u32 %v7449_v3, 16  ;;  %v5454_v43 = vadd.f32 %v5453_v54, %v5452_v53  ;;  %v8468_v53 = vld [vmem:[#allocation8_spill] sm:$0xff]  ;;  %v8470_v54 = vld [vmem:[#allocation23_spill] sm:$0xff] }
 0x105   : > { %v7810_v13 = vcombine.low %v8463_v9, %v3831_v39  ;;  %v5566_v5 = vadd.f32 %v5565_v46, %v5564_v34  ;;  %v3840_v63 = vrot.slane %v3839_v12, 4  ;;  %v8467_v44 = vshrl.u32 %v8466_v62, 16  ;;  %v5455_v46 = vpop.f32.mrf.mxu0  ;;  %2959 = vmatmul.mubr.bf16.gmra.mxu0 %v7606_v57  ;;  %v8471_v57 = vld [vmem:[#allocation26_spill] sm:$0xff] }
 0x106   : > { %v5567_v23 = vpop.f32.mrf.mxu1  ;;  %3120 = vmatmul.mubr.bf16.gmra.mxu1 %v7464_v22  ;;  %v3852_v34 = vshll.u32 %v7412_v15, 16  ;;  %v7829_v9 = vrot.slane %v1808_v28, 1  ;;  %v3844_v59 = vrot.slane %v3842_v10, 5  ;;  %v4998_v3 = vcombine.low %v4854_v30, %v7441_v61  ;;  %2966 = vmatprep.mubr.bf16.mxu0 %v7614_v35 }
 0x107   : > { %v3848_v39 = vrot.slane %v8467_v44, 4  ;;  %3127 = vmatprep.mubr.bf16.mxu1 %v7666_v56  ;;  %v1910_v1 = vrot.slane %v8468_v53, 1  ;;  %v7834_v22 = vadd.f32 %v5566_v5, %v5454_v43  ;;  %v7837_v12 = vor.u32 %v1805_v21, %v1801_v7  ;;  %v5456_v28 = vpop.f32.mrf.mxu0  ;;  %v8472_v44 = vld [vmem:[#allocation24_spill] sm:$0xff]  ;;  %v8473_v7 = vld [vmem:[#allocation45_spill] sm:$0xff] }
 0x108   : > { %v5568_v6 = vpop.f32.mrf.mxu1  ;;  %v3854_v15 = vrot.slane %v3852_v34, 5  ;;  %v3869_v56 = vsel %vm7035_vm4, %v8471_v57, %v8470_v54  ;;  %v3845_v61 = vsel %vm7035_vm4, %v3840_v63, %v3844_v59  ;;  %v1909_v62 = vrot.slane %v4998_v3, 1  ;;  %v8474_v34 = vld [vmem:[#allocation48_spill] sm:$0xff] }
 0x109   : > { %8469 = vst [vmem:[#allocation14_spill] sm:$0xff] %v7834_v22  ;;  %v5569_v10 = vadd.f32 %v5568_v6, %v5567_v23  ;;  %v3849_v30 = vor.u32 %v3848_v39, %v3844_v59  ;;  %v5457_v5 = vadd.f32 %v5456_v28, %v5455_v46  ;;  %v3873_v35 = vor.u32 %v8472_v44, %v8470_v54  ;;  %v5458_v16 = vpop.f32.mrf.mxu0  ;;  %v8475_v23 = vld [vmem:[#allocation27_spill] sm:$0xff]  ;;  %v8476_v6 = vld [vmem:[#allocation28_spill] sm:$0xff]  ;;  %v8478_v44 = vld [vmem:[#allocation17_spill] sm:$0xff] }
 0x10a   : > { %v5570_v43 = vpop.f32.mrf.mxu1  ;;  %v4999_v21 = vcombine.low %v4855_v42, %v8473_v7  ;;  %v1913_v53 = vrot.slane %v8474_v34, 1  ;;  %v7850_v57 = vsel %vm947_vm0, %v1909_v62, %v1910_v1  ;;  %v3887_v63 = vor.u32 %v8476_v6, %v8475_v23  ;;  %v8477_v39 = vld [vmem:[#allocation47_spill] sm:$0xff]  ;;  %v4856_v22 = vld [vmem:[%s6450_s10 + $0xb4] sm:$0xe] }
 0x10b   : > { %v3850_v4 = vrot.slane %v3849_v30, 4  ;;  %v3890_v59 = vshll.u32 %v8477_v39, 16  ;;  %v7855_v46 = vadd.f32 %v5569_v10, %v5457_v5  ;;  %v3874_v28 = vrot.slane %v3873_v35, 4  ;;  %v5459_v34 = vpop.f32.mrf.mxu0  ;;  %v8480_v39 = vld [vmem:[#allocation16_spill] sm:$0xff]  ;;  %v8481_v5 = vld [vmem:[#allocation49_spill] sm:$0xff] }
 0x10c   : > { %v5571_v3 = vpop.f32.mrf.mxu1  ;;  %v1912_v54 = vrot.slane %v4999_v21, 1  ;;  %v8479_v42 = vshrl.u32 %v8478_v44, 16  ;;  %v3888_v1 = vrot.slane %v3887_v63, 4  ;;  %v5460_v23 = vadd.f32 %v5459_v34, %v5458_v16  ;;  %v8485_v44 = vld [vmem:[#allocation51_spill] sm:$0xff] }
 0x10d   : > { %v5572_v14 = vadd.f32 %v5571_v3, %v5570_v43  ;;  %v3855_v30 = vsel %vm7035_vm4, %v3850_v4, %v3854_v15  ;;  %v3892_v62 = vrot.slane %v3890_v59, 5  ;;  %v3879_v35 = vsel %vm7035_vm4, %v3874_v28, %v8481_v5  ;;  %v5461_v43 = vpop.f32.mrf.mxu0  ;;  %2967 = vmatmul.mubr.bf16.gmra.mxu0 %v7618_v11  ;;  %v4857_v59 = vld [vmem:[%s6450_s10 + $0xc0] sm:$0xe]  ;;  %v8489_v5 = vld [vmem:[#allocation9_spill] sm:$0xff] }
 0x10e   : > { %v3896_v7 = vrot.slane %v8479_v42, 4  ;;  %v5573_v6 = vpop.f32.mrf.mxu1  ;;  %3128 = vmatmul.mubr.bf16.gmra.mxu1 %v8480_v39  ;;  %v7863_v10 = vcombine.low %v3845_v61, %v3855_v30  ;;  %v7869_v21 = vsel %vm947_vm0, %v1912_v54, %v1913_v53  ;;  %v7873_v4 = vcombine.low %v3869_v56, %v3879_v35  ;;  %v8482_v61 = vld [vmem:[#allocation7_spill] sm:$0xff]  ;;  %2974 = vmatprep.mubr.bf16.mxu0 %v7671_v27  ;;  %v8484_v53 = vld [vmem:[#allocation46_spill] sm:$0xff] }
 0x10f   : > { %3135 = vmatprep.mubr.bf16.mxu1 %v7687_v36  ;;  %v3893_v16 = vsel %vm7035_vm4, %v3888_v1, %v3892_v62  ;;  %v3900_v63 = vshll.u32 %v8482_v61, 16  ;;  %v7879_v3 = vadd.f32 %v5572_v14, %v5460_v23  ;;  %v5000_v54 = vcombine.low %v4856_v22, %v8484_v53  ;;  %v8486_v42 = vld [vmem:[#allocation31_spill] sm:$0xff]  ;;  %v8487_v36 = vld [vmem:[#allocation33_spill] sm:$0xff]  ;;  %v5462_v34 = vpop.f32.mrf.mxu0 }
 0x110   : > { %v3897_v15 = vor.u32 %v3896_v7, %v3892_v62  ;;  %v5574_v28 = vpop.f32.mrf.mxu1  ;;  %v1916_v11 = vrot.slane %v8485_v44, 1  ;;  %v3917_v56 = vsel %vm7035_vm4, %v8487_v36, %v8486_v42  ;;  %v8488_v62 = vld [vmem:[#allocation32_spill] sm:$0xff]  ;;  %v5463_v23 = vadd.f32 %v5462_v34, %v5461_v43  ;;  %v8490_v36 = vld [vmem:[#allocation34_spill] sm:$0xff] }
 0x111   : > { %8483 = vst [vmem:[#allocation15_spill] sm:$0xff] %v7879_v3  ;;  %v5575_v30 = vadd.f32 %v5574_v28, %v5573_v6  ;;  %v3902_v1 = vrot.slane %v3900_v63, 5  ;;  %v3921_v14 = vor.u32 %v8488_v62, %v8486_v42  ;;  %v1915_v27 = vrot.slane %v5000_v54, 1  ;;  %v5464_v61 = vpop.f32.mrf.mxu0  ;;  %v8491_v6 = vld [vmem:[#allocation35_spill] sm:$0xff] }
 0x112   : > { %v3898_v7 = vrot.slane %v3897_v15, 4  ;;  %v5576_v39 = vpop.f32.mrf.mxu1  ;;  %v5001_v22 = vcombine.low %v4857_v59, %v8489_v5  ;;  %v1919_v35 = vrot.slane %v7648_v55, 1  ;;  %v3935_v15 = vor.u32 %v8491_v6, %v8490_v36  ;;  %v8492_v63 = vld [vmem:[#allocation11_spill] sm:$0xff] }
 0x113   : > { %v3922_v44 = vrot.slane %v3921_v14, 4  ;;  %v3938_v28 = vshll.u32 %v8492_v63, 16  ;;  %v7897_v3 = vadd.f32 %v5575_v30, %v5463_v23  ;;  %v7902_v54 = vsel %vm947_vm0, %v1915_v27, %v1916_v11  ;;  %v4858_v55 = vld [vmem:[%s6450_s10 + $0xcc] sm:$0xe]  ;;  %v5465_v34 = vpop.f32.mrf.mxu0  ;;  %v8493_v23 = vld [vmem:[#allocation50_spill] sm:$0xff]  ;;  %v8494_v27 = vld [vmem:[#allocation25_spill] sm:$0xff] }
 0x114   : > { %v3903_v53 = vsel %vm7035_vm4, %v3898_v7, %v3902_v1  ;;  %v5577_v42 = vpop.f32.mrf.mxu1  ;;  %v1918_v59 = vrot.slane %v5001_v22, 1  ;;  %v3936_v1 = vrot.slane %v3935_v15, 4  ;;  %v5466_v5 = vadd.f32 %v5465_v34, %v5464_v61 }
 0x115   : > { %v7899_v43 = vcombine.low %v3893_v16, %v3903_v53  ;;  %v5578_v62 = vadd.f32 %v5577_v42, %v5576_v39  ;;  %v3927_v7 = vsel %vm7035_vm4, %v3922_v44, %v7673_v26  ;;  %v3940_v14 = vrot.slane %v3938_v28, 5  ;;  %v5467_v39 = vpop.f32.mrf.mxu0  ;;  %2975 = vmatmul.mubr.bf16.gmra.mxu0 %v7691_v2  ;;  %v8497_v44 = vld [vmem:[#allocation52_spill] sm:$0xff]  ;;  %v6264_v2 = vld [vmem:[%s6450_s10 + $0x28] sm:$0xf]  ;;  %v8499_v42 = vld [vmem:[#allocation37_spill] sm:$0xff] }
 0x116   : > { %v5579_v30 = vpop.f32.mrf.mxu1  ;;  %3136 = vmatmul.mubr.bf16.gmra.mxu1 %v8493_v23  ;;  %v7909_v16 = vcombine.low %v3917_v56, %v3927_v7  ;;  %v7912_v11 = vsel %vm947_vm0, %v1918_v59, %v1919_v35  ;;  %v8495_v22 = vshrl.u32 %v8494_v27, 16  ;;  %v8496_v26 = vor.u32 %v7756_v32, %v7720_v45  ;;  %2982 = vmatprep.mubr.bf16.mxu0 %v7714_v33  ;;  %v8498_v28 = vld [vmem:[#allocation36_spill] sm:$0xff]  ;;  %v8500_v33 = vld [vmem:[#allocation39_spill] sm:$0xff] }
 0x117   : > { %3143 = vmatprep.mubr.bf16.mxu1 %v7772_v49  ;;  %v3948_v36 = vshll.u32 %v8497_v44, 16  ;;  %v5002_v56 = vcombine.low %v4858_v55, %v7706_v24  ;;  %v1922_v35 = vrot.slane %v7752_v40, 1  ;;  %v7926_v6 = vadd.f32 %v5578_v62, %v5466_v5  ;;  %v5468_v59 = vpop.f32.mrf.mxu0  ;;  %v4843_v62 = vld [vmem:[%s6450_s10 + $0x18] sm:$0xe] }
 0x118   : > { %v3944_v53 = vrot.slane %v8495_v22, 4  ;;  %v7921_v61 = vrot.slane %v8496_v26, 4  ;;  %v5580_v15 = vpop.f32.mrf.mxu1  ;;  %v3650_v63 = vshll.u32 %v6264_v2, 16  ;;  %v3969_v32 = vor.u32 %v8499_v42, %v8498_v28 }
 0x119   : > { %v5581_v34 = vadd.f32 %v5580_v15, %v5579_v30  ;;  %v3941_v7 = vsel %vm7035_vm4, %v3936_v1, %v3940_v14  ;;  %v3950_v24 = vrot.slane %v3948_v36, 5  ;;  %v1921_v55 = vrot.slane %v5002_v56, 1 }
 0x11a   : > { %v3945_v49 = vor.u32 %v3944_v53, %v3940_v14  ;;  %v5469_v23 = vadd.f32 %v5468_v59, %v5467_v39  ;;  %v5582_v40 = vpop.f32.mrf.mxu1  ;;  %v3965_v27 = vsel %vm7035_vm4, %v8500_v33, %v8498_v28  ;;  %v3970_v22 = vrot.slane %v3969_v32, 4  ;;  %v5470_v53 = vpop.f32.mrf.mxu0  ;;  %v8502_v39 = vld [vmem:[#allocation3_spill] sm:$0xff]  ;;  %v6265_v28 = vld [vmem:[%s6450_s10 + $0x1c] sm:$0xf]  ;;  %v8506_v33 = vld [vmem:[#allocation38_spill] sm:$0xff] }
 0x11b   : > { %v1811_v30 = vsel %vm690_vm1, %v7837_v12, %v7829_v9  ;;  %v8501_v1 = vshll.u32 %v7816_v0, 16  ;;  %v8503_v26 = vshrl.u32 %v8502_v39, 16  ;;  %v7947_v36 = vsel %vm947_vm0, %v1921_v55, %v1922_v35  ;;  %v6266_v59 = vld [vmem:[%s6450_s10 + $0x3c] sm:$0xf] }
 0x11c   : > { %v3946_v5 = vrot.slane %v3945_v49, 4  ;;  %v7949_v56 = vadd.f32 %v5581_v34, %v5469_v23  ;;  %v5583_v15 = vpop.f32.mrf.mxu1  ;;  %v7951_v2 = vrot.slane %v3650_v63, 5  ;;  %v3975_v0 = vsel %vm7035_vm4, %v3970_v22, %v7774_v41  ;;  %v5471_v9 = vpop.f32.mrf.mxu0  ;;  %v6267_v34 = vld [vmem:[%s6450_s10 + $0x40] sm:$0xf]  ;;  %v8509_v39 = vld [vmem:[#allocation5_spill] sm:$0xff] }
 0x11d   : > { %v3614_v14 = vrot.slane %v8501_v1, 5  ;;  %v3656_v44 = vrot.slane %v8503_v26, 4  ;;  %v5584_v12 = vadd.f32 %v5583_v15, %v5582_v40  ;;  %v4987_v42 = vcombine.low %v4843_v62, %v6265_v28  ;;  %2983 = vmatmul.mubr.bf16.gmra.mxu0 %v7732_v17  ;;  %v4844_v1 = vld [vmem:[%s6450_s10 + $0x24] sm:$0xe]  ;;  %v6268_v15 = vld [vmem:[%s6450_s10 + $0x2c] sm:$0x1] }
 0x11e   : > { %v3951_v49 = vsel %vm7035_vm4, %v3946_v5, %v3950_v24  ;;  %v7961_v35 = vcombine.low %v3965_v27, %v3975_v0  ;;  %v3692_v63 = vshll.u32 %v6266_v59, 16  ;;  %v3702_v55 = vshrl.u32 %v6267_v34, 16  ;;  %v5585_v24 = vpop.f32.mrf.mxu1  ;;  %3144 = vmatmul.mubr.bf16.gmra.mxu1 %v7631_v51  ;;  %v8504_v5 = vld [vmem:[#allocation29_spill] sm:$0xff]  ;;  %v5473_v22 = vpop.f32.mrf.mxu0  ;;  %v8508_v27 = vld [vmem:[#allocation10_spill] sm:$0xff]  ;;  %2990 = vmatprep.mubr.bf16.mxu0 %v7787_v19  ;;  %v6270_v19 = vld [vmem:[%s6450_s10 + $0x28] sm:$0xf] }
 0x11f   : > { %v7959_v32 = vcombine.low %v3941_v7, %v3951_v49  ;;  %v5472_v23 = vadd.f32 %v5471_v9, %v5470_v53  ;;  %v8505_v41 = vshrl.u32 %v8504_v5, 16  ;;  %3151 = vmatprep.mubr.bf16.mxu1 %v1811_v30  ;;  %v8507_v7 = vshll.u32 %v7718_v50, 16  ;;  %v8510_v51 = vld [vmem:[#allocation6_spill] sm:$0xff] }
 0x120   : > { %v3605_v53 = vsel %vm7035_vm4, %v8508_v27, %v7720_v45  ;;  %v3647_v26 = vor.u32 %v8510_v51, %v8509_v39  ;;  %v3660_v49 = vshll.u32 %v6268_v15, 16  ;;  %v5586_v17 = vpop.f32.mrf.mxu1  ;;  %v3615_v50 = vsel %vm7035_vm4, %v7921_v61, %v3614_v14  ;;  %v5474_v9 = vpop.f32.mrf.mxu0  ;;  %v6269_v5 = vld [vmem:[%s6450_s10 + $0x20] ss:$0 sps:$4 sm:$0x11]   ;;  %v4845_v15 = vld [vmem:[%s6450_s10 + $0x30] sm:$0xe] }
 0x121   : > { %v1342_v40 = vor.u32 %v8506_v33, %v8505_v41  ;;  %v1346_v62 = vrot.slane %v8507_v7, 1  ;;  %v7980_v0 = vadd.f32 %v5584_v12, %v5472_v23  ;;  %v3657_v30 = vor.u32 %v3656_v44, %v7951_v2  ;;  %v8511_v33 = vld [vmem:[#allocation4_spill] sm:$0xff] }
 0x122   : > { %v3698_v45 = vshll.u32 %v6267_v34, 16  ;;  %v5587_v28 = vadd.f32 %v5586_v17, %v5585_v24  ;;  %v1876_v59 = vrot.slane %v4987_v42, 1  ;;  %v1877_v41 = vrot.slane %v6269_v5, 1  ;;  %v5588_v39 = vpop.f32.mrf.mxu1  ;;  %v5476_v61 = vpop.f32.mrf.mxu0 }
 0x123   : > { %v8512_v7 = vshrl.u32 %v8511_v33, 16  ;;  %v3694_v23 = vrot.slane %v3692_v63, 5  ;;  %v5475_v27 = vadd.f32 %v5474_v9, %v5473_v22  ;;  %v4988_v51 = vcombine.low %v4844_v1, %v6270_v19  ;;  %v6271_v9 = vld [vmem:[%s6450_s10 + $0x54] sm:$0xf] }
 0x124   : > { %v1347_v14 = vsel %vm690_vm1, %v1342_v40, %v1346_v62  ;;  %v5107_v44 = vcombine.low %v3605_v53, %v3615_v50  ;;  %v3648_v34 = vrot.slane %v3647_v26, 4  ;;  %v3662_v42 = vrot.slane %v3660_v49, 5  ;;  %v5589_v17 = vpop.f32.mrf.mxu1  ;;  %v5477_v1 = vpop.f32.mrf.mxu0  ;;  %v6272_v40 = vld [vmem:[%s6450_s10 + $0x34] sm:$0xf]  ;;  %v6273_v26 = vld [vmem:[%s6450_s10 + $0x58] sm:$0xf] }
 0x125   : > { %v3691_v12 = vrot.slane %v8512_v7, 4  ;;  %v7993_v24 = vadd.f32 %v5587_v28, %v5475_v27  ;;  %v3658_v5 = vrot.slane %v3657_v30, 4  ;;  %v7995_v63 = vrot.slane %v3698_v45, 5  ;;  %v6274_v50 = vld [vmem:[%s6450_s10 + $0x2c] ss:$0 sps:$4 sm:$0x11]   ;;  %2991 = vmatmul.mubr.bf16.gmra.mxu0 %v1347_v14 }
 0x126   : > { %v3704_v22 = vrot.slane %v3702_v55, 4  ;;  %v3737_v33 = vshrl.u32 %v6271_v9, 16  ;;  %v5590_v7 = vadd.f32 %v5589_v17, %v5588_v39  ;;  %v1878_v19 = vsel %vm947_vm0, %v1876_v59, %v1877_v41  ;;  %v5591_v30 = vpop.f32.mrf.mxu1  ;;  %3152 = vmatmul.mubr.bf16.gmra.mxu1 %v7736_v37  ;;  %v5479_v55 = vpop.f32.mrf.mxu0  ;;  %v4846_v41 = vld [vmem:[%s6450_s10 + $0x3c] sm:$0xe] }
 0x127   : > { %8513 = vst [vmem:[#allocation19_spill] sm:$0xff] %v7993_v24  ;;  %v4989_v62 = vcombine.low %v4845_v15, %v6272_v40  ;;  %v3740_v53 = vshll.u32 %v6271_v9, 16  ;;  %v3750_v49 = vshrl.u32 %v6273_v26, 16  ;;  %v1880_v28 = vrot.slane %v6274_v50, 1  ;;  %5981 = vmatprep.mubr.bf16.mxu1 %v5107_v44  ;;  %v6275_v15 = vld [vmem:[%s6450_s10 + $0x44] sm:$0x1]  ;;  %5933 = vmatprep.mubr.bf16.mxu0 %v1878_v19 }
 0x128   : > { %v5478_v27 = vadd.f32 %v5477_v1, %v5476_v61  ;;  %v1879_v45 = vrot.slane %v4988_v51, 1  ;;  %v3653_v59 = vsel %vm7035_vm4, %v3648_v34, %v7951_v2  ;;  %v3695_v39 = vor.u32 %v3694_v23, %v3691_v12  ;;  %v5592_v61 = vpop.f32.mrf.mxu1  ;;  %v5480_v44 = vpop.f32.mrf.mxu0  ;;  %v6276_v2 = vld [vmem:[%s6450_s10 + $0x38] ss:$0 sps:$4 sm:$0x11]  }
 0x129   : > { %v3708_v17 = vshll.u32 %v6275_v15, 16  ;;  %v3663_v37 = vsel %vm7035_vm4, %v3658_v5, %v3662_v42  ;;  %v3705_v14 = vor.u32 %v3704_v22, %v7995_v63  ;;  %v3746_v51 = vshll.u32 %v6273_v26, 16 }
 0x12a   : > { %v8008_v9 = vadd.f32 %v5590_v7, %v5478_v27  ;;  %v5593_v1 = vadd.f32 %v5592_v61, %v5591_v30  ;;  %v1882_v40 = vrot.slane %v4989_v62, 1  ;;  %v1883_v34 = vrot.slane %v6276_v2, 1  ;;  %v5594_v7 = vpop.f32.mrf.mxu1  ;;  %v6277_v27 = vld [vmem:[%s6450_s10 + $0x40] sm:$0xf]  ;;  %v5482_v19 = vpop.f32.mrf.mxu0 }
 0x12b   : > { %v3739_v12 = vrot.slane %v3737_v33, 4  ;;  %v3742_v23 = vrot.slane %v3740_v53, 5  ;;  %v5481_v50 = vadd.f32 %v5480_v44, %v5479_v55  ;;  %v4990_v15 = vcombine.low %v4846_v41, %v6277_v27  ;;  %v6278_v55 = vld [vmem:[%s6450_s10 + $0x6c] sm:$0xf] }
 0x12c   : > { %8514 = vst [vmem:[#allocation18_spill] sm:$0xff] %v8008_v9  ;;  %v4847_v9 = vld [vmem:[%s6450_s10 + $0x48] sm:$0xe]  ;;  %v1881_v42 = vsel %vm947_vm0, %v1879_v45, %v1880_v28  ;;  %v5109_v5 = vcombine.low %v3653_v59, %v3663_v37  ;;  %v3696_v22 = vrot.slane %v3695_v39, 4  ;;  %v3710_v26 = vrot.slane %v3708_v17, 5  ;;  %v5595_v62 = vpop.f32.mrf.mxu1  ;;  %v5483_v41 = vpop.f32.mrf.mxu0  ;;  %v8516_v17 = vld [vmem:[#allocation30_spill] sm:$0xff] }
 0x12d   : > { %v8017_v24 = vadd.f32 %v5593_v1, %v5481_v50  ;;  %v3706_v30 = vrot.slane %v3705_v14, 4  ;;  %v8019_v33 = vrot.slane %v3746_v51, 5  ;;  %v3752_v53 = vrot.slane %v3750_v49, 4  ;;  %v6279_v27 = vld [vmem:[%s6450_s10 + $0x4c] sm:$0xf]  ;;  %5934 = vmatmul.mubr.bf16.vlgmr.msra.gmra.mxu0 %v1881_v42 }
 0x12e   : > { %v3785_v61 = vshrl.u32 %v6278_v55, 16  ;;  %v5596_v44 = vadd.f32 %v5595_v62, %v5594_v7  ;;  %v1884_v2 = vsel %vm947_vm0, %v1882_v40, %v1883_v34  ;;  %v4991_v28 = vcombine.low %v4847_v9, %v6279_v27  ;;  %v5597_v39 = vpop.f32.mrf.mxu1  ;;  %5982 = vmatmul.mubr.bf16.vlgmr.msra.gmra.mxu1 %v8516_v17  ;;  %v6280_v14 = vld [vmem:[%s6450_s10 + $0x44] ss:$0 sps:$4 sm:$0x11]   ;;  %v6281_v1 = vld [vmem:[%s6450_s10 + $0x70] sm:$0xf]  ;;  %v5485_v50 = vpop.f32.mrf.mxu0 }
 0x12f   : > { %8515 = vst [vmem:[#allocation20_spill] sm:$0xff] %v8017_v24  ;;  %v3788_v45 = vshll.u32 %v6278_v55, 16  ;;  %v5484_v59 = vadd.f32 %v5483_v41, %v5482_v19  ;;  %v1885_v37 = vrot.slane %v4990_v15, 1  ;;  %v1886_v51 = vrot.slane %v6280_v14, 1  ;;  %5985 = vmatprep.mubr.bf16.mxu1 %v5109_v5  ;;  %v6282_v34 = vld [vmem:[%s6450_s10 + $0x5c] sm:$0x1]  ;;  %5937 = vmatprep.mubr.bf16.mxu0 %v1884_v2 }
 0x130   : > { %v3798_v49 = vshrl.u32 %v6281_v1, 16  ;;  %v3701_v40 = vsel %vm7035_vm4, %v3696_v22, %v7995_v63  ;;  %v3743_v9 = vor.u32 %v3742_v23, %v3739_v12  ;;  %v3756_v7 = vshll.u32 %v6282_v34, 16  ;;  %v5598_v62 = vpop.f32.mrf.mxu1  ;;  %v4848_v55 = vld [vmem:[%s6450_s10 + $0x54] sm:$0xe]  ;;  %v5486_v41 = vpop.f32.mrf.mxu0  ;;  %v4849_v2 = vld [vmem:[%s6450_s10 + $0x60] sm:$0xe] }
 0x131   : > { %v8031_v19 = vadd.f32 %v5596_v44, %v5484_v59  ;;  %v3711_v15 = vsel %vm7035_vm4, %v3706_v30, %v3710_v26  ;;  %v3753_v42 = vor.u32 %v3752_v53, %v8019_v33  ;;  %v3794_v5 = vshll.u32 %v6281_v1, 16  ;;  %v6283_v63 = vld [vmem:[%s6450_s10 + $0x50] ss:$0 sps:$4 sm:$0x11]   ;;  %v6284_v30 = vld [vmem:[%s6450_s10 + $0x58] sm:$0xf] }
 0x132   : > { %v5599_v27 = vadd.f32 %v5598_v62, %v5597_v39  ;;  %v1888_v17 = vrot.slane %v4991_v28, 1  ;;  %v1889_v12 = vrot.slane %v6283_v63, 1  ;;  %v3787_v23 = vrot.slane %v3785_v61, 4  ;;  %v5600_v59 = vpop.f32.mrf.mxu1  ;;  %v5488_v34 = vpop.f32.mrf.mxu0 }
 0x133   : > { %8517 = vst [vmem:[#allocation40_spill] sm:$0xff] %v8031_v19  ;;  %v3790_v22 = vrot.slane %v3788_v45, 5  ;;  %v5487_v44 = vadd.f32 %v5486_v41, %v5485_v50  ;;  %v1887_v14 = vsel %vm947_vm0, %v1885_v37, %v1886_v51  ;;  %v5111_v26 = vcombine.low %v3701_v40, %v3711_v15  ;;  %v6285_v37 = vld [vmem:[%s6450_s10 + $0x64] sm:$0xf] }
 0x134   : > { %v4992_v19 = vcombine.low %v4848_v55, %v6284_v30  ;;  %v3744_v24 = vrot.slane %v3743_v9, 4  ;;  %v3758_v53 = vrot.slane %v3756_v7, 5  ;;  %v5601_v39 = vpop.f32.mrf.mxu1  ;;  %v3754_v28 = vrot.slane %v3753_v42, 4  ;;  %v5489_v45 = vpop.f32.mrf.mxu0  ;;  %v6286_v15 = vld [vmem:[%s6450_s10 + $0x5c] ss:$0 sps:$4 sm:$0x11]  }
 0x135   : > { %v8041_v1 = vadd.f32 %v5599_v27, %v5487_v44  ;;  %v3796_v62 = vrot.slane %v3794_v5, 5  ;;  %v3800_v61 = vrot.slane %v3798_v49, 4  ;;  %v5602_v50 = vadd.f32 %v5601_v39, %v5600_v59  ;;  %5938 = vmatmul.mubr.bf16.gmra.mxu0 %v1887_v14 }
 0x136   : > { %v1890_v41 = vsel %vm947_vm0, %v1888_v17, %v1889_v12  ;;  %v4993_v51 = vcombine.low %v4849_v2, %v6285_v37  ;;  %v5490_v63 = vadd.f32 %v5489_v45, %v5488_v34  ;;  %v5603_v40 = vpop.f32.mrf.mxu1  ;;  %5986 = vmatmul.mubr.bf16.gmra.mxu1 %v7663_v60  ;;  %v5491_v9 = vpop.f32.mrf.mxu0  ;;  %v1891_v7 = vrot.slane %v4992_v19, 1  ;;  %v6287_v12 = vld [vmem:[%s6450_s10 + $0x74] sm:$0x1]  ;;  %v6288_v2 = vld [vmem:[%s6450_s10 + $0x68] ss:$0 sps:$4 sm:$0x11]  }
 0x137   : > { %5989 = vmatprep.mubr.bf16.mxu1 %v5111_v26  ;;  %v1892_v55 = vrot.slane %v6286_v15, 1  ;;  %v3749_v49 = vsel %vm7035_vm4, %v3744_v24, %v8019_v33  ;;  %v3791_v42 = vor.u32 %v3790_v22, %v3787_v23  ;;  %5941 = vmatprep.mubr.bf16.mxu0 %v1890_v41  ;;  %v3759_v17 = vsel %vm7035_vm4, %v3754_v28, %v3758_v53  ;;  %s5165_s10 = sshll.u32 %s8526_s28, 7 }
 0x138   : > { %v8050_v5 = vadd.f32 %v5602_v50, %v5490_v63  ;;  %v5604_v27 = vpop.f32.mrf.mxu1  ;;  %v3801_v60 = vor.u32 %v3800_v61, %v3796_v62  ;;  %v3804_v44 = vshll.u32 %v6287_v12, 16  ;;  %v5492_v59 = vpop.f32.mrf.mxu0  ;;  %v1894_v19 = vrot.slane %v4993_v51, 1  ;;  %s8209_s18 = scalar_lea.vmem %s8310_s6, %s5165_s10  ;;  %s8217_s21 = scalar_lea.vmem %s8307_s3, %s5165_s10 }
 0x139   : > { %v5605_v14 = vadd.f32 %v5604_v27, %v5603_v40  ;;  %v1895_v34 = vrot.slane %v6288_v2, 1  ;;  %v5493_v26 = vadd.f32 %v5492_v59, %v5491_v9  ;;  %v1893_v24 = vsel %vm947_vm0, %v1891_v7, %v1892_v55 }
 0x13a   : > { %v5606_v30 = vpop.f32.mrf.mxu1  ;;  %v5494_v39 = vpop.f32.mrf.mxu0  ;;  %v5113_v33 = vcombine.low %v3749_v49, %v3759_v17  ;;  %v3792_v45 = vrot.slane %v3791_v42, 4  ;;  %v3802_v50 = vrot.slane %v3801_v60, 4  ;;  %v3806_v53 = vrot.slane %v3804_v44, 5 }
 0x13b   : > { %v8057_v23 = vadd.f32 %v5605_v14, %v5493_v26  ;;  %v1896_v41 = vsel %vm947_vm0, %v1894_v19, %v1895_v34 }
 0x13c   : > { %v5607_v22 = vpop.f32.mrf.mxu1  ;;  %v5495_v28 = vpop.f32.mrf.mxu0  ;;  %v3797_v7 = vsel %vm7035_vm4, %v3792_v45, %v3796_v62  ;;  %v3807_v15 = vsel %vm7035_vm4, %v3802_v50, %v3806_v53 }
 0x13d   : > { %v5608_v61 = vadd.f32 %v5607_v22, %v5606_v30  ;;  %v5496_v37 = vadd.f32 %v5495_v28, %v5494_v39  ;;  %5942 = vmatmul.mubr.bf16.gmra.mxu0 %v1893_v24  ;;  %v5115_v60 = vcombine.low %v3797_v7, %v3807_v15 }
 0x13e   : > { %v5609_v51 = vpop.f32.mrf.mxu1  ;;  %5990 = vmatmul.mubr.bf16.gmra.mxu1 %v7727_v20  ;;  %v5497_v63 = vpop.f32.mrf.mxu0  ;;  %5945 = vmatprep.mubr.bf16.mxu0 %v1896_v41 }
 0x13f   : > { %5993 = vmatprep.mubr.bf16.mxu1 %v5113_v33  ;;  %v8061_v40 = vadd.f32 %v5608_v61, %v5496_v37 }
 0x140   : > { %v5610_v9 = vpop.f32.mrf.mxu1  ;;  %v5498_v55 = vpop.f32.mrf.mxu0 }
 0x141   : > { %v5611_v49 = vadd.f32 %v5610_v9, %v5609_v51  ;;  %v5499_v42 = vadd.f32 %v5498_v55, %v5497_v63 }
 0x142   : > { %v5612_v27 = vpop.f32.mrf.mxu1  ;;  %v5500_v17 = vpop.f32.mrf.mxu0 }
 0x143   : > { %v8067_v20 = vadd.f32 %v5611_v49, %v5499_v42 }
 0x144   : > { %v5613_v12 = vpop.f32.mrf.mxu1  ;;  %v5501_v44 = vpop.f32.mrf.mxu0 }
 0x145   : > { %v5614_v59 = vadd.f32 %v5613_v12, %v5612_v27  ;;  %v5502_v14 = vadd.f32 %v5501_v44, %v5500_v17  ;;  %5946 = vmatmul.mubr.bf16.gmra.mxu0 %v7759_v38 }
 0x146   : > { %v5615_v19 = vpop.f32.mrf.mxu1  ;;  %5994 = vmatmul.mubr.bf16.gmra.mxu1 %v7766_v47  ;;  %v5503_v2 = vpop.f32.mrf.mxu0  ;;  %5949 = vmatprep.mubr.bf16.mxu0 %v7778_v8 }
 0x147   : > { %5997 = vmatprep.mubr.bf16.mxu1 %v5115_v60  ;;  %v8071_v25 = vadd.f32 %v5614_v59, %v5502_v14 }
 0x148   : > { %v5616_v62 = vpop.f32.mrf.mxu1  ;;  %v5504_v34 = vpop.f32.mrf.mxu0 }
 0x149   : > { %v5617_v26 = vadd.f32 %v5616_v62, %v5615_v19  ;;  %v5505_v30 = vadd.f32 %v5504_v34, %v5503_v2 }
 0x14a   : > { %v5618_v39 = vpop.f32.mrf.mxu1  ;;  %v5506_v24 = vpop.f32.mrf.mxu0 }
 0x14b   : > { %v8074_v33 = vadd.f32 %v5617_v26, %v5505_v30 }
 0x14c   : > { %v5619_v22 = vpop.f32.mrf.mxu1  ;;  %v5507_v45 = vpop.f32.mrf.mxu0 }
 0x14d   : > { %v5620_v50 = vadd.f32 %v5619_v22, %v5618_v39  ;;  %v5508_v47 = vadd.f32 %v5507_v45, %v5506_v24  ;;  %5950 = vmatmul.mubr.bf16.gmra.mxu0 %v7803_v18 }
 0x14e   : > { %v5621_v53 = vpop.f32.mrf.mxu1  ;;  %5998 = vmatmul.mubr.bf16.gmra.mxu1 %v7810_v13  ;;  %v5509_v38 = vpop.f32.mrf.mxu0  ;;  %5953 = vmatprep.mubr.bf16.mxu0 %v7820_v29 }
 0x14f   : > { %6001 = vmatprep.mubr.bf16.mxu1 %v7863_v10  ;;  %v8079_v8 = vadd.f32 %v5620_v50, %v5508_v47 }
 0x150   : > { %v5622_v28 = vpop.f32.mrf.mxu1  ;;  %v5510_v61 = vpop.f32.mrf.mxu0 }
 0x151   : > { %v5623_v41 = vadd.f32 %v5622_v28, %v5621_v53  ;;  %v5511_v37 = vadd.f32 %v5510_v61, %v5509_v38 }
 0x152   : > { %v5624_v51 = vpop.f32.mrf.mxu1  ;;  %v5512_v63 = vpop.f32.mrf.mxu0 }
 0x153   : > { %v8082_v9 = vadd.f32 %v5623_v41, %v5511_v37 }
 0x154   : > { %v5625_v7 = vpop.f32.mrf.mxu1  ;;  %v5513_v15 = vpop.f32.mrf.mxu0 }
 0x155   : > { %v5626_v13 = vadd.f32 %v5625_v7, %v5624_v51  ;;  %v5514_v55 = vadd.f32 %v5513_v15, %v5512_v63  ;;  %5954 = vmatmul.mubr.bf16.gmra.mxu0 %v7850_v57 }
 0x156   : > { %v5627_v49 = vpop.f32.mrf.mxu1  ;;  %6002 = vmatmul.mubr.bf16.gmra.mxu1 %v7873_v4  ;;  %v5515_v18 = vpop.f32.mrf.mxu0  ;;  %5957 = vmatprep.mubr.bf16.mxu0 %v7869_v21 }
 0x157   : > { %6005 = vmatprep.mubr.bf16.mxu1 %v7899_v43  ;;  %v8087_v29 = vadd.f32 %v5626_v13, %v5514_v55 }
 0x158   : > { %v5628_v10 = vpop.f32.mrf.mxu1  ;;  %v5516_v42 = vpop.f32.mrf.mxu0 }
 0x159   : > { %v5629_v27 = vadd.f32 %v5628_v10, %v5627_v49  ;;  %v5517_v17 = vadd.f32 %v5516_v42, %v5515_v18 }
 0x15a   : > { %v5630_v60 = vpop.f32.mrf.mxu1  ;;  %v5518_v12 = vpop.f32.mrf.mxu0 }
 0x15b   : > { %v8090_v44 = vadd.f32 %v5629_v27, %v5517_v17 }
 0x15c   : > { %v5631_v59 = vpop.f32.mrf.mxu1  ;;  %v5519_v14 = vpop.f32.mrf.mxu0 }
 0x15d   : > { %v5632_v4 = vadd.f32 %v5631_v59, %v5630_v60  ;;  %v5520_v19 = vadd.f32 %v5519_v14, %v5518_v12  ;;  %5958 = vmatmul.mubr.bf16.gmra.mxu0 %v7902_v54 }
 0x15e   : > { %v5633_v2 = vpop.f32.mrf.mxu1  ;;  %6006 = vmatmul.mubr.bf16.gmra.mxu1 %v7909_v16  ;;  %v5521_v57 = vpop.f32.mrf.mxu0  ;;  %5961 = vmatprep.mubr.bf16.mxu0 %v7912_v11 }
 0x15f   : > { %6009 = vmatprep.mubr.bf16.mxu1 %v7959_v32  ;;  %v8095_v21 = vadd.f32 %v5632_v4, %v5520_v19 }
 0x160   : > { %v5634_v43 = vpop.f32.mrf.mxu1  ;;  %v5522_v62 = vpop.f32.mrf.mxu0 }
 0x161   : > { %v5635_v34 = vadd.f32 %v5634_v43, %v5633_v2  ;;  %v5523_v26 = vadd.f32 %v5522_v62, %v5521_v57 }
 0x162   : > { %v5636_v30 = vpop.f32.mrf.mxu1  ;;  %v5524_v39 = vpop.f32.mrf.mxu0 }
 0x163   : > { %v8098_v24 = vadd.f32 %v5635_v34, %v5523_v26 }
 0x164   : > { %v5637_v22 = vpop.f32.mrf.mxu1  ;;  %v5525_v45 = vpop.f32.mrf.mxu0 }
 0x165   : > { %v5638_v16 = vadd.f32 %v5637_v22, %v5636_v30  ;;  %v5526_v50 = vadd.f32 %v5525_v45, %v5524_v39  ;;  %5962 = vmatmul.mubr.bf16.gmra.mxu0 %v7947_v36  ;;  %v8518_v45 = vld [vmem:[#allocation13_spill] sm:$0xff] }
 0x166   : > { %v5639_v47 = vpop.f32.mrf.mxu1  ;;  %6010 = vmatmul.mubr.bf16.gmra.mxu1 %v7961_v35  ;;  %v5527_v54 = vpop.f32.mrf.mxu0 }
 0x167   : > { %v8102_v32 = vadd.f32 %v5638_v16, %v5526_v50 }
 0x168   : > { %v5640_v11 = vpop.f32.mrf.mxu1  ;;  %v5528_v53 = vpop.f32.mrf.mxu0 }
 0x169   : > { %v5641_v38 = vadd.f32 %v5640_v11, %v5639_v47  ;;  %v5529_v28 = vadd.f32 %v5528_v53, %v5527_v54 }
 0x16a   : > { %v5642_v61 = vpop.f32.mrf.mxu1  ;;  %v5530_v41 = vpop.f32.mrf.mxu0 }
 0x16b   : > { %v8104_v37 = vadd.f32 %v5641_v38, %v5529_v28 }
 0x16c   : > { %v5643_v51 = vpop.f32.mrf.mxu1  ;;  %v5531_v63 = vpop.f32.mrf.mxu0 }
 0x16d   : > { %v5644_v7 = vadd.f32 %v5643_v51, %v5642_v61  ;;  %v5532_v15 = vadd.f32 %v5531_v63, %v5530_v41 }
 0x16e   : > { %v5773_v13 = vpop.f32.mrf.mxu1  ;;  %v5661_v55 = vpop.f32.mrf.mxu0 }
 0x16f   : > { %v8106_v35 = vadd.f32 %v5644_v7, %v5532_v15 }
 0x170   : > { %v5774_v49 = vpop.f32.mrf.mxu1  ;;  %v5662_v36 = vpop.f32.mrf.mxu0 }
 0x171   : > { %v5775_v18 = vadd.f32 %v5774_v49, %v5773_v13  ;;  %v5663_v10 = vadd.f32 %v5662_v36, %v5661_v55 }
 0x172   : > { %v5776_v42 = vpop.f32.mrf.mxu1  ;;  %v5664_v27 = vpop.f32.mrf.mxu0 }
 0x173   : > { %v2873_v17 = vadd.f32 %v5663_v10, %v7668_v48 }
 0x174   : > { %v5777_v60 = vpop.f32.mrf.mxu1  ;;  %v5665_v12 = vpop.f32.mrf.mxu0 }
 0x175   : > { %v5778_v59 = vadd.f32 %v5777_v60, %v5776_v42  ;;  %v5666_v14 = vadd.f32 %v5665_v12, %v5664_v27  ;;  %v8109_v19 = vadd.f32 %v5775_v18, %v2873_v17  ;;  %v8519_v17 = vld [vmem:[#allocation14_spill] sm:$0xff] }
 0x176   : > { %v5779_v4 = vpop.f32.mrf.mxu1  ;;  %v5667_v2 = vpop.f32.mrf.mxu0 }
 0x177   : > { %v2876_v57 = vadd.f32 %v5666_v14, %v7699_v52 }
 0x178   : > { %v5780_v43 = vpop.f32.mrf.mxu1  ;;  %v5668_v62 = vpop.f32.mrf.mxu0 }
 0x179   : > { %v5781_v34 = vadd.f32 %v5780_v43, %v5779_v4  ;;  %v5669_v26 = vadd.f32 %v5668_v62, %v5667_v2  ;;  %v8112_v39 = vadd.f32 %v5778_v59, %v2876_v57 }
 0x17a   : > { %v5782_v30 = vpop.f32.mrf.mxu1  ;;  %v5670_v22 = vpop.f32.mrf.mxu0 }
 0x17b   : > { %v2881_v48 = vadd.f32 %v5669_v26, %v8518_v45 }
 0x17c   : > { %v5783_v16 = vpop.f32.mrf.mxu1  ;;  %v5671_v50 = vpop.f32.mrf.mxu0 }
 0x17d   : > { %v5784_v47 = vadd.f32 %v5783_v16, %v5782_v30  ;;  %v5672_v54 = vadd.f32 %v5671_v50, %v5670_v22  ;;  %v8115_v53 = vadd.f32 %v5781_v34, %v2881_v48  ;;  %v8520_v48 = vld [vmem:[#allocation15_spill] sm:$0xff] }
 0x17e   : > { %v5785_v11 = vpop.f32.mrf.mxu1  ;;  %v5673_v38 = vpop.f32.mrf.mxu0 }
 0x17f   : > { %v2884_v52 = vadd.f32 %v5672_v54, %v7780_v58 }
 0x180   : > { %v5786_v28 = vpop.f32.mrf.mxu1  ;;  %v5674_v61 = vpop.f32.mrf.mxu0 }
 0x181   : > { %v5787_v41 = vadd.f32 %v5786_v28, %v5785_v11  ;;  %v5675_v51 = vadd.f32 %v5674_v61, %v5673_v38  ;;  %v8118_v7 = vadd.f32 %v5784_v47, %v2884_v52 }
 0x182   : > { %v5788_v63 = vpop.f32.mrf.mxu1  ;;  %v5676_v15 = vpop.f32.mrf.mxu0 }
 0x183   : > { %v2889_v13 = vadd.f32 %v5675_v51, %v7800_v31 }
 0x184   : > { %v5789_v55 = vpop.f32.mrf.mxu1  ;;  %v5677_v49 = vpop.f32.mrf.mxu0 }
 0x185   : > { %v5790_v36 = vadd.f32 %v5789_v55, %v5788_v63  ;;  %v5678_v18 = vadd.f32 %v5677_v49, %v5676_v15  ;;  %v8121_v42 = vadd.f32 %v5787_v41, %v2889_v13 }
 0x186   : > { %v5791_v10 = vpop.f32.mrf.mxu1  ;;  %v5679_v27 = vpop.f32.mrf.mxu0 }
 0x187   : > { %v2892_v58 = vadd.f32 %v5678_v18, %v8519_v17 }
 0x188   : > { %v5792_v60 = vpop.f32.mrf.mxu1  ;;  %v5680_v12 = vpop.f32.mrf.mxu0 }
 0x189   : > { %v5793_v59 = vadd.f32 %v5792_v60, %v5791_v10  ;;  %v5681_v14 = vadd.f32 %v5680_v12, %v5679_v27  ;;  %v8124_v2 = vadd.f32 %v5790_v36, %v2892_v58 }
 0x18a   : > { %v5794_v4 = vpop.f32.mrf.mxu1  ;;  %v5682_v57 = vpop.f32.mrf.mxu0 }
 0x18b   : > { %v2897_v31 = vadd.f32 %v5681_v14, %v7855_v46 }
 0x18c   : > { %v5795_v43 = vpop.f32.mrf.mxu1  ;;  %v5683_v62 = vpop.f32.mrf.mxu0 }
 0x18d   : > { %v5796_v34 = vadd.f32 %v5795_v43, %v5794_v4  ;;  %v5684_v26 = vadd.f32 %v5683_v62, %v5682_v57  ;;  %v8127_v22 = vadd.f32 %v5793_v59, %v2897_v31 }
 0x18e   : > { %v5797_v30 = vpop.f32.mrf.mxu1  ;;  %v5685_v45 = vpop.f32.mrf.mxu0 }
 0x18f   : > { %v2900_v16 = vadd.f32 %v5684_v26, %v8520_v48 }
 0x190   : > { %v5798_v50 = vpop.f32.mrf.mxu1  ;;  %v5686_v47 = vpop.f32.mrf.mxu0 }
 0x191   : > { %v5799_v54 = vadd.f32 %v5798_v50, %v5797_v30  ;;  %v5687_v11 = vadd.f32 %v5686_v47, %v5685_v45  ;;  %v8130_v52 = vadd.f32 %v5796_v34, %v2900_v16  ;;  %v8521_v50 = vld [vmem:[#allocation19_spill] sm:$0xff] }
 0x192   : > { %v5800_v38 = vpop.f32.mrf.mxu1  ;;  %v5688_v28 = vpop.f32.mrf.mxu0 }
 0x193   : > { %v2905_v46 = vadd.f32 %v5687_v11, %v7897_v3 }
 0x194   : > { %v5801_v61 = vpop.f32.mrf.mxu1  ;;  %v5689_v41 = vpop.f32.mrf.mxu0 }
 0x195   : > { %v5802_v51 = vadd.f32 %v5801_v61, %v5800_v38  ;;  %v5690_v63 = vadd.f32 %v5689_v41, %v5688_v28  ;;  %v8133_v13 = vadd.f32 %v5799_v54, %v2905_v46  ;;  %v8522_v41 = vld [vmem:[#allocation18_spill] sm:$0xff] }
 0x196   : > { %v5803_v15 = vpop.f32.mrf.mxu1  ;;  %v5691_v55 = vpop.f32.mrf.mxu0 }
 0x197   : > { %v2908_v49 = vadd.f32 %v5690_v63, %v7926_v6 }
 0x198   : > { %v5804_v36 = vpop.f32.mrf.mxu1  ;;  %v5692_v18 = vpop.f32.mrf.mxu0 }
 0x199   : > { %v5805_v10 = vadd.f32 %v5804_v36, %v5803_v15  ;;  %v5693_v27 = vadd.f32 %v5692_v18, %v5691_v55  ;;  %v8136_v58 = vadd.f32 %v5802_v51, %v2908_v49 }
 0x19a   : > { %v5806_v17 = vpop.f32.mrf.mxu1  ;;  %v5694_v60 = vpop.f32.mrf.mxu0 }
 0x19b   : > { %v2913_v3 = vadd.f32 %v5693_v27, %v7949_v56 }
 0x19c   : > { %v5807_v12 = vpop.f32.mrf.mxu1  ;;  %v5695_v59 = vpop.f32.mrf.mxu0 }
 0x19d   : > { %v5808_v14 = vadd.f32 %v5807_v12, %v5806_v17  ;;  %v5696_v4 = vadd.f32 %v5695_v59, %v5694_v60  ;;  %v8139_v31 = vadd.f32 %v5805_v10, %v2913_v3  ;;  %v8523_v10 = vld [vmem:[#allocation20_spill] sm:$0xff] }
 0x19e   : > { %v5809_v57 = vpop.f32.mrf.mxu1  ;;  %v5697_v43 = vpop.f32.mrf.mxu0 }
 0x19f   : > { %v2916_v6 = vadd.f32 %v5696_v4, %v7980_v0 }
 0x1a0   : > { %v5810_v62 = vpop.f32.mrf.mxu1  ;;  %v5698_v34 = vpop.f32.mrf.mxu0 }
 0x1a1   : > { %v5811_v26 = vadd.f32 %v5810_v62, %v5809_v57  ;;  %v5699_v30 = vadd.f32 %v5698_v34, %v5697_v43  ;;  %v8142_v48 = vadd.f32 %v5808_v14, %v2916_v6  ;;  %v8524_v57 = vld [vmem:[#allocation40_spill] sm:$0xff] }
 0x1a2   : > { %v5812_v45 = vpop.f32.mrf.mxu1  ;;  %v5700_v16 = vpop.f32.mrf.mxu0 }
 0x1a3   : > { %v2921_v56 = vadd.f32 %v5699_v30, %v8521_v50 }
 0x1a4   : > { %v5813_v47 = vpop.f32.mrf.mxu1  ;;  %v5701_v54 = vpop.f32.mrf.mxu0 }
 0x1a5   : > { %v5814_v11 = vadd.f32 %v5813_v47, %v5812_v45  ;;  %v5702_v38 = vadd.f32 %v5701_v54, %v5700_v16  ;;  %v8145_v46 = vadd.f32 %v5811_v26, %v2921_v56 }
 0x1a6   : > { %v5815_v28 = vpop.f32.mrf.mxu1  ;;  %v5703_v61 = vpop.f32.mrf.mxu0 }
 0x1a7   : > { %v2924_v0 = vadd.f32 %v5702_v38, %v8522_v41 }
 0x1a8   : > { %v5816_v51 = vpop.f32.mrf.mxu1  ;;  %v5704_v63 = vpop.f32.mrf.mxu0 }
 0x1a9   : > { %v5817_v15 = vadd.f32 %v5816_v51, %v5815_v28  ;;  %v5705_v55 = vadd.f32 %v5704_v63, %v5703_v61  ;;  %v8148_v36 = vadd.f32 %v5814_v11, %v2924_v0 }
 0x1aa   : > { %v5818_v49 = vpop.f32.mrf.mxu1  ;;  %v5706_v18 = vpop.f32.mrf.mxu0 }
 0x1ab   : > { %v2929_v27 = vadd.f32 %v5705_v55, %v8523_v10 }
 0x1ac   : > { %v5819_v17 = vpop.f32.mrf.mxu1  ;;  %v5707_v60 = vpop.f32.mrf.mxu0 }
 0x1ad   : > { %v5820_v3 = vadd.f32 %v5819_v17, %v5818_v49  ;;  %v5708_v12 = vadd.f32 %v5707_v60, %v5706_v18  ;;  %v8151_v14 = vadd.f32 %v5817_v15, %v2929_v27 }
 0x1ae   : > { %v5821_v59 = vpop.f32.mrf.mxu1  ;;  %v5709_v4 = vpop.f32.mrf.mxu0 }
 0x1af   : > { %v2932_v43 = vadd.f32 %v5708_v12, %v8524_v57 }
 0x1b0   : > { %v5822_v6 = vpop.f32.mrf.mxu1  ;;  %v5710_v62 = vpop.f32.mrf.mxu0 }
 0x1b1   : > { %v5823_v34 = vadd.f32 %v5822_v6, %v5821_v59  ;;  %v5711_v26 = vadd.f32 %v5710_v62, %v5709_v4  ;;  %v8154_v45 = vadd.f32 %v5820_v3, %v2932_v43 }
 0x1b2   : > { %v5824_v30 = vpop.f32.mrf.mxu1  ;;  %v5712_v16 = vpop.f32.mrf.mxu0 }
 0x1b3   : > { %v2937_v50 = vadd.f32 %v5711_v26, %v8041_v1 }
 0x1b4   : > { %v5825_v56 = vpop.f32.mrf.mxu1  ;;  %v5713_v47 = vpop.f32.mrf.mxu0 }
 0x1b5   : > { %v5826_v54 = vadd.f32 %v5825_v56, %v5824_v30  ;;  %v5714_v11 = vadd.f32 %v5713_v47, %v5712_v16  ;;  %v8157_v28 = vadd.f32 %v5823_v34, %v2937_v50 }
 0x1b6   : > { %v5827_v38 = vpop.f32.mrf.mxu1  ;;  %v5715_v61 = vpop.f32.mrf.mxu0 }
 0x1b7   : > { %v2940_v41 = vadd.f32 %v5714_v11, %v8050_v5 }
 0x1b8   : > { %v5828_v0 = vpop.f32.mrf.mxu1  ;;  %v5716_v51 = vpop.f32.mrf.mxu0 }
 0x1b9   : > { %v5829_v63 = vadd.f32 %v5828_v0, %v5827_v38  ;;  %v5717_v15 = vadd.f32 %v5716_v51, %v5715_v61  ;;  %v8160_v49 = vadd.f32 %v5826_v54, %v2940_v41 }
 0x1ba   : > { %v5830_v55 = vpop.f32.mrf.mxu1  ;;  %v5718_v18 = vpop.f32.mrf.mxu0 }
 0x1bb   : > { %v2945_v1 = vadd.f32 %v5717_v15, %v8057_v23 }
 0x1bc   : > { %v5831_v10 = vpop.f32.mrf.mxu1  ;;  %v5719_v27 = vpop.f32.mrf.mxu0 }
 0x1bd   : > { %v5832_v17 = vadd.f32 %v5831_v10, %v5830_v55  ;;  %v5720_v60 = vadd.f32 %v5719_v27, %v5718_v18  ;;  %v8163_v12 = vadd.f32 %v5829_v63, %v2945_v1 }
 0x1be   : > { %v5833_v3 = vpop.f32.mrf.mxu1  ;;  %v5721_v59 = vpop.f32.mrf.mxu0 }
 0x1bf   : > { %v2948_v5 = vadd.f32 %v5720_v60, %v8061_v40 }
 0x1c0   : > { %v5834_v4 = vpop.f32.mrf.mxu1  ;;  %v5722_v57 = vpop.f32.mrf.mxu0 }
 0x1c1   : > { %v5835_v43 = vadd.f32 %v5834_v4, %v5833_v3  ;;  %v5723_v6 = vadd.f32 %v5722_v57, %v5721_v59  ;;  %v8166_v34 = vadd.f32 %v5832_v17, %v2948_v5 }
 0x1c2   : > { %v5836_v62 = vpop.f32.mrf.mxu1  ;;  %v5724_v26 = vpop.f32.mrf.mxu0 }
 0x1c3   : > { %v2953_v23 = vadd.f32 %v5723_v6, %v8067_v20 }
 0x1c4   : > { %v5837_v30 = vpop.f32.mrf.mxu1  ;;  %v5725_v16 = vpop.f32.mrf.mxu0 }
 0x1c5   : > { %v5838_v50 = vadd.f32 %v5837_v30, %v5836_v62  ;;  %v5726_v56 = vadd.f32 %v5725_v16, %v5724_v26  ;;  %v8169_v54 = vadd.f32 %v5835_v43, %v2953_v23 }
 0x1c6   : > { %v5839_v47 = vpop.f32.mrf.mxu1  ;;  %v5727_v11 = vpop.f32.mrf.mxu0 }
 0x1c7   : > { %v2956_v40 = vadd.f32 %v5726_v56, %v8071_v25 }
 0x1c8   : > { %v5840_v38 = vpop.f32.mrf.mxu1  ;;  %v5728_v61 = vpop.f32.mrf.mxu0 }
 0x1c9   : > { %v5841_v41 = vadd.f32 %v5840_v38, %v5839_v47  ;;  %v5729_v0 = vadd.f32 %v5728_v61, %v5727_v11  ;;  %v8172_v63 = vadd.f32 %v5838_v50, %v2956_v40 }
 0x1ca   : > { %v5842_v51 = vpop.f32.mrf.mxu1  ;;  %v5730_v15 = vpop.f32.mrf.mxu0 }
 0x1cb   : > { %v2961_v20 = vadd.f32 %v5729_v0, %v8074_v33 }
 0x1cc   : > { %v5843_v55 = vpop.f32.mrf.mxu1  ;;  %v5731_v18 = vpop.f32.mrf.mxu0 }
 0x1cd   : > { %v5844_v1 = vadd.f32 %v5843_v55, %v5842_v51  ;;  %v5732_v10 = vadd.f32 %v5731_v18, %v5730_v15  ;;  %v8175_v17 = vadd.f32 %v5841_v41, %v2961_v20 }
 0x1ce   : > { %v5845_v27 = vpop.f32.mrf.mxu1  ;;  %v5733_v60 = vpop.f32.mrf.mxu0 }
 0x1cf   : > { %v2964_v25 = vadd.f32 %v5732_v10, %v8079_v8 }
 0x1d0   : > { %v5846_v3 = vpop.f32.mrf.mxu1  ;;  %v5734_v59 = vpop.f32.mrf.mxu0 }
 0x1d1   : > { %v5847_v5 = vadd.f32 %v5846_v3, %v5845_v27  ;;  %v5735_v4 = vadd.f32 %v5734_v59, %v5733_v60  ;;  %v8178_v43 = vadd.f32 %v5844_v1, %v2964_v25 }
 0x1d2   : > { %v5848_v57 = vpop.f32.mrf.mxu1  ;;  %v5736_v6 = vpop.f32.mrf.mxu0 }
 0x1d3   : > { %v2969_v33 = vadd.f32 %v5735_v4, %v8082_v9 }
 0x1d4   : > { %v5849_v62 = vpop.f32.mrf.mxu1  ;;  %v5737_v26 = vpop.f32.mrf.mxu0 }
 0x1d5   : > { %v5850_v23 = vadd.f32 %v5849_v62, %v5848_v57  ;;  %v5738_v30 = vadd.f32 %v5737_v26, %v5736_v6  ;;  %v8181_v50 = vadd.f32 %v5847_v5, %v2969_v33 }
 0x1d6   : > { %v5851_v16 = vpop.f32.mrf.mxu1  ;;  %v5739_v56 = vpop.f32.mrf.mxu0 }
 0x1d7   : > { %v2972_v8 = vadd.f32 %v5738_v30, %v8087_v29 }
 0x1d8   : > { %v5852_v47 = vpop.f32.mrf.mxu1  ;;  %v5740_v11 = vpop.f32.mrf.mxu0 }
 0x1d9   : > { %v5853_v40 = vadd.f32 %v5852_v47, %v5851_v16  ;;  %v5741_v38 = vadd.f32 %v5740_v11, %v5739_v56  ;;  %v8184_v41 = vadd.f32 %v5850_v23, %v2972_v8 }
 0x1da   : > { %v5854_v61 = vpop.f32.mrf.mxu1  ;;  %v5742_v0 = vpop.f32.mrf.mxu0 }
 0x1db   : > { %v2977_v9 = vadd.f32 %v5741_v38, %v8090_v44 }
 0x1dc   : > { %v5855_v51 = vpop.f32.mrf.mxu1  ;;  %v5743_v15 = vpop.f32.mrf.mxu0 }
 0x1dd   : > { %v5856_v20 = vadd.f32 %v5855_v51, %v5854_v61  ;;  %v5744_v55 = vadd.f32 %v5743_v15, %v5742_v0  ;;  %v8187_v1 = vadd.f32 %v5853_v40, %v2977_v9 }
 0x1de   : > { %v5857_v18 = vpop.f32.mrf.mxu1  ;;  %v5745_v10 = vpop.f32.mrf.mxu0 }
 0x1df   : > { %v2980_v29 = vadd.f32 %v5744_v55, %v8095_v21 }
 0x1e0   : > { %v5858_v27 = vpop.f32.mrf.mxu1  ;;  %v5746_v60 = vpop.f32.mrf.mxu0 }
 0x1e1   : > { %v5859_v25 = vadd.f32 %v5858_v27, %v5857_v18  ;;  %v5747_v3 = vadd.f32 %v5746_v60, %v5745_v10  ;;  %v8190_v5 = vadd.f32 %v5856_v20, %v2980_v29 }
 0x1e2   : > { %v5860_v59 = vpop.f32.mrf.mxu1  ;;  %v5748_v4 = vpop.f32.mrf.mxu0 }
 0x1e3   : > { %v2985_v44 = vadd.f32 %v5747_v3, %v8098_v24 }
 0x1e4   : > { %v5861_v57 = vpop.f32.mrf.mxu1  ;;  %v5749_v6 = vpop.f32.mrf.mxu0 }
 0x1e5   : > { %v5862_v33 = vadd.f32 %v5861_v57, %v5860_v59  ;;  %v5750_v62 = vadd.f32 %v5749_v6, %v5748_v4  ;;  %v8193_v23 = vadd.f32 %v5859_v25, %v2985_v44 }
 0x1e6   : > { %v5863_v26 = vpop.f32.mrf.mxu1  ;;  %v5751_v30 = vpop.f32.mrf.mxu0 }
 0x1e7   : > { %v2988_v21 = vadd.f32 %v5750_v62, %v8102_v32 }
 0x1e8   : > { %v5864_v16 = vpop.f32.mrf.mxu1  ;;  %v5752_v56 = vpop.f32.mrf.mxu0 }
 0x1e9   : > { %v5753_v8 = vadd.f32 %v5752_v56, %v5751_v30  ;;  %v8198_v11 = vadd.f32 %v5862_v33, %v2988_v21  ;;  %v5865_v38 = vadd.f32 %v5864_v16, %v5863_v26 }
 0x1ea   : > { %v8196_v47 = vpop.f32.mrf.mxu1  ;;  %v5754_v40 = vpop.f32.mrf.mxu0 }
 0x1eb   : > { %v2993_v24 = vadd.f32 %v5753_v8, %v8104_v37 }
 0x1ec   : > { %v8201_v61 = vpop.f32.mrf.mxu1  ;;  %v5755_v0 = vpop.f32.mrf.mxu0 }
 0x1ed   : > { %v8203_v51 = vadd.f32 %v5865_v38, %v2993_v24 }
 0x1ee   : > { %v5983_v9 = vpop.f32.mrf.mxu1  ;;  %v5935_v15 = vpop.f32.mrf.mxu0 }
 0x1ef   : > { %v3203_v10 = vadd.f32 %v5935_v15, %v8115_v53  ;;  %v4465_v33 = vmul.f32 %v5983_v9, %v5983_v9 }
 0x1f0   : > { %v4138_v32 = vpop.f32.mrf.mxu1  ;;  %v3194_v20 = vpop.f32.mrf.mxu0 }
 0x1f1   : > { %v3195_v29 = vadd.f32 %v3194_v20, %v8109_v19  ;;  %v4463_v25 = vmul.f32 %v4138_v32, %v4138_v32  ;;  %v5756_v19 = vadd.f32 %v5755_v0, %v5754_v40  ;;  %v3521_v24 = vmul.f32 %v3203_v10, %v3203_v10 }
 0x1f2   : > { %v5984_v55 = vpop.f32.mrf.mxu1  ;;  %v5936_v18 = vpop.f32.mrf.mxu0 }
 0x1f3   : > { %v5319_v37 = vpack.c.bf16 %v5984_v55, %v5983_v9  ;;  %v3206_v27 = vadd.f32 %v5936_v18, %v8118_v7  ;;  %v3519_v30 = vmul.f32 %v3195_v29, %v3195_v29  ;;  %v4466_v38 = vmul.f32 %v5984_v55, %v5984_v55 }
 0x1f4   : > { %v4141_v60 = vpop.f32.mrf.mxu1  ;;  %v3197_v3 = vpop.f32.mrf.mxu0 }
 0x1f5   : > { %5406 = vst [vmem:[%s8209_s18 + $0x8] sm:$0xff] %v5319_v37   ;;  %v5314_v59 = vpack.c.bf16 %v4141_v60, %v4138_v32  ;;  %v4425_v4 = vadd.f32 %v4141_v60, %v4138_v32  ;;  %v4464_v44 = vmul.f32 %v4141_v60, %v4141_v60  ;;  %v5239_v57 = vpack.c.bf16 %v3206_v27, %v3203_v10 }
 0x1f6   : > { %v3198_v53 = vadd.f32 %v3197_v3, %v8112_v39  ;;  %v5987_v6 = vpop.f32.mrf.mxu1  ;;  %v5939_v26 = vpop.f32.mrf.mxu0  ;;  %v3522_v39 = vmul.f32 %v3206_v27, %v3206_v27 }
 0x1f7   : > { %5315 = vst [vmem:[%s8209_s18] sm:$0xff] %v5314_v59   ;;  %v4426_v7 = vadd.f32 %v5983_v9, %v4425_v4  ;;  %v4495_v62 = vadd.f32 %v4464_v44, %v4463_v25  ;;  %5391 = vst [vmem:[%s8217_s21 + $0x8] sm:$0xff] %v5239_v57   ;;  %v3219_v4 = vadd.f32 %v5939_v26, %v8127_v22 }
 0x1f8   : > { %v5234_v21 = vpack.c.bf16 %v3198_v53, %v3195_v29  ;;  %v3481_v16 = vadd.f32 %v3198_v53, %v3195_v29  ;;  %v3520_v56 = vmul.f32 %v3198_v53, %v3198_v53  ;;  %v4154_v8 = vpop.f32.mrf.mxu1  ;;  %v3210_v32 = vpop.f32.mrf.mxu0 }
 0x1f9   : > { %v4496_v15 = vadd.f32 %v4495_v62, %v4465_v33  ;;  %v4427_v20 = vadd.f32 %v5984_v55, %v4426_v7  ;;  %v3211_v9 = vadd.f32 %v3210_v32, %v8121_v42  ;;  %v4467_v60 = vmul.f32 %v4154_v8, %v4154_v8 }
 0x1fa   : > { %5235 = vst [vmem:[%s8217_s21] sm:$0xff] %v5234_v21   ;;  %v3482_v40 = vadd.f32 %v3481_v16, %v3203_v10  ;;  %v3551_v0 = vadd.f32 %v3520_v56, %v3519_v30  ;;  %v5988_v18 = vpop.f32.mrf.mxu1  ;;  %v5940_v3 = vpop.f32.mrf.mxu0 }
 0x1fb   : > { %v4428_v37 = vadd.f32 %v4427_v20, %v4154_v8  ;;  %v4497_v25 = vadd.f32 %v4496_v15, %v4466_v38  ;;  %v5329_v29 = vpack.c.bf16 %v5988_v18, %v5987_v6  ;;  %v3222_v55 = vadd.f32 %v5940_v3, %v8130_v52 }
 0x1fc   : > { %v3552_v59 = vadd.f32 %v3551_v0, %v3521_v24  ;;  %v3483_v44 = vadd.f32 %v3482_v40, %v3206_v27  ;;  %v4157_v57 = vpop.f32.mrf.mxu1  ;;  %v3213_v10 = vpop.f32.mrf.mxu0  ;;  %v3523_v30 = vmul.f32 %v3211_v9, %v3211_v9  ;;  %v4469_v24 = vmul.f32 %v5987_v6, %v5987_v6 }
 0x1fd   : > { %v4498_v53 = vadd.f32 %v4497_v25, %v4467_v60  ;;  %5408 = vst [vmem:[%s8209_s18 + $0x18] sm:$0xff] %v5329_v29   ;;  %v5324_v33 = vpack.c.bf16 %v4157_v57, %v4154_v8  ;;  %v4429_v7 = vadd.f32 %v4428_v37, %v4157_v57  ;;  %v4468_v42 = vmul.f32 %v4157_v57, %v4157_v57 }
 0x1fe   : > { %v3484_v62 = vadd.f32 %v3483_v44, %v3211_v9  ;;  %v3553_v21 = vadd.f32 %v3552_v59, %v3522_v39  ;;  %v5249_v16 = vpack.c.bf16 %v3222_v55, %v3219_v4  ;;  %v5991_v56 = vpop.f32.mrf.mxu1  ;;  %v3214_v22 = vadd.f32 %v3213_v10, %v8124_v2  ;;  %v5943_v52 = vpop.f32.mrf.mxu0 }
 0x1ff   : > { %5407 = vst [vmem:[%s8209_s18 + $0x10] sm:$0xff] %v5324_v33   ;;  %v4430_v27 = vadd.f32 %v5987_v6, %v4429_v7  ;;  %v4499_v26 = vadd.f32 %v4498_v53, %v4468_v42  ;;  %v2996_v38 = vadd.f32 %v5756_v19, %v8106_v35  ;;  %v5868_v8 = vadd.f32 %v8201_v61, %v8196_v47 }
 0x200   : > { %v3554_v15 = vadd.f32 %v3553_v21, %v3523_v30  ;;  %5393 = vst [vmem:[%s8217_s21 + $0x18] sm:$0xff] %v5249_v16   ;;  %v4470_v32 = vmul.f32 %v5988_v18, %v5988_v18  ;;  %v4170_v20 = vpop.f32.mrf.mxu1  ;;  %v5244_v39 = vpack.c.bf16 %v3214_v22, %v3211_v9  ;;  %v3485_v40 = vadd.f32 %v3484_v62, %v3214_v22  ;;  %v3226_v60 = vpop.f32.mrf.mxu0 }
 0x201   : > { %v3524_v0 = vmul.f32 %v3214_v22, %v3214_v22  ;;  %v4500_v37 = vadd.f32 %v4499_v26, %v4469_v24  ;;  %v3525_v2 = vmul.f32 %v3219_v4, %v3219_v4  ;;  %v3227_v6 = vadd.f32 %v3226_v60, %v8133_v13 }
 0x202   : > { %v4431_v25 = vadd.f32 %v5988_v18, %v4430_v27  ;;  %v4471_v3 = vmul.f32 %v4170_v20, %v4170_v20  ;;  %v5992_v35 = vpop.f32.mrf.mxu1  ;;  %5392 = vst [vmem:[%s8217_s21 + $0x10] sm:$0xff] %v5244_v39   ;;  %v3486_v19 = vadd.f32 %v3485_v40, %v3219_v4  ;;  %v5944_v61 = vpop.f32.mrf.mxu0  ;;  %v3526_v44 = vmul.f32 %v3222_v55, %v3222_v55 }
 0x203   : > { %v3555_v29 = vadd.f32 %v3554_v15, %v3524_v0  ;;  %v4501_v47 = vadd.f32 %v4500_v37, %v4470_v32  ;;  %v5339_v59 = vpack.c.bf16 %v5992_v35, %v5991_v56  ;;  %v3235_v9 = vadd.f32 %v5943_v52, %v8139_v31 }
 0x204   : > { %v4432_v57 = vadd.f32 %v4431_v25, %v4170_v20  ;;  %v3238_v53 = vadd.f32 %v5944_v61, %v8142_v48  ;;  %v4173_v10 = vpop.f32.mrf.mxu1  ;;  %v3487_v13 = vadd.f32 %v3486_v19, %v3222_v55  ;;  %v3229_v7 = vpop.f32.mrf.mxu0  ;;  %v8240_v16 = vadd.f32 %v5868_v8, %v2996_v38 }
 0x205   : > { %v3556_v33 = vadd.f32 %v3555_v29, %v3525_v2  ;;  %v4502_v18 = vadd.f32 %v4501_v47, %v4471_v3  ;;  %5410 = vst [vmem:[%s8209_s18 + $0x28] sm:$0xff] %v5339_v59   ;;  %v5334_v42 = vpack.c.bf16 %v4173_v10, %v4170_v20  ;;  %v3230_v62 = vadd.f32 %v3229_v7, %v8136_v58 }
 0x206   : > { %v5259_v4 = vpack.c.bf16 %v3238_v53, %v3235_v9  ;;  %v4433_v30 = vadd.f32 %v4432_v57, %v4173_v10  ;;  %v5995_v21 = vpop.f32.mrf.mxu1  ;;  %v3488_v31 = vadd.f32 %v3487_v13, %v3227_v6  ;;  %v3527_v24 = vmul.f32 %v3227_v6, %v3227_v6  ;;  %v5947_v27 = vpop.f32.mrf.mxu0 }
 0x207   : > { %v3557_v22 = vadd.f32 %v3556_v33, %v3526_v44  ;;  %5409 = vst [vmem:[%s8209_s18 + $0x20] sm:$0xff] %v5334_v42   ;;  %v4472_v48 = vmul.f32 %v4173_v10, %v4173_v10  ;;  %v4473_v55 = vmul.f32 %v5991_v56, %v5991_v56  ;;  %v5254_v26 = vpack.c.bf16 %v3230_v62, %v3227_v6 }
 0x208   : > { %5395 = vst [vmem:[%s8217_s21 + $0x28] sm:$0xff] %v5259_v4   ;;  %v3528_v52 = vmul.f32 %v3230_v62, %v3230_v62  ;;  %v4434_v15 = vadd.f32 %v5991_v56, %v4433_v30  ;;  %v4186_v32 = vpop.f32.mrf.mxu1  ;;  %v3529_v20 = vmul.f32 %v3235_v9, %v3235_v9  ;;  %v3489_v58 = vadd.f32 %v3488_v31, %v3230_v62  ;;  %v3242_v0 = vpop.f32.mrf.mxu0 }
 0x209   : > { %v3558_v39 = vadd.f32 %v3557_v22, %v3527_v24  ;;  %v4503_v40 = vadd.f32 %v4502_v18, %v4472_v48  ;;  %v3530_v38 = vmul.f32 %v3238_v53, %v3238_v53  ;;  %v4474_v8 = vmul.f32 %v5992_v35, %v5992_v35  ;;  %5394 = vst [vmem:[%s8217_s21 + $0x20] sm:$0xff] %v5254_v26  }
 0x20a   : > { %v3243_v37 = vadd.f32 %v3242_v0, %v8145_v46  ;;  %v4435_v60 = vadd.f32 %v5992_v35, %v4434_v15  ;;  %v5996_v2 = vpop.f32.mrf.mxu1  ;;  %v3490_v25 = vadd.f32 %v3489_v58, %v3235_v9  ;;  %v5948_v6 = vpop.f32.mrf.mxu0  ;;  %v3251_v56 = vadd.f32 %v5947_v27, %v8151_v14 }
 0x20b   : > { %v3559_v3 = vadd.f32 %v3558_v39, %v3528_v52  ;;  %v4504_v19 = vadd.f32 %v4503_v40, %v4473_v55  ;;  %v5349_v29 = vpack.c.bf16 %v5996_v2, %v5995_v21  ;;  %v4475_v61 = vmul.f32 %v4186_v32, %v4186_v32 }
 0x20c   : > { %v4436_v47 = vadd.f32 %v4435_v60, %v4186_v32  ;;  %v3254_v59 = vadd.f32 %v5948_v6, %v8154_v45  ;;  %v4189_v44 = vpop.f32.mrf.mxu1  ;;  %v3491_v10 = vadd.f32 %v3490_v25, %v3238_v53  ;;  %v3245_v46 = vpop.f32.mrf.mxu0  ;;  %v3531_v9 = vmul.f32 %v3243_v37, %v3243_v37 }
 0x20d   : > { %v3560_v57 = vadd.f32 %v3559_v3, %v3529_v20  ;;  %v4505_v33 = vadd.f32 %v4504_v19, %v4474_v8  ;;  %5412 = vst [vmem:[%s8209_s18 + $0x38] sm:$0xff] %v5349_v29   ;;  %v5344_v35 = vpack.c.bf16 %v4189_v44, %v4186_v32  ;;  %v3246_v18 = vadd.f32 %v3245_v46, %v8148_v36 }
 0x20e   : > { %v5269_v13 = vpack.c.bf16 %v3254_v59, %v3251_v56  ;;  %v4437_v7 = vadd.f32 %v4436_v47, %v4189_v44  ;;  %v5999_v42 = vpop.f32.mrf.mxu1  ;;  %v3492_v14 = vadd.f32 %v3491_v10, %v3243_v37  ;;  %v4476_v45 = vmul.f32 %v4189_v44, %v4189_v44  ;;  %v5951_v30 = vpop.f32.mrf.mxu0 }
 0x20f   : > { %v3561_v4 = vadd.f32 %v3560_v57, %v3530_v38  ;;  %v4506_v62 = vadd.f32 %v4505_v33, %v4475_v61  ;;  %5411 = vst [vmem:[%s8209_s18 + $0x30] sm:$0xff] %v5344_v35   ;;  %v4477_v31 = vmul.f32 %v5995_v21, %v5995_v21  ;;  %v5264_v53 = vpack.c.bf16 %v3246_v18, %v3243_v37 }
 0x210   : > { %5397 = vst [vmem:[%s8217_s21 + $0x38] sm:$0xff] %v5269_v13   ;;  %v3532_v24 = vmul.f32 %v3246_v18, %v3246_v18  ;;  %v4438_v22 = vadd.f32 %v5995_v21, %v4437_v7  ;;  %v4202_v48 = vpop.f32.mrf.mxu1  ;;  %v3533_v27 = vmul.f32 %v3251_v56, %v3251_v56  ;;  %v3493_v26 = vadd.f32 %v3492_v14, %v3246_v18  ;;  %v3258_v36 = vpop.f32.mrf.mxu0 }
 0x211   : > { %v3562_v55 = vadd.f32 %v3561_v4, %v3531_v9  ;;  %v4507_v52 = vadd.f32 %v4506_v62, %v4476_v45  ;;  %v3534_v15 = vmul.f32 %v3254_v59, %v3254_v59  ;;  %v4478_v32 = vmul.f32 %v5996_v2, %v5996_v2  ;;  %5396 = vst [vmem:[%s8217_s21 + $0x30] sm:$0xff] %v5264_v53  }
 0x212   : > { %v3259_v20 = vadd.f32 %v3258_v36, %v8157_v28  ;;  %v4439_v39 = vadd.f32 %v5996_v2, %v4438_v22  ;;  %v6000_v58 = vpop.f32.mrf.mxu1  ;;  %v3494_v40 = vadd.f32 %v3493_v26, %v3251_v56  ;;  %v5952_v8 = vpop.f32.mrf.mxu0  ;;  %v3267_v21 = vadd.f32 %v5951_v30, %v8163_v12 }
 0x213   : > { %v3563_v0 = vadd.f32 %v3562_v55, %v3532_v24  ;;  %v4508_v38 = vadd.f32 %v4507_v52, %v4477_v31  ;;  %v5359_v37 = vpack.c.bf16 %v6000_v58, %v5999_v42  ;;  %v4479_v25 = vmul.f32 %v4202_v48, %v4202_v48 }
 0x214   : > { %v4440_v60 = vadd.f32 %v4439_v39, %v4202_v48  ;;  %v3270_v3 = vadd.f32 %v5952_v8, %v8166_v34  ;;  %v4205_v19 = vpop.f32.mrf.mxu1  ;;  %v3495_v29 = vadd.f32 %v3494_v40, %v3254_v59  ;;  %v3261_v28 = vpop.f32.mrf.mxu0  ;;  %v3535_v56 = vmul.f32 %v3259_v20, %v3259_v20 }
 0x215   : > { %v3564_v6 = vadd.f32 %v3563_v0, %v3533_v27  ;;  %v4509_v47 = vadd.f32 %v4508_v38, %v4478_v32  ;;  %5414 = vst [vmem:[%s8209_s18 + $0x48] sm:$0xff] %v5359_v37   ;;  %v5354_v2 = vpack.c.bf16 %v4205_v19, %v4202_v48  ;;  %v3262_v44 = vadd.f32 %v3261_v28, %v8160_v49 }
 0x216   : > { %v5279_v61 = vpack.c.bf16 %v3270_v3, %v3267_v21  ;;  %v4441_v57 = vadd.f32 %v4440_v60, %v4205_v19  ;;  %v6003_v10 = vpop.f32.mrf.mxu1  ;;  %v3496_v12 = vadd.f32 %v3495_v29, %v3259_v20  ;;  %v4480_v34 = vmul.f32 %v4205_v19, %v4205_v19  ;;  %v5955_v35 = vpop.f32.mrf.mxu0 }
 0x217   : > { %v3565_v33 = vadd.f32 %v3564_v6, %v3534_v15  ;;  %v4510_v46 = vadd.f32 %v4509_v47, %v4479_v25  ;;  %5413 = vst [vmem:[%s8209_s18 + $0x40] sm:$0xff] %v5354_v2   ;;  %v4481_v9 = vmul.f32 %v5999_v42, %v5999_v42  ;;  %v5274_v59 = vpack.c.bf16 %v3262_v44, %v3259_v20 }
 0x218   : > { %5399 = vst [vmem:[%s8217_s21 + $0x48] sm:$0xff] %v5279_v61   ;;  %v3536_v13 = vmul.f32 %v3262_v44, %v3262_v44  ;;  %v4442_v18 = vadd.f32 %v5999_v42, %v4441_v57  ;;  %v4218_v7 = vpop.f32.mrf.mxu1  ;;  %v3537_v14 = vmul.f32 %v3267_v21, %v3267_v21  ;;  %v3497_v62 = vadd.f32 %v3496_v12, %v3262_v44  ;;  %v3274_v49 = vpop.f32.mrf.mxu0 }
 0x219   : > { %v3566_v4 = vadd.f32 %v3565_v33, %v3535_v56  ;;  %v4511_v45 = vadd.f32 %v4510_v46, %v4480_v34  ;;  %v3538_v30 = vmul.f32 %v3270_v3, %v3270_v3  ;;  %v4482_v31 = vmul.f32 %v6000_v58, %v6000_v58  ;;  %5398 = vst [vmem:[%s8217_s21 + $0x40] sm:$0xff] %v5274_v59  }
 0x21a   : > { %v3275_v53 = vadd.f32 %v3274_v49, %v8169_v54  ;;  %v4443_v24 = vadd.f32 %v6000_v58, %v4442_v18  ;;  %v6004_v22 = vpop.f32.mrf.mxu1  ;;  %v3498_v48 = vadd.f32 %v3497_v62, %v3267_v21  ;;  %v5956_v26 = vpop.f32.mrf.mxu0  ;;  %v3283_v42 = vadd.f32 %v5955_v35, %v8175_v17 }
 0x21b   : > { %v3567_v27 = vadd.f32 %v3566_v4, %v3536_v13  ;;  %v4512_v55 = vadd.f32 %v4511_v45, %v4481_v9  ;;  %v5369_v52 = vpack.c.bf16 %v6004_v22, %v6003_v10  ;;  %v4483_v15 = vmul.f32 %v4218_v7, %v4218_v7 }
 0x21c   : > { %v4444_v36 = vadd.f32 %v4443_v24, %v4218_v7  ;;  %v3286_v32 = vadd.f32 %v5956_v26, %v8178_v43  ;;  %v4221_v20 = vpop.f32.mrf.mxu1  ;;  %v3499_v40 = vadd.f32 %v3498_v48, %v3270_v3  ;;  %v3277_v54 = vpop.f32.mrf.mxu0  ;;  %v3539_v38 = vmul.f32 %v3275_v53, %v3275_v53 }
 0x21d   : > { %v3568_v39 = vadd.f32 %v3567_v27, %v3537_v14  ;;  %v4513_v0 = vadd.f32 %v4512_v55, %v4482_v31  ;;  %5416 = vst [vmem:[%s8209_s18 + $0x58] sm:$0xff] %v5369_v52   ;;  %v5364_v58 = vpack.c.bf16 %v4221_v20, %v4218_v7  ;;  %v3278_v37 = vadd.f32 %v3277_v54, %v8172_v63 }
 0x21e   : > { %v5289_v8 = vpack.c.bf16 %v3286_v32, %v3283_v42  ;;  %v4445_v21 = vadd.f32 %v4444_v36, %v4221_v20  ;;  %v6007_v60 = vpop.f32.mrf.mxu1  ;;  %v3500_v17 = vadd.f32 %v3499_v40, %v3275_v53  ;;  %v4484_v43 = vmul.f32 %v4221_v20, %v4221_v20  ;;  %v5959_v6 = vpop.f32.mrf.mxu0 }
 0x21f   : > { %v3569_v25 = vadd.f32 %v3568_v39, %v3538_v30  ;;  %v4514_v19 = vadd.f32 %v4513_v0, %v4483_v15  ;;  %5415 = vst [vmem:[%s8209_s18 + $0x50] sm:$0xff] %v5364_v58   ;;  %v4485_v29 = vmul.f32 %v6003_v10, %v6003_v10  ;;  %v5284_v3 = vpack.c.bf16 %v3278_v37, %v3275_v53 }
 0x220   : > { %5401 = vst [vmem:[%s8217_s21 + $0x58] sm:$0xff] %v5289_v8   ;;  %v3540_v47 = vmul.f32 %v3278_v37, %v3278_v37  ;;  %v4446_v28 = vadd.f32 %v6003_v10, %v4445_v21  ;;  %v4234_v2 = vpop.f32.mrf.mxu1  ;;  %v3541_v56 = vmul.f32 %v3283_v42, %v3283_v42  ;;  %v3501_v44 = vadd.f32 %v3500_v17, %v3278_v37  ;;  %v3290_v63 = vpop.f32.mrf.mxu0 }
 0x221   : > { %v3570_v61 = vadd.f32 %v3569_v25, %v3539_v38  ;;  %v4515_v57 = vadd.f32 %v4514_v19, %v4484_v43  ;;  %v3542_v12 = vmul.f32 %v3286_v32, %v3286_v32  ;;  %v4486_v33 = vmul.f32 %v6004_v22, %v6004_v22  ;;  %5400 = vst [vmem:[%s8217_s21 + $0x50] sm:$0xff] %v5284_v3  }
 0x222   : > { %v3291_v46 = vadd.f32 %v3290_v63, %v8181_v50  ;;  %v4447_v34 = vadd.f32 %v6004_v22, %v4446_v28  ;;  %v6008_v35 = vpop.f32.mrf.mxu1  ;;  %v3502_v9 = vadd.f32 %v3501_v44, %v3283_v42  ;;  %v5960_v18 = vpop.f32.mrf.mxu0  ;;  %v3299_v10 = vadd.f32 %v5959_v6, %v8187_v1 }
 0x223   : > { %v3571_v59 = vadd.f32 %v3570_v61, %v3540_v47  ;;  %v4516_v13 = vadd.f32 %v4515_v57, %v4485_v29  ;;  %v5379_v7 = vpack.c.bf16 %v6008_v35, %v6007_v60  ;;  %v4487_v4 = vmul.f32 %v4234_v2, %v4234_v2 }
 0x224   : > { %v4448_v14 = vadd.f32 %v4447_v34, %v4234_v2  ;;  %v3302_v62 = vadd.f32 %v5960_v18, %v8190_v5  ;;  %v4237_v45 = vpop.f32.mrf.mxu1  ;;  %v3503_v30 = vadd.f32 %v3502_v9, %v3286_v32  ;;  %v3293_v50 = vpop.f32.mrf.mxu0  ;;  %v3543_v24 = vmul.f32 %v3291_v46, %v3291_v46 }
 0x225   : > { %v3572_v49 = vadd.f32 %v3571_v59, %v3541_v56  ;;  %v4517_v31 = vadd.f32 %v4516_v13, %v4486_v33  ;;  %5418 = vst [vmem:[%s8209_s18 + $0x68] sm:$0xff] %v5379_v7   ;;  %v5374_v53 = vpack.c.bf16 %v4237_v45, %v4234_v2  ;;  %v3294_v48 = vadd.f32 %v3293_v50, %v8184_v41 }
 0x226   : > { %v5299_v22 = vpack.c.bf16 %v3302_v62, %v3299_v10  ;;  %v4449_v27 = vadd.f32 %v4448_v14, %v4237_v45  ;;  %v6011_v55 = vpop.f32.mrf.mxu1  ;;  %v3504_v1 = vadd.f32 %v3503_v30, %v3291_v46  ;;  %v4488_v5 = vmul.f32 %v4237_v45, %v4237_v45  ;;  %v5963_v42 = vpop.f32.mrf.mxu0 }
 0x227   : > { %v3573_v26 = vadd.f32 %v3572_v49, %v3542_v12  ;;  %v4518_v52 = vadd.f32 %v4517_v31, %v4487_v4  ;;  %5417 = vst [vmem:[%s8209_s18 + $0x60] sm:$0xff] %v5374_v53   ;;  %v4489_v36 = vmul.f32 %v6007_v60, %v6007_v60  ;;  %v5294_v15 = vpack.c.bf16 %v3294_v48, %v3291_v46 }
 0x228   : > { %5403 = vst [vmem:[%s8217_s21 + $0x68] sm:$0xff] %v5299_v22   ;;  %v3544_v32 = vmul.f32 %v3294_v48, %v3294_v48  ;;  %v4450_v20 = vadd.f32 %v6007_v60, %v4449_v27  ;;  %v4250_v39 = vpop.f32.mrf.mxu1  ;;  %v3545_v40 = vmul.f32 %v3299_v10, %v3299_v10  ;;  %v3505_v54 = vadd.f32 %v3504_v1, %v3294_v48  ;;  %v3306_v41 = vpop.f32.mrf.mxu0 }
 0x229   : > { %v3574_v0 = vadd.f32 %v3573_v26, %v3543_v24  ;;  %v4519_v58 = vadd.f32 %v4518_v52, %v4488_v5  ;;  %v3546_v38 = vmul.f32 %v3302_v62, %v3302_v62  ;;  %v4490_v8 = vmul.f32 %v6008_v35, %v6008_v35  ;;  %5402 = vst [vmem:[%s8217_s21 + $0x60] sm:$0xff] %v5294_v15  }
 0x22a   : > { %v3307_v37 = vadd.f32 %v3306_v41, %v8193_v23  ;;  %v4451_v21 = vadd.f32 %v6008_v35, %v4450_v20  ;;  %v6012_v17 = vpop.f32.mrf.mxu1  ;;  %v3506_v25 = vadd.f32 %v3505_v54, %v3299_v10  ;;  %v5964_v6 = vpop.f32.mrf.mxu0  ;;  %v3315_v60 = vadd.f32 %v5963_v42, %v8203_v51 }
 0x22b   : > { %v3575_v19 = vadd.f32 %v3574_v0, %v3544_v32  ;;  %v4520_v43 = vadd.f32 %v4519_v58, %v4489_v36  ;;  %v5389_v29 = vpack.c.bf16 %v6012_v17, %v6011_v55  ;;  %v4491_v47 = vmul.f32 %v4250_v39, %v4250_v39 }
 0x22c   : > { %v4452_v3 = vadd.f32 %v4451_v21, %v4250_v39  ;;  %v3318_v28 = vadd.f32 %v5964_v6, %v8240_v16  ;;  %v4253_v2 = vpop.f32.mrf.mxu1  ;;  %v3507_v61 = vadd.f32 %v3506_v25, %v3302_v62  ;;  %v3309_v44 = vpop.f32.mrf.mxu0  ;;  %v3547_v63 = vmul.f32 %v3307_v37, %v3307_v37 }
 0x22d   : > { %v3576_v56 = vadd.f32 %v3575_v19, %v3545_v40  ;;  %v4521_v23 = vadd.f32 %v4520_v43, %v4490_v8  ;;  %5420 = vst [vmem:[%s8209_s18 + $0x78] sm:$0xff] %v5389_v29   ;;  %v5384_v57 = vpack.c.bf16 %v4253_v2, %v4250_v39  ;;  %v3310_v33 = vadd.f32 %v3309_v44, %v8198_v11 }
 0x22e   : > { %v5309_v12 = vpack.c.bf16 %v3318_v28, %v3315_v60  ;;  %v4453_v46 = vadd.f32 %v4452_v3, %v4253_v2  ;;  %v3508_v51 = vadd.f32 %v3507_v61, %v3307_v37  ;;  %v4492_v9 = vmul.f32 %v4253_v2, %v4253_v2 }
 0x22f   : > { %v3577_v34 = vadd.f32 %v3576_v56, %v3546_v38  ;;  %v4522_v35 = vadd.f32 %v4521_v23, %v4491_v47  ;;  %5419 = vst [vmem:[%s8209_s18 + $0x70] sm:$0xff] %v5384_v57   ;;  %v5304_v16 = vpack.c.bf16 %v3310_v33, %v3307_v37  ;;  %v3548_v59 = vmul.f32 %v3310_v33, %v3310_v33 }
 0x230   : > { %5405 = vst [vmem:[%s8217_s21 + $0x78] sm:$0xff] %v5309_v12   ;;  %v4454_v13 = vadd.f32 %v6011_v55, %v4453_v46  ;;  %v4493_v18 = vmul.f32 %v6011_v55, %v6011_v55  ;;  %v3509_v10 = vadd.f32 %v3508_v51, %v3310_v33  ;;  %v3549_v4 = vmul.f32 %v3315_v60, %v3315_v60 }
 0x231   : > { %v3578_v7 = vadd.f32 %v3577_v34, %v3547_v63  ;;  %v4523_v14 = vadd.f32 %v4522_v35, %v4492_v9  ;;  %5404 = vst [vmem:[%s8217_s21 + $0x70] sm:$0xff] %v5304_v16   ;;  %v4494_v45 = vmul.f32 %v6012_v17, %v6012_v17  ;;  %v3550_v50 = vmul.f32 %v3318_v28, %v3318_v28 }
 0x232   : > { %v4455_v62 = vadd.f32 %v6012_v17, %v4454_v13  ;;  %v3510_v11 = vadd.f32 %v3509_v10, %v3315_v60 }
 0x233   : > { %v3579_v49 = vadd.f32 %v3578_v7, %v3548_v59  ;;  %v4524_v30 = vadd.f32 %v4523_v14, %v4493_v18 }
 0x234   : > { %v4456_v31 = vrot.slane %v4455_v62, 4  ;;  %v3511_v53 = vadd.f32 %v3510_v11, %v3318_v28 }
 0x235   : > { %v3580_v24 = vadd.f32 %v3579_v49, %v3549_v4  ;;  %v4525_v22 = vadd.f32 %v4524_v30, %v4494_v45 }
 0x236   : > { %v4457_v48 = vadd.f32 %v4456_v31, %v4455_v62  ;;  %v3512_v27 = vrot.slane %v3511_v53, 4 }
 0x237   : > { %v3581_v1 = vadd.f32 %v3580_v24, %v3550_v50  ;;  %v4526_v55 = vrot.slane %v4525_v22, 4 }
 0x238   : > { %v4458_v26 = vrot.slane %v4457_v48, 2  ;;  %v3513_v52 = vadd.f32 %v3512_v27, %v3511_v53 }
 0x239   : > { %v3582_v5 = vrot.slane %v3581_v1, 4  ;;  %v4527_v42 = vadd.f32 %v4526_v55, %v4525_v22 }
 0x23a   : > { %v4459_v36 = vadd.f32 %v4458_v26, %v4457_v48  ;;  %v3514_v15 = vrot.slane %v3513_v52, 2 }
 0x23b   : > { %v3583_v32 = vadd.f32 %v3582_v5, %v3581_v1  ;;  %v4528_v20 = vrot.slane %v4527_v42, 2 }
 0x23c   : > { %v4460_v39 = vrot.slane %v4459_v36, 1  ;;  %v3515_v40 = vadd.f32 %v3514_v15, %v3513_v52 }
 0x23d   : > { %v3584_v0 = vrot.slane %v3583_v32, 2  ;;  %v4529_v54 = vadd.f32 %v4528_v20, %v4527_v42 }
 0x23e   : > { %v4461_v58 = vadd.f32 %v4460_v39, %v4459_v36  ;;  %v3516_v41 = vrot.slane %v3515_v40, 1 }
 0x23f   : > { %v3585_v38 = vadd.f32 %v3584_v0, %v3583_v32  ;;  %v4530_v8 = vrot.slane %v4529_v54, 1 }
 0x240   : > { %4462 = vst [vmem:[%s347_s24] sm:$0x1] %v4461_v58  ;;  %v3517_v37 = vadd.f32 %v3516_v41, %v3515_v40 }
 0x241   : > { %v3586_v21 = vrot.slane %v3585_v38, 1  ;;  %v4531_v17 = vadd.f32 %v4530_v8, %v4529_v54 }
 0x242   : > { %3518 = vst [vmem:[%s336_s29] sm:$0x1] %v3517_v37 }
 0x243   : > { %v3587_v25 = vadd.f32 %v3586_v21, %v3585_v38  ;;  %4532 = vst [vmem:[%s350_s11] sm:$0x1] %v4531_v17 }
 0x245   : > { %3588 = vst [vmem:[%s339_s14] sm:$0x1] %v3587_v25 }
 0x246 PF: > { %s19_s27 = sadd.s32 1, %s6295_s27  }
 0x247   : > { %p16_p4 = scmp.ge.s32.totalorder %s19_s27, 4  }
 0x249   :  { %18 = sbr.rel (!%p16_p4) target bundleno = 1 (0x1), region = 124 }

// kernel: basic_block_rn12_forward.9
= control target key start
LH: loop header
LB: loop body
LE: loop exit
PB: predicated region body
PF: predicated region fallthrough
CT: control target
= control target key end

     0   :  { %s5792_s21 = smov 0   ;;  %s7333_s0 = inlined_call_operand.vmem [shape: bf16[2,256,128], index: 0, kind: input, shape index: {}]   ;;  %s7334_s1 = inlined_call_operand.vmem [shape: f32[1,128], index: 1, kind: input, shape index: {}]   ;;  %s7335_s2 = inlined_call_operand.vmem [shape: f32[1,128], index: 2, kind: input, shape index: {}]   ;;  %s7336_s3 = inlined_call_operand.vmem [shape: bf16[1152,128], index: 3, kind: input, shape index: {}]   ;;  %s7337_s4 = inlined_call_operand.vmem [shape: bf16[2,256,128], index: 4, kind: output, shape index: {0}]   ;;  %s7338_s5 = inlined_call_operand.vmem [shape: f32[2,1,128], index: 5, kind: output, shape index: {1}]   ;;  %s7339_s6 = inlined_call_operand.vmem [shape: f32[2,1,128], index: 6, kind: output, shape index: {2}]  }
   0x1 LB: > { %s4440_s22 = sadd.s32 4294967295, %s5754_s21   ;;  %p4444_p0 = scmp.ge.s32.totalorder %s5754_s21, 1  ;;  %s5754_s21 = sphi %s5792_s21, %s17_s21  }
   0x2   : > { %p217_p1 = scmp.lt.s32.totalorder %s5754_s21, 3 }
   0x4   : > { %p218_p2 = pnand %p4444_p0, %p217_p1 }
   0x6   : > { %221 = sbr.rel (%p218_p2) target bundleno = 607 (0x25f), region = 36 }
   0xb   : > { %v5518_v0 = vld [vmem:[%s7336_s3 + $0x78] sm:$0xff]   ;;  %v5756_v2 = vmov 0   ;;  %v5520_v3 = vld [vmem:[%s7336_s3 + $0x70] sm:$0xff]   ;;  %p253_p3 = scmp.lt.s32.totalorder %s4440_s22, 1  ;;  %v5522_v5 = vld [vmem:[%s7336_s3 + $0x68] sm:$0xff]   ;;  %vm989_vm6 = vcmask 1040384  }
   0xc   : > { %v5519_v1 = vld [vmem:[%s7336_s3 + $0x38] sm:$0xff]   ;;  %508 = vst [vmem:[#allocation2] sm:$0xf] %v5756_v2  ;;  %509 = vst [vmem:[#allocation2 + $0x4] sm:$0xf] %v5756_v2  ;;  %4973 = vmatprep.subr.bf16.mxu0 %v5518_v0  ;;  %5493 = vmatprep.subr.bf16.mxu1 %v5518_v0  ;;  %v5521_v4 = vld [vmem:[%s7336_s3 + $0x30] sm:$0xff]  }
   0xd   : > { %510 = vst [vmem:[#allocation2 + $0x8] sm:$0x1] %v5756_v2  ;;  %511 = vst [vmem:[#allocation2 + $0xc] sm:$0xf] %v5756_v2  ;;  %4974 = vmatpush3.bf16.msra.mxu0 %v5519_v1  ;;  %5501 = vmatpush3.bf16.msra.mxu1 %v5519_v1  ;;  %v5523_v6 = vld [vmem:[%s7336_s3 + $0x28] sm:$0xff]   ;;  %s7387_s22 = smov (!%p253_p3, %s4440_s22), 1 }
   0xe   : > { %512 = vst [vmem:[#allocation2 + $0x10] sm:$0xf] %v5756_v2  ;;  %513 = vst [vmem:[#allocation2 + $0x14] sm:$0x1] %v5756_v2  ;;  %4975 = vmatprep.subr.bf16.mxu0 %v5520_v3  ;;  %5494 = vmatprep.subr.bf16.mxu1 %v5520_v3  ;;  %v5524_v7 = vld [vmem:[%s7336_s3 + $0x60] sm:$0xff]   ;;  %s4733_s15 = sshll.u32 %s7387_s22, 7  ;;  %s265_s23 = scalar_lea.vmem %s7338_s5, %s7387_s22 }
   0xf   : > { %514 = vst [vmem:[#allocation2 + $0x18] sm:$0xf] %v5756_v2  ;;  %515 = vst [vmem:[#allocation2 + $0x1c] sm:$0xf] %v5756_v2  ;;  %v5525_v8 = vld [vmem:[%s7336_s3 + $0x20] sm:$0xff]   ;;  %v5526_v9 = vld [vmem:[%s7336_s3 + $0x58] sm:$0xff]   ;;  %s5842_s24 = scalar_lea.vmem %s7333_s0, %s4733_s15  ;;  %s7207_s19 = scalar_lea.vmem %s7337_s4, %s4733_s15 }
  0x10   : > { %516 = vst [vmem:[#allocation2 + $0x20] sm:$0x1] %v5756_v2  ;;  %517 = vst [vmem:[#allocation2 + $0x24] sm:$0xf] %v5756_v2  ;;  %v5527_v10 = vld [vmem:[%s7336_s3 + $0x18] sm:$0xff]   ;;  %v5528_v11 = vld [vmem:[%s7336_s3 + $0x50] sm:$0xff]  }
  0x11   : > { %518 = vst [vmem:[#allocation2 + $0x28] sm:$0xf] %v5756_v2  ;;  %519 = vst [vmem:[#allocation2 + $0x2c] sm:$0x1] %v5756_v2  ;;  %4976 = vmatpush3.bf16.msra.mxu0 %v5521_v4  ;;  %5502 = vmatpush3.bf16.msra.mxu1 %v5521_v4  ;;  %v4800_v16 = vld [vmem:[%s5842_s24] sm:$0xff]   ;;  %v5529_v20 = vld [vmem:[%s7336_s3 + $0x10] sm:$0xff]  }
  0x12   : > { %520 = vst [vmem:[#allocation2 + $0x30] sm:$0xf] %v5756_v2  ;;  %521 = vst [vmem:[#allocation2 + $0x34] sm:$0xf] %v5756_v2  ;;  %4977 = vmatprep.subr.bf16.mxu0 %v5522_v5  ;;  %5495 = vmatprep.subr.bf16.mxu1 %v5522_v5  ;;  %v4801_v17 = vunpack.c.l.bf16 %v4800_v16  ;;  %v4802_v18 = vunpack.c.h.bf16 %v4800_v16  ;;  %v5853_v19 = vld [vmem:[%s7334_s1] ss:$0 sm:$0xff] }
  0x13   : > { %522 = vst [vmem:[#allocation2 + $0x38] sm:$0x1] %v5756_v2  ;;  %523 = vst [vmem:[#allocation2 + $0x3c] sm:$0xf] %v5756_v2  ;;  %v1099_v12 = vld [vmem:[#allocation2] sm:$0xf] }
  0x14   : > { %524 = vst [vmem:[#allocation2 + $0x40] sm:$0xf] %v5756_v2  ;;  %525 = vst [vmem:[#allocation2 + $0x44] sm:$0x1] %v5756_v2  ;;  %v1100_v13 = vld [vmem:[#allocation2 + $0x4] sm:$0xf]  ;;  %v341_v26 = vmul.f32 %v4801_v17, %v5853_v19  ;;  %v342_v27 = vmul.f32 %v4802_v18, %v5853_v19 }
  0x15   : > { %526 = vst [vmem:[#allocation2 + $0x48] sm:$0xf] %v5756_v2  ;;  %527 = vst [vmem:[#allocation2 + $0x4c] sm:$0xf] %v5756_v2  ;;  %4978 = vmatpush3.bf16.msra.mxu0 %v5523_v6  ;;  %5503 = vmatpush3.bf16.msra.mxu1 %v5523_v6  ;;  %v5847_v14 = vcombine.low %v1099_v12, %v1100_v13  ;;  %v5863_v24 = vld [vmem:[%s7335_s2] ss:$0 sm:$0xff] }
  0x16   : > { %528 = vst [vmem:[#allocation2 + $0x50] sm:$0x1] %v5756_v2  ;;  %529 = vst [vmem:[#allocation2 + $0x54] sm:$0xf] %v5756_v2  ;;  %4979 = vmatprep.subr.bf16.mxu0 %v5524_v7  ;;  %5496 = vmatprep.subr.bf16.mxu1 %v5524_v7  ;;  %v5530_v25 = vld [vmem:[%s7336_s3 + $0x48] sm:$0xff]   ;;  %v4953_v30 = vld [vmem:[%s5842_s24 + $0x58] sm:$0xff]   ;;  %v380_v33 = vadd.f32 %v5863_v24, %v341_v26  ;;  %v381_v34 = vadd.f32 %v5863_v24, %v342_v27 }
  0x17   : > { %530 = vst [vmem:[#allocation2 + $0x58] sm:$0xf] %v5756_v2  ;;  %531 = vst [vmem:[#allocation2 + $0x5c] sm:$0x1] %v5756_v2  ;;  %v1438_v21 = vshrl.u32 %v5847_v14, 16  ;;  %v1440_v22 = vshll.u32 %v5847_v14, 16  ;;  %v4845_v35 = vunpack.c.l.bf16 %v4953_v30  ;;  %v4846_v36 = vunpack.c.h.bf16 %v4953_v30 }
  0x18   : > { %532 = vst [vmem:[#allocation2 + $0x60] sm:$0xf] %v5756_v2  ;;  %533 = vst [vmem:[#allocation2 + $0x64] sm:$0xf] %v5756_v2  ;;  %vm1436_vm0 = vsmask.f32 7424 }
  0x19   : > { %534 = vst [vmem:[#allocation2 + $0x68] sm:$0x1] %v5756_v2  ;;  %535 = vst [vmem:[#allocation2 + $0x6c] sm:$0xf] %v5756_v2  ;;  %4980 = vmatpush3.bf16.msra.mxu0 %v5525_v8  ;;  %5504 = vmatpush3.bf16.msra.mxu1 %v5525_v8  ;;  %v1442_v28 = vrot.slane %v1440_v22, 1  ;;  %v5531_v31 = vld [vmem:[%s7336_s3 + $0x8] sm:$0xff]   ;;  %v363_v42 = vmul.f32 %v4845_v35, %v5853_v19  ;;  %v364_v43 = vmul.f32 %v4846_v36, %v5853_v19 }
  0x1a   : > { %536 = vst [vmem:[#allocation2 + $0x70] sm:$0xf] %v5756_v2  ;;  %537 = vst [vmem:[#allocation2 + $0x74] sm:$0x1] %v5756_v2  ;;  %4981 = vmatprep.subr.bf16.mxu0 %v5526_v9  ;;  %5497 = vmatprep.subr.bf16.mxu1 %v5526_v9  ;;  %v5532_v32 = vld [vmem:[%s7336_s3 + $0x40] sm:$0xff]   ;;  %vm412_vm2 = vcmp.ge.f32.partialorder %v380_v33, 0.0 }
  0x1b   : > { %538 = vst [vmem:[#allocation2 + $0x78] sm:$0xf] %v5756_v2  ;;  %539 = vst [vmem:[#allocation2 + $0x7c] sm:$0xf] %v5756_v2  ;;  %v1443_v37 = vor.u32 %v1442_v28, %v1438_v21  ;;  %vm658_vm1 = vsmask.f32 256  ;;  %v402_v48 = vadd.f32 %v5863_v24, %v363_v42  ;;  %v403_v50 = vadd.f32 %v5863_v24, %v364_v43 }
  0x1c   : > { %540 = vst [vmem:[#allocation2 + $0x80] sm:$0x1] %v5756_v2  ;;  %541 = vst [vmem:[#allocation2 + $0x84] sm:$0xf] %v5756_v2  ;;  %vm413_vm3 = vcmp.ge.f32.partialorder %v381_v34, 0.0  ;;  %v5533_v40 = vld [vmem:[%s7336_s3] sm:$0xff]  }
  0x1d   : > { %542 = vst [vmem:[#allocation2 + $0x88] sm:$0xf] %v5756_v2  ;;  %543 = vst [vmem:[#allocation2 + $0x8c] sm:$0x1] %v5756_v2  ;;  %4982 = vmatpush3.bf16.msra.mxu0 %v5527_v10  ;;  %5505 = vmatpush3.bf16.msra.mxu1 %v5527_v10  ;;  %v444_v38 = vmul.f32 0.1, %v380_v33 }
  0x1e   : > { %544 = vst [vmem:[#allocation2 + $0x90] sm:$0xf] %v5756_v2  ;;  %545 = vst [vmem:[#allocation2 + $0x94] sm:$0xf] %v5756_v2  ;;  %4983 = vmatprep.subr.bf16.mxu0 %v5528_v11  ;;  %5498 = vmatprep.subr.bf16.mxu1 %v5528_v11  ;;  %v445_v39 = vmul.f32 0.1, %v381_v34 }
  0x1f   : > { %546 = vst [vmem:[#allocation2 + $0x98] sm:$0x1] %v5756_v2  ;;  %547 = vst [vmem:[#allocation2 + $0x9c] sm:$0xf] %v5756_v2  ;;  %vm659_vm4 = vsmask.f32 4368  ;;  %v476_v44 = vsel %vm412_vm2, %v380_v33, %v444_v38 }
  0x20   : > { %548 = vst [vmem:[#allocation2 + $0xa0] sm:$0xf] %v5756_v2  ;;  %549 = vst [vmem:[#allocation2 + $0xa4] sm:$0x1] %v5756_v2  ;;  %v477_v45 = vsel %vm413_vm3, %v381_v34, %v445_v39  ;;  %vm983_vm5 = vsmask.f32 7938  ;;  %v4735_v46 = vpack.c.bf16 %v476_v44, %v476_v44 }
  0x21   : > { %550 = vst [vmem:[#allocation2 + $0xa8] sm:$0xf] %v5756_v2  ;;  %551 = vst [vmem:[#allocation2 + $0xac] sm:$0xf] %v5756_v2  ;;  %4984 = vmatpush3.bf16.msra.mxu0 %v5529_v20  ;;  %5506 = vmatpush3.bf16.msra.mxu1 %v5529_v20  ;;  %v4736_v47 = vpack.c.bf16 %v477_v45, %v477_v45  ;;  %v5540_v49 = vld [vmem:[%s7336_s3 + $0xf8] sm:$0xff]   ;;  %vm982_vm7 = vcmask 1043456  }
  0x22   : > { %552 = vst [vmem:[#allocation2 + $0xb0] sm:$0x1] %v5756_v2  ;;  %553 = vst [vmem:[#allocation2 + $0xb4] sm:$0xf] %v5756_v2  ;;  %4985 = vmatprep.subr.bf16.mxu0 %v5530_v25  ;;  %5499 = vmatprep.subr.bf16.mxu1 %v5530_v25  ;;  %v5541_v51 = vld [vmem:[%s7336_s3 + $0x178] sm:$0xff]   ;;  %v662_v52 = vshrl.u32 %v4735_v46, 16 }
  0x23   : > { %554 = vst [vmem:[#allocation2 + $0xb8] sm:$0xf] %v5756_v2  ;;  %555 = vst [vmem:[#allocation2 + $0xbc] sm:$0x1] %v5756_v2  ;;  %v665_v53 = vshll.u32 %v4735_v46, 16  ;;  %v670_v54 = vshrl.u32 %v4736_v47, 16 }
  0x24   : > { %556 = vst [vmem:[#allocation2 + $0xc0] sm:$0xf] %v5756_v2  ;;  %557 = vst [vmem:[#allocation2 + $0xc4] sm:$0xf] %v5756_v2  ;;  %v673_v55 = vshll.u32 %v4736_v47, 16  ;;  %vm434_vm9 = vcmp.ge.f32.partialorder %v402_v48, 0.0 }
  0x25   : > { %558 = vst [vmem:[#allocation2 + $0xc8] sm:$0x1] %v5756_v2  ;;  %559 = vst [vmem:[#allocation2 + $0xcc] sm:$0xf] %v5756_v2  ;;  %4986 = vmatpush3.bf16.msra.mxu0 %v5531_v31  ;;  %5507 = vmatpush3.bf16.msra.mxu1 %v5531_v31  ;;  %v985_v56 = vld [vmem:[#allocation2 + $0xc] sm:$0xf] }
  0x26   : > { %560 = vst [vmem:[#allocation2 + $0xd0] sm:$0xf] %v5756_v2  ;;  %561 = vst [vmem:[#allocation2 + $0xd4] sm:$0x1] %v5756_v2  ;;  %4987 = vmatprep.subr.bf16.mxu0 %v5532_v32  ;;  %5500 = vmatprep.subr.bf16.mxu1 %v5532_v32  ;;  %vm435_vm10 = vcmp.ge.f32.partialorder %v403_v50, 0.0  ;;  %v664_v61 = vrot.slane %v662_v52, 7 }
  0x27   : > { %v5535_v15 = vld [vmem:[#allocation2 + $0x8] ss:$0 sps:$4 sm:$0x11]   ;;  %vm5894_vm8 = vmand %vm989_vm6, %vm658_vm1  ;;  %v466_v58 = vmul.f32 0.1, %v402_v48  ;;  %v672_v62 = vrot.slane %v670_v54, 7 }
  0x28   : > { %v1445_v23 = vshll.u32 %v5535_v15, 16  ;;  %v467_v59 = vmul.f32 0.1, %v403_v50  ;;  %vm5900_vm11 = vmor %vm658_vm1, %vm659_vm4  ;;  %v5543_v63 = vld [vmem:[%s7336_s3 + $0x138] sm:$0xff]   ;;  %v4943_v0 = vld [vmem:[%s5842_s24 + $0x8] sm:$0xff]   ;;  %v667_v8 = vor.u32 %v665_v53, %v664_v61  ;;  %v668_v9 = vrot.slane %v664_v61, 4 }
  0x29   : > { %4988 = vmatpush3.bf16.msra.mxu0 %v5533_v40  ;;  %5508 = vmatpush3.bf16.msra.mxu1 %v5533_v40  ;;  %vm5910_vm12 = vmand %vm982_vm7, %vm983_vm5  ;;  %v991_v2 = vld [vmem:[#allocation2 + $0x14] sm:$0x1]  ;;  %v498_v3 = vsel %vm434_vm9, %v402_v48, %v466_v58  ;;  %v4805_v5 = vunpack.c.l.bf16 %v4943_v0  ;;  %v4806_v6 = vunpack.c.h.bf16 %v4943_v0  ;;  %v4954_v7 = vld [vmem:[%s5842_s24 + $0x60] sm:$0xff]   ;;  %v675_v10 = vor.u32 %v673_v55, %v672_v62 }
  0x2a   : > { %v1447_v29 = vrot.slane %v1445_v23, 1  ;;  %v499_v4 = vsel %vm435_vm10, %v403_v50, %v467_v59  ;;  %5085 = vmatprep.subr.bf16.mxu1 %v5540_v49  ;;  %5197 = vmatprep.subr.bf16.mxu0 %v5541_v51  ;;  %v677_v11 = vrot.slane %v672_v62, 4  ;;  %v4757_v12 = vpack.c.bf16 %v498_v3, %v498_v3  ;;  %v1064_v26 = vld [vmem:[#allocation2 + $0x90] sm:$0xf]  ;;  %v1068_v27 = vld [vmem:[#allocation2 + $0x98] sm:$0x1] }
  0x2b   : > { %v4758_v13 = vpack.c.bf16 %v499_v4, %v499_v4  ;;  %v343_v15 = vmul.f32 %v4805_v5, %v5853_v19  ;;  %v344_v16 = vmul.f32 %v4806_v6, %v5853_v19  ;;  %v676_v17 = vsel %vm5900_vm11, %v668_v9, %v675_v10  ;;  %v5553_v34 = vld [vmem:[%s7336_s3 + $0x170] sm:$0xff]   ;;  %v998_v9 = vld [vmem:[#allocation2 + $0x20] sm:$0x1] }
  0x2c   : > { %v1448_v41 = vsel %vm1436_vm0, %v1443_v37, %v1447_v29  ;;  %v986_v18 = vsel %vm5910_vm12, %v667_v8, %v985_v56  ;;  %v992_v20 = vsel %vm5894_vm8, %v677_v11, %v991_v2  ;;  %v4849_v21 = vunpack.c.l.bf16 %v4954_v7  ;;  %988 = vst [vmem:[#allocation2 + $0x10] sm:$0xf] %v676_v17  ;;  %v5555_v45 = vld [vmem:[%s7336_s3 + $0x130] sm:$0xff]  }
  0x2d   : > { %3294 = vmatprep.mubr.bf16.mxu0 %v1448_v41  ;;  %987 = vst [vmem:[#allocation2 + $0xc] sm:$0xf] %v986_v18  ;;  %993 = vst [vmem:[#allocation2 + $0x14] sm:$0x1] %v992_v20  ;;  %v852_v22 = vshll.u32 %v4757_v12, 16  ;;  %v857_v23 = vshrl.u32 %v4758_v13, 16  ;;  %v382_v28 = vadd.f32 %v5863_v24, %v343_v15  ;;  %v383_v29 = vadd.f32 %v5863_v24, %v344_v16 }
  0x2e   : > { %3295 = vmatmul.mubr.bf16.vlgmr.msra.gmra.mxu0 %v5847_v14  ;;  %v849_v14 = vshrl.u32 %v4757_v12, 16  ;;  %v860_v25 = vshll.u32 %v4758_v13, 16  ;;  %v4850_v30 = vunpack.c.h.bf16 %v4954_v7  ;;  %v365_v31 = vmul.f32 %v4849_v21, %v5853_v19  ;;  %v4944_v46 = vld [vmem:[%s5842_s24 + $0x10] sm:$0xff]   ;;  %v994_v7 = vld [vmem:[#allocation2 + $0x18] sm:$0xf] }
  0x2f   : > { %5198 = vmatpush3.bf16.msra.mxu0 %v5543_v63  ;;  %v859_v33 = vrot.slane %v857_v23, 7  ;;  %vm414_vm13 = vcmp.ge.f32.partialorder %v382_v28, 0.0  ;;  %vm415_vm14 = vcmp.ge.f32.partialorder %v383_v29, 0.0  ;;  %v446_v35 = vmul.f32 0.1, %v382_v28 }
  0x30   : > { %v851_v32 = vrot.slane %v849_v14, 7  ;;  %v447_v36 = vmul.f32 0.1, %v383_v29  ;;  %5199 = vmatprep.subr.bf16.mxu0 %v5553_v34  ;;  %v366_v43 = vmul.f32 %v4850_v30, %v5853_v19  ;;  %v404_v44 = vadd.f32 %v5863_v24, %v365_v31 }
  0x31   : > { %v862_v39 = vor.u32 %v860_v25, %v859_v33  ;;  %v864_v40 = vrot.slane %v859_v33, 4  ;;  %v478_v41 = vsel %vm414_vm13, %v382_v28, %v446_v35  ;;  %v4809_v55 = vunpack.c.l.bf16 %v4944_v46 }
  0x32   : > { %v854_v37 = vor.u32 %v852_v22, %v851_v32  ;;  %v855_v38 = vrot.slane %v851_v32, 4  ;;  %v479_v42 = vsel %vm415_vm14, %v383_v29, %v447_v36  ;;  %v4737_v50 = vpack.c.bf16 %v478_v41, %v478_v41  ;;  %v5952_v22 = vld [vmem:[%s5842_s24 + $0x68] sm:$0xff]  }
  0x33   : > { %v1069_v49 = vsel %vm5894_vm8, %v864_v40, %v1068_v27  ;;  %v5942_v52 = vld [vmem:[#allocation2 + $0x10] sm:$0xf]  ;;  %v4738_v53 = vpack.c.bf16 %v479_v42, %v479_v42  ;;  %v405_v54 = vadd.f32 %v5863_v24, %v366_v43  ;;  %5200 = vmatpush3.bf16.msra.mxu0 %v5555_v45  ;;  %v4810_v56 = vunpack.c.h.bf16 %v4944_v46 }
  0x34   : > { %v863_v47 = vsel %vm5900_vm11, %v855_v38, %v862_v39  ;;  %v1065_v48 = vsel %vm5910_vm12, %v854_v37, %v1064_v26  ;;  %v1101_v51 = vld [vmem:[#allocation2 + $0xc] sm:$0xf]  ;;  %1070 = vst [vmem:[#allocation2 + $0x98] sm:$0x1] %v1069_v49  ;;  %v679_v61 = vshrl.u32 %v4737_v50, 16  ;;  %v682_v62 = vshll.u32 %v4737_v50, 16 }
  0x35   : > { %1066 = vst [vmem:[#allocation2 + $0x90] sm:$0xf] %v1065_v48  ;;  %1067 = vst [vmem:[#allocation2 + $0x94] sm:$0xf] %v863_v47  ;;  %v4484_v58 = vcombine.low %v1101_v51, %v5942_v52  ;;  %vm436_vm15 = vcmp.ge.f32.partialorder %v404_v44, 0.0  ;;  %v687_v63 = vshrl.u32 %v4738_v53, 16  ;;  %v345_v12 = vmul.f32 %v4809_v55, %v5853_v19 }
  0x36   : > { %v5946_v59 = vld [vmem:[#allocation2 + $0x14] ss:$0 sps:$4 sm:$0x11]   ;;  %v690_v0 = vshll.u32 %v4738_v53, 16  ;;  %vm437_vm1 = vcmp.ge.f32.partialorder %v405_v54, 0.0  ;;  %v681_v6 = vrot.slane %v679_v61, 7  ;;  %v346_v29 = vmul.f32 %v4810_v56, %v5853_v19 }
  0x37   : > { %v468_v2 = vmul.f32 0.1, %v404_v44  ;;  %v1450_v3 = vshrl.u32 %v4484_v58, 16  ;;  %v1452_v4 = vshll.u32 %v4484_v58, 16  ;;  %v1457_v5 = vshll.u32 %v5946_v59, 16  ;;  %v4945_v56 = vld [vmem:[%s5842_s24 + $0x18] sm:$0xff]  }
  0x38   : > { %v689_v8 = vrot.slane %v687_v63, 7  ;;  %v469_v10 = vmul.f32 0.1, %v405_v54  ;;  %v684_v16 = vor.u32 %v682_v62, %v681_v6  ;;  %v685_v17 = vrot.slane %v681_v6, 4  ;;  %v1071_v39 = vld [vmem:[#allocation2 + $0x9c] sm:$0xf] }
  0x39   : > { %v500_v11 = vsel %vm436_vm15, %v404_v44, %v468_v2  ;;  %v1454_v13 = vrot.slane %v1452_v4, 1  ;;  %v1459_v15 = vrot.slane %v1457_v5, 1  ;;  %v384_v45 = vadd.f32 %v5863_v24, %v345_v12  ;;  %v1075_v53 = vld [vmem:[#allocation2 + $0xa4] sm:$0x1]  ;;  %v5542_v62 = vld [vmem:[%s7336_s3 + $0xb8] sm:$0xff]   ;;  %v5544_v63 = vld [vmem:[%s7336_s3 + $0xf0] sm:$0xff]  }
  0x3a   : > { %v692_v18 = vor.u32 %v690_v0, %v689_v8  ;;  %v694_v20 = vrot.slane %v689_v8, 4  ;;  %v501_v21 = vsel %vm437_vm1, %v405_v54, %v469_v10  ;;  %v4759_v14 = vpack.c.bf16 %v500_v11, %v500_v11 }
  0x3b   : > { %v1455_v23 = vor.u32 %v1454_v13, %v1450_v3  ;;  %v995_v27 = vsel %vm5910_vm12, %v684_v16, %v994_v7  ;;  %v4760_v28 = vpack.c.bf16 %v501_v21, %v501_v21  ;;  %v5539_v31 = vld [vmem:[#allocation2 + $0x98] ss:$0 sps:$4 sm:$0x11]   ;;  %v385_v46 = vadd.f32 %v5863_v24, %v346_v29  ;;  %v5545_v16 = vld [vmem:[%s7336_s3 + $0xb0] sm:$0xff]  }
  0x3c   : > { %v1123_v25 = vld [vmem:[#allocation2 + $0x90] sm:$0xf]  ;;  %v1124_v26 = vld [vmem:[#allocation2 + $0x94] sm:$0xf]  ;;  %v693_v32 = vsel %vm5900_vm11, %v685_v17, %v692_v18  ;;  %996 = vst [vmem:[#allocation2 + $0x18] sm:$0xf] %v995_v27  ;;  %v999_v33 = vsel %vm5894_vm8, %v694_v20, %v998_v9  ;;  %v4853_v47 = vunpack.c.l.bf16 %v5952_v22  ;;  %v4854_v7 = vunpack.c.h.bf16 %v5952_v22 }
  0x3d   : > { %v4495_v30 = vcombine.low %v1123_v25, %v1124_v26  ;;  %v866_v34 = vshrl.u32 %v4759_v14, 16  ;;  %v1460_v35 = vsel %vm1436_vm0, %v1455_v23, %v1459_v15  ;;  %997 = vst [vmem:[#allocation2 + $0x1c] sm:$0xf] %v693_v32  ;;  %1000 = vst [vmem:[#allocation2 + $0x20] sm:$0x1] %v999_v33  ;;  %v869_v36 = vshll.u32 %v4759_v14, 16 }
  0x3e   : > { %v874_v37 = vshrl.u32 %v4760_v28, 16  ;;  %v877_v38 = vshll.u32 %v4760_v28, 16  ;;  %3302 = vmatprep.mubr.bf16.mxu0 %v1460_v35  ;;  %v1589_v42 = vshll.u32 %v5539_v31, 16  ;;  %vm416_vm2 = vcmp.ge.f32.partialorder %v384_v45, 0.0  ;;  %v5984_v9 = vld [vmem:[%s5842_s24 + $0x70] sm:$0xff]   ;;  %v5550_v22 = vld [vmem:[%s7336_s3 + $0xe8] sm:$0xff]  }
  0x3f   : > { %v1582_v40 = vshrl.u32 %v4495_v30, 16  ;;  %v1584_v41 = vshll.u32 %v4495_v30, 16  ;;  %v868_v43 = vrot.slane %v866_v34, 7  ;;  %3303 = vmatmul.mubr.bf16.gmra.mxu0 %v4484_v58  ;;  %vm417_vm3 = vcmp.ge.f32.partialorder %v385_v46, 0.0  ;;  %v5569_v58 = vld [vmem:[%s7336_s3 + $0x168] sm:$0xff]  }
  0x40   : > { %v876_v44 = vrot.slane %v874_v37, 7  ;;  %v1591_v49 = vrot.slane %v1589_v42, 1  ;;  %v448_v2 = vmul.f32 0.1, %v384_v45  ;;  %v449_v3 = vmul.f32 0.1, %v385_v46  ;;  %5201 = vmatprep.subr.bf16.mxu0 %v5569_v58 }
  0x41   : > { %v1586_v48 = vrot.slane %v1584_v41, 1  ;;  %v871_v50 = vor.u32 %v869_v36, %v868_v43  ;;  %v872_v51 = vrot.slane %v868_v43, 4  ;;  %v367_v8 = vmul.f32 %v4853_v47, %v5853_v19  ;;  %v1001_v35 = vld [vmem:[#allocation2 + $0x24] sm:$0xf]  ;;  %v5571_v37 = vld [vmem:[%s7336_s3 + $0x128] sm:$0xff]  }
  0x42   : > { %v879_v54 = vor.u32 %v877_v38, %v876_v44  ;;  %v881_v55 = vrot.slane %v876_v44, 4  ;;  %v480_v12 = vsel %vm416_vm2, %v384_v45, %v448_v2  ;;  %v481_v13 = vsel %vm417_vm3, %v385_v46, %v449_v3  ;;  %v1005_v44 = vld [vmem:[#allocation2 + $0x2c] sm:$0x1]  ;;  %5202 = vmatpush3.bf16.msra.mxu0 %v5571_v37 }
  0x43   : > { %v1587_v61 = vor.u32 %v1586_v48, %v1582_v40  ;;  %v1072_v0 = vsel %vm5910_vm12, %v871_v50, %v1071_v39  ;;  %v1103_v4 = vld [vmem:[#allocation2 + $0x18] sm:$0xf]  ;;  %v4813_v15 = vunpack.c.l.bf16 %v4945_v56  ;;  %v4739_v20 = vpack.c.bf16 %v480_v12, %v480_v12  ;;  %v5551_v40 = vld [vmem:[%s7336_s3 + $0xa8] sm:$0xff]  }
  0x44   : > { %v880_v5 = vsel %vm5900_vm11, %v872_v51, %v879_v54  ;;  %1073 = vst [vmem:[#allocation2 + $0x9c] sm:$0xf] %v1072_v0  ;;  %v1076_v6 = vsel %vm5894_vm8, %v881_v55, %v1075_v53  ;;  %v5987_v11 = vld [vmem:[#allocation2 + $0x1c] sm:$0xf]  ;;  %v4740_v21 = vpack.c.bf16 %v481_v13, %v481_v13  ;;  %v368_v14 = vmul.f32 %v4854_v7, %v5853_v19  ;;  %v5554_v7 = vld [vmem:[%s7336_s3 + $0xa0] sm:$0xff]  }
  0x45   : > { %v1592_v10 = vsel %vm1436_vm0, %v1587_v61, %v1591_v49  ;;  %1074 = vst [vmem:[#allocation2 + $0xa0] sm:$0xf] %v880_v5  ;;  %1077 = vst [vmem:[#allocation2 + $0xa4] sm:$0x1] %v1076_v6  ;;  %v4485_v17 = vcombine.low %v1103_v4, %v5987_v11  ;;  %v406_v23 = vadd.f32 %v5863_v24, %v367_v8  ;;  %v4814_v25 = vunpack.c.h.bf16 %v4945_v56  ;;  %v5552_v49 = vld [vmem:[%s7336_s3 + $0xe0] sm:$0xff]  }
  0x46   : > { %3390 = vmatprep.mubr.bf16.mxu1 %v1592_v10  ;;  %v5995_v18 = vld [vmem:[#allocation2 + $0x20] ss:$0 sps:$4 sm:$0x11]   ;;  %v347_v26 = vmul.f32 %v4813_v15, %v5853_v19  ;;  %v4857_v27 = vunpack.c.l.bf16 %v5984_v9  ;;  %v696_v32 = vshrl.u32 %v4739_v20, 16  ;;  %v699_v33 = vshll.u32 %v4739_v20, 16 }
  0x47   : > { %3391 = vmatmul.mubr.bf16.vlgmr.msra.gmra.mxu1 %v4495_v30  ;;  %v1462_v28 = vshrl.u32 %v4485_v17, 16  ;;  %v1464_v29 = vshll.u32 %v4485_v17, 16  ;;  %v1469_v31 = vshll.u32 %v5995_v18, 16  ;;  %v704_v30 = vshrl.u32 %v4740_v21, 16  ;;  %v5581_v20 = vld [vmem:[%s7336_s3 + $0x160] sm:$0xff]  }
  0x48   : > { %5086 = vmatpush3.bf16.msra.mxu1 %v5542_v62  ;;  %v707_v34 = vshll.u32 %v4740_v21, 16  ;;  %v407_v36 = vadd.f32 %v5863_v24, %v368_v14  ;;  %v698_v41 = vrot.slane %v696_v32, 7  ;;  %vm438_vm4 = vcmp.ge.f32.partialorder %v406_v23, 0.0  ;;  %5203 = vmatprep.subr.bf16.mxu0 %v5581_v20 }
  0x49   : > { %5087 = vmatprep.subr.bf16.mxu1 %v5544_v63  ;;  %v1466_v38 = vrot.slane %v1464_v29, 1  ;;  %v1471_v39 = vrot.slane %v1469_v31, 1  ;;  %v706_v43 = vrot.slane %v704_v30, 7  ;;  %v470_v45 = vmul.f32 0.1, %v406_v23  ;;  %v5561_v31 = vld [vmem:[%s7336_s3 + $0x98] sm:$0xff]  }
  0x4a   : > { %vm439_vm5 = vcmp.ge.f32.partialorder %v407_v36, 0.0  ;;  %v348_v46 = vmul.f32 %v4814_v25, %v5853_v19  ;;  %v701_v50 = vor.u32 %v699_v33, %v698_v41  ;;  %v702_v51 = vrot.slane %v698_v41, 4  ;;  %v1078_v29 = vld [vmem:[#allocation2 + $0xa8] sm:$0xf] }
  0x4b   : > { %v1125_v42 = vld [vmem:[#allocation2 + $0x9c] sm:$0xf]  ;;  %v1467_v47 = vor.u32 %v1466_v38, %v1462_v28  ;;  %v386_v53 = vadd.f32 %v5863_v24, %v347_v26  ;;  %v709_v56 = vor.u32 %v707_v34, %v706_v43  ;;  %v711_v58 = vrot.slane %v706_v43, 4 }
  0x4c   : > { %5088 = vmatpush3.bf16.msra.mxu1 %v5545_v16  ;;  %v1126_v48 = vld [vmem:[#allocation2 + $0xa0] sm:$0xf]  ;;  %v5549_v55 = vld [vmem:[#allocation2 + $0xa4] ss:$0 sps:$4 sm:$0x11]   ;;  %v1002_v63 = vsel %vm5910_vm12, %v701_v50, %v1001_v35  ;;  %v502_v0 = vsel %vm438_vm4, %v406_v23, %v470_v45  ;;  %v387_v2 = vadd.f32 %v5863_v24, %v348_v46  ;;  %v4858_v32 = vunpack.c.h.bf16 %v5984_v9 }
  0x4d   : > { %v6017_v54 = vcombine.low %v1125_v42, %v1126_v48  ;;  %5089 = vmatprep.subr.bf16.mxu1 %v5550_v22  ;;  %v471_v61 = vmul.f32 0.1, %v407_v36  ;;  %v1472_v62 = vsel %vm1436_vm0, %v1467_v47, %v1471_v39  ;;  %v1601_v5 = vshll.u32 %v5549_v55, 16  ;;  %1003 = vst [vmem:[#allocation2 + $0x24] sm:$0xf] %v1002_v63  ;;  %v5592_v55 = vld [vmem:[%s7336_s3 + $0x158] sm:$0xff]  }
  0x4e   : > { %3310 = vmatprep.mubr.bf16.mxu0 %v1472_v62  ;;  %v710_v6 = vsel %vm5900_vm11, %v702_v51, %v709_v56  ;;  %v1006_v8 = vsel %vm5894_vm8, %v711_v58, %v1005_v44  ;;  %v4761_v12 = vpack.c.bf16 %v502_v0, %v502_v0  ;;  %vm418_vm6 = vcmp.ge.f32.partialorder %v386_v53, 0.0  ;;  %v1082_v39 = vld [vmem:[#allocation2 + $0xb0] sm:$0x1]  ;;  %v4946_v0 = vld [vmem:[%s5842_s24 + $0x20] sm:$0xff]  }
  0x4f   : > { %v1594_v3 = vshrl.u32 %v6017_v54, 16  ;;  %v1596_v4 = vshll.u32 %v6017_v54, 16  ;;  %3311 = vmatmul.mubr.bf16.gmra.mxu0 %v4485_v17  ;;  %1004 = vst [vmem:[#allocation2 + $0x28] sm:$0xf] %v710_v6  ;;  %v503_v10 = vsel %vm439_vm5, %v407_v36, %v471_v61  ;;  %v1603_v15 = vrot.slane %v1601_v5, 1  ;;  %v5560_v17 = vld [vmem:[%s7336_s3 + $0xd8] sm:$0xff]  }
  0x50   : > { %5090 = vmatpush3.bf16.msra.mxu1 %v5551_v40  ;;  %1007 = vst [vmem:[#allocation2 + $0x2c] sm:$0x1] %v1006_v8  ;;  %v4762_v16 = vpack.c.bf16 %v503_v10, %v503_v10  ;;  %vm419_vm7 = vcmp.ge.f32.partialorder %v387_v2, 0.0  ;;  %v883_v21 = vshrl.u32 %v4761_v12, 16  ;;  %v886_v14 = vshll.u32 %v4761_v12, 16  ;;  %v5582_v36 = vld [vmem:[%s7336_s3 + $0x120] sm:$0xff]  }
  0x51   : > { %v1598_v13 = vrot.slane %v1596_v4, 1  ;;  %5091 = vmatprep.subr.bf16.mxu1 %v5552_v49  ;;  %v450_v22 = vmul.f32 0.1, %v386_v53  ;;  %v451_v23 = vmul.f32 0.1, %v387_v2  ;;  %v369_v35 = vmul.f32 %v4857_v27, %v5853_v19  ;;  %v5562_v40 = vld [vmem:[%s7336_s3 + $0xd0] sm:$0xff]   ;;  %5204 = vmatpush3.bf16.msra.mxu0 %v5582_v36 }
  0x52   : > { %v891_v26 = vshrl.u32 %v4762_v16, 16  ;;  %v894_v28 = vshll.u32 %v4762_v16, 16  ;;  %v885_v33 = vrot.slane %v883_v21, 7  ;;  %v5563_v27 = vld [vmem:[%s7336_s3 + $0x90] sm:$0xff]   ;;  %v370_v45 = vmul.f32 %v4858_v32, %v5853_v19  ;;  %v1012_v6 = vld [vmem:[#allocation2 + $0x38] sm:$0x1]  ;;  %5205 = vmatprep.subr.bf16.mxu0 %v5592_v55 }
  0x53   : > { %v1599_v25 = vor.u32 %v1598_v13, %v1594_v3  ;;  %v482_v30 = vsel %vm418_vm6, %v386_v53, %v450_v22  ;;  %v483_v34 = vsel %vm419_vm7, %v387_v2, %v451_v23  ;;  %v408_v46 = vadd.f32 %v5863_v24, %v369_v35  ;;  %v5568_v53 = vld [vmem:[%s7336_s3 + $0xc8] sm:$0xff]   ;;  %v1008_v62 = vld [vmem:[#allocation2 + $0x30] sm:$0xf]  ;;  %v5595_v22 = vld [vmem:[%s7336_s3 + $0x118] sm:$0xff]  }
  0x54   : > { %5092 = vmatpush3.bf16.msra.mxu1 %v5554_v7  ;;  %v893_v38 = vrot.slane %v891_v26, 7  ;;  %v4741_v41 = vpack.c.bf16 %v482_v30, %v482_v30  ;;  %v4742_v42 = vpack.c.bf16 %v483_v34, %v483_v34  ;;  %v1105_v43 = vld [vmem:[#allocation2 + $0x24] sm:$0xf]  ;;  %v888_v44 = vor.u32 %v886_v14, %v885_v33  ;;  %v5570_v14 = vld [vmem:[%s7336_s3 + $0x88] sm:$0xff]  }
  0x55   : > { %v1604_v37 = vsel %vm1436_vm0, %v1599_v25, %v1603_v15  ;;  %5093 = vmatprep.subr.bf16.mxu1 %v5560_v17  ;;  %v889_v9 = vrot.slane %v885_v33, 4  ;;  %v409_v63 = vadd.f32 %v5863_v24, %v370_v45  ;;  %vm440_vm9 = vcmp.ge.f32.partialorder %v408_v46, 0.0  ;;  %5206 = vmatpush3.bf16.msra.mxu0 %v5595_v22 }
  0x56   : > { %3398 = vmatprep.mubr.bf16.mxu1 %v1604_v37  ;;  %v6062_v47 = vld [vmem:[#allocation2 + $0x28] sm:$0xf]  ;;  %v896_v48 = vor.u32 %v894_v28, %v893_v38  ;;  %v898_v49 = vrot.slane %v893_v38, 4  ;;  %v713_v50 = vshrl.u32 %v4741_v41, 16  ;;  %v716_v51 = vshll.u32 %v4741_v41, 16  ;;  %v5572_v28 = vld [vmem:[%s7336_s3 + $0xc0] sm:$0xff]  }
  0x57   : > { %3399 = vmatmul.mubr.bf16.gmra.mxu1 %v6017_v54  ;;  %v6071_v56 = vcombine.low %v1105_v43, %v6062_v47  ;;  %v6073_v58 = vld [vmem:[#allocation2 + $0x2c] ss:$0 sps:$4 sm:$0x11]   ;;  %v1079_v54 = vsel %vm5910_vm12, %v888_v44, %v1078_v29  ;;  %v721_v61 = vshrl.u32 %v4742_v42, 16  ;;  %v724_v5 = vshll.u32 %v4742_v42, 16  ;;  %v5573_v41 = vld [vmem:[%s7336_s3 + $0x80] sm:$0xff]  }
  0x58   : > { %5094 = vmatpush3.bf16.msra.mxu1 %v5561_v31  ;;  %v897_v2 = vsel %vm5900_vm11, %v889_v9, %v896_v48  ;;  %1080 = vst [vmem:[#allocation2 + $0xa8] sm:$0xf] %v1079_v54  ;;  %v1083_v3 = vsel %vm5894_vm8, %v898_v49, %v1082_v39  ;;  %v715_v4 = vrot.slane %v713_v50, 7  ;;  %v1481_v10 = vshll.u32 %v6073_v58, 16  ;;  %v5578_v9 = vld [vmem:[%s7336_s3 + $0x1f8] sm:$0xff]  }
  0x59   : > { %5095 = vmatprep.subr.bf16.mxu1 %v5562_v40  ;;  %v1474_v7 = vshrl.u32 %v6071_v56, 16  ;;  %v1476_v8 = vshll.u32 %v6071_v56, 16  ;;  %1081 = vst [vmem:[#allocation2 + $0xac] sm:$0xf] %v897_v2  ;;  %1084 = vst [vmem:[#allocation2 + $0xb0] sm:$0x1] %v1083_v3  ;;  %v4817_v29 = vunpack.c.l.bf16 %v4946_v0  ;;  %v4818_v30 = vunpack.c.h.bf16 %v4946_v0 }
  0x5a   : > { %v723_v12 = vrot.slane %v721_v61, 7  ;;  %v718_v13 = vor.u32 %v716_v51, %v715_v4  ;;  %v719_v15 = vrot.slane %v715_v4, 4  ;;  %vm441_vm10 = vcmp.ge.f32.partialorder %v409_v63, 0.0  ;;  %v1085_v51 = vld [vmem:[#allocation2 + $0xb4] sm:$0xf] }
  0x5b   : > { %v1478_v16 = vrot.slane %v1476_v8, 1  ;;  %v1483_v17 = vrot.slane %v1481_v10, 1  ;;  %v472_v25 = vmul.f32 0.1, %v408_v46  ;;  %v473_v26 = vmul.f32 0.1, %v409_v63 }
  0x5c   : > { %5096 = vmatpush3.bf16.msra.mxu1 %v5563_v27  ;;  %v726_v20 = vor.u32 %v724_v5, %v723_v12  ;;  %v728_v21 = vrot.slane %v723_v12, 4  ;;  %v1009_v23 = vsel %vm5910_vm12, %v718_v13, %v1008_v62  ;;  %v349_v36 = vmul.f32 %v4817_v29, %v5853_v19  ;;  %v1089_v2 = vld [vmem:[#allocation2 + $0xbc] sm:$0x1] }
  0x5d   : > { %5097 = vmatprep.subr.bf16.mxu1 %v5568_v53  ;;  %v1479_v31 = vor.u32 %v1478_v16, %v1474_v7  ;;  %1010 = vst [vmem:[#allocation2 + $0x30] sm:$0xf] %v1009_v23  ;;  %v504_v34 = vsel %vm440_vm9, %v408_v46, %v472_v25  ;;  %v505_v35 = vsel %vm441_vm10, %v409_v63, %v473_v26  ;;  %v5602_v26 = vld [vmem:[%s7336_s3 + $0x150] sm:$0xff]   ;;  %vm1693_vm15 = vcmask 1046528  }
  0x5e   : > { %v727_v32 = vsel %vm5900_vm11, %v719_v15, %v726_v20  ;;  %v1013_v33 = vsel %vm5894_vm8, %v728_v21, %v1012_v6  ;;  %v4763_v39 = vpack.c.bf16 %v504_v34, %v504_v34  ;;  %v4764_v40 = vpack.c.bf16 %v505_v35, %v505_v35  ;;  %v5603_v34 = vld [vmem:[%s7336_s3 + $0x110] sm:$0xff]   ;;  %5207 = vmatprep.subr.bf16.mxu0 %v5602_v26 }
  0x5f   : > { %1011 = vst [vmem:[#allocation2 + $0x34] sm:$0xf] %v727_v32  ;;  %1014 = vst [vmem:[#allocation2 + $0x38] sm:$0x1] %v1013_v33  ;;  %v1484_v37 = vsel %vm1436_vm0, %v1479_v31, %v1483_v17  ;;  %v1127_v38 = vld [vmem:[#allocation2 + $0xa8] sm:$0xf]  ;;  %v350_v42 = vmul.f32 %v4818_v30, %v5853_v19  ;;  %v388_v44 = vadd.f32 %v5863_v24, %v349_v36  ;;  %5208 = vmatpush3.bf16.msra.mxu0 %v5603_v34 }
  0x60   : > { %5098 = vmatpush3.bf16.msra.mxu1 %v5570_v14  ;;  %3318 = vmatprep.mubr.bf16.mxu0 %v1484_v37  ;;  %v1128_v43 = vld [vmem:[#allocation2 + $0xac] sm:$0xf]  ;;  %v5559_v45 = vld [vmem:[#allocation2 + $0xb0] ss:$0 sps:$4 sm:$0x11]   ;;  %v900_v46 = vshrl.u32 %v4763_v39, 16 }
  0x61   : > { %5099 = vmatprep.subr.bf16.mxu1 %v5572_v28  ;;  %v4497_v27 = vcombine.low %v1127_v38, %v1128_v43  ;;  %3319 = vmatmul.mubr.bf16.gmra.mxu0 %v6071_v56  ;;  %v903_v48 = vshll.u32 %v4763_v39, 16  ;;  %v908_v49 = vshrl.u32 %v4764_v40, 16  ;;  %v911_v50 = vshll.u32 %v4764_v40, 16  ;;  %v1015_v33 = vld [vmem:[#allocation2 + $0x3c] sm:$0xf]  ;;  %v4947_v30 = vld [vmem:[%s5842_s24 + $0x28] sm:$0xff]  }
  0x62   : > { %v389_v19 = vadd.f32 %v5863_v24, %v350_v42  ;;  %vm420_vm13 = vcmp.ge.f32.partialorder %v388_v44, 0.0  ;;  %v452_v53 = vmul.f32 0.1, %v388_v44  ;;  %v1613_v61 = vshll.u32 %v5559_v45, 16  ;;  %v1163_v40 = vld [vmem:[#allocation2 + $0xc] sm:$0xf] }
  0x63   : > { %v1606_v55 = vshrl.u32 %v4497_v27, 16  ;;  %v1608_v54 = vshll.u32 %v4497_v27, 16  ;;  %v902_v62 = vrot.slane %v900_v46, 7  ;;  %v910_v0 = vrot.slane %v908_v49, 7  ;;  %v6136_v43 = vld [vmem:[#allocation2 + $0x10] sm:$0xf] }
  0x64   : > { %5100 = vmatpush3.bf16.msra.mxu1 %v5573_v41  ;;  %v1107_v63 = vld [vmem:[#allocation2 + $0x30] sm:$0xf]  ;;  %vm421_vm14 = vcmp.ge.f32.partialorder %v389_v19, 0.0  ;;  %v453_v3 = vmul.f32 0.1, %v389_v19  ;;  %v484_v56 = vsel %vm420_vm13, %v388_v44, %v452_v53  ;;  %v1615_v5 = vrot.slane %v1613_v61, 1 }
  0x65   : > { %5309 = vmatprep.subr.bf16.mxu1 %v5578_v9  ;;  %v1610_v4 = vrot.slane %v1608_v54, 1  ;;  %v905_v7 = vor.u32 %v903_v48, %v902_v62  ;;  %v4743_v24 = vpack.c.bf16 %v484_v56, %v484_v56  ;;  %v906_v12 = vrot.slane %v902_v62, 4  ;;  %v1147_v44 = vld [vmem:[#allocation2] sm:$0xe]  ;;  %v1019_v53 = vld [vmem:[#allocation2 + $0x44] sm:$0x1] }
  0x66   : > { %v6115_v6 = vld [vmem:[#allocation2 + $0x34] sm:$0xf]  ;;  %v6118_v10 = vld [vmem:[#allocation2 + $0x38] ss:$0 sps:$4 sm:$0x11]   ;;  %v913_v13 = vor.u32 %v911_v50, %v910_v0  ;;  %v915_v15 = vrot.slane %v910_v0, 4  ;;  %v485_v20 = vsel %vm421_vm14, %v389_v19, %v453_v3  ;;  %v4821_v9 = vunpack.c.l.bf16 %v4947_v30 }
  0x67   : > { %v4487_v8 = vcombine.low %v1107_v63, %v6115_v6  ;;  %v1611_v16 = vor.u32 %v1610_v4, %v1606_v55  ;;  %v1086_v17 = vsel %vm5910_vm12, %v905_v7, %v1085_v51  ;;  %v730_v21 = vshrl.u32 %v4743_v24, 16  ;;  %v6138_v46 = vld [vmem:[#allocation2 + $0x8] ss:$0 sps:$4 sm:$0x11]   ;;  %v6147_v55 = vld [vmem:[%s7334_s1] ss:$0 sm:$0xff] }
  0x68   : > { %v1493_v23 = vshll.u32 %v6118_v10, 16  ;;  %v914_v25 = vsel %vm5900_vm11, %v906_v12, %v913_v13  ;;  %1087 = vst [vmem:[#allocation2 + $0xb4] sm:$0xf] %v1086_v17  ;;  %v1090_v29 = vsel %vm5894_vm8, %v915_v15, %v1089_v2  ;;  %v4744_v31 = vpack.c.bf16 %v485_v20, %v485_v20  ;;  %v4948_v62 = vld [vmem:[%s5842_s24 + $0x30] sm:$0xff]   ;;  %v5736_v56 = vld [vmem:[#allocation2 + $0x4] sm:$0xf] }
  0x69   : > { %v1486_v14 = vshrl.u32 %v4487_v8, 16  ;;  %v1488_v22 = vshll.u32 %v4487_v8, 16  ;;  %v1616_v28 = vsel %vm1436_vm0, %v1611_v16, %v1615_v5  ;;  %1088 = vst [vmem:[#allocation2 + $0xb8] sm:$0xf] %v914_v25  ;;  %v732_v32 = vrot.slane %v730_v21, 7 }
  0x6a   : > { %3406 = vmatprep.mubr.bf16.mxu1 %v1616_v28  ;;  %v1495_v36 = vrot.slane %v1493_v23, 1  ;;  %1091 = vst [vmem:[#allocation2 + $0xbc] sm:$0x1] %v1090_v29  ;;  %v733_v37 = vshll.u32 %v4743_v24, 16  ;;  %v738_v38 = vshrl.u32 %v4744_v31, 16  ;;  %v741_v39 = vshll.u32 %v4744_v31, 16 }
  0x6b   : > { %v1490_v35 = vrot.slane %v1488_v22, 1  ;;  %3407 = vmatmul.mubr.bf16.gmra.mxu1 %v4497_v27  ;;  %v4822_v45 = vunpack.c.h.bf16 %v4947_v30  ;;  %v1695_v48 = vrot.slane %v6138_v46, 1  ;;  %v736_v49 = vrot.slane %v732_v32, 4  ;;  %v1148_v27 = vld [vmem:[#allocation2 + $0xc] sm:$0xe]  ;;  %v5580_v46 = vld [vmem:[%s7336_s3 + $0x1b8] sm:$0xff]  }
  0x6c   : > { %v735_v42 = vor.u32 %v733_v37, %v732_v32  ;;  %v740_v50 = vrot.slane %v738_v38, 7  ;;  %v351_v54 = vmul.f32 %v6147_v55, %v4821_v9  ;;  %v6153_v3 = vcombine.low %v1163_v40, %v6136_v43  ;;  %v6158_v7 = vld [vmem:[%s7335_s2] ss:$0 sm:$0xff]  ;;  %v1161_v60 = vld [vmem:[#allocation2 + $0xa8] sm:$0xe] }
  0x6d   : > { %v1491_v41 = vor.u32 %v1490_v35, %v1486_v14  ;;  %v352_v61 = vmul.f32 %v6147_v55, %v4822_v45  ;;  %v4515_v4 = vcombine.low %v1147_v44, %v5736_v56  ;;  %v4516_v13 = vcombine.low %v1148_v27, %v5942_v52  ;;  %v1022_v45 = vld [vmem:[#allocation2 + $0x48] sm:$0xf] }
  0x6e   : > { %v1016_v19 = vsel %vm5910_vm12, %v735_v42, %v1015_v33  ;;  %v743_v0 = vor.u32 %v741_v39, %v740_v50  ;;  %v745_v2 = vrot.slane %v740_v50, 4  ;;  %v390_v24 = vadd.f32 %v6158_v7, %v351_v54 }
  0x6f   : > { %v1496_v51 = vsel %vm1436_vm0, %v1491_v41, %v1495_v36  ;;  %v1129_v63 = vld [vmem:[#allocation2 + $0xb4] sm:$0xf]  ;;  %1017 = vst [vmem:[#allocation2 + $0x3c] sm:$0xf] %v1016_v19  ;;  %v391_v12 = vadd.f32 %v6158_v7, %v352_v61  ;;  %v1698_v15 = vrot.slane %v5946_v59, 1  ;;  %v4825_v21 = vunpack.c.l.bf16 %v4948_v62 }
  0x70   : > { %3326 = vmatprep.mubr.bf16.mxu0 %v1496_v51  ;;  %v1130_v5 = vld [vmem:[#allocation2 + $0xb8] sm:$0xf]  ;;  %v744_v20 = vsel %vm5900_vm11, %v736_v49, %v743_v0  ;;  %vm422_vm1 = vcmp.ge.f32.partialorder %v390_v24, 0.0  ;;  %v454_v14 = vmul.f32 0.1, %v390_v24  ;;  %v1697_v26 = vrot.slane %v4516_v13, 1 }
  0x71   : > { %3327 = vmatmul.mubr.bf16.gmra.mxu0 %v4487_v8  ;;  %v4498_v16 = vcombine.low %v1129_v63, %v1130_v5  ;;  %v5567_v17 = vld [vmem:[#allocation2 + $0xbc] ss:$0 sps:$4 sm:$0x11]   ;;  %v1020_v8 = vsel %vm5894_vm8, %v745_v2, %v1019_v53  ;;  %1018 = vst [vmem:[#allocation2 + $0x40] sm:$0xf] %v744_v20  ;;  %vm423_vm2 = vcmp.ge.f32.partialorder %v391_v12, 0.0  ;;  %v4826_v29 = vunpack.c.h.bf16 %v4948_v62 }
  0x72   : > { %1021 = vst [vmem:[#allocation2 + $0x44] sm:$0x1] %v1020_v8  ;;  %v455_v22 = vmul.f32 0.1, %v391_v12  ;;  %v1625_v52 = vshll.u32 %v5567_v17, 16  ;;  %v486_v59 = vsel %vm422_vm1, %v390_v24, %v454_v14  ;;  %v353_v31 = vmul.f32 %v6147_v55, %v4825_v21 }
  0x73   : > { %v1618_v23 = vshrl.u32 %v4498_v16, 16  ;;  %v1620_v25 = vshll.u32 %v4498_v16, 16  ;;  %v4745_v30 = vpack.c.bf16 %v486_v59, %v486_v59  ;;  %v1694_v36 = vrot.slane %v4515_v4, 1  ;;  %v1026_v49 = vld [vmem:[#allocation2 + $0x50] sm:$0x1] }
  0x74   : > { %v487_v28 = vsel %vm423_vm2, %v391_v12, %v455_v22  ;;  %v1627_v33 = vrot.slane %v1625_v52, 1  ;;  %v6170_v37 = vsel %vm1693_vm15, %v1697_v26, %v1698_v15  ;;  %v354_v38 = vmul.f32 %v6147_v55, %v4826_v29  ;;  %v1165_v15 = vld [vmem:[#allocation2 + $0x18] sm:$0xf]  ;;  %v6187_v17 = vld [vmem:[#allocation2 + $0x1c] sm:$0xf]  ;;  %v5617_v29 = vld [vmem:[%s7336_s3 + $0x108] sm:$0xff]  }
  0x75   : > { %v1622_v32 = vrot.slane %v1620_v25, 1  ;;  %v4746_v34 = vpack.c.bf16 %v487_v28, %v487_v28  ;;  %v392_v39 = vadd.f32 %v6158_v7, %v353_v31  ;;  %v747_v41 = vshrl.u32 %v4745_v30, 16  ;;  %v1149_v8 = vld [vmem:[#allocation2 + $0x18] sm:$0xe] }
  0x76   : > { %v1109_v35 = vld [vmem:[#allocation2 + $0x3c] sm:$0xf]  ;;  %v750_v42 = vshll.u32 %v4745_v30, 16  ;;  %v393_v50 = vadd.f32 %v6158_v7, %v354_v38  ;;  %v1696_v59 = vsel %vm1693_vm15, %v1694_v36, %v1695_v48  ;;  %v1701_v30 = vrot.slane %v5995_v18, 1  ;;  %v1029_v36 = vld [vmem:[#allocation2 + $0x54] sm:$0xf] }
  0x77   : > { %v1623_v40 = vor.u32 %v1622_v32, %v1618_v23  ;;  %v755_v44 = vshrl.u32 %v4746_v34, 16  ;;  %v758_v9 = vshll.u32 %v4746_v34, 16  ;;  %vm424_vm3 = vcmp.ge.f32.partialorder %v392_v39, 0.0  ;;  %v4949_v25 = vld [vmem:[%s5842_s24 + $0x38] sm:$0xff]   ;;  %v5593_v38 = vld [vmem:[%s7336_s3 + $0x1f0] sm:$0xff]  }
  0x78   : > { %v456_v27 = vmul.f32 0.1, %v392_v39  ;;  %v6176_v19 = vld [vmem:[#allocation2 + $0x40] sm:$0xf]  ;;  %v749_v53 = vrot.slane %v747_v41, 7  ;;  %vm425_vm4 = vcmp.ge.f32.partialorder %v393_v50, 0.0 }
  0x79   : > { %v1628_v51 = vsel %vm1436_vm0, %v1623_v40, %v1627_v33  ;;  %v757_v54 = vrot.slane %v755_v44, 7  ;;  %v6179_v61 = vcombine.low %v1109_v35, %v6176_v19  ;;  %v6181_v62 = vld [vmem:[#allocation2 + $0x44] ss:$0 sps:$4 sm:$0x11]   ;;  %v457_v63 = vmul.f32 0.1, %v393_v50 }
  0x7a   : > { %3414 = vmatprep.mubr.bf16.mxu1 %v1628_v51  ;;  %v488_v0 = vsel %vm424_vm3, %v392_v39, %v456_v27  ;;  %v752_v2 = vor.u32 %v750_v42, %v749_v53  ;;  %v753_v56 = vrot.slane %v749_v53, 4  ;;  %v1505_v13 = vshll.u32 %v6181_v62, 16  ;;  %v1033_v18 = vld [vmem:[#allocation2 + $0x5c] sm:$0x1]  ;;  %v4950_v27 = vld [vmem:[%s5842_s24 + $0x40] sm:$0xff]  }
  0x7b   : > { %3415 = vmatmul.mubr.bf16.gmra.mxu1 %v4498_v16  ;;  %v760_v4 = vor.u32 %v758_v9, %v757_v54  ;;  %v762_v5 = vrot.slane %v757_v54, 4  ;;  %v1498_v24 = vshrl.u32 %v6179_v61, 16  ;;  %v1500_v12 = vshll.u32 %v6179_v61, 16  ;;  %v5615_v16 = vld [vmem:[%s7336_s3 + $0x148] sm:$0xff]   ;;  %v1167_v54 = vld [vmem:[#allocation2 + $0x24] sm:$0xf] }
  0x7c   : > { %3455 = vmatprep.mubr.bf16.mxu1 %v6153_v3  ;;  %v489_v20 = vsel %vm425_vm4, %v393_v50, %v457_v63  ;;  %v1023_v14 = vsel %vm5910_vm12, %v752_v2, %v1022_v45  ;;  %v4747_v23 = vpack.c.bf16 %v488_v0, %v488_v0  ;;  %v1507_v26 = vrot.slane %v1505_v13, 1  ;;  %5209 = vmatprep.subr.bf16.mxu0 %v5615_v16  ;;  %v5596_v45 = vld [vmem:[%s7336_s3 + $0x1b0] sm:$0xff]   ;;  %v1150_v50 = vld [vmem:[#allocation2 + $0x24] sm:$0xe]  ;;  %v6222_v63 = vld [vmem:[#allocation2 + $0x28] sm:$0xf] }
  0x7d   : > { %v761_v21 = vsel %vm5900_vm11, %v753_v56, %v760_v4  ;;  %v1027_v22 = vsel %vm5894_vm8, %v762_v5, %v1026_v49  ;;  %v1502_v52 = vrot.slane %v1500_v12, 1  ;;  %1024 = vst [vmem:[#allocation2 + $0x48] sm:$0xf] %v1023_v14  ;;  %v4748_v28 = vpack.c.bf16 %v489_v20, %v489_v20  ;;  %5210 = vmatpush3.bf16.msra.mxu0 %v5617_v29  ;;  %v5608_v56 = vld [vmem:[%s7336_s3 + $0x1e8] sm:$0xff]   ;;  %v5625_v12 = vld [vmem:[%s7336_s3 + $0x140] sm:$0xff]  }
  0x7e   : > { %1025 = vst [vmem:[#allocation2 + $0x4c] sm:$0xf] %v761_v21  ;;  %1028 = vst [vmem:[#allocation2 + $0x50] sm:$0x1] %v1027_v22  ;;  %v764_v31 = vshrl.u32 %v4747_v23, 16  ;;  %v767_v32 = vshll.u32 %v4747_v23, 16  ;;  %v4517_v33 = vcombine.low %v1149_v8, %v5987_v11  ;;  %v4829_v39 = vunpack.c.l.bf16 %v4949_v25  ;;  %5211 = vmatprep.subr.bf16.mxu0 %v5625_v12 }
  0x7f   : > { %v1503_v34 = vor.u32 %v1502_v52, %v1498_v24  ;;  %v772_v48 = vshrl.u32 %v4748_v28, 16  ;;  %v775_v35 = vshll.u32 %v4748_v28, 16  ;;  %v6214_v40 = vcombine.low %v1165_v15, %v6187_v17  ;;  %v5626_v13 = vld [vmem:[%s7336_s3 + $0x100] sm:$0xff]  }
  0x80   : > { %v766_v11 = vrot.slane %v764_v31, 7  ;;  %v1700_v41 = vrot.slane %v4517_v33, 1  ;;  %v4830_v42 = vunpack.c.h.bf16 %v4949_v25  ;;  %v355_v49 = vmul.f32 %v6147_v55, %v4829_v39 }
  0x81   : > { %v1508_v44 = vsel %vm1436_vm0, %v1503_v34, %v1507_v26  ;;  %v774_v9 = vrot.slane %v772_v48, 7  ;;  %v4833_v16 = vunpack.c.l.bf16 %v4950_v27  ;;  %v4518_v26 = vcombine.low %v1150_v50, %v6062_v47  ;;  %5212 = vmatpush3.bf16.msra.mxu0 %v5626_v13  ;;  %v1169_v34 = vld [vmem:[#allocation2 + $0x30] sm:$0xf]  ;;  %v5622_v48 = vld [vmem:[%s7336_s3 + $0x1e0] sm:$0xff]  }
  0x82   : > { %3334 = vmatprep.mubr.bf16.mxu0 %v1508_v44  ;;  %v769_v51 = vor.u32 %v767_v32, %v766_v11  ;;  %v770_v53 = vrot.slane %v766_v11, 4  ;;  %v6225_v0 = vsel %vm1693_vm15, %v1700_v41, %v1701_v30  ;;  %v356_v2 = vmul.f32 %v6147_v55, %v4830_v42  ;;  %v5610_v32 = vld [vmem:[%s7336_s3 + $0x1a8] sm:$0xff]   ;;  %v6269_v11 = vld [vmem:[#allocation2 + $0x34] sm:$0xf] }
  0x83   : > { %3456 = vmatmul.mubr.bf16.vlgmr.msra.gmra.mxu1 %v1696_v59  ;;  %3335 = vmatmul.mubr.bf16.gmra.mxu0 %v6179_v61  ;;  %v777_v4 = vor.u32 %v775_v35, %v774_v9  ;;  %v779_v5 = vrot.slane %v774_v9, 4  ;;  %v394_v24 = vadd.f32 %v6158_v7, %v355_v49  ;;  %v6259_v31 = vcombine.low %v1167_v54, %v6222_v63  ;;  %v5624_v9 = vld [vmem:[%s7336_s3 + $0x1a0] sm:$0xff]  }
  0x84   : > { %5310 = vmatpush3.bf16.msra.mxu1 %v5580_v46  ;;  %v1111_v15 = vld [vmem:[#allocation2 + $0x48] sm:$0xf]  ;;  %3463 = vmatprep.mubr.bf16.mxu1 %v6214_v40  ;;  %v1030_v61 = vsel %vm5910_vm12, %v769_v51, %v1029_v36  ;;  %v395_v8 = vadd.f32 %v6158_v7, %v356_v2  ;;  %v4834_v46 = vunpack.c.h.bf16 %v4950_v27  ;;  %v357_v47 = vmul.f32 %v6147_v55, %v4833_v16  ;;  %v5634_v27 = vld [vmem:[%s7336_s3 + $0x1d8] sm:$0xff]   ;;  %v1036_v54 = vld [vmem:[#allocation2 + $0x60] sm:$0xf] }
  0x85   : > { %v6239_v20 = vld [vmem:[#allocation2 + $0x4c] sm:$0xf]  ;;  %5311 = vmatprep.subr.bf16.mxu1 %v5593_v38  ;;  %v6248_v14 = vld [vmem:[#allocation2 + $0x50] ss:$0 sps:$4 sm:$0x11]   ;;  %v778_v22 = vsel %vm5900_vm11, %v770_v53, %v777_v4  ;;  %v1034_v23 = vsel %vm5894_vm8, %v779_v5, %v1033_v18  ;;  %vm426_vm5 = vcmp.ge.f32.partialorder %v394_v24, 0.0 }
  0x86   : > { %v6246_v21 = vcombine.low %v1111_v15, %v6239_v20  ;;  %1031 = vst [vmem:[#allocation2 + $0x54] sm:$0xf] %v1030_v61  ;;  %1032 = vst [vmem:[#allocation2 + $0x58] sm:$0xf] %v778_v22  ;;  %vm427_vm6 = vcmp.ge.f32.partialorder %v395_v8, 0.0  ;;  %v1517_v29 = vshll.u32 %v6248_v14, 16  ;;  %v358_v42 = vmul.f32 %v6147_v55, %v4834_v46 }
  0x87   : > { %1035 = vst [vmem:[#allocation2 + $0x5c] sm:$0x1] %v1034_v23  ;;  %v458_v25 = vmul.f32 0.1, %v394_v24  ;;  %v459_v52 = vmul.f32 0.1, %v395_v8  ;;  %v396_v44 = vadd.f32 %v6158_v7, %v357_v47  ;;  %v6288_v15 = vcombine.low %v1169_v34, %v6269_v11 }
  0x88   : > { %v1510_v59 = vshrl.u32 %v6246_v21, 16  ;;  %v1512_v28 = vshll.u32 %v6246_v21, 16  ;;  %5312 = vmatpush3.bf16.msra.mxu1 %v5596_v45  ;;  %v1519_v36 = vrot.slane %v1517_v29, 1  ;;  %v6271_v18 = vrot.slane %v4518_v26, 1  ;;  %v1040_v2 = vld [vmem:[#allocation2 + $0x68] sm:$0x1] }
  0x89   : > { %v490_v33 = vsel %vm426_vm5, %v394_v24, %v458_v25  ;;  %v491_v30 = vsel %vm427_vm6, %v395_v8, %v459_v52  ;;  %5313 = vmatprep.subr.bf16.mxu1 %v5608_v56  ;;  %v1704_v41 = vrot.slane %v6073_v58, 1  ;;  %v397_v56 = vadd.f32 %v6158_v7, %v358_v42  ;;  %v6308_v42 = vld [vmem:[#allocation2 + $0x40] sm:$0xf] }
  0x8a   : > { %v1514_v35 = vrot.slane %v1512_v28, 1  ;;  %v4749_v38 = vpack.c.bf16 %v490_v33, %v490_v33  ;;  %v4750_v39 = vpack.c.bf16 %v491_v30, %v491_v30  ;;  %vm428_vm7 = vcmp.ge.f32.partialorder %v396_v44, 0.0  ;;  %v1151_v33 = vld [vmem:[#allocation2 + $0x30] sm:$0xe]  ;;  %v6298_v30 = vld [vmem:[%s7336_s3 + $0x238] sm:$0xff]  }
  0x8b   : > { %3464 = vmatmul.mubr.bf16.gmra.mxu1 %v6170_v37  ;;  %v460_v4 = vmul.f32 0.1, %v396_v44  ;;  %vm429_vm9 = vcmp.ge.f32.partialorder %v397_v56, 0.0  ;;  %v461_v16 = vmul.f32 0.1, %v397_v56  ;;  %5445 = vmatprep.subr.bf16.mxu0 %v6298_v30 }
  0x8c   : > { %v1515_v45 = vor.u32 %v1514_v35, %v1510_v59  ;;  %3471 = vmatprep.mubr.bf16.mxu1 %v6259_v31  ;;  %v781_v49 = vshrl.u32 %v4749_v38, 16  ;;  %v784_v50 = vshll.u32 %v4749_v38, 16  ;;  %v789_v37 = vshrl.u32 %v4750_v39, 16  ;;  %5314 = vmatpush3.bf16.msra.mxu1 %v5610_v32 }
  0x8d   : > { %v1113_v51 = vld [vmem:[#allocation2 + $0x54] sm:$0xf]  ;;  %v792_v53 = vshll.u32 %v4750_v39, 16  ;;  %5315 = vmatprep.subr.bf16.mxu1 %v5622_v48  ;;  %v6285_v24 = vld [vmem:[#allocation2 + $0x58] sm:$0xf]  ;;  %v492_v22 = vsel %vm428_vm7, %v396_v44, %v460_v4  ;;  %v493_v32 = vsel %vm429_vm9, %v397_v56, %v461_v16  ;;  %v4951_v48 = vld [vmem:[%s5842_s24 + $0x48] sm:$0xff]  }
  0x8e   : > { %v1520_v5 = vsel %vm1436_vm0, %v1515_v45, %v1519_v36  ;;  %v783_v12 = vrot.slane %v781_v49, 7  ;;  %v791_v13 = vrot.slane %v789_v37, 7  ;;  %v4490_v61 = vcombine.low %v1113_v51, %v6285_v24  ;;  %v6291_v8 = vld [vmem:[#allocation2 + $0x5c] ss:$0 sps:$4 sm:$0x11]  }
  0x8f   : > { %3342 = vmatprep.mubr.bf16.mxu0 %v1520_v5  ;;  %v1529_v29 = vshll.u32 %v6291_v8, 16  ;;  %v4751_v47 = vpack.c.bf16 %v492_v22, %v492_v22  ;;  %v4752_v38 = vpack.c.bf16 %v493_v32, %v493_v32  ;;  %v1171_v39 = vld [vmem:[#allocation2 + $0x3c] sm:$0xf]  ;;  %v4519_v49 = vcombine.low %v1151_v33, %v6115_v6  ;;  %v1043_v51 = vld [vmem:[#allocation2 + $0x6c] sm:$0xf]  ;;  %v4952_v22 = vld [vmem:[%s5842_s24 + $0x50] sm:$0xff]  }
  0x90   : > { %3343 = vmatmul.mubr.bf16.gmra.mxu0 %v6246_v21  ;;  %v786_v23 = vor.u32 %v784_v50, %v783_v12  ;;  %v787_v25 = vrot.slane %v783_v12, 4  ;;  %v794_v52 = vor.u32 %v792_v53, %v791_v13  ;;  %v796_v26 = vrot.slane %v791_v13, 4  ;;  %5316 = vmatpush3.bf16.msra.mxu1 %v5624_v9  ;;  %v5637_v44 = vld [vmem:[%s7336_s3 + $0x198] sm:$0xff]   ;;  %v1047_v56 = vld [vmem:[#allocation2 + $0x74] sm:$0x1] }
  0x91   : > { %v1522_v59 = vshrl.u32 %v4490_v61, 16  ;;  %v1524_v28 = vshll.u32 %v4490_v61, 16  ;;  %5317 = vmatprep.subr.bf16.mxu1 %v5634_v27  ;;  %v1531_v36 = vrot.slane %v1529_v29, 1  ;;  %v798_v9 = vshrl.u32 %v4751_v47, 16  ;;  %v1152_v6 = vld [vmem:[#allocation2 + $0x3c] sm:$0xe] }
  0x92   : > { %v795_v21 = vsel %vm5900_vm11, %v787_v25, %v794_v52  ;;  %v1037_v34 = vsel %vm5910_vm12, %v786_v23, %v1036_v54  ;;  %v1041_v46 = vsel %vm5894_vm8, %v796_v26, %v1040_v2  ;;  %v801_v45 = vshll.u32 %v4751_v47, 16 }
  0x93   : > { %v1526_v35 = vrot.slane %v1524_v28, 1  ;;  %3472 = vmatmul.mubr.bf16.gmra.mxu1 %v6225_v0  ;;  %1038 = vst [vmem:[#allocation2 + $0x60] sm:$0xf] %v1037_v34  ;;  %1039 = vst [vmem:[#allocation2 + $0x64] sm:$0xf] %v795_v21  ;;  %v5645_v0 = vld [vmem:[%s7336_s3 + $0x1d0] sm:$0xff]   ;;  %v4837_v53 = vunpack.c.l.bf16 %v4951_v48  ;;  %v1705_v54 = vsel %vm1693_vm15, %v6271_v18, %v1704_v41  ;;  %v4838_v4 = vunpack.c.h.bf16 %v4951_v48 }
  0x94   : > { %1042 = vst [vmem:[#allocation2 + $0x68] sm:$0x1] %v1041_v46  ;;  %3479 = vmatprep.mubr.bf16.mxu1 %v6288_v15  ;;  %v806_v37 = vshrl.u32 %v4752_v38, 16  ;;  %v809_v27 = vshll.u32 %v4752_v38, 16  ;;  %5318 = vmatpush3.bf16.msra.mxu1 %v5637_v44  ;;  %v800_v2 = vrot.slane %v798_v9, 7  ;;  %v1707_v13 = vrot.slane %v6118_v10, 1 }
  0x95   : > { %v1527_v50 = vor.u32 %v1526_v35, %v1522_v59  ;;  %5319 = vmatprep.subr.bf16.mxu1 %v5645_v0  ;;  %v359_v16 = vmul.f32 %v6147_v55, %v4837_v53  ;;  %v6328_v58 = vcombine.low %v1171_v39, %v6308_v42  ;;  %v360_v18 = vmul.f32 %v6147_v55, %v4838_v4  ;;  %v5648_v41 = vld [vmem:[%s7336_s3 + $0x190] sm:$0xff]   ;;  %v1173_v35 = vld [vmem:[#allocation2 + $0x48] sm:$0xf] }
  0x96   : > { %v808_v12 = vrot.slane %v806_v37, 7  ;;  %v803_v23 = vor.u32 %v801_v45, %v800_v2  ;;  %v804_v25 = vrot.slane %v800_v2, 4  ;;  %v1706_v59 = vrot.slane %v4519_v49, 1  ;;  %v6350_v45 = vld [vmem:[#allocation2 + $0x4c] sm:$0xf] }
  0x97   : > { %v1532_v5 = vsel %vm1436_vm0, %v1527_v50, %v1531_v36  ;;  %v398_v10 = vadd.f32 %v6158_v7, %v359_v16  ;;  %v399_v33 = vadd.f32 %v6158_v7, %v360_v18  ;;  %v4520_v21 = vcombine.low %v1152_v6, %v6176_v19  ;;  %v1050_v18 = vld [vmem:[#allocation2 + $0x78] sm:$0xf] }
  0x98   : > { %3350 = vmatprep.mubr.bf16.mxu0 %v1532_v5  ;;  %v811_v52 = vor.u32 %v809_v27, %v808_v12  ;;  %v813_v26 = vrot.slane %v808_v12, 4  ;;  %v1044_v32 = vsel %vm5910_vm12, %v803_v23, %v1043_v51  ;;  %v4841_v34 = vunpack.c.l.bf16 %v4952_v22  ;;  %5320 = vmatpush3.bf16.msra.mxu1 %v5648_v41  ;;  %v1054_v41 = vld [vmem:[#allocation2 + $0x80] sm:$0x1] }
  0x99   : > { %3351 = vmatmul.mubr.bf16.gmra.mxu0 %v4490_v61  ;;  %1045 = vst [vmem:[#allocation2 + $0x6c] sm:$0xf] %v1044_v32  ;;  %vm430_vm10 = vcmp.ge.f32.partialorder %v398_v10, 0.0  ;;  %vm431_vm13 = vcmp.ge.f32.partialorder %v399_v33, 0.0  ;;  %v462_v19 = vmul.f32 0.1, %v398_v10  ;;  %v4842_v37 = vunpack.c.h.bf16 %v4952_v22 }
  0x9a   : > { %v1115_v28 = vld [vmem:[#allocation2 + $0x60] sm:$0xf]  ;;  %v6335_v29 = vld [vmem:[#allocation2 + $0x64] sm:$0xf]  ;;  %v812_v47 = vsel %vm5900_vm11, %v804_v25, %v811_v52  ;;  %v1048_v48 = vsel %vm5894_vm8, %v813_v26, %v1047_v56  ;;  %v463_v36 = vmul.f32 0.1, %v399_v33  ;;  %v361_v27 = vmul.f32 %v6147_v55, %v4841_v34 }
  0x9b   : > { %v4491_v46 = vcombine.low %v1115_v28, %v6335_v29  ;;  %v6342_v61 = vld [vmem:[#allocation2 + $0x68] ss:$0 sps:$4 sm:$0x11]   ;;  %3480 = vmatmul.mubr.bf16.gmra.mxu1 %v1705_v54  ;;  %1046 = vst [vmem:[#allocation2 + $0x70] sm:$0xf] %v812_v47  ;;  %v1709_v38 = vrot.slane %v4520_v21, 1  ;;  %v494_v0 = vsel %vm430_vm10, %v398_v10, %v462_v19  ;;  %v1708_v56 = vsel %vm1693_vm15, %v1706_v59, %v1707_v13 }
  0x9c   : > { %1049 = vst [vmem:[#allocation2 + $0x74] sm:$0x1] %v1048_v48  ;;  %3487 = vmatprep.mubr.bf16.mxu1 %v6328_v58  ;;  %v1541_v9 = vshll.u32 %v6342_v61, 16  ;;  %v1710_v49 = vrot.slane %v6181_v62, 1  ;;  %v495_v50 = vsel %vm431_vm13, %v399_v33, %v463_v36  ;;  %v4753_v54 = vpack.c.bf16 %v494_v0, %v494_v0  ;;  %v1175_v19 = vld [vmem:[#allocation2 + $0x54] sm:$0xf] }
  0x9d   : > { %v1534_v39 = vshrl.u32 %v4491_v46, 16  ;;  %v1536_v44 = vshll.u32 %v4491_v46, 16  ;;  %v4754_v2 = vpack.c.bf16 %v495_v50, %v495_v50  ;;  %v6356_v4 = vcombine.low %v1173_v35, %v6350_v45  ;;  %v6369_v36 = vld [vmem:[#allocation2 + $0x58] sm:$0xf]  ;;  %v5656_v0 = vld [vmem:[%s7336_s3 + $0x1c8] sm:$0xff]  }
  0x9e   : > { %v1543_v53 = vrot.slane %v1541_v9, 1  ;;  %v362_v6 = vmul.f32 %v6147_v55, %v4842_v37  ;;  %v400_v5 = vadd.f32 %v6158_v7, %v361_v27  ;;  %v815_v62 = vshrl.u32 %v4753_v54, 16  ;;  %5321 = vmatprep.subr.bf16.mxu1 %v5656_v0 }
  0x9f   : > { %v1538_v51 = vrot.slane %v1536_v44, 1  ;;  %v818_v16 = vshll.u32 %v4753_v54, 16  ;;  %v823_v23 = vshrl.u32 %v4754_v2, 16  ;;  %v826_v25 = vshll.u32 %v4754_v2, 16 }
  0xa0   : > { %v1117_v22 = vld [vmem:[#allocation2 + $0x6c] sm:$0xf]  ;;  %v401_v52 = vadd.f32 %v6158_v7, %v362_v6  ;;  %vm432_vm14 = vcmp.ge.f32.partialorder %v400_v5, 0.0  ;;  %v464_v26 = vmul.f32 0.1, %v400_v5  ;;  %v817_v55 = vrot.slane %v815_v62, 7 }
  0xa1   : > { %v1539_v12 = vor.u32 %v1538_v51, %v1534_v39  ;;  %v825_v10 = vrot.slane %v823_v23, 7  ;;  %v1711_v28 = vsel %vm1693_vm15, %v1709_v38, %v1710_v49  ;;  %v1153_v49 = vld [vmem:[#allocation2 + $0x48] sm:$0xe]  ;;  %v6382_v2 = vcombine.low %v1175_v19, %v6369_v36 }
  0xa2   : > { %v6362_v59 = vld [vmem:[#allocation2 + $0x70] sm:$0xf]  ;;  %vm433_vm1 = vcmp.ge.f32.partialorder %v401_v52, 0.0  ;;  %v465_v7 = vmul.f32 0.1, %v401_v52  ;;  %v496_v21 = vsel %vm432_vm14, %v400_v5, %v464_v26  ;;  %v820_v34 = vor.u32 %v818_v16, %v817_v55 }
  0xa3   : > { %v1544_v13 = vsel %vm1436_vm0, %v1539_v12, %v1543_v53  ;;  %3488 = vmatmul.mubr.bf16.gmra.mxu1 %v1708_v56  ;;  %v4492_v32 = vcombine.low %v1117_v22, %v6362_v59  ;;  %v6366_v33 = vld [vmem:[#allocation2 + $0x74] ss:$0 sps:$4 sm:$0x11]   ;;  %v821_v47 = vrot.slane %v817_v55, 4  ;;  %v828_v48 = vor.u32 %v826_v25, %v825_v10  ;;  %v5659_v12 = vld [vmem:[%s7336_s3 + $0x188] sm:$0xff]  }
  0xa4   : > { %3358 = vmatprep.mubr.bf16.mxu0 %v1544_v13  ;;  %3495 = vmatprep.mubr.bf16.mxu1 %v6356_v4  ;;  %v830_v35 = vrot.slane %v825_v10, 4  ;;  %v1553_v44 = vshll.u32 %v6366_v33, 16  ;;  %v497_v9 = vsel %vm433_vm1, %v401_v52, %v465_v7  ;;  %v1051_v50 = vsel %vm5910_vm12, %v820_v34, %v1050_v18  ;;  %v1057_v22 = vld [vmem:[#allocation2 + $0x84] sm:$0xf]  ;;  %v1177_v25 = vld [vmem:[#allocation2 + $0x60] sm:$0xf] }
  0xa5   : > { %3359 = vmatmul.mubr.bf16.gmra.mxu0 %v4491_v46  ;;  %v1546_v39 = vshrl.u32 %v4492_v32, 16  ;;  %v1548_v38 = vshll.u32 %v4492_v32, 16  ;;  %v829_v46 = vsel %vm5900_vm11, %v821_v47, %v828_v48  ;;  %v4755_v27 = vpack.c.bf16 %v496_v21, %v496_v21  ;;  %1052 = vst [vmem:[#allocation2 + $0x78] sm:$0xf] %v1051_v50  ;;  %v5667_v18 = vld [vmem:[%s7336_s3 + $0x1c0] sm:$0xff]   ;;  %5322 = vmatpush3.bf16.msra.mxu1 %v5659_v12 }
  0xa6   : > { %v1055_v37 = vsel %vm5894_vm8, %v830_v35, %v1054_v41  ;;  %v1555_v53 = vrot.slane %v1553_v44, 1  ;;  %1053 = vst [vmem:[#allocation2 + $0x7c] sm:$0xf] %v829_v46  ;;  %v4756_v54 = vpack.c.bf16 %v497_v9, %v497_v9  ;;  %v4521_v5 = vcombine.low %v1153_v49, %v6239_v20  ;;  %v1061_v52 = vld [vmem:[#allocation2 + $0x8c] sm:$0x1]  ;;  %v5670_v21 = vld [vmem:[%s7336_s3 + $0x180] sm:$0xff]   ;;  %5323 = vmatprep.subr.bf16.mxu1 %v5667_v18 }
  0xa7   : > { %v1550_v51 = vrot.slane %v1548_v38, 1  ;;  %1056 = vst [vmem:[#allocation2 + $0x80] sm:$0x1] %v1055_v37  ;;  %v832_v56 = vshrl.u32 %v4755_v27, 16  ;;  %v835_v6 = vshll.u32 %v4755_v27, 16  ;;  %v1713_v13 = vrot.slane %v6248_v14, 1 }
  0xa8   : > { %v840_v16 = vshrl.u32 %v4756_v54, 16  ;;  %v843_v23 = vshll.u32 %v4756_v54, 16  ;;  %v1712_v26 = vrot.slane %v4521_v5, 1  ;;  %v1154_v20 = vld [vmem:[#allocation2 + $0x54] sm:$0xe] }
  0xa9   : > { %v1551_v62 = vor.u32 %v1550_v51, %v1546_v39  ;;  %v834_v41 = vrot.slane %v832_v56, 7  ;;  %v6394_v7 = vld [vmem:[#allocation2 + $0x64] sm:$0xf]  ;;  %v4522_v0 = vcombine.low %v1154_v20, %v6285_v24  ;;  %5324 = vmatpush3.bf16.msra.mxu1 %v5670_v21  ;;  %v1211_v27 = vld [vmem:[#allocation2 + $0xc] sm:$0xe]  ;;  %v1716_v56 = vrot.slane %v6291_v8, 1 }
  0xaa   : > { %v842_v10 = vrot.slane %v840_v16, 7  ;;  %v1714_v39 = vsel %vm1693_vm15, %v1712_v26, %v1713_v13  ;;  %v6405_v38 = vcombine.low %v1177_v25, %v6394_v7  ;;  %v6418_v5 = vld [vmem:[#allocation2 + $0x70] sm:$0xf]  ;;  %v1155_v24 = vld [vmem:[#allocation2 + $0x60] sm:$0xe] }
  0xab   : > { %3496 = vmatmul.mubr.bf16.gmra.mxu1 %v1711_v28  ;;  %v1556_v55 = vsel %vm1436_vm0, %v1551_v62, %v1555_v53  ;;  %v837_v28 = vor.u32 %v835_v6, %v834_v41  ;;  %v838_v34 = vrot.slane %v834_v41, 4  ;;  %v1715_v54 = vrot.slane %v4522_v0, 1  ;;  %v1179_v6 = vld [vmem:[#allocation2 + $0x6c] sm:$0xf] }
  0xac   : > { %3503 = vmatprep.mubr.bf16.mxu1 %v6382_v2  ;;  %3366 = vmatprep.mubr.bf16.mxu0 %v1556_v55  ;;  %v845_v47 = vor.u32 %v843_v23, %v842_v10  ;;  %v847_v14 = vrot.slane %v842_v10, 4  ;;  %v1119_v48 = vld [vmem:[#allocation2 + $0x78] sm:$0xf]  ;;  %v4563_v62 = vcombine.low %v1211_v27, %v6136_v43  ;;  %v5629_v23 = vld [vmem:[#allocation2 + $0x14] ss:$0 sps:$4 sm:$0x11]   ;;  %v6426_v41 = vcombine.low %v1179_v6, %v6418_v5 }
  0xad   : > { %3367 = vmatmul.mubr.bf16.gmra.mxu0 %v4492_v32  ;;  %v6399_v35 = vld [vmem:[#allocation2 + $0x7c] sm:$0xf]  ;;  %v1058_v19 = vsel %vm5910_vm12, %v837_v28, %v1057_v22  ;;  %v1717_v18 = vsel %vm1693_vm15, %v1715_v54, %v1716_v56  ;;  %v4523_v8 = vcombine.low %v1155_v24, %v6335_v29  ;;  %v1905_v43 = vshll.u32 %v6153_v3, 16 }
  0xae   : > { %v4493_v44 = vcombine.low %v1119_v48, %v6399_v35  ;;  %v6408_v9 = vld [vmem:[#allocation2 + $0x80] ss:$0 sps:$4 sm:$0x11]   ;;  %v846_v32 = vsel %vm5900_vm11, %v838_v34, %v845_v47  ;;  %1059 = vst [vmem:[#allocation2 + $0x84] sm:$0xf] %v1058_v19  ;;  %v1062_v49 = vsel %vm5894_vm8, %v847_v14, %v1061_v52  ;;  %v2158_v10 = vrot.slane %v4563_v62, 1 }
  0xaf   : > { %1060 = vst [vmem:[#allocation2 + $0x88] sm:$0xf] %v846_v32  ;;  %1063 = vst [vmem:[#allocation2 + $0x8c] sm:$0x1] %v1062_v49  ;;  %v1565_v37 = vshll.u32 %v6408_v9, 16  ;;  %v2159_v21 = vrot.slane %v5629_v23, 1 }
  0xb0   : > { %v1558_v46 = vshrl.u32 %v4493_v44, 16  ;;  %v1560_v50 = vshll.u32 %v4493_v44, 16  ;;  %v1718_v28 = vrot.slane %v4523_v8, 1  ;;  %v1719_v29 = vrot.slane %v6342_v61, 1  ;;  %v1156_v34 = vld [vmem:[#allocation2 + $0x6c] sm:$0xe] }
  0xb1   : > { %v1567_v53 = vrot.slane %v1565_v37, 1  ;;  %v1181_v48 = vld [vmem:[#allocation2 + $0x78] sm:$0xf]  ;;  %v6436_v19 = vld [vmem:[#allocation2 + $0x7c] sm:$0xf]  ;;  %v1907_v32 = vrot.slane %v1905_v43, 1  ;;  %v4524_v61 = vcombine.low %v1156_v34, %v6362_v59 }
  0xb2   : > { %v1562_v51 = vrot.slane %v1560_v50, 1  ;;  %v1910_v0 = vshll.u32 %v5629_v23, 16  ;;  %v1720_v50 = vsel %vm1693_vm15, %v1718_v28, %v1719_v29  ;;  %v6441_v37 = vcombine.low %v1181_v48, %v6436_v19  ;;  %v1213_v62 = vld [vmem:[#allocation2 + $0x24] sm:$0xe]  ;;  %v1185_v28 = vld [vmem:[#allocation2 + $0x90] sm:$0xf] }
  0xb3   : > { %3504 = vmatmul.mubr.bf16.gmra.mxu1 %v1714_v39  ;;  %v1212_v39 = vld [vmem:[#allocation2 + $0x18] sm:$0xe]  ;;  %v1721_v6 = vrot.slane %v4524_v61, 1  ;;  %v1722_v24 = vrot.slane %v6366_v33, 1  ;;  %v4565_v33 = vcombine.low %v1213_v62, %v6222_v63  ;;  %v1929_v29 = vshll.u32 %v6259_v31, 16  ;;  %v5657_v63 = vld [vmem:[%s7336_s3 + $0x228] sm:$0xff]  }
  0xb4   : > { %3511 = vmatprep.mubr.bf16.mxu1 %v6405_v38  ;;  %v1563_v12 = vor.u32 %v1562_v51, %v1558_v46  ;;  %v5633_v46 = vld [vmem:[#allocation2 + $0x20] ss:$0 sps:$4 sm:$0x11]   ;;  %v4564_v27 = vcombine.low %v1212_v39, %v6187_v17  ;;  %v1912_v56 = vrot.slane %v1910_v0, 1  ;;  %v1157_v17 = vld [vmem:[#allocation2 + $0x78] sm:$0xe] }
  0xb5   : > { %v1121_v16 = vld [vmem:[#allocation2 + $0x84] sm:$0xf]  ;;  %v1922_v8 = vshll.u32 %v5633_v46, 16  ;;  %v1723_v43 = vsel %vm1693_vm15, %v1721_v6, %v1722_v24  ;;  %v1725_v39 = vrot.slane %v6408_v9, 1  ;;  %v1927_v61 = vshrl.u32 %v6259_v31, 16 }
  0xb6   : > { %v1568_v22 = vsel %vm1436_vm0, %v1563_v12, %v1567_v53  ;;  %v6422_v25 = vld [vmem:[#allocation2 + $0x88] sm:$0xf]  ;;  %v6430_v26 = vld [vmem:[#allocation2 + $0x8c] ss:$0 sps:$4 sm:$0x11]   ;;  %v2160_v53 = vsel %vm1693_vm15, %v2158_v10, %v2159_v21  ;;  %v2161_v59 = vrot.slane %v4564_v27, 1 }
  0xb7   : > { %3374 = vmatprep.mubr.bf16.mxu0 %v1568_v22  ;;  %v4494_v52 = vcombine.low %v1121_v16, %v6422_v25  ;;  %v1577_v55 = vshll.u32 %v6430_v26, 16  ;;  %v2162_v12 = vrot.slane %v5633_v46, 1  ;;  %v1183_v16 = vld [vmem:[#allocation2 + $0x84] sm:$0xf]  ;;  %v6450_v23 = vld [vmem:[#allocation2 + $0x88] sm:$0xf] }
  0xb8   : > { %3375 = vmatmul.mubr.bf16.gmra.mxu0 %v4493_v44  ;;  %v1903_v44 = vshrl.u32 %v6153_v3, 16  ;;  %v1917_v3 = vshll.u32 %v6214_v40, 16  ;;  %v1915_v22 = vshrl.u32 %v6214_v40, 16  ;;  %v6459_v10 = vcombine.low %v1183_v16, %v6450_v23  ;;  %v5646_v40 = vld [vmem:[%s7336_s3 + $0x230] sm:$0xff]   ;;  %v1187_v24 = vld [vmem:[#allocation2 + $0x9c] sm:$0xf] }
  0xb9   : > { %v1570_v13 = vshrl.u32 %v4494_v52, 16  ;;  %v1572_v20 = vshll.u32 %v4494_v52, 16  ;;  %v1579_v14 = vrot.slane %v1577_v55, 1  ;;  %v5640_v55 = vld [vmem:[#allocation2 + $0x2c] ss:$0 sps:$4 sm:$0x11]  }
  0xba   : > { %v1908_v54 = vor.u32 %v1907_v32, %v1903_v44  ;;  %v1214_v21 = vld [vmem:[#allocation2 + $0x30] sm:$0xe]  ;;  %v2164_v44 = vrot.slane %v4565_v33, 1  ;;  %v2165_v32 = vrot.slane %v5640_v55, 1  ;;  %v1934_v46 = vshll.u32 %v5640_v55, 16  ;;  %v5678_v55 = vld [vmem:[%s7336_s3 + $0x218] sm:$0xff]  }
  0xbb   : > { %3512 = vmatmul.mubr.bf16.gmra.mxu1 %v1717_v18  ;;  %v1574_v47 = vrot.slane %v1572_v20, 1  ;;  %v1919_v18 = vrot.slane %v1917_v3, 1  ;;  %v2163_v20 = vsel %vm1693_vm15, %v2161_v59, %v2162_v12  ;;  %v4566_v0 = vcombine.low %v1214_v21, %v6269_v11  ;;  %v6486_v59 = vld [vmem:[#allocation2 + $0xa0] sm:$0xf] }
  0xbc   : > { %3519 = vmatprep.mubr.bf16.mxu1 %v6426_v41  ;;  %v1931_v27 = vrot.slane %v1929_v29, 1  ;;  %v1941_v11 = vshll.u32 %v6288_v15, 16  ;;  %v2166_v6 = vsel %vm1693_vm15, %v2164_v44, %v2165_v32  ;;  %v1936_v31 = vrot.slane %v1934_v46, 1  ;;  %v5668_v12 = vld [vmem:[%s7336_s3 + $0x220] sm:$0xff]  }
  0xbd   : > { %v1575_v49 = vor.u32 %v1574_v47, %v1570_v13  ;;  %v4525_v13 = vcombine.low %v1157_v17, %v6399_v35  ;;  %v1920_v34 = vor.u32 %v1919_v18, %v1915_v22  ;;  %v1924_v47 = vrot.slane %v1922_v8, 1  ;;  %v6465_v35 = vld [vmem:[#allocation2 + $0x94] sm:$0xf] }
  0xbe   : > { %v1932_v16 = vor.u32 %v1931_v27, %v1927_v61  ;;  %v2167_v22 = vrot.slane %v4566_v0, 1  ;;  %v1939_v21 = vshrl.u32 %v6288_v15, 16  ;;  %v1953_v32 = vshll.u32 %v6328_v58, 16  ;;  %v5685_v27 = vld [vmem:[%s7336_s3 + $0x210] sm:$0xff]  }
  0xbf   : > { %v1580_v51 = vsel %vm1436_vm0, %v1575_v49, %v1579_v14  ;;  %v4957_v14 = vld [vmem:[%s5842_s24 + $0x78] sm:$0xff]   ;;  %v1724_v48 = vrot.slane %v4525_v13, 1  ;;  %v1158_v49 = vld [vmem:[#allocation2 + $0x84] sm:$0xe]  ;;  %v5739_v13 = vld [vmem:[%s7335_s2] ss:$0 sm:$0xff]  ;;  %s268_s24 = scalar_lea.vmem %s7339_s6, %s7387_s22 }
  0xc0   : > { %3382 = vmatprep.mubr.bf16.mxu0 %v1580_v51  ;;  %v6477_v51 = vld [vmem:[#allocation2 + $0x38] ss:$0 sps:$4 sm:$0x11]   ;;  %v4861_v3 = vunpack.c.l.bf16 %v4957_v14 }
  0xc1   : > { %3383 = vmatmul.mubr.bf16.gmra.mxu0 %v4494_v52  ;;  %v1913_v52 = vsel %vm1436_vm0, %v1908_v54, %v1912_v56  ;;  %v1726_v9 = vsel %vm1693_vm15, %v1724_v48, %v1725_v39  ;;  %v4862_v54 = vunpack.c.h.bf16 %v4957_v14  ;;  %v1215_v56 = vld [vmem:[#allocation2 + $0x3c] sm:$0xe]  ;;  %v2168_v18 = vrot.slane %v6477_v51, 1  ;;  %v6510_v48 = vld [vmem:[#allocation2 + $0x44] ss:$0 sps:$4 sm:$0x11]  }
  0xc2   : > { %3616 = vmatprep.mubr.bf16.mxu0 %v2160_v53  ;;  %v4526_v53 = vcombine.low %v1158_v49, %v6422_v25  ;;  %v5738_v25 = vld [vmem:[%s7334_s1] ss:$0 sm:$0xff]  ;;  %v6508_v14 = vcombine.low %v1187_v24, %v6486_v59  ;;  %v5740_v39 = vld [vmem:[#allocation2 + $0x94] sm:$0xf] }
  0xc3   : > { %3520 = vmatmul.mubr.bf16.gmra.mxu1 %v1720_v50  ;;  %v1925_v50 = vsel %vm1436_vm0, %v1920_v34, %v1924_v47  ;;  %v371_v17 = vmul.f32 %v5738_v25, %v4861_v3  ;;  %v372_v62 = vmul.f32 %v5738_v25, %v4862_v54  ;;  %v1937_v34 = vsel %vm1436_vm0, %v1932_v16, %v1936_v31 }
  0xc4   : > { %3527 = vmatprep.mubr.bf16.mxu1 %v6441_v37  ;;  %v1727_v8 = vrot.slane %v4526_v53, 1  ;;  %v1946_v47 = vshll.u32 %v6477_v51, 16  ;;  %v2169_v49 = vsel %vm1693_vm15, %v2167_v22, %v2168_v18  ;;  %v1189_v51 = vld [vmem:[#allocation2 + $0xa8] sm:$0xf]  ;;  %v2171_v31 = vrot.slane %v6510_v48, 1 }
  0xc5   : > { %v410_v33 = vadd.f32 %v5739_v13, %v371_v17  ;;  %v5692_v17 = vld [vmem:[%s7336_s3 + $0x208] sm:$0xff]   ;;  %v1955_v16 = vrot.slane %v1953_v32, 1  ;;  %v1160_v22 = vld [vmem:[#allocation2 + $0x9c] sm:$0xe] }
  0xc7   : > { %vm442_vm2 = vcmp.ge.f32.partialorder %v410_v33, 0.0 }
  0xc9   : > { %3617 = vmatmul.mubr.bf16.vlgmr.msra.gmra.mxu0 %v1913_v52  ;;  %v1728_v52 = vrot.slane %v6430_v26, 1  ;;  %v474_v26 = vmul.f32 0.1, %v410_v33 }
  0xca   : > { %3624 = vmatprep.mubr.bf16.mxu0 %v2163_v20  ;;  %5446 = vmatpush3.bf16.msra.mxu0 %v6298_v30  ;;  %v6480_v30 = vcombine.low %v1185_v28, %v6465_v35  ;;  %v411_v20 = vadd.f32 %v5739_v13, %v372_v62  ;;  %v1943_v28 = vrot.slane %v1941_v11, 1  ;;  %v1951_v62 = vshrl.u32 %v6328_v58, 16 }
  0xcb   : > { %3528 = vmatmul.mubr.bf16.gmra.mxu1 %v1723_v43  ;;  %5447 = vmatprep.subr.bf16.mxu0 %v5646_v40  ;;  %v1159_v43 = vld [vmem:[#allocation2 + $0x90] sm:$0xe]  ;;  %v506_v44 = vsel %vm442_vm2, %v410_v33, %v474_v26 }
  0xcc   : > { %3535 = vmatprep.mubr.bf16.mxu1 %v6459_v10  ;;  %vm443_vm3 = vcmp.ge.f32.partialorder %v411_v20, 0.0  ;;  %v475_v29 = vmul.f32 0.1, %v411_v20  ;;  %v4527_v15 = vcombine.low %v1159_v43, %v5740_v39  ;;  %v4765_v0 = vpack.c.bf16 %v506_v44, %v506_v44  ;;  %v1217_v39 = vld [vmem:[#allocation2 + $0x54] sm:$0xe] }
  0xcd   : > { %v1958_v43 = vshll.u32 %v6510_v48, 16  ;;  %v6545_v44 = vld [vmem:[#allocation2 + $0xb8] sm:$0xf]  ;;  %v1956_v1 = vor.u32 %v1955_v16, %v1951_v62 }
  0xce   : > { %5448 = vmatpush3.bf16.msra.mxu0 %v5646_v40  ;;  %v4567_v40 = vcombine.low %v1215_v56, %v6308_v42  ;;  %v1729_v42 = vsel %vm1693_vm15, %v1727_v8, %v1728_v52  ;;  %v917_v53 = vshrl.u32 %v4765_v0, 16  ;;  %v920_v3 = vshll.u32 %v4765_v0, 16  ;;  %v1216_v56 = vld [vmem:[#allocation2 + $0x48] sm:$0xe]  ;;  %v1092_v52 = vld [vmem:[#allocation2 + $0xc0] sm:$0xf] }
  0xcf   : > { %5449 = vmatprep.subr.bf16.mxu0 %v5657_v63  ;;  %v1730_v24 = vrot.slane %v4527_v15, 1  ;;  %v1191_v15 = vld [vmem:[#allocation2 + $0xb4] sm:$0xf] }
  0xd0   : > { %v2170_v61 = vrot.slane %v4567_v40, 1  ;;  %v919_v18 = vrot.slane %v917_v53, 7 }
  0xd1   : > { %3625 = vmatmul.mubr.bf16.gmra.mxu0 %v1925_v50  ;;  %v1944_v50 = vor.u32 %v1943_v28, %v1939_v21  ;;  %v5742_v28 = vld [vmem:[#allocation2 + $0xa0] sm:$0xf] }
  0xd2   : > { %3632 = vmatprep.mubr.bf16.mxu0 %v2166_v6  ;;  %5450 = vmatpush3.bf16.msra.mxu0 %v5657_v63  ;;  %v507_v63 = vsel %vm443_vm3, %v411_v20, %v475_v29  ;;  %v1948_v6 = vrot.slane %v1946_v47, 1  ;;  %v922_v13 = vor.u32 %v920_v3, %v919_v18  ;;  %v923_v33 = vrot.slane %v919_v18, 4 }
  0xd3   : > { %3536 = vmatmul.mubr.bf16.gmra.mxu1 %v1726_v9  ;;  %5451 = vmatprep.subr.bf16.mxu0 %v5668_v12  ;;  %v4766_v46 = vpack.c.bf16 %v507_v63, %v507_v63  ;;  %v6518_v9 = vld [vmem:[#allocation2 + $0xac] sm:$0xf]  ;;  %v4528_v26 = vcombine.low %v1160_v22, %v5742_v28  ;;  %v4568_v29 = vcombine.low %v1216_v56, %v6350_v45  ;;  %v5699_v45 = vld [vmem:[%s7336_s3 + $0x200] sm:$0xff]   ;;  %v1960_v63 = vrot.slane %v1958_v43, 1 }
  0xd4   : > { %3543 = vmatprep.mubr.bf16.mxu1 %v6480_v30  ;;  %v1949_v40 = vsel %vm1436_vm0, %v1944_v50, %v1948_v6  ;;  %v6533_v58 = vcombine.low %v1189_v51, %v6518_v9  ;;  %v1093_v48 = vsel %vm5910_vm12, %v922_v13, %v1092_v52  ;;  %v1963_v51 = vshrl.u32 %v6356_v4, 16  ;;  %v5745_v43 = vld [vmem:[#allocation2 + $0xb0] ss:$0 sps:$4 sm:$0x11]   ;;  %v1230_v28 = vld [vmem:[#allocation2 + $0x24] sm:$0xf] }
  0xd5   : > { %v925_v54 = vshrl.u32 %v4766_v46, 16  ;;  %v928_v11 = vshll.u32 %v4766_v46, 16  ;;  %1094 = vst [vmem:[#allocation2 + $0xc0] sm:$0xf] %v1093_v48  ;;  %v1733_v32 = vrot.slane %v4528_v26, 1  ;;  %v2173_v46 = vrot.slane %v4568_v29, 1 }
  0xd6   : > { %5452 = vmatpush3.bf16.msra.mxu0 %v5668_v12  ;;  %v5741_v12 = vld [vmem:[#allocation2 + $0x98] ss:$0 sps:$4 sm:$0x11]   ;;  %v1961_v6 = vsel %vm1436_vm0, %v1956_v1, %v1960_v63  ;;  %v1977_v22 = vshll.u32 %v6382_v2, 16  ;;  %v1737_v13 = vrot.slane %v5745_v43, 1  ;;  %v1989_v48 = vshll.u32 %v6405_v38, 16 }
  0xd7   : > { %5453 = vmatprep.subr.bf16.mxu0 %v5678_v55  ;;  %v1731_v25 = vrot.slane %v5741_v12, 1  ;;  %v6526_v8 = vrot.slane %v925_v54, 7  ;;  %v4569_v54 = vcombine.low %v1217_v39, %v6369_v36  ;;  %v6555_v12 = vcombine.low %v1191_v15, %v6545_v44  ;;  %v1162_v36 = vld [vmem:[#allocation2 + $0xb4] sm:$0xe]  ;;  %v6566_v26 = vld [vmem:[#allocation2 + $0x28] sm:$0xf] }
  0xd8   : > { %v1975_v39 = vshrl.u32 %v6382_v2, 16  ;;  %v1979_v1 = vrot.slane %v1977_v22, 1 }
  0xd9   : > { %3633 = vmatmul.mubr.bf16.gmra.mxu0 %v1937_v34  ;;  %v930_v20 = vor.u32 %v928_v11, %v6526_v8  ;;  %v1732_v21 = vsel %vm1693_vm15, %v1730_v24, %v1731_v25  ;;  %v5655_v34 = vld [vmem:[#allocation2 + $0x50] ss:$0 sps:$4 sm:$0x11]   ;;  %v5744_v11 = vld [vmem:[#allocation2 + $0xac] sm:$0xf]  ;;  %v2176_v18 = vrot.slane %v4569_v54, 1 }
  0xda   : > { %3640 = vmatprep.mubr.bf16.mxu0 %v2169_v49  ;;  %5454 = vmatpush3.bf16.msra.mxu0 %v5678_v55  ;;  %v2172_v55 = vsel %vm1693_vm15, %v2170_v61, %v2171_v31  ;;  %v5743_v49 = vld [vmem:[#allocation2 + $0xa4] ss:$0 sps:$4 sm:$0x11]   ;;  %v2174_v50 = vrot.slane %v5655_v34, 1  ;;  %v1228_v61 = vld [vmem:[#allocation2 + $0x18] sm:$0xf]  ;;  %v4529_v56 = vcombine.low %v1161_v60, %v5744_v11 }
  0xdb   : > { %3544 = vmatmul.mubr.bf16.gmra.mxu1 %v1729_v42  ;;  %5455 = vmatprep.subr.bf16.mxu0 %v5685_v27  ;;  %v931_v47 = vsel %vm5900_vm11, %v923_v33, %v930_v20  ;;  %v1965_v42 = vshll.u32 %v6356_v4, 16  ;;  %v1734_v0 = vrot.slane %v5743_v49, 1  ;;  %v1970_v3 = vshll.u32 %v5655_v34, 16  ;;  %v5662_v31 = vld [vmem:[#allocation2 + $0x5c] ss:$0 sps:$4 sm:$0x11]  }
  0xdc   : > { %3551 = vmatprep.mubr.bf16.mxu1 %v6508_v14  ;;  %1095 = vst [vmem:[#allocation2 + $0xc4] sm:$0xf] %v931_v47  ;;  %v2175_v4 = vsel %vm1693_vm15, %v2173_v46, %v2174_v50  ;;  %v1736_v52 = vrot.slane %v4529_v56, 1  ;;  %v6562_v33 = vld [vmem:[#allocation2 + $0x20] ss:$0 sps:$4 sm:$0x11]  }
  0xdd   : > { %v1967_v53 = vrot.slane %v1965_v42, 1  ;;  %v1735_v24 = vsel %vm1693_vm15, %v1733_v32, %v1734_v0  ;;  %v1972_v16 = vrot.slane %v1970_v3, 1  ;;  %v1219_v60 = vld [vmem:[#allocation2 + $0x6c] sm:$0xe]  ;;  %v1982_v63 = vshll.u32 %v5662_v31, 16 }
  0xde   : > { %5456 = vmatpush3.bf16.msra.mxu0 %v5685_v27  ;;  %v6548_v27 = vld [vmem:[#allocation2 + $0x1c] sm:$0xf]  ;;  %v1738_v32 = vsel %vm1693_vm15, %v1736_v52, %v1737_v13  ;;  %v5746_v49 = vld [vmem:[#allocation2 + $0xb8] sm:$0xf]  ;;  %v932_v0 = vrot.slane %v6526_v8, 4  ;;  %v4571_v54 = vcombine.low %v1219_v60, %v6418_v5  ;;  %v1980_v8 = vor.u32 %v1979_v1, %v1975_v39 }
  0xdf   : > { %5457 = vmatprep.subr.bf16.mxu0 %v5692_v17  ;;  %v6558_v25 = vcombine.low %v1228_v61, %v6548_v27  ;;  %v1968_v62 = vor.u32 %v1967_v53, %v1963_v51  ;;  %v6583_v61 = vcombine.low %v1230_v28, %v6566_v26  ;;  %v2374_v53 = vshll.u32 %v6562_v33, 16  ;;  %v1096_v3 = vld [vmem:[#allocation2 + $0xc8] sm:$0x1]  ;;  %v1233_v13 = vld [vmem:[#allocation2 + $0x34] sm:$0xf] }
  0xe0   : > { %v1097_v22 = vsel %vm5894_vm8, %v932_v0, %v1096_v3  ;;  %v2182_v28 = vrot.slane %v4571_v54, 1  ;;  %v1235_v54 = vld [vmem:[#allocation2 + $0x40] sm:$0xf] }
  0xe1   : > { %3641 = vmatmul.mubr.bf16.gmra.mxu0 %v1949_v40  ;;  %v2177_v40 = vrot.slane %v5662_v31, 1  ;;  %v1973_v42 = vsel %vm1436_vm0, %v1968_v62, %v1972_v16  ;;  %v2367_v50 = vshrl.u32 %v6558_v25, 16  ;;  %v1987_v31 = vshrl.u32 %v6405_v38, 16  ;;  %v5747_v16 = vld [vmem:[#allocation2 + $0xbc] ss:$0 sps:$4 sm:$0x11]  }
  0xe2   : > { %3648 = vmatprep.mubr.bf16.mxu0 %v2172_v55  ;;  %5458 = vmatpush3.bf16.msra.mxu0 %v5692_v17  ;;  %v1218_v17 = vld [vmem:[#allocation2 + $0x60] sm:$0xe]  ;;  %v2381_v5 = vshll.u32 %v6583_v61, 16  ;;  %v2376_v43 = vrot.slane %v2374_v53, 1  ;;  %1098 = vst [vmem:[#allocation2 + $0xc8] sm:$0x1] %v1097_v22 }
  0xe3   : > { %3552 = vmatmul.mubr.bf16.gmra.mxu1 %v1732_v21  ;;  %5459 = vmatprep.subr.bf16.mxu0 %v5699_v45  ;;  %v2369_v21 = vshll.u32 %v6558_v25, 16  ;;  %v4570_v29 = vcombine.low %v1218_v17, %v6394_v7  ;;  %v1193_v55 = vld [vmem:[#allocation2 + $0xc0] sm:$0xf]  ;;  %v6569_v34 = vld [vmem:[#allocation2 + $0xc4] sm:$0xf]  ;;  %v4530_v7 = vcombine.low %v1162_v36, %v5746_v49  ;;  %v2178_v2 = vsel %vm1693_vm15, %v2176_v18, %v2177_v40 }
  0xe4   : > { %3559 = vmatprep.mubr.bf16.mxu1 %v6533_v58  ;;  %v6579_v46 = vcombine.low %v1193_v55, %v6569_v34  ;;  %v6590_v17 = vld [vmem:[#allocation2 + $0x74] ss:$0 sps:$4 sm:$0x11]   ;;  %v1740_v36 = vrot.slane %v5747_v16, 1  ;;  %v1232_v38 = vld [vmem:[#allocation2 + $0x30] sm:$0xf] }
  0xe5   : > { %v2371_v51 = vrot.slane %v2369_v21, 1  ;;  %v2179_v11 = vrot.slane %v4570_v29, 1  ;;  %v1739_v62 = vrot.slane %v4530_v7, 1  ;;  %v2379_v39 = vshrl.u32 %v6583_v61, 16  ;;  %v1278_v49 = vld [vmem:[#allocation2 + $0x30] sm:$0xe] }
  0xe6   : > { %5460 = vmatpush3.bf16.msra.mxu0 %v5699_v45  ;;  %v5666_v45 = vld [vmem:[#allocation2 + $0x68] ss:$0 sps:$4 sm:$0x11]   ;;  %v1279_v7 = vld [vmem:[#allocation2 + $0x3c] sm:$0xe]  ;;  %v2183_v0 = vrot.slane %v6590_v17, 1 }
  0xe7   : > { %v2180_v56 = vrot.slane %v5666_v45, 1  ;;  %v1994_v18 = vshll.u32 %v5666_v45, 16  ;;  %v2372_v52 = vor.u32 %v2371_v51, %v2367_v50  ;;  %v1741_v57 = vsel %vm1693_vm15, %v1739_v62, %v1740_v36  ;;  %v6619_v22 = vld [vmem:[#allocation2 + $0x44] ss:$0 sps:$4 sm:$0x11]  }
  0xe8   : > { %v2383_v45 = vrot.slane %v2381_v5, 1  ;;  %v2001_v53 = vshll.u32 %v6426_v41, 16  ;;  %v2184_v16 = vsel %vm1693_vm15, %v2182_v28, %v2183_v0  ;;  %v1999_v36 = vshrl.u32 %v6426_v41, 16  ;;  %v1234_v5 = vld [vmem:[#allocation2 + $0x3c] sm:$0xf] }
  0xe9   : > { %3649 = vmatmul.mubr.bf16.gmra.mxu0 %v1961_v6  ;;  %v1984_v6 = vrot.slane %v1982_v63, 1  ;;  %v2181_v21 = vsel %vm1693_vm15, %v2179_v11, %v2180_v56  ;;  %v1996_v60 = vrot.slane %v1994_v18, 1  ;;  %v2377_v1 = vsel %vm1436_vm0, %v2372_v52, %v2376_v43 }
  0xea   : > { %3656 = vmatprep.mubr.bf16.mxu0 %v2175_v4  ;;  %v5681_v4 = vld [vmem:[#allocation2 + $0x2c] ss:$0 sps:$4 sm:$0x11]   ;;  %v6602_v63 = vcombine.low %v1232_v38, %v1233_v13  ;;  %v2003_v52 = vrot.slane %v2001_v53, 1 }
  0xeb   : > { %3560 = vmatmul.mubr.bf16.gmra.mxu1 %v1735_v24  ;;  %v1991_v24 = vrot.slane %v1989_v48, 1  ;;  %v1985_v40 = vsel %vm1436_vm0, %v1980_v8, %v1984_v6  ;;  %v2386_v29 = vshll.u32 %v5681_v4, 16  ;;  %v1220_v48 = vld [vmem:[#allocation2 + $0x78] sm:$0xe]  ;;  %v2626_v50 = vrot.slane %v5681_v4, 1 }
  0xec   : > { %3567 = vmatprep.mubr.bf16.mxu1 %v6555_v12  ;;  %v5684_v8 = vld [vmem:[#allocation2 + $0x38] ss:$0 sps:$4 sm:$0x11]   ;;  %v6641_v53 = vld [vmem:[#allocation2 + $0x4c] sm:$0xf] }
  0xed   : > { %v2388_v3 = vrot.slane %v2386_v29, 1  ;;  %v2398_v28 = vshll.u32 %v5684_v8, 16 }
  0xee   : > { %v4989_v20 = vpop.f32.mrf.mxu0 }
  0xf0   : > { %v4990_v47 = vpop.f32.mrf.mxu0 }
  0xf1   : > { %v6574_v15 = vadd.f32 %v4990_v47, %v4989_v20  ;;  %3657 = vmatmul.mubr.bf16.gmra.mxu0 %v1973_v42  ;;  %v1276_v20 = vld [vmem:[#allocation2 + $0x18] sm:$0xe]  ;;  %v1277_v47 = vld [vmem:[#allocation2 + $0x24] sm:$0xe]  ;;  %v1992_v42 = vor.u32 %v1991_v24, %v1987_v31  ;;  %v4613_v31 = vcombine.low %v1278_v49, %v1233_v13  ;;  %v4614_v24 = vcombine.low %v1279_v7, %v1235_v54 }
  0xf2   : > { %3664 = vmatprep.mubr.bf16.mxu0 %v2178_v2  ;;  %v6597_v55 = vpop.f32.mrf.mxu0  ;;  %v2623_v2 = vrot.slane %v6562_v33, 1  ;;  %v4612_v51 = vcombine.low %v1277_v47, %v6566_v26  ;;  %v4572_v33 = vcombine.low %v1220_v48, %v6436_v19  ;;  %v2393_v26 = vshll.u32 %v6602_v63, 16 }
  0xf3   : > { %3568 = vmatmul.mubr.bf16.gmra.mxu1 %v1738_v32  ;;  %v4611_v32 = vcombine.low %v1276_v20, %v6548_v27  ;;  %v2384_v27 = vor.u32 %v2383_v45, %v2379_v39  ;;  %v1997_v62 = vsel %vm1436_vm0, %v1992_v42, %v1996_v60  ;;  %v2006_v19 = vshll.u32 %v6590_v17, 16  ;;  %v5675_v20 = vld [vmem:[#allocation2 + $0x80] ss:$0 sps:$4 sm:$0x11]   ;;  %v1221_v60 = vld [vmem:[#allocation2 + $0x84] sm:$0xe] }
  0xf4   : > { %3575 = vmatprep.mubr.bf16.mxu1 %v6579_v46  ;;  %v6609_v11 = vpop.f32.mrf.mxu0  ;;  %v2625_v6 = vrot.slane %v4612_v51, 1  ;;  %v2628_v38 = vrot.slane %v4613_v31, 1  ;;  %v2629_v13 = vrot.slane %v5684_v8, 1  ;;  %v2631_v29 = vrot.slane %v4614_v24, 1  ;;  %v1236_v51 = vld [vmem:[#allocation2 + $0x48] sm:$0xf] }
  0xf5   : > { %v2622_v56 = vrot.slane %v4611_v32, 1  ;;  %v2395_v41 = vrot.slane %v2393_v26, 1  ;;  %v6627_v47 = vcombine.low %v1234_v5, %v1235_v54  ;;  %v2013_v39 = vshll.u32 %v6441_v37, 16 }
  0xf6   : > { %v6622_v18 = vsel %vm1693_vm15, %v2625_v6, %v2626_v50  ;;  %v6630_v42 = vsel %vm1693_vm15, %v2628_v38, %v2629_v13  ;;  %v2008_v32 = vrot.slane %v2006_v19, 1  ;;  %v2185_v49 = vrot.slane %v4572_v33, 1 }
  0xf7   : > { %v6614_v4 = vsel %vm1693_vm15, %v2622_v56, %v2623_v2  ;;  %v2186_v7 = vrot.slane %v5675_v20, 1  ;;  %v2400_v50 = vrot.slane %v2398_v28, 1  ;;  %v2405_v2 = vshll.u32 %v6627_v47, 16 }
  0xf8   : > { %v2011_v56 = vshrl.u32 %v6441_v37, 16  ;;  %v2018_v8 = vshll.u32 %v5675_v20, 16  ;;  %v2410_v33 = vshll.u32 %v6619_v22, 16  ;;  %v6651_v26 = vcombine.low %v1236_v51, %v6641_v53  ;;  %v1222_v20 = vld [vmem:[#allocation2 + $0x90] sm:$0xe] }
  0xf9   : > { %3665 = vmatmul.mubr.bf16.gmra.mxu0 %v1985_v40  ;;  %v2389_v40 = vsel %vm1436_vm0, %v2384_v27, %v2388_v3  ;;  %v5679_v3 = vld [vmem:[#allocation2 + $0x8c] ss:$0 sps:$4 sm:$0x11]   ;;  %v2015_v27 = vrot.slane %v2013_v39, 1  ;;  %v2187_v24 = vsel %vm1693_vm15, %v2185_v49, %v2186_v7  ;;  %v2025_v13 = vshll.u32 %v6459_v10, 16 }
  0xfa   : > { %3672 = vmatprep.mubr.bf16.mxu0 %v2181_v21  ;;  %v2391_v21 = vshrl.u32 %v6602_v63, 16  ;;  %v2020_v19 = vrot.slane %v2018_v8, 1  ;;  %v2189_v38 = vrot.slane %v5679_v3, 1  ;;  %v6666_v39 = vld [vmem:[#allocation2 + $0x58] sm:$0xf]  ;;  %v2023_v7 = vshrl.u32 %v6459_v10, 16 }
  0xfb   : > { %3576 = vmatmul.mubr.bf16.gmra.mxu1 %v1741_v57  ;;  %v2632_v57 = vrot.slane %v6619_v22, 1  ;;  %v2037_v8 = vshll.u32 %v6480_v30, 16 }
  0xfc   : > { %3777 = vmatprep.mubr.bf16.mxu1 %v2377_v1  ;;  %v2004_v1 = vor.u32 %v2003_v52, %v1999_v36  ;;  %v2396_v0 = vor.u32 %v2395_v41, %v2391_v21  ;;  %v2407_v36 = vrot.slane %v2405_v2, 1  ;;  %v2016_v52 = vor.u32 %v2015_v27, %v2011_v56 }
  0xfd   : > { %v6638_v45 = vsel %vm1693_vm15, %v2631_v29, %v2632_v57  ;;  %v2412_v29 = vrot.slane %v2410_v33, 1  ;;  %v2417_v41 = vshll.u32 %v6651_v26, 16  ;;  %v1238_v57 = vld [vmem:[#allocation2 + $0x54] sm:$0xf]  ;;  %v2415_v2 = vshrl.u32 %v6651_v26, 16 }
  0xfe   : > { %v2009_v31 = vsel %vm1436_vm0, %v2004_v1, %v2008_v32  ;;  %v5682_v32 = vld [vmem:[#allocation2 + $0x98] ss:$0 sps:$4 sm:$0x11]   ;;  %v6676_v56 = vcombine.low %v1238_v57, %v6666_v39 }
  0xff   : > { %v4995_v43 = vpop.f32.mrf.mxu0  ;;  %v2192_v10 = vrot.slane %v5682_v32, 1 }
 0x101   : > { %v4996_v48 = vpop.f32.mrf.mxu0  ;;  %3673 = vmatmul.mubr.bf16.gmra.mxu0 %v1997_v62 }
 0x102   : > { %v6633_v17 = vadd.f32 %v4996_v48, %v4995_v43  ;;  %3680 = vmatprep.mubr.bf16.mxu0 %v2184_v16  ;;  %v2401_v16 = vsel %vm1436_vm0, %v2396_v0, %v2400_v50  ;;  %v2027_v0 = vrot.slane %v2025_v13, 1  ;;  %v2030_v50 = vshll.u32 %v5679_v3, 16  ;;  %v1223_v3 = vld [vmem:[#allocation2 + $0x9c] sm:$0xe] }
 0x103   : > { %3778 = vmatmul.mubr.bf16.vlgmr.msra.gmra.mxu1 %v6558_v25  ;;  %v4573_v25 = vcombine.low %v1221_v60, %v6450_v23  ;;  %v6645_v6 = vpop.f32.mrf.mxu0  ;;  %v2403_v23 = vshrl.u32 %v6627_v47, 16  ;;  %v2021_v60 = vsel %vm1436_vm0, %v2016_v52, %v2020_v19  ;;  %v1240_v52 = vld [vmem:[#allocation2 + $0x60] sm:$0xf]  ;;  %v6685_v19 = vld [vmem:[#allocation2 + $0x64] sm:$0xf]  ;;  %v2039_v13 = vrot.slane %v2037_v8, 1 }
 0x104   : > { %3785 = vmatprep.mubr.bf16.mxu1 %v2389_v40  ;;  %v6661_v40 = vld [vmem:[#allocation2 + $0x50] ss:$0 sps:$4 sm:$0x11]   ;;  %v2032_v33 = vrot.slane %v2030_v50, 1 }
 0x105   : > { %v2188_v43 = vrot.slane %v4573_v25, 1  ;;  %v6658_v22 = vpop.f32.mrf.mxu0  ;;  %v2408_v28 = vor.u32 %v2407_v36, %v2403_v23  ;;  %v2422_v25 = vshll.u32 %v6661_v40, 16  ;;  %v2429_v36 = vshll.u32 %v6676_v56, 16 }
 0x107   : > { %v5061_v54 = vpop.f32.mrf.mxu1  ;;  %v2190_v1 = vsel %vm1693_vm15, %v2188_v43, %v2189_v38  ;;  %v2413_v51 = vsel %vm1436_vm0, %v2408_v28, %v2412_v29  ;;  %v2424_v23 = vrot.slane %v2422_v25, 1  ;;  %v4575_v43 = vcombine.low %v1223_v3, %v6486_v59  ;;  %v5686_v28 = vld [vmem:[#allocation2 + $0xa4] ss:$0 sps:$4 sm:$0x11]  }
 0x108   : > { %v2427_v29 = vshrl.u32 %v6676_v56, 16  ;;  %v6703_v25 = vld [vmem:[#allocation2 + $0x68] ss:$0 sps:$4 sm:$0x11]  }
 0x109   : > { %v5062_v62 = vpop.f32.mrf.mxu1  ;;  %3681 = vmatmul.mubr.bf16.gmra.mxu0 %v2009_v31 }
 0x10a   : > { %v6655_v37 = vadd.f32 %v5062_v62, %v5061_v54  ;;  %3688 = vmatprep.mubr.bf16.mxu0 %v2187_v24  ;;  %v2419_v54 = vrot.slane %v2417_v41, 1  ;;  %v2028_v24 = vor.u32 %v2027_v0, %v2023_v7  ;;  %v6682_v62 = vld [vmem:[#allocation2 + $0x5c] ss:$0 sps:$4 sm:$0x11]   ;;  %v2049_v7 = vshll.u32 %v6508_v14, 16 }
 0x10b   : > { %v5064_v5 = vpop.f32.mrf.mxu1  ;;  %3786 = vmatmul.mubr.bf16.gmra.mxu1 %v6583_v61  ;;  %v4574_v61 = vcombine.low %v1222_v20, %v6465_v35  ;;  %v2434_v41 = vshll.u32 %v6682_v62, 16 }
 0x10c   : > { %3793 = vmatprep.mubr.bf16.mxu1 %v2401_v16  ;;  %v2420_v16 = vor.u32 %v2419_v54, %v2415_v2  ;;  %v2033_v20 = vsel %vm1436_vm0, %v2028_v24, %v2032_v33  ;;  %v2194_v2 = vrot.slane %v4575_v43, 1  ;;  %v1242_v24 = vld [vmem:[#allocation2 + $0x6c] sm:$0xf]  ;;  %v6710_v33 = vld [vmem:[#allocation2 + $0x70] sm:$0xf] }
 0x10d   : > { %v5065_v21 = vpop.f32.mrf.mxu1  ;;  %v2191_v31 = vrot.slane %v4574_v61, 1  ;;  %v2436_v8 = vrot.slane %v2434_v41, 1 }
 0x10e   : > { %v6664_v48 = vadd.f32 %v5065_v21, %v5064_v5  ;;  %v2042_v21 = vshll.u32 %v5682_v32, 16  ;;  %v2425_v61 = vsel %vm1436_vm0, %v2420_v16, %v2424_v23  ;;  %v1224_v32 = vld [vmem:[#allocation2 + $0xa8] sm:$0xe]  ;;  %v2047_v16 = vshrl.u32 %v6508_v14, 16 }
 0x10f   : > { %v5001_v49 = vpop.f32.mrf.mxu0  ;;  %v2193_v38 = vsel %vm1693_vm15, %v2191_v31, %v2192_v10  ;;  %v2051_v23 = vrot.slane %v2049_v7, 1  ;;  %v6726_v7 = vld [vmem:[#allocation2 + $0x74] ss:$0 sps:$4 sm:$0x11]  }
 0x110   : > { %v2044_v50 = vrot.slane %v2042_v21, 1 }
 0x111   : > { %v5002_v35 = vpop.f32.mrf.mxu0  ;;  %3689 = vmatmul.mubr.bf16.gmra.mxu0 %v2021_v60  ;;  %v2431_v60 = vrot.slane %v2429_v36, 1  ;;  %v2054_v36 = vshll.u32 %v5686_v28, 16  ;;  %v2052_v14 = vor.u32 %v2051_v23, %v2047_v16 }
 0x112   : > { %v6678_v27 = vadd.f32 %v5002_v35, %v5001_v49  ;;  %3696 = vmatprep.mubr.bf16.mxu0 %v2190_v1  ;;  %v6699_v49 = vcombine.low %v1240_v52, %v6685_v19 }
 0x113   : > { %3794 = vmatmul.mubr.bf16.gmra.mxu1 %v6602_v63  ;;  %v2035_v63 = vshrl.u32 %v6480_v30, 16  ;;  %v6696_v59 = vpop.f32.mrf.mxu0  ;;  %v2432_v35 = vor.u32 %v2431_v60, %v2427_v29  ;;  %v6720_v29 = vcombine.low %v1242_v24, %v6710_v33  ;;  %v1225_v60 = vld [vmem:[#allocation2 + $0xb4] sm:$0xe]  ;;  %v5693_v24 = vld [vmem:[#allocation2 + $0xbc] ss:$0 sps:$4 sm:$0x11]  }
 0x114   : > { %3801 = vmatprep.mubr.bf16.mxu1 %v2413_v51  ;;  %v2195_v51 = vrot.slane %v5686_v28, 1  ;;  %v2441_v3 = vshll.u32 %v6699_v49, 16 }
 0x115   : > { %v2040_v0 = vor.u32 %v2039_v13, %v2035_v63  ;;  %v6705_v31 = vpop.f32.mrf.mxu0  ;;  %v2437_v63 = vsel %vm1436_vm0, %v2432_v35, %v2436_v8  ;;  %v2439_v13 = vshrl.u32 %v6699_v49, 16 }
 0x116   : > { %v2196_v43 = vsel %vm1693_vm15, %v2194_v2, %v2195_v51  ;;  %v2453_v2 = vshll.u32 %v6720_v29, 16  ;;  %v1244_v51 = vld [vmem:[#allocation2 + $0x78] sm:$0xf] }
 0x117   : > { %v5067_v5 = vpop.f32.mrf.mxu1  ;;  %v2045_v52 = vsel %vm1436_vm0, %v2040_v0, %v2044_v50 }
 0x119   : > { %v5068_v57 = vpop.f32.mrf.mxu1  ;;  %3697 = vmatmul.mubr.bf16.gmra.mxu0 %v2033_v20  ;;  %v2443_v20 = vrot.slane %v2441_v3, 1  ;;  %v2059_v3 = vshrl.u32 %v6533_v58, 16 }
 0x11a   : > { %v6694_v1 = vadd.f32 %v5068_v57, %v5067_v5  ;;  %3704 = vmatprep.mubr.bf16.mxu0 %v2193_v38  ;;  %v5689_v5 = vld [vmem:[#allocation2 + $0xb0] ss:$0 sps:$4 sm:$0x11]   ;;  %v2446_v38 = vshll.u32 %v6703_v25, 16 }
 0x11b   : > { %v5070_v30 = vpop.f32.mrf.mxu1  ;;  %3802 = vmatmul.mubr.bf16.gmra.mxu1 %v6627_v47  ;;  %v4576_v47 = vcombine.low %v1224_v32, %v6518_v9  ;;  %v2056_v9 = vrot.slane %v2054_v36, 1  ;;  %v2198_v41 = vrot.slane %v5689_v5, 1  ;;  %v2444_v32 = vor.u32 %v2443_v20, %v2439_v13 }
 0x11c   : > { %3809 = vmatprep.mubr.bf16.mxu1 %v2425_v61  ;;  %v2061_v61 = vshll.u32 %v6533_v58, 16  ;;  %v2448_v0 = vrot.slane %v2446_v38, 1  ;;  %v2066_v23 = vshll.u32 %v5689_v5, 16  ;;  %v2451_v38 = vshrl.u32 %v6720_v29, 16 }
 0x11d   : > { %v5071_v54 = vpop.f32.mrf.mxu1  ;;  %v2197_v28 = vrot.slane %v4576_v47, 1  ;;  %v2057_v35 = vsel %vm1436_vm0, %v2052_v14, %v2056_v9  ;;  %v2073_v13 = vshll.u32 %v6555_v12, 16  ;;  %v2201_v20 = vrot.slane %v5693_v24, 1 }
 0x11e   : > { %v6707_v10 = vadd.f32 %v5071_v54, %v5070_v30  ;;  %v6729_v54 = vld [vmem:[#allocation2 + $0x7c] sm:$0xf]  ;;  %v2063_v16 = vrot.slane %v2061_v61, 1  ;;  %v2068_v9 = vrot.slane %v2066_v23, 1 }
 0x11f   : > { %v2199_v8 = vsel %vm1693_vm15, %v2197_v28, %v2198_v41  ;;  %v6745_v28 = vld [vmem:[#allocation2 + $0x80] ss:$0 sps:$4 sm:$0x11]  }
 0x120   : > { %v2064_v14 = vor.u32 %v2063_v16, %v2059_v3  ;;  %v2078_v3 = vshll.u32 %v5693_v24, 16  ;;  %v2470_v23 = vshll.u32 %v6745_v28, 16 }
 0x121   : > { %v5007_v21 = vpop.f32.mrf.mxu0  ;;  %3705 = vmatmul.mubr.bf16.gmra.mxu0 %v2045_v52  ;;  %v2458_v52 = vshll.u32 %v6726_v7, 16 }
 0x122   : > { %3712 = vmatprep.mubr.bf16.mxu0 %v2196_v43  ;;  %v2449_v43 = vsel %vm1436_vm0, %v2444_v32, %v2448_v0  ;;  %v1246_v0 = vld [vmem:[#allocation2 + $0x84] sm:$0xf] }
 0x123   : > { %3810 = vmatmul.mubr.bf16.gmra.mxu1 %v6651_v26  ;;  %v5008_v57 = vpop.f32.mrf.mxu0  ;;  %v4577_v26 = vcombine.low %v1225_v60, %v6545_v44  ;;  %v6741_v44 = vcombine.low %v1244_v51, %v6729_v54  ;;  %v2460_v61 = vrot.slane %v2458_v52, 1  ;;  %v2071_v51 = vshrl.u32 %v6555_v12, 16 }
 0x124   : > { %3817 = vmatprep.mubr.bf16.mxu1 %v2437_v63  ;;  %v6724_v30 = vadd.f32 %v5008_v57, %v5007_v21  ;;  %v2455_v63 = vrot.slane %v2453_v2, 1  ;;  %v1226_v21 = vld [vmem:[#allocation2 + $0xc0] sm:$0xe] }
 0x125   : > { %v5010_v50 = vpop.f32.mrf.mxu0  ;;  %v2200_v58 = vrot.slane %v4577_v26, 1  ;;  %v2465_v60 = vshll.u32 %v6741_v44, 16 }
 0x126   : > { %v2456_v57 = vor.u32 %v2455_v63, %v2451_v38  ;;  %v2463_v38 = vshrl.u32 %v6741_v44, 16 }
 0x127   : > { %v5011_v47 = vpop.f32.mrf.mxu0  ;;  %v2202_v2 = vsel %vm1693_vm15, %v2200_v58, %v2201_v20  ;;  %v2467_v63 = vrot.slane %v2465_v60, 1  ;;  %v2085_v20 = vshll.u32 %v6579_v46, 16 }
 0x128   : > { %v6735_v36 = vadd.f32 %v5011_v47, %v5010_v50  ;;  %v6750_v50 = vld [vmem:[#allocation2 + $0x88] sm:$0xf] }
 0x129   : > { %3713 = vmatmul.mubr.bf16.gmra.mxu0 %v2057_v35  ;;  %v2069_v35 = vsel %vm1436_vm0, %v2064_v14, %v2068_v9  ;;  %v5696_v47 = vld [vmem:[#allocation2 + $0xc8] ss:$0 sps:$4 sm:$0x11]  }
 0x12a   : > { %3720 = vmatprep.mubr.bf16.mxu0 %v2199_v8  ;;  %v2075_v8 = vrot.slane %v2073_v13, 1  ;;  %v2204_v14 = vrot.slane %v5696_v47, 1 }
 0x12b   : > { %3818 = vmatmul.mubr.bf16.gmra.mxu1 %v6676_v56  ;;  %v5073_v5 = vpop.f32.mrf.mxu1  ;;  %v4578_v56 = vcombine.low %v1226_v21, %v6569_v34  ;;  %v6760_v34 = vcombine.low %v1246_v0, %v6750_v50 }
 0x12c   : > { %3825 = vmatprep.mubr.bf16.mxu1 %v2449_v43  ;;  %v2461_v43 = vsel %vm1436_vm0, %v2456_v57, %v2460_v61  ;;  %v2076_v13 = vor.u32 %v2075_v8, %v2071_v51  ;;  %v2472_v57 = vrot.slane %v2470_v23, 1  ;;  %v6768_v61 = vld [vmem:[#allocation2 + $0x8c] ss:$0 sps:$4 sm:$0x11]   ;;  %v2090_v8 = vshll.u32 %v5696_v47, 16 }
 0x12d   : > { %v5074_v41 = vpop.f32.mrf.mxu1  ;;  %v2203_v21 = vrot.slane %v4578_v56, 1  ;;  %v2477_v60 = vshll.u32 %v6760_v34, 16 }
 0x12e   : > { %v6748_v32 = vadd.f32 %v5074_v41, %v5073_v5  ;;  %v2080_v5 = vrot.slane %v2078_v3, 1  ;;  %v2468_v41 = vor.u32 %v2467_v63, %v2463_v38  ;;  %v2475_v3 = vshrl.u32 %v6760_v34, 16 }
 0x12f   : > { %v5076_v26 = vpop.f32.mrf.mxu1  ;;  %v2205_v51 = vsel %vm1693_vm15, %v2203_v21, %v2204_v14 }
 0x130   : > { %v2081_v56 = vsel %vm1436_vm0, %v2076_v13, %v2080_v5  ;;  %v2473_v23 = vsel %vm1436_vm0, %v2468_v41, %v2472_v57  ;;  %v6790_v41 = vld [vmem:[#allocation2 + $0xa0] sm:$0xf] }
 0x131   : > { %v5013_v16 = vpop.f32.mrf.mxu0  ;;  %v5077_v52 = vpop.f32.mrf.mxu1  ;;  %3721 = vmatmul.mubr.bf16.gmra.mxu0 %v2069_v35  ;;  %v6771_v35 = vld [vmem:[#allocation2 + $0x94] sm:$0xf] }
 0x132   : > { %v6762_v58 = vadd.f32 %v5077_v52, %v5076_v26  ;;  %3728 = vmatprep.mubr.bf16.mxu0 %v2202_v2  ;;  %v1248_v26 = vld [vmem:[#allocation2 + $0x90] sm:$0xf]  ;;  %v2479_v52 = vrot.slane %v2477_v60, 1 }
 0x133   : > { %v5014_v12 = vpop.f32.mrf.mxu0  ;;  %3826 = vmatmul.mubr.bf16.gmra.mxu1 %v6699_v49  ;;  %v2083_v49 = vshrl.u32 %v6579_v46, 16  ;;  %v6782_v38 = vcombine.low %v1248_v26, %v6771_v35 }
 0x134   : > { %v6766_v24 = vadd.f32 %v5014_v12, %v5013_v16  ;;  %3833 = vmatprep.mubr.bf16.mxu1 %v2461_v43  ;;  %v2087_v16 = vrot.slane %v2085_v20, 1  ;;  %v2482_v43 = vshll.u32 %v6768_v61, 16  ;;  %v2092_v12 = vrot.slane %v2090_v8, 1  ;;  %v6785_v20 = vld [vmem:[#allocation2 + $0x98] ss:$0 sps:$4 sm:$0x11]  }
 0x135   : > { %v5016_v9 = vpop.f32.mrf.mxu0  ;;  %v2480_v13 = vor.u32 %v2479_v52, %v2475_v3  ;;  %v2489_v21 = vshll.u32 %v6782_v38, 16 }
 0x136   : > { %v2088_v63 = vor.u32 %v2087_v16, %v2083_v49  ;;  %v2484_v5 = vrot.slane %v2482_v43, 1  ;;  %v2487_v49 = vshrl.u32 %v6782_v38, 16  ;;  %v1280_v43 = vld [vmem:[#allocation2 + $0x48] sm:$0xe] }
 0x137   : > { %v5017_v0 = vpop.f32.mrf.mxu0  ;;  %v2491_v16 = vrot.slane %v2489_v21, 1  ;;  %v6806_v21 = vld [vmem:[#allocation2 + $0xac] sm:$0xf] }
 0x138   : > { %v6774_v2 = vadd.f32 %v5017_v0, %v5016_v9  ;;  %v1250_v9 = vld [vmem:[#allocation2 + $0x9c] sm:$0xf]  ;;  %v2093_v60 = vsel %vm1436_vm0, %v2088_v63, %v2092_v12  ;;  %v2485_v26 = vsel %vm1436_vm0, %v2480_v13, %v2484_v5  ;;  %v1252_v5 = vld [vmem:[#allocation2 + $0xa8] sm:$0xf] }
 0x139   : > { %3729 = vmatmul.mubr.bf16.gmra.mxu0 %v2081_v56  ;;  %v6797_v56 = vcombine.low %v1250_v9, %v6790_v41 }
 0x13a   : > { %3736 = vmatprep.mubr.bf16.mxu0 %v2205_v51 }
 0x13b   : > { %v5079_v46 = vpop.f32.mrf.mxu1  ;;  %3834 = vmatmul.mubr.bf16.gmra.mxu1 %v6720_v29  ;;  %v2494_v29 = vshll.u32 %v6785_v20, 16  ;;  %v2501_v12 = vshll.u32 %v6797_v56, 16 }
 0x13c   : > { %3841 = vmatprep.mubr.bf16.mxu1 %v2473_v23  ;;  %v6803_v23 = vld [vmem:[#allocation2 + $0xa4] ss:$0 sps:$4 sm:$0x11]  }
 0x13d   : > { %v5080_v47 = vpop.f32.mrf.mxu1  ;;  %v2496_v63 = vrot.slane %v2494_v29, 1 }
 0x13e   : > { %v6788_v14 = vadd.f32 %v5080_v47, %v5079_v46  ;;  %v2492_v46 = vor.u32 %v2491_v16, %v2487_v49  ;;  %v2499_v49 = vshrl.u32 %v6797_v56, 16  ;;  %v2503_v16 = vrot.slane %v2501_v12, 1 }
 0x13f   : > { %v5082_v57 = vpop.f32.mrf.mxu1  ;;  %v2635_v12 = vrot.slane %v6661_v40, 1 }
 0x140   : > { %v2497_v29 = vsel %vm1436_vm0, %v2492_v46, %v2496_v63 }
 0x141   : > { %v5083_v0 = vpop.f32.mrf.mxu1  ;;  %3737 = vmatmul.mubr.bf16.gmra.mxu0 %v2093_v60  ;;  %v4615_v60 = vcombine.low %v1280_v43, %v6641_v53  ;;  %v1281_v43 = vld [vmem:[#allocation2 + $0x54] sm:$0xe] }
 0x142   : > { %v6799_v51 = vadd.f32 %v5083_v0, %v5082_v57  ;;  %5461 = vmatprep.mubr.bf16.mxu0 %v6614_v4  ;;  %v2506_v0 = vshll.u32 %v6803_v23, 16 }
 0x143   : > { %v5101_v8 = vpop.f32.mrf.mxu1  ;;  %3842 = vmatmul.mubr.bf16.gmra.mxu1 %v6741_v44  ;;  %v5019_v3 = vpop.f32.mrf.mxu0  ;;  %v2634_v63 = vrot.slane %v4615_v60, 1 }
 0x144   : > { %7346 = vst [vmem:[#allocation3_spill] sm:$0xff] %v6799_v51  ;;  %3849 = vmatprep.mubr.bf16.mxu1 %v2485_v26  ;;  %v6860_v51 = vld [vmem:[#allocation2 + $0xc4] sm:$0xf] }
 0x145   : > { %v5102_v52 = vpop.f32.mrf.mxu1  ;;  %v5020_v47 = vpop.f32.mrf.mxu0  ;;  %v2636_v60 = vsel %vm1693_vm15, %v2634_v63, %v2635_v12 }
 0x146   : > { %v5103_v13 = vadd.f32 %v5102_v52, %v5101_v8  ;;  %v6808_v9 = vadd.f32 %v5020_v47, %v5019_v3  ;;  %v6818_v8 = vcombine.low %v1252_v5, %v6806_v21  ;;  %v4994_v3 = vadd.f32 %v6609_v11, %v6597_v55  ;;  %v1282_v11 = vld [vmem:[#allocation2 + $0x60] sm:$0xe] }
 0x147   : > { %v5104_v44 = vpop.f32.mrf.mxu1  ;;  %v5022_v57 = vpop.f32.mrf.mxu0  ;;  %v2504_v5 = vor.u32 %v2503_v16, %v2499_v49 }
 0x148   : > { %v6811_v4 = vadd.f32 %v5103_v13, %v6574_v15  ;;  %v6830_v13 = vld [vmem:[#allocation2 + $0xb0] ss:$0 sps:$4 sm:$0x11]  }
 0x149   : > { %v5105_v26 = vpop.f32.mrf.mxu1  ;;  %v5023_v52 = vpop.f32.mrf.mxu0  ;;  %5462 = vmatmul.mubr.bf16.vlgmr.msra.gmra.mxu0 %v6622_v18  ;;  %v2508_v18 = vrot.slane %v2506_v0, 1  ;;  %v2518_v49 = vshll.u32 %v6830_v13, 16 }
 0x14a   : > { %v5106_v15 = vadd.f32 %v5105_v26, %v5104_v44  ;;  %v6823_v47 = vadd.f32 %v5023_v52, %v5022_v57  ;;  %5465 = vmatprep.mubr.bf16.mxu0 %v6630_v42  ;;  %v2513_v44 = vshll.u32 %v6818_v8, 16  ;;  %v1254_v26 = vld [vmem:[#allocation2 + $0xb4] sm:$0xf]  ;;  %v4616_v42 = vcombine.low %v1281_v43, %v6666_v39 }
 0x14b   : > { %v5107_v53 = vpop.f32.mrf.mxu1  ;;  %3850 = vmatmul.mubr.bf16.gmra.mxu1 %v6760_v34  ;;  %v6833_v34 = vld [vmem:[#allocation2 + $0xb8] sm:$0xf]  ;;  %v2509_v16 = vsel %vm1436_vm0, %v2504_v5, %v2508_v18  ;;  %v5000_v39 = vadd.f32 %v6658_v22, %v6645_v6  ;;  %v2641_v6 = vrot.slane %v6703_v25, 1  ;;  %v6857_v22 = vld [vmem:[#allocation2 + $0xbc] ss:$0 sps:$4 sm:$0x11]  }
 0x14c   : > { %v6827_v46 = vadd.f32 %v5106_v15, %v4994_v3  ;;  %3857 = vmatprep.mubr.bf16.mxu1 %v2497_v29  ;;  %v4617_v29 = vcombine.low %v1282_v11, %v6685_v19  ;;  %v2511_v15 = vshrl.u32 %v6818_v8, 16  ;;  %v1283_v11 = vld [vmem:[#allocation2 + $0x6c] sm:$0xe]  ;;  %v1284_v5 = vld [vmem:[#allocation2 + $0x78] sm:$0xe]  ;;  %v2637_v18 = vrot.slane %v4616_v42, 1 }
 0x14d   : > { %v5108_v55 = vpop.f32.mrf.mxu1  ;;  %v4619_v25 = vcombine.low %v1284_v5, %v6729_v54  ;;  %v5006_v54 = vadd.f32 %v6705_v31, %v6696_v59  ;;  %v6886_v59 = vld [vmem:[#allocation2 + $0xc8] ss:$0 sps:$4 sm:$0x11]  }
 0x14e   : > { %v5109_v57 = vadd.f32 %v5108_v55, %v5107_v53  ;;  %v2515_v53 = vrot.slane %v2513_v44, 1  ;;  %v6845_v55 = vcombine.low %v1254_v26, %v6833_v34  ;;  %v2640_v26 = vrot.slane %v4617_v29, 1 }
 0x14f   : > { %v5110_v3 = vpop.f32.mrf.mxu1 }
 0x150   : > { %v5025_v52 = vpop.f32.mrf.mxu0  ;;  %v6838_v40 = vadd.f32 %v5109_v57, %v6633_v17  ;;  %v2638_v17 = vrot.slane %v6682_v62, 1  ;;  %v2516_v62 = vor.u32 %v2515_v53, %v2511_v15  ;;  %v2530_v15 = vshll.u32 %v6857_v22, 16 }
 0x151   : > { %v5111_v0 = vpop.f32.mrf.mxu1  ;;  %5466 = vmatmul.mubr.bf16.gmra.mxu0 %v6638_v45 }
 0x152   : > { %v5026_v43 = vpop.f32.mrf.mxu0  ;;  %v5112_v63 = vadd.f32 %v5111_v0, %v5110_v3  ;;  %5469 = vmatprep.mubr.bf16.mxu0 %v2636_v60  ;;  %v2520_v3 = vrot.slane %v2518_v49, 1  ;;  %v4618_v60 = vcombine.low %v1283_v11, %v6710_v33 }
 0x153   : > { %v6851_v19 = vadd.f32 %v5026_v43, %v5025_v52  ;;  %v5113_v12 = vpop.f32.mrf.mxu1  ;;  %3858 = vmatmul.mubr.bf16.gmra.mxu1 %v6782_v38  ;;  %v2525_v52 = vshll.u32 %v6845_v55, 16  ;;  %v1256_v43 = vld [vmem:[#allocation2 + $0xc0] sm:$0xf] }
 0x154   : > { %v5028_v44 = vpop.f32.mrf.mxu0  ;;  %v6854_v57 = vadd.f32 %v5112_v63, %v5000_v39  ;;  %3865 = vmatprep.mubr.bf16.mxu1 %v2509_v16  ;;  %v2639_v16 = vsel %vm1693_vm15, %v2637_v18, %v2638_v17  ;;  %v2642_v39 = vsel %vm1693_vm15, %v2640_v26, %v2641_v6  ;;  %v6875_v33 = vcombine.low %v1256_v43, %v6860_v51 }
 0x155   : > { %v5114_v45 = vpop.f32.mrf.mxu1  ;;  %v2643_v11 = vrot.slane %v4618_v60, 1  ;;  %v2646_v18 = vrot.slane %v4619_v25, 1  ;;  %v2647_v26 = vrot.slane %v6745_v28, 1  ;;  %v2532_v43 = vrot.slane %v2530_v15, 1  ;;  %v6889_v25 = vld [vmem:[#allocation2 + $0xd0] sm:$0xf] }
 0x156   : > { %v5029_v0 = vpop.f32.mrf.mxu0  ;;  %v5115_v38 = vadd.f32 %v5114_v45, %v5113_v12  ;;  %v2521_v12 = vsel %vm1436_vm0, %v2516_v62, %v2520_v3  ;;  %v2527_v45 = vrot.slane %v2525_v52, 1  ;;  %v1285_v52 = vld [vmem:[#allocation2 + $0x84] sm:$0xe]  ;;  %v2537_v60 = vshll.u32 %v6875_v33, 16 }
 0x157   : > { %v6862_v42 = vadd.f32 %v5029_v0, %v5028_v44  ;;  %v5116_v29 = vpop.f32.mrf.mxu1  ;;  %v2523_v44 = vshrl.u32 %v6845_v55, 16 }
 0x158   : > { %v6869_v49 = vadd.f32 %v5115_v38, %v6678_v27  ;;  %v2644_v27 = vrot.slane %v6726_v7, 1  ;;  %v1286_v38 = vld [vmem:[#allocation2 + $0x90] sm:$0xe] }
 0x159   : > { %v5031_v53 = vpop.f32.mrf.mxu0  ;;  %v5117_v63 = vpop.f32.mrf.mxu1  ;;  %5470 = vmatmul.mubr.bf16.gmra.mxu0 %v2639_v16  ;;  %v2528_v7 = vor.u32 %v2527_v45, %v2523_v44  ;;  %v4621_v15 = vcombine.low %v1286_v38, %v6771_v35  ;;  %v2542_v44 = vshll.u32 %v6886_v59, 16 }
 0x15a   : > { %v5118_v17 = vadd.f32 %v5117_v63, %v5116_v29  ;;  %5473 = vmatprep.mubr.bf16.mxu0 %v2642_v39  ;;  %v1258_v29 = vld [vmem:[#allocation2 + $0xcc] sm:$0xf]  ;;  %v2648_v39 = vsel %vm1693_vm15, %v2646_v18, %v2647_v26  ;;  %v2650_v26 = vrot.slane %v6768_v61, 1 }
 0x15b   : > { %v5032_v5 = vpop.f32.mrf.mxu0  ;;  %v5119_v6 = vpop.f32.mrf.mxu1  ;;  %3866 = vmatmul.mubr.bf16.gmra.mxu1 %v6797_v56  ;;  %v2645_v56 = vsel %vm1693_vm15, %v2643_v11, %v2644_v27  ;;  %v2535_v11 = vshrl.u32 %v6875_v33, 16  ;;  %v2539_v27 = vrot.slane %v2537_v60, 1  ;;  %v2544_v60 = vrot.slane %v2542_v44, 1 }
 0x15c   : > { %v6882_v62 = vadd.f32 %v5032_v5, %v5031_v53  ;;  %v6884_v3 = vadd.f32 %v5118_v17, %v5006_v54  ;;  %3873 = vmatprep.mubr.bf16.mxu1 %v2521_v12  ;;  %v4620_v53 = vcombine.low %v1285_v52, %v6750_v50  ;;  %v2533_v17 = vsel %vm1436_vm0, %v2528_v7, %v2532_v43  ;;  %v1288_v7 = vld [vmem:[#allocation2 + $0xa8] sm:$0xe] }
 0x15d   : > { %v5034_v31 = vpop.f32.mrf.mxu0  ;;  %v5120_v0 = vpop.f32.mrf.mxu1  ;;  %v6904_v5 = vcombine.low %v1258_v29, %v6889_v25  ;;  %v2653_v52 = vrot.slane %v6785_v20, 1  ;;  %v2540_v43 = vor.u32 %v2539_v27, %v2535_v11 }
 0x15e   : > { %v5121_v28 = vadd.f32 %v5120_v0, %v5119_v6  ;;  %v2649_v18 = vrot.slane %v4620_v53, 1  ;;  %v2652_v6 = vrot.slane %v4621_v15, 1 }
 0x15f   : > { %v5035_v16 = vpop.f32.mrf.mxu0  ;;  %v5122_v63 = vpop.f32.mrf.mxu1 }
 0x160   : > { %v6894_v12 = vadd.f32 %v5035_v16, %v5034_v31  ;;  %v6897_v54 = vadd.f32 %v5121_v28, %v6724_v30  ;;  %v1287_v31 = vld [vmem:[#allocation2 + $0x9c] sm:$0xe]  ;;  %v2549_v28 = vshll.u32 %v6904_v5, 16  ;;  %v2651_v29 = vsel %vm1693_vm15, %v2649_v18, %v2650_v26  ;;  %v6915_v16 = vld [vmem:[#allocation2 + $0xd4] ss:$0 sps:$4 sm:$0x11]  }
 0x161   : > { %v5123_v45 = vpop.f32.mrf.mxu1  ;;  %5474 = vmatmul.mubr.bf16.gmra.mxu0 %v2645_v56  ;;  %v4622_v56 = vcombine.low %v1287_v31, %v6790_v41  ;;  %v2654_v20 = vsel %vm1693_vm15, %v2652_v6, %v2653_v52  ;;  %v2554_v41 = vshll.u32 %v6915_v16, 16  ;;  %v2659_v52 = vrot.slane %v6830_v13, 1  ;;  %v1289_v31 = vld [vmem:[#allocation2 + $0xb4] sm:$0xe] }
 0x162   : > { %v5124_v50 = vadd.f32 %v5123_v45, %v5122_v63  ;;  %5477 = vmatprep.mubr.bf16.mxu0 %v2648_v39  ;;  %v4623_v63 = vcombine.low %v1288_v7, %v6806_v21  ;;  %v2545_v45 = vsel %vm1436_vm0, %v2540_v43, %v2544_v60  ;;  %v2551_v11 = vrot.slane %v2549_v28, 1 }
 0x163   : > { %v5125_v30 = vpop.f32.mrf.mxu1  ;;  %3874 = vmatmul.mubr.bf16.gmra.mxu1 %v6818_v8  ;;  %v2656_v21 = vrot.slane %v6803_v23, 1  ;;  %v2556_v7 = vrot.slane %v2554_v41, 1  ;;  %v4624_v23 = vcombine.low %v1289_v31, %v6833_v34  ;;  %v2665_v41 = vrot.slane %v6886_v59, 1 }
 0x164   : > { %v6909_v35 = vadd.f32 %v5124_v50, %v6735_v36  ;;  %3881 = vmatprep.mubr.bf16.mxu1 %v2533_v17  ;;  %v2547_v17 = vshrl.u32 %v6904_v5, 16  ;;  %v2658_v6 = vrot.slane %v4623_v63, 1 }
 0x165   : > { %v5037_v0 = vpop.f32.mrf.mxu0  ;;  %v5126_v38 = vpop.f32.mrf.mxu1  ;;  %v2661_v34 = vrot.slane %v4624_v23, 1 }
 0x166   : > { %v5127_v61 = vadd.f32 %v5126_v38, %v5125_v30  ;;  %v2552_v38 = vor.u32 %v2551_v11, %v2547_v17  ;;  %v2660_v13 = vsel %vm1693_vm15, %v2658_v6, %v2659_v52 }
 0x167   : > { %v5038_v8 = vpop.f32.mrf.mxu0  ;;  %v5128_v36 = vpop.f32.mrf.mxu1 }
 0x168   : > { %v6917_v39 = vadd.f32 %v5038_v8, %v5037_v0  ;;  %v6921_v53 = vadd.f32 %v5127_v61, %v6766_v24  ;;  %v2655_v24 = vrot.slane %v4622_v56, 1 }
 0x169   : > { %v5040_v15 = vpop.f32.mrf.mxu0  ;;  %v5129_v44 = vpop.f32.mrf.mxu1  ;;  %5478 = vmatmul.mubr.bf16.gmra.mxu0 %v2651_v29 }
 0x16a   : > { %v5130_v27 = vadd.f32 %v5129_v44, %v5128_v36  ;;  %5481 = vmatprep.mubr.bf16.mxu0 %v2654_v20  ;;  %v2657_v61 = vsel %vm1693_vm15, %v2655_v24, %v2656_v21  ;;  %v2557_v20 = vsel %vm1436_vm0, %v2552_v38, %v2556_v7  ;;  %v2668_v7 = vrot.slane %v6915_v16, 1 }
 0x16b   : > { %v5041_v50 = vpop.f32.mrf.mxu0  ;;  %v5131_v18 = vpop.f32.mrf.mxu1  ;;  %3882 = vmatmul.mubr.bf16.gmra.mxu1 %v6845_v55  ;;  %v1290_v55 = vld [vmem:[#allocation2 + $0xc0] sm:$0xe] }
 0x16c   : > { %v6928_v26 = vadd.f32 %v5041_v50, %v5040_v15  ;;  %v6932_v30 = vadd.f32 %v5130_v27, %v6774_v2  ;;  %3889 = vmatprep.mubr.bf16.mxu1 %v2545_v45  ;;  %v4625_v36 = vcombine.low %v1290_v55, %v6860_v51  ;;  %v1291_v50 = vld [vmem:[#allocation2 + $0xcc] sm:$0xe] }
 0x16d   : > { %v5132_v0 = vpop.f32.mrf.mxu1  ;;  %v5043_v43 = vpop.f32.mrf.mxu0 }
 0x16e   : > { %v5133_v60 = vadd.f32 %v5132_v0, %v5131_v18  ;;  %v2664_v51 = vrot.slane %v4625_v36, 1 }
 0x16f   : > { %v5134_v28 = vpop.f32.mrf.mxu1  ;;  %v5044_v29 = vpop.f32.mrf.mxu0 }
 0x170   : > { %v6938_v2 = vadd.f32 %v5133_v60, %v6808_v9  ;;  %v6940_v8 = vadd.f32 %v5044_v29, %v5043_v43  ;;  %v2662_v9 = vrot.slane %v6857_v22, 1  ;;  %v4626_v22 = vcombine.low %v1291_v50, %v6889_v25 }
 0x171   : > { %v5135_v56 = vpop.f32.mrf.mxu1  ;;  %v5046_v63 = vpop.f32.mrf.mxu0  ;;  %5482 = vmatmul.mubr.bf16.gmra.mxu0 %v2657_v61 }
 0x172   : > { %v5136_v15 = vadd.f32 %v5135_v56, %v5134_v28  ;;  %5485 = vmatprep.mubr.bf16.mxu0 %v2660_v13  ;;  %v2667_v38 = vrot.slane %v4626_v22, 1 }
 0x173   : > { %v5137_v44 = vpop.f32.mrf.mxu1  ;;  %3890 = vmatmul.mubr.bf16.gmra.mxu1 %v6875_v33  ;;  %v5047_v45 = vpop.f32.mrf.mxu0  ;;  %v2663_v33 = vsel %vm1693_vm15, %v2661_v34, %v2662_v9 }
 0x174   : > { %v6948_v17 = vadd.f32 %v5136_v15, %v6823_v47  ;;  %3897 = vmatprep.mubr.bf16.mxu1 %v2557_v20  ;;  %v6950_v11 = vadd.f32 %v5047_v45, %v5046_v63  ;;  %v2666_v47 = vsel %vm1693_vm15, %v2664_v51, %v2665_v41  ;;  %v2669_v29 = vsel %vm1693_vm15, %v2667_v38, %v2668_v7 }
 0x175   : > { %v5138_v27 = vpop.f32.mrf.mxu1 }
 0x176   : > { %v5139_v18 = vadd.f32 %v5138_v27, %v5137_v44 }
 0x177   : > { %v5140_v24 = vpop.f32.mrf.mxu1 }
 0x178   : > { %v6955_v21 = vadd.f32 %v5139_v18, %v6851_v19  ;;  %v5049_v52 = vpop.f32.mrf.mxu0 }
 0x179   : > { %v5141_v6 = vpop.f32.mrf.mxu1  ;;  %5486 = vmatmul.mubr.bf16.gmra.mxu0 %v2663_v33 }
 0x17a   : > { %v5142_v31 = vadd.f32 %v5141_v6, %v5140_v24  ;;  %v5050_v59 = vpop.f32.mrf.mxu0  ;;  %5489 = vmatprep.mubr.bf16.mxu0 %v2666_v47 }
 0x17b   : > { %v5143_v0 = vpop.f32.mrf.mxu1  ;;  %3898 = vmatmul.mubr.bf16.gmra.mxu1 %v6904_v5  ;;  %v5051_v19 = vadd.f32 %v5050_v59, %v5049_v52 }
 0x17c   : > { %v6962_v43 = vadd.f32 %v5142_v31, %v6862_v42  ;;  %v5052_v25 = vpop.f32.mrf.mxu0 }
 0x17d   : > { %v5144_v60 = vpop.f32.mrf.mxu1 }
 0x17e   : > { %v5145_v55 = vadd.f32 %v5144_v60, %v5143_v0  ;;  %v5053_v61 = vpop.f32.mrf.mxu0 }
 0x17f   : > { %v5146_v28 = vpop.f32.mrf.mxu1  ;;  %v5054_v5 = vadd.f32 %v5053_v61, %v5052_v25 }
 0x180   : > { %v6966_v23 = vadd.f32 %v5145_v55, %v6882_v62 }
 0x181   : > { %v5147_v13 = vpop.f32.mrf.mxu1  ;;  %v5055_v36 = vpop.f32.mrf.mxu0  ;;  %5490 = vmatmul.mubr.bf16.gmra.mxu0 %v2669_v29 }
 0x182   : > { %v5148_v56 = vadd.f32 %v5147_v13, %v5146_v28 }
 0x183   : > { %v5149_v16 = vpop.f32.mrf.mxu1  ;;  %v5056_v20 = vpop.f32.mrf.mxu0 }
 0x184   : > { %v6969_v42 = vadd.f32 %v5148_v56, %v6894_v12  ;;  %v5057_v15 = vadd.f32 %v5056_v20, %v5055_v36 }
 0x185   : > { %v5150_v63 = vpop.f32.mrf.mxu1  ;;  %v5058_v45 = vpop.f32.mrf.mxu0 }
 0x186   : > { %v5151_v44 = vadd.f32 %v5150_v63, %v5149_v16 }
 0x187   : > { %v5152_v34 = vpop.f32.mrf.mxu1  ;;  %v5059_v62 = vpop.f32.mrf.mxu0 }
 0x188   : > { %v6972_v9 = vadd.f32 %v5151_v44, %v6917_v39  ;;  %v5060_v41 = vadd.f32 %v5059_v62, %v5058_v45 }
 0x189   : > { %v5153_v51 = vpop.f32.mrf.mxu1  ;;  %v5213_v50 = vpop.f32.mrf.mxu0 }
 0x18a   : > { %v5154_v27 = vadd.f32 %v5153_v51, %v5152_v34 }
 0x18b   : > { %v5155_v18 = vpop.f32.mrf.mxu1  ;;  %v5214_v12 = vpop.f32.mrf.mxu0 }
 0x18c   : > { %v6975_v24 = vadd.f32 %v5154_v27, %v6928_v26  ;;  %v5215_v22 = vadd.f32 %v5214_v12, %v5213_v50 }
 0x18d   : > { %v5156_v33 = vpop.f32.mrf.mxu1  ;;  %v5216_v6 = vpop.f32.mrf.mxu0 }
 0x18e   : > { %v5157_v47 = vadd.f32 %v5156_v33, %v5155_v18  ;;  %v6978_v31 = vadd.f32 %v5215_v22, %v6811_v4 }
 0x18f   : > { %v5158_v52 = vpop.f32.mrf.mxu1  ;;  %v5217_v0 = vpop.f32.mrf.mxu0 }
 0x190   : > { %v6981_v39 = vadd.f32 %v5157_v47, %v6940_v8  ;;  %v5218_v38 = vadd.f32 %v5217_v0, %v5216_v6 }
 0x191   : > { %v5159_v59 = vpop.f32.mrf.mxu1  ;;  %v5219_v60 = vpop.f32.mrf.mxu0 }
 0x192   : > { %v5160_v7 = vadd.f32 %v5159_v59, %v5158_v52  ;;  %v6984_v26 = vadd.f32 %v5218_v38, %v6827_v46 }
 0x193   : > { %v5161_v25 = vpop.f32.mrf.mxu1  ;;  %v5220_v28 = vpop.f32.mrf.mxu0 }
 0x194   : > { %v6987_v55 = vadd.f32 %v5160_v7, %v6950_v11  ;;  %v5221_v29 = vadd.f32 %v5220_v28, %v5219_v60 }
 0x195   : > { %v5162_v61 = vpop.f32.mrf.mxu1  ;;  %v5222_v13 = vpop.f32.mrf.mxu0 }
 0x196   : > { %v5163_v4 = vadd.f32 %v5162_v61, %v5161_v25  ;;  %v6990_v8 = vadd.f32 %v5221_v29, %v6838_v40 }
 0x197   : > { %v5164_v56 = vpop.f32.mrf.mxu1  ;;  %v5223_v16 = vpop.f32.mrf.mxu0 }
 0x198   : > { %v6992_v36 = vadd.f32 %v5163_v4, %v5051_v19  ;;  %v5224_v63 = vadd.f32 %v5223_v16, %v5222_v13 }
 0x199   : > { %v5165_v20 = vpop.f32.mrf.mxu1  ;;  %v5225_v46 = vpop.f32.mrf.mxu0 }
 0x19a   : > { %v5166_v44 = vadd.f32 %v5165_v20, %v5164_v56  ;;  %v6995_v11 = vadd.f32 %v5224_v63, %v6854_v57 }
 0x19b   : > { %v5167_v45 = vpop.f32.mrf.mxu1  ;;  %v5226_v62 = vpop.f32.mrf.mxu0 }
 0x19c   : > { %v6997_v34 = vadd.f32 %v5166_v44, %v5054_v5  ;;  %v5227_v27 = vadd.f32 %v5226_v62, %v5225_v46 }
 0x19d   : > { %v5168_v51 = vpop.f32.mrf.mxu1  ;;  %v5228_v18 = vpop.f32.mrf.mxu0 }
 0x19e   : > { %v5169_v50 = vadd.f32 %v5168_v51, %v5167_v45  ;;  %v7000_v19 = vadd.f32 %v5227_v27, %v6869_v49 }
 0x19f   : > { %v5170_v40 = vpop.f32.mrf.mxu1  ;;  %v5229_v33 = vpop.f32.mrf.mxu0 }
 0x1a0   : > { %v7002_v12 = vadd.f32 %v5169_v50, %v5057_v15  ;;  %v5230_v47 = vadd.f32 %v5229_v33, %v5228_v18 }
 0x1a1   : > { %v5171_v22 = vpop.f32.mrf.mxu1  ;;  %v5231_v52 = vpop.f32.mrf.mxu0 }
 0x1a2   : > { %v5172_v6 = vadd.f32 %v5171_v22, %v5170_v40  ;;  %v7005_v5 = vadd.f32 %v5230_v47, %v6884_v3 }
 0x1a3   : > { %v5173_v57 = vpop.f32.mrf.mxu1  ;;  %v5232_v59 = vpop.f32.mrf.mxu0 }
 0x1a4   : > { %v7007_v0 = vadd.f32 %v5172_v6, %v5060_v41  ;;  %v5233_v7 = vadd.f32 %v5232_v59, %v5231_v52 }
 0x1a5   : > { %v5174_v38 = vpop.f32.mrf.mxu1  ;;  %v5234_v25 = vpop.f32.mrf.mxu0 }
 0x1a6   : > { %v5175_v60 = vadd.f32 %v5174_v38, %v5173_v57  ;;  %v7010_v15 = vadd.f32 %v5233_v7, %v6897_v54 }
 0x1a7   : > { %v5176_v49 = vpop.f32.mrf.mxu1  ;;  %v5235_v61 = vpop.f32.mrf.mxu0 }
 0x1a8   : > { %v7013_v28 = vadd.f32 %v5175_v60, %v6655_v37  ;;  %v5236_v4 = vadd.f32 %v5235_v61, %v5234_v25 }
 0x1a9   : > { %v5177_v29 = vpop.f32.mrf.mxu1  ;;  %v5237_v3 = vpop.f32.mrf.mxu0 }
 0x1aa   : > { %v5178_v13 = vadd.f32 %v5177_v29, %v5176_v49  ;;  %v7016_v41 = vadd.f32 %v5236_v4, %v6909_v35 }
 0x1ab   : > { %v5179_v56 = vpop.f32.mrf.mxu1  ;;  %v5238_v20 = vpop.f32.mrf.mxu0 }
 0x1ac   : > { %v7019_v16 = vadd.f32 %v5178_v13, %v6664_v48  ;;  %v5239_v44 = vadd.f32 %v5238_v20, %v5237_v3 }
 0x1ad   : > { %v5180_v63 = vpop.f32.mrf.mxu1  ;;  %v5240_v46 = vpop.f32.mrf.mxu0 }
 0x1ae   : > { %v5181_v54 = vadd.f32 %v5180_v63, %v5179_v56  ;;  %v7022_v37 = vadd.f32 %v5239_v44, %v6921_v53 }
 0x1af   : > { %v5182_v45 = vpop.f32.mrf.mxu1  ;;  %v5241_v51 = vpop.f32.mrf.mxu0 }
 0x1b0   : > { %v7025_v62 = vadd.f32 %v5181_v54, %v6694_v1  ;;  %v5242_v50 = vadd.f32 %v5241_v51, %v5240_v46  ;;  %v7348_v51 = vld [vmem:[#allocation3_spill] sm:$0xff] }
 0x1b1   : > { %v5183_v27 = vpop.f32.mrf.mxu1  ;;  %v5243_v18 = vpop.f32.mrf.mxu0 }
 0x1b2   : > { %v5184_v35 = vadd.f32 %v5183_v27, %v5182_v45  ;;  %v7028_v48 = vadd.f32 %v5242_v50, %v6932_v30 }
 0x1b3   : > { %v5185_v40 = vpop.f32.mrf.mxu1  ;;  %v5244_v22 = vpop.f32.mrf.mxu0 }
 0x1b4   : > { %v7031_v33 = vadd.f32 %v5184_v35, %v6707_v10  ;;  %v5245_v6 = vadd.f32 %v5244_v22, %v5243_v18 }
 0x1b5   : > { %v5186_v47 = vpop.f32.mrf.mxu1  ;;  %v5246_v52 = vpop.f32.mrf.mxu0 }
 0x1b6   : > { %v5187_v53 = vadd.f32 %v5186_v47, %v5185_v40  ;;  %v7034_v1 = vadd.f32 %v5245_v6, %v6938_v2 }
 0x1b7   : > { %v5188_v57 = vpop.f32.mrf.mxu1  ;;  %v5247_v38 = vpop.f32.mrf.mxu0 }
 0x1b8   : > { %v7037_v59 = vadd.f32 %v5187_v53, %v6748_v32  ;;  %v5248_v60 = vadd.f32 %v5247_v38, %v5246_v52 }
 0x1b9   : > { %v5189_v7 = vpop.f32.mrf.mxu1  ;;  %v5249_v25 = vpop.f32.mrf.mxu0 }
 0x1ba   : > { %v5190_v30 = vadd.f32 %v5189_v7, %v5188_v57  ;;  %v7040_v10 = vadd.f32 %v5248_v60, %v6948_v17 }
 0x1bb   : > { %v5191_v49 = vpop.f32.mrf.mxu1  ;;  %v5250_v29 = vpop.f32.mrf.mxu0 }
 0x1bc   : > { %v7043_v61 = vadd.f32 %v5190_v30, %v6762_v58  ;;  %v5251_v13 = vadd.f32 %v5250_v29, %v5249_v25 }
 0x1bd   : > { %v5192_v4 = vpop.f32.mrf.mxu1  ;;  %v5252_v3 = vpop.f32.mrf.mxu0 }
 0x1be   : > { %v5193_v2 = vadd.f32 %v5192_v4, %v5191_v49  ;;  %v7046_v32 = vadd.f32 %v5251_v13, %v6955_v21 }
 0x1bf   : > { %v5194_v56 = vpop.f32.mrf.mxu1  ;;  %v5253_v63 = vpop.f32.mrf.mxu0 }
 0x1c0   : > { %v7049_v20 = vadd.f32 %v5193_v2, %v6788_v14  ;;  %v5254_v54 = vadd.f32 %v5253_v63, %v5252_v3 }
 0x1c1   : > { %v5195_v44 = vpop.f32.mrf.mxu1  ;;  %v5255_v46 = vpop.f32.mrf.mxu0 }
 0x1c2   : > { %7347 = vst [vmem:[#allocation4_spill] sm:$0xff] %v7049_v20  ;;  %v5196_v17 = vadd.f32 %v5195_v44, %v5194_v56  ;;  %v7052_v58 = vadd.f32 %v5254_v54, %v6962_v43 }
 0x1c3   : > { %v5325_v45 = vpop.f32.mrf.mxu1  ;;  %v5256_v50 = vpop.f32.mrf.mxu0 }
 0x1c4   : > { %v7055_v27 = vadd.f32 %v5196_v17, %v7348_v51  ;;  %v5257_v18 = vadd.f32 %v5256_v50, %v5255_v46 }
 0x1c5   : > { %v5326_v35 = vpop.f32.mrf.mxu1  ;;  %v5258_v40 = vpop.f32.mrf.mxu0 }
 0x1c6   : > { %7349 = vst [vmem:[#allocation3_spill] sm:$0xff] %v7055_v27  ;;  %v5327_v21 = vadd.f32 %v5326_v35, %v5325_v45  ;;  %v7058_v14 = vadd.f32 %v5257_v18, %v6966_v23 }
 0x1c7   : > { %v5328_v22 = vpop.f32.mrf.mxu1  ;;  %v5259_v6 = vpop.f32.mrf.mxu0 }
 0x1c8   : > { %v7061_v47 = vadd.f32 %v5327_v21, %v6978_v31  ;;  %v5260_v52 = vadd.f32 %v5259_v6, %v5258_v40 }
 0x1c9   : > { %v5329_v53 = vpop.f32.mrf.mxu1  ;;  %v5261_v57 = vpop.f32.mrf.mxu0 }
 0x1ca   : > { %v5330_v43 = vadd.f32 %v5329_v53, %v5328_v22  ;;  %v7066_v7 = vadd.f32 %v5260_v52, %v6969_v42 }
 0x1cb   : > { %v7063_v38 = vpop.f32.mrf.mxu1  ;;  %v5262_v30 = vpop.f32.mrf.mxu0 }
 0x1cc   : > { %v7069_v60 = vadd.f32 %v5330_v43, %v6984_v26  ;;  %v5263_v23 = vadd.f32 %v5262_v30, %v5261_v57 }
 0x1cd   : > { %v7071_v25 = vpop.f32.mrf.mxu1  ;;  %v5264_v49 = vpop.f32.mrf.mxu0 }
 0x1ce   : > { %v7076_v29 = vadd.f32 %v5263_v23, %v6972_v9 }
 0x1cf   : > { %v7073_v31 = vpop.f32.mrf.mxu1  ;;  %v5265_v4 = vpop.f32.mrf.mxu0 }
 0x1d0   : > { %v5266_v2 = vadd.f32 %v5265_v4, %v5264_v49 }
 0x1d1   : > { %v7078_v13 = vpop.f32.mrf.mxu1  ;;  %v5267_v3 = vpop.f32.mrf.mxu0 }
 0x1d2   : > { %v7083_v26 = vadd.f32 %v5266_v2, %v6975_v24 }
 0x1d3   : > { %v7080_v42 = vpop.f32.mrf.mxu1  ;;  %v5268_v56 = vpop.f32.mrf.mxu0 }
 0x1d4   : > { %7350 = vst [vmem:[#allocation5_spill] sm:$0xff] %v7083_v26  ;;  %v5269_v44 = vadd.f32 %v5268_v56, %v5267_v3 }
 0x1d5   : > { %v7085_v63 = vpop.f32.mrf.mxu1  ;;  %v5270_v54 = vpop.f32.mrf.mxu0 }
 0x1d6   : > { %v7090_v9 = vadd.f32 %v5269_v44, %v6981_v39 }
 0x1d7   : > { %v7087_v17 = vpop.f32.mrf.mxu1  ;;  %v5271_v46 = vpop.f32.mrf.mxu0 }
 0x1d8   : > { %v5272_v51 = vadd.f32 %v5271_v46, %v5270_v54 }
 0x1d9   : > { %v7092_v45 = vpop.f32.mrf.mxu1  ;;  %v5273_v50 = vpop.f32.mrf.mxu0 }
 0x1da   : > { %v7097_v24 = vadd.f32 %v5272_v51, %v6987_v55 }
 0x1db   : > { %v7094_v35 = vpop.f32.mrf.mxu1  ;;  %v5274_v18 = vpop.f32.mrf.mxu0 }
 0x1dc   : > { %7351 = vst [vmem:[#allocation6_spill] sm:$0xff] %v7097_v24  ;;  %v5275_v40 = vadd.f32 %v5274_v18, %v5273_v50 }
 0x1dd   : > { %v7099_v21 = vpop.f32.mrf.mxu1  ;;  %v5276_v22 = vpop.f32.mrf.mxu0 }
 0x1de   : > { %v7104_v39 = vadd.f32 %v5275_v40, %v6992_v36 }
 0x1df   : > { %v7101_v6 = vpop.f32.mrf.mxu1  ;;  %v5277_v53 = vpop.f32.mrf.mxu0 }
 0x1e0   : > { %7352 = vst [vmem:[#allocation7_spill] sm:$0xff] %v7104_v39  ;;  %v5278_v43 = vadd.f32 %v5277_v53, %v5276_v22 }
 0x1e1   : > { %v7106_v52 = vpop.f32.mrf.mxu1  ;;  %v5279_v57 = vpop.f32.mrf.mxu0 }
 0x1e2   : > { %v7111_v55 = vadd.f32 %v5278_v43, %v6997_v34  ;;  %v5348_v39 = vadd.f32 %v7106_v52, %v7101_v6 }
 0x1e3   : > { %v7108_v30 = vpop.f32.mrf.mxu1  ;;  %v5280_v23 = vpop.f32.mrf.mxu0 }
 0x1e4   : > { %7353 = vst [vmem:[#allocation8_spill] sm:$0xff] %v7111_v55  ;;  %v5281_v4 = vadd.f32 %v5280_v23, %v5279_v57 }
 0x1e5   : > { %v7113_v49 = vpop.f32.mrf.mxu1  ;;  %v5282_v2 = vpop.f32.mrf.mxu0 }
 0x1e6   : > { %v7118_v36 = vadd.f32 %v5281_v4, %v7002_v12 }
 0x1e7   : > { %v7115_v3 = vpop.f32.mrf.mxu1  ;;  %v5283_v56 = vpop.f32.mrf.mxu0 }
 0x1e8   : > { %7354 = vst [vmem:[#allocation9_spill] sm:$0xff] %v7118_v36  ;;  %v5284_v54 = vadd.f32 %v5283_v56, %v5282_v2 }
 0x1e9   : > { %v7120_v44 = vpop.f32.mrf.mxu1  ;;  %v5285_v46 = vpop.f32.mrf.mxu0 }
 0x1ea   : > { %v7125_v34 = vadd.f32 %v5284_v54, %v7007_v0 }
 0x1eb   : > { %v7122_v51 = vpop.f32.mrf.mxu1  ;;  %v5286_v50 = vpop.f32.mrf.mxu0 }
 0x1ec   : > { %7355 = vst [vmem:[#allocation10_spill] sm:$0xff] %v7125_v34  ;;  %v5287_v40 = vadd.f32 %v5286_v50, %v5285_v46 }
 0x1ed   : > { %v7127_v18 = vpop.f32.mrf.mxu1  ;;  %v5288_v22 = vpop.f32.mrf.mxu0 }
 0x1ee   : > { %v7132_v12 = vadd.f32 %v5287_v40, %v7013_v28 }
 0x1ef   : > { %v7129_v53 = vpop.f32.mrf.mxu1  ;;  %v5289_v43 = vpop.f32.mrf.mxu0 }
 0x1f0   : > { %7356 = vst [vmem:[#allocation11_spill] sm:$0xff] %v7132_v12  ;;  %v5290_v23 = vadd.f32 %v5289_v43, %v5288_v22 }
 0x1f1   : > { %v7134_v57 = vpop.f32.mrf.mxu1  ;;  %v5291_v4 = vpop.f32.mrf.mxu0 }
 0x1f2   : > { %v7139_v0 = vadd.f32 %v5290_v23, %v7019_v16 }
 0x1f3   : > { %v7136_v2 = vpop.f32.mrf.mxu1  ;;  %v5292_v56 = vpop.f32.mrf.mxu0 }
 0x1f4   : > { %7357 = vst [vmem:[#allocation12_spill] sm:$0xff] %v7139_v0  ;;  %v5293_v46 = vadd.f32 %v5292_v56, %v5291_v4 }
 0x1f5   : > { %v7141_v54 = vpop.f32.mrf.mxu1  ;;  %v5294_v50 = vpop.f32.mrf.mxu0 }
 0x1f6   : > { %v7146_v28 = vadd.f32 %v5293_v46, %v7025_v62 }
 0x1f7   : > { %v7143_v27 = vpop.f32.mrf.mxu1  ;;  %v5295_v40 = vpop.f32.mrf.mxu0 }
 0x1f8   : > { %7358 = vst [vmem:[#allocation13_spill] sm:$0xff] %v7146_v28  ;;  %v5296_v22 = vadd.f32 %v5295_v40, %v5294_v50 }
 0x1f9   : > { %v7148_v20 = vpop.f32.mrf.mxu1  ;;  %v5297_v43 = vpop.f32.mrf.mxu0 }
 0x1fa   : > { %v7153_v16 = vadd.f32 %v5296_v22, %v7031_v33 }
 0x1fb   : > { %v7150_v12 = vpop.f32.mrf.mxu1  ;;  %v5298_v23 = vpop.f32.mrf.mxu0 }
 0x1fc   : > { %7359 = vst [vmem:[#allocation14_spill] sm:$0xff] %v7153_v16  ;;  %v5299_v4 = vadd.f32 %v5298_v23, %v5297_v43 }
 0x1fd   : > { %v7155_v0 = vpop.f32.mrf.mxu1  ;;  %v5300_v56 = vpop.f32.mrf.mxu0 }
 0x1fe   : > { %v7160_v62 = vadd.f32 %v5299_v4, %v7037_v59 }
 0x1ff   : > { %v7157_v55 = vpop.f32.mrf.mxu1  ;;  %v5301_v46 = vpop.f32.mrf.mxu0 }
 0x200   : > { %7360 = vst [vmem:[#allocation15_spill] sm:$0xff] %v7160_v62  ;;  %v5302_v50 = vadd.f32 %v5301_v46, %v5300_v56  ;;  %v5333_v56 = vadd.f32 %v7071_v25, %v7063_v38 }
 0x201   : > { %v7162_v28 = vpop.f32.mrf.mxu1  ;;  %v7164_v40 = vpop.f32.mrf.mxu0 }
 0x202   : > { %7361 = vst [vmem:[#allocation16_spill] sm:$0xff] %v7164_v40  ;;  %v7169_v33 = vadd.f32 %v5302_v50, %v7043_v61  ;;  %v5336_v61 = vadd.f32 %v7078_v13, %v7073_v31  ;;  %v5345_v13 = vadd.f32 %v7099_v21, %v7094_v35 }
 0x203   : > { %v7166_v34 = vpop.f32.mrf.mxu1  ;;  %v7171_v22 = vpop.f32.mrf.mxu0 }
 0x204   : > { %7362 = vst [vmem:[#allocation17_spill] sm:$0xff] %v7169_v33  ;;  %7363 = vst [vmem:[#allocation18_spill] sm:$0xff] %v7171_v22  ;;  %v3791_v22 = vadd.f32 %v5336_v61, %v6995_v11  ;;  %v3807_v61 = vadd.f32 %v5348_v39, %v7016_v41  ;;  %v5357_v41 = vadd.f32 %v7127_v18, %v7122_v51 }
 0x205   : > { %v7173_v43 = vpop.f32.mrf.mxu1  ;;  %v7175_v23 = vpop.f32.mrf.mxu0 }
 0x206   : > { %7364 = vst [vmem:[#allocation19_spill] sm:$0xff] %v7175_v23  ;;  %v3788_v23 = vadd.f32 %v5333_v56, %v6990_v8 }
 0x207   : > { %v7177_v16 = vpop.f32.mrf.mxu1  ;;  %v7179_v59 = vpop.f32.mrf.mxu0 }
 0x208   : > { %7365 = vst [vmem:[#allocation20_spill] sm:$0xff] %v7179_v59  ;;  %v5339_v59 = vadd.f32 %v7085_v63, %v7080_v42 }
 0x209   : > { %v7181_v4 = vpop.f32.mrf.mxu1  ;;  %v5463_v46 = vpop.f32.mrf.mxu0 }
 0x20a   : > { %v3949_v38 = vadd.f32 %v5463_v46, %v3788_v23  ;;  %v3796_v35 = vadd.f32 %v5339_v59, %v7000_v19  ;;  %v3804_v23 = vadd.f32 %v5345_v13, %v7010_v15  ;;  %v5351_v15 = vadd.f32 %v7113_v49, %v7108_v30 }
 0x20b   : > { %v7187_v50 = vpop.f32.mrf.mxu1  ;;  %v3940_v33 = vpop.f32.mrf.mxu0  ;;  %v5354_v30 = vadd.f32 %v7120_v44, %v7115_v3 }
 0x20c   : > { %v3941_v25 = vadd.f32 %v3940_v33, %v7061_v47 }
 0x20d   : > { %v7189_v62 = vpop.f32.mrf.mxu1  ;;  %v5464_v40 = vpop.f32.mrf.mxu0 }
 0x20e   : > { %v3952_v31 = vadd.f32 %v5464_v40, %v3791_v22  ;;  %v4265_v6 = vmul.f32 %v3941_v25, %v3941_v25  ;;  %v5342_v22 = vadd.f32 %v7092_v45, %v7087_v17  ;;  %v5360_v45 = vadd.f32 %v7134_v57, %v7129_v53 }
 0x20f   : > { %v7195_v36 = vpop.f32.mrf.mxu1  ;;  %v3943_v8 = vpop.f32.mrf.mxu0  ;;  %v3812_v53 = vadd.f32 %v5351_v15, %v7022_v37  ;;  %v5363_v37 = vadd.f32 %v7141_v54, %v7136_v2 }
 0x210   : > { %v4871_v42 = vpack.c.bf16 %v3952_v31, %v3949_v38  ;;  %v3944_v47 = vadd.f32 %v3943_v8, %v7069_v60  ;;  %v4267_v60 = vmul.f32 %v3949_v38, %v3949_v38  ;;  %v4268_v26 = vmul.f32 %v3952_v31, %v3952_v31 }
 0x211   : > { %v7209_v11 = vpop.f32.mrf.mxu1  ;;  %v5467_v63 = vpop.f32.mrf.mxu0  ;;  %v3799_v39 = vadd.f32 %v5342_v22, %v7005_v5  ;;  %v3823_v22 = vadd.f32 %v5360_v45, %v7040_v10 }
 0x212   : > { %4958 = vst [vmem:[%s7207_s19 + $0x8] sm:$0xff] %v4871_v42   ;;  %v4866_v52 = vpack.c.bf16 %v3944_v47, %v3941_v25  ;;  %v4227_v40 = vadd.f32 %v3944_v47, %v3941_v25  ;;  %v4266_v33 = vmul.f32 %v3944_v47, %v3944_v47  ;;  %v3965_v47 = vadd.f32 %v5467_v63, %v3804_v23 }
 0x213   : > { %v7213_v21 = vpop.f32.mrf.mxu1  ;;  %v3956_v56 = vpop.f32.mrf.mxu0 }
 0x214   : > { %7366 = vst [vmem:[#allocation21_spill] sm:$0xff] %v7213_v21  ;;  %4867 = vst [vmem:[%s7207_s19] sm:$0xff] %v4866_v52   ;;  %v4228_v19 = vadd.f32 %v4227_v40, %v3949_v38  ;;  %v4297_v59 = vadd.f32 %v4266_v33, %v4265_v6  ;;  %v3957_v8 = vadd.f32 %v3956_v56, %v3796_v35 }
 0x215   : > { %v7220_v46 = vpop.f32.mrf.mxu1  ;;  %v5468_v42 = vpop.f32.mrf.mxu0  ;;  %v4271_v23 = vmul.f32 %v3965_v47, %v3965_v47 }
 0x216   : > { %v4298_v25 = vadd.f32 %v4297_v59, %v4267_v60  ;;  %v4229_v24 = vadd.f32 %v4228_v19, %v3952_v31  ;;  %v3968_v17 = vadd.f32 %v5468_v42, %v3807_v61  ;;  %v4269_v6 = vmul.f32 %v3957_v8, %v3957_v8 }
 0x217   : > { %v7223_v21 = vpop.f32.mrf.mxu1  ;;  %v3959_v38 = vpop.f32.mrf.mxu0 }
 0x218   : > { %v4230_v35 = vadd.f32 %v4229_v24, %v3957_v8  ;;  %v4299_v63 = vadd.f32 %v4298_v25, %v4268_v26  ;;  %v4881_v31 = vpack.c.bf16 %v3968_v17, %v3965_v47  ;;  %v3960_v52 = vadd.f32 %v3959_v38, %v3799_v39 }
 0x219   : > { %v7232_v13 = vpop.f32.mrf.mxu1  ;;  %v5471_v40 = vpop.f32.mrf.mxu0  ;;  %v3820_v26 = vadd.f32 %v5357_v41, %v7034_v1  ;;  %v4272_v42 = vmul.f32 %v3968_v17, %v3968_v17  ;;  %v5372_v41 = vadd.f32 %v7162_v28, %v7157_v55 }
 0x21a   : > { %v4300_v49 = vadd.f32 %v4299_v63, %v4269_v6  ;;  %4960 = vst [vmem:[%s7207_s19 + $0x18] sm:$0xff] %v4881_v31   ;;  %v4876_v51 = vpack.c.bf16 %v3960_v52, %v3957_v8  ;;  %v4231_v18 = vadd.f32 %v4230_v35, %v3960_v52  ;;  %v4270_v5 = vmul.f32 %v3960_v52, %v3960_v52 }
 0x21b   : > { %v7234_v33 = vpop.f32.mrf.mxu1  ;;  %v3972_v57 = vpop.f32.mrf.mxu0  ;;  %v3981_v19 = vadd.f32 %v5471_v40, %v3820_v26  ;;  %v3815_v8 = vadd.f32 %v5354_v30, %v7028_v48  ;;  %v3839_v40 = vadd.f32 %v5372_v41, %v7066_v7 }
 0x21c   : > { %4959 = vst [vmem:[%s7207_s19 + $0x10] sm:$0xff] %v4876_v51   ;;  %v4232_v56 = vadd.f32 %v4231_v18, %v3965_v47  ;;  %v4301_v61 = vadd.f32 %v4300_v49, %v4270_v5  ;;  %v3973_v60 = vadd.f32 %v3972_v57, %v3812_v53  ;;  %v5369_v47 = vadd.f32 %v7155_v0, %v7150_v12 }
 0x21d   : > { %v7240_v24 = vpop.f32.mrf.mxu1  ;;  %v5472_v3 = vpop.f32.mrf.mxu0  ;;  %v3828_v0 = vadd.f32 %v5363_v37, %v7046_v32  ;;  %v4275_v30 = vmul.f32 %v3981_v19, %v3981_v19  ;;  %v5375_v32 = vadd.f32 %v7173_v43, %v7166_v34 }
 0x21e   : > { %v3984_v59 = vadd.f32 %v5472_v3, %v3823_v22  ;;  %v4302_v1 = vadd.f32 %v4301_v61, %v4271_v23  ;;  %v4233_v25 = vadd.f32 %v4232_v56, %v3968_v17  ;;  %v4273_v38 = vmul.f32 %v3973_v60, %v3973_v60 }
 0x21f   : > { %v7245_v44 = vpop.f32.mrf.mxu1  ;;  %v3975_v10 = vpop.f32.mrf.mxu0  ;;  %v5366_v17 = vadd.f32 %v7148_v20, %v7143_v27  ;;  %v3836_v52 = vadd.f32 %v5369_v47, %v7058_v14  ;;  %v5381_v56 = vadd.f32 %v7189_v62, %v7187_v50  ;;  %v5384_v61 = vadd.f32 %v7209_v11, %v7195_v36 }
 0x220   : > { %v4891_v45 = vpack.c.bf16 %v3984_v59, %v3981_v19  ;;  %v3976_v39 = vadd.f32 %v3975_v10, %v3815_v8  ;;  %v4234_v48 = vadd.f32 %v4233_v25, %v3973_v60  ;;  %v4303_v35 = vadd.f32 %v4302_v1, %v4272_v42  ;;  %v7367_v10 = vld [vmem:[#allocation6_spill] sm:$0xff] }
 0x221   : > { %v7250_v15 = vpop.f32.mrf.mxu1  ;;  %v5475_v2 = vpop.f32.mrf.mxu0  ;;  %v3831_v57 = vadd.f32 %v5366_v17, %v7052_v58  ;;  %v4276_v26 = vmul.f32 %v3984_v59, %v3984_v59  ;;  %v3844_v62 = vadd.f32 %v5375_v32, %v7076_v29  ;;  %v3852_v11 = vadd.f32 %v5381_v56, %v7090_v9  ;;  %v7370_v32 = vld [vmem:[#allocation7_spill] sm:$0xff] }
 0x222   : > { %4962 = vst [vmem:[%s7207_s19 + $0x28] sm:$0xff] %v4891_v45   ;;  %v4886_v6 = vpack.c.bf16 %v3976_v39, %v3973_v60  ;;  %v4274_v63 = vmul.f32 %v3976_v39, %v3976_v39  ;;  %v4304_v31 = vadd.f32 %v4303_v35, %v4273_v38  ;;  %v4235_v12 = vadd.f32 %v4234_v48, %v3976_v39 }
 0x223   : > { %v7256_v54 = vpop.f32.mrf.mxu1  ;;  %v3988_v55 = vpop.f32.mrf.mxu0  ;;  %v3997_v5 = vadd.f32 %v5475_v2, %v3836_v52  ;;  %v3855_v47 = vadd.f32 %v5384_v61, %v7367_v10  ;;  %v5390_v9 = vadd.f32 %v7232_v13, %v7223_v21  ;;  %v5393_v52 = vadd.f32 %v7240_v24, %v7234_v33  ;;  %v7371_v24 = vld [vmem:[#allocation9_spill] sm:$0xff] }
 0x224   : > { %4961 = vst [vmem:[%s7207_s19 + $0x20] sm:$0xff] %v4886_v6   ;;  %v4236_v49 = vadd.f32 %v4235_v12, %v3981_v19  ;;  %v4305_v51 = vadd.f32 %v4304_v31, %v4274_v63  ;;  %v3989_v18 = vadd.f32 %v3988_v55, %v3828_v0  ;;  %v7369_v6 = vld [vmem:[#allocation5_spill] sm:$0xff] }
 0x225   : > { %v7262_v28 = vpop.f32.mrf.mxu1  ;;  %v5476_v20 = vpop.f32.mrf.mxu0  ;;  %v4279_v41 = vmul.f32 %v3997_v5, %v3997_v5 }
 0x226   : > { %v4000_v53 = vadd.f32 %v5476_v20, %v3839_v40  ;;  %v4306_v22 = vadd.f32 %v4305_v51, %v4275_v30  ;;  %v4237_v14 = vadd.f32 %v4236_v49, %v3984_v59  ;;  %v4277_v19 = vmul.f32 %v3989_v18, %v3989_v18 }
 0x227   : > { %v7267_v27 = vpop.f32.mrf.mxu1  ;;  %v3991_v23 = vpop.f32.mrf.mxu0  ;;  %v5378_v59 = vadd.f32 %v7181_v4, %v7177_v16  ;;  %v7368_v4 = vld [vmem:[#allocation21_spill] sm:$0xff] }
 0x228   : > { %v4901_v60 = vpack.c.bf16 %v4000_v53, %v3997_v5  ;;  %v3992_v3 = vadd.f32 %v3991_v23, %v3831_v57  ;;  %v4238_v58 = vadd.f32 %v4237_v14, %v3989_v18  ;;  %v4307_v8 = vadd.f32 %v4306_v22, %v4276_v26  ;;  %v7372_v23 = vld [vmem:[#allocation10_spill] sm:$0xff] }
 0x229   : > { %v7272_v7 = vpop.f32.mrf.mxu1  ;;  %v5479_v34 = vpop.f32.mrf.mxu0  ;;  %v5387_v35 = vadd.f32 %v7220_v46, %v7368_v4  ;;  %v3847_v29 = vadd.f32 %v5378_v59, %v7369_v6  ;;  %v4280_v63 = vmul.f32 %v4000_v53, %v4000_v53  ;;  %v5396_v46 = vadd.f32 %v7250_v15, %v7245_v44  ;;  %v7373_v15 = vld [vmem:[#allocation8_spill] sm:$0xff] }
 0x22a   : > { %4964 = vst [vmem:[%s7207_s19 + $0x38] sm:$0xff] %v4901_v60   ;;  %v4896_v37 = vpack.c.bf16 %v3992_v3, %v3989_v18  ;;  %v4278_v42 = vmul.f32 %v3992_v3, %v3992_v3  ;;  %v4308_v1 = vadd.f32 %v4307_v8, %v4277_v19  ;;  %v4239_v25 = vadd.f32 %v4238_v58, %v3992_v3 }
 0x22b   : > { %v5403_v43 = vpop.f32.mrf.mxu1  ;;  %v4004_v50 = vpop.f32.mrf.mxu0  ;;  %v4013_v2 = vadd.f32 %v5479_v34, %v3852_v11  ;;  %v3860_v26 = vadd.f32 %v5387_v35, %v7370_v32  ;;  %v3868_v14 = vadd.f32 %v5393_v52, %v7371_v24  ;;  %v3871_v44 = vadd.f32 %v5396_v46, %v7372_v23 }
 0x22c   : > { %4963 = vst [vmem:[%s7207_s19 + $0x30] sm:$0xff] %v4896_v37   ;;  %v4240_v45 = vadd.f32 %v4239_v25, %v3997_v5  ;;  %v4309_v39 = vadd.f32 %v4308_v1, %v4278_v42  ;;  %v4005_v48 = vadd.f32 %v4004_v50, %v3844_v62  ;;  %v3863_v56 = vadd.f32 %v5390_v9, %v7373_v15  ;;  %v7379_v9 = vld [vmem:[#allocation14_spill] sm:$0xff]  ;;  %v7384_v15 = vld [vmem:[#allocation15_spill] sm:$0xff] }
 0x22d   : > { %v5404_v36 = vpop.f32.mrf.mxu1  ;;  %v5480_v38 = vpop.f32.mrf.mxu0  ;;  %v4283_v61 = vmul.f32 %v4013_v2, %v4013_v2  ;;  %v5399_v62 = vadd.f32 %v7262_v28, %v7256_v54 }
 0x22e   : > { %v4016_v17 = vadd.f32 %v5480_v38, %v3855_v47  ;;  %v4310_v31 = vadd.f32 %v4309_v39, %v4279_v41  ;;  %v4241_v12 = vadd.f32 %v4240_v45, %v4000_v53  ;;  %v4281_v51 = vmul.f32 %v4005_v48, %v4005_v48  ;;  %v7374_v47 = vld [vmem:[#allocation16_spill] sm:$0xff]  ;;  %v7375_v41 = vld [vmem:[#allocation18_spill] sm:$0xff]  ;;  %v7376_v39 = vld [vmem:[#allocation19_spill] sm:$0xff] }
 0x22f   : > { %v5406_v16 = vpop.f32.mrf.mxu1  ;;  %v4007_v0 = vpop.f32.mrf.mxu0  ;;  %v5405_v37 = vadd.f32 %v5404_v36, %v5403_v43  ;;  %v5305_v45 = vadd.f32 %v7375_v41, %v7374_v47 }
 0x230   : > { %v4911_v40 = vpack.c.bf16 %v4016_v17, %v4013_v2  ;;  %v4008_v30 = vadd.f32 %v4007_v0, %v3847_v29  ;;  %v4242_v49 = vadd.f32 %v4241_v12, %v4005_v48  ;;  %v4311_v18 = vadd.f32 %v4310_v31, %v4280_v63  ;;  %v7378_v29 = vld [vmem:[#allocation13_spill] sm:$0xff] }
 0x231   : > { %v5407_v55 = vpop.f32.mrf.mxu1  ;;  %v5483_v20 = vpop.f32.mrf.mxu0  ;;  %v4284_v1 = vmul.f32 %v4016_v17, %v4016_v17  ;;  %v3884_v63 = vadd.f32 %v5405_v37, %v7378_v29 }
 0x232   : > { %4966 = vst [vmem:[%s7207_s19 + $0x48] sm:$0xff] %v4911_v40   ;;  %v4906_v21 = vpack.c.bf16 %v4008_v30, %v4005_v48  ;;  %v4282_v13 = vmul.f32 %v4008_v30, %v4008_v30  ;;  %v4312_v53 = vadd.f32 %v4311_v18, %v4281_v51  ;;  %v4243_v57 = vadd.f32 %v4242_v49, %v4008_v30  ;;  %v7377_v48 = vld [vmem:[#allocation20_spill] sm:$0xff] }
 0x233   : > { %v5409_v5 = vpop.f32.mrf.mxu1  ;;  %v4020_v22 = vpop.f32.mrf.mxu0  ;;  %v4029_v34 = vadd.f32 %v5483_v20, %v3868_v14  ;;  %v5408_v42 = vadd.f32 %v5407_v55, %v5406_v16  ;;  %v5308_v38 = vadd.f32 %v7377_v48, %v7376_v39  ;;  %v5402_v16 = vadd.f32 %v7272_v7, %v7267_v27  ;;  %v7380_v55 = vld [vmem:[#allocation11_spill] sm:$0xff]  ;;  %v7381_v49 = vld [vmem:[#allocation4_spill] sm:$0xff]  ;;  %v7385_v39 = vld [vmem:[#allocation17_spill] sm:$0xff] }
 0x234   : > { %4965 = vst [vmem:[%s7207_s19 + $0x40] sm:$0xff] %v4906_v21   ;;  %v4244_v60 = vadd.f32 %v4243_v57, %v4013_v2  ;;  %v4313_v3 = vadd.f32 %v4312_v53, %v4282_v13  ;;  %v4021_v58 = vadd.f32 %v4020_v22, %v3860_v26  ;;  %v3876_v52 = vadd.f32 %v5399_v62, %v7380_v55  ;;  %v7382_v27 = vld [vmem:[#allocation3_spill] sm:$0xff]  ;;  %v7383_v22 = vld [vmem:[#allocation12_spill] sm:$0xff] }
 0x235   : > { %v5410_v33 = vpop.f32.mrf.mxu1  ;;  %v5484_v19 = vpop.f32.mrf.mxu0  ;;  %v3887_v31 = vadd.f32 %v5408_v42, %v7379_v9  ;;  %v3739_v51 = vadd.f32 %v5305_v45, %v7381_v49  ;;  %v3742_v7 = vadd.f32 %v5308_v38, %v7382_v27  ;;  %v4287_v18 = vmul.f32 %v4029_v34, %v4029_v34 }
 0x236   : > { %v4032_v59 = vadd.f32 %v5484_v19, %v3871_v44  ;;  %v4314_v25 = vadd.f32 %v4313_v3, %v4283_v61  ;;  %v4245_v50 = vadd.f32 %v4244_v60, %v4016_v17  ;;  %v4285_v43 = vmul.f32 %v4021_v58, %v4021_v58 }
 0x237   : > { %v5412_v8 = vpop.f32.mrf.mxu1  ;;  %v4023_v11 = vpop.f32.mrf.mxu0  ;;  %v5411_v46 = vadd.f32 %v5410_v33, %v5409_v5  ;;  %v3879_v24 = vadd.f32 %v5402_v16, %v7383_v22 }
 0x238   : > { %v4921_v4 = vpack.c.bf16 %v4032_v59, %v4029_v34  ;;  %v4024_v35 = vadd.f32 %v4023_v11, %v3863_v56  ;;  %v4246_v2 = vadd.f32 %v4245_v50, %v4021_v58  ;;  %v4315_v36 = vadd.f32 %v4314_v25, %v4284_v1 }
 0x239   : > { %v5413_v10 = vpop.f32.mrf.mxu1  ;;  %v5487_v6 = vpop.f32.mrf.mxu0  ;;  %v4288_v23 = vmul.f32 %v4032_v59, %v4032_v59  ;;  %v3892_v56 = vadd.f32 %v5411_v46, %v7384_v15 }
 0x23a   : > { %4968 = vst [vmem:[%s7207_s19 + $0x58] sm:$0xff] %v4921_v4   ;;  %v4916_v28 = vpack.c.bf16 %v4024_v35, %v4021_v58  ;;  %v4286_v17 = vmul.f32 %v4024_v35, %v4024_v35  ;;  %v4316_v12 = vadd.f32 %v4315_v36, %v4285_v43  ;;  %v4247_v0 = vadd.f32 %v4246_v2, %v4024_v35 }
 0x23b   : > { %v5415_v54 = vpop.f32.mrf.mxu1  ;;  %v4036_v40 = vpop.f32.mrf.mxu0  ;;  %v4045_v32 = vadd.f32 %v5487_v6, %v3884_v63  ;;  %v5414_v58 = vadd.f32 %v5413_v10, %v5412_v8 }
 0x23c   : > { %4967 = vst [vmem:[%s7207_s19 + $0x50] sm:$0xff] %v4916_v28   ;;  %v4248_v20 = vadd.f32 %v4247_v0, %v4029_v34  ;;  %v4317_v21 = vadd.f32 %v4316_v12, %v4286_v17  ;;  %v4037_v13 = vadd.f32 %v4036_v40, %v3876_v52 }
 0x23d   : > { %v5416_v30 = vpop.f32.mrf.mxu1  ;;  %v5488_v53 = vpop.f32.mrf.mxu0  ;;  %v3895_v48 = vadd.f32 %v5414_v58, %v7385_v39  ;;  %v4291_v38 = vmul.f32 %v4045_v32, %v4045_v32 }
 0x23e   : > { %v4048_v26 = vadd.f32 %v5488_v53, %v3887_v31  ;;  %v5417_v14 = vadd.f32 %v5416_v30, %v5415_v54  ;;  %v4318_v5 = vadd.f32 %v4317_v21, %v4287_v18  ;;  %v4249_v33 = vadd.f32 %v4248_v20, %v4032_v59 }
 0x23f   : > { %v5418_v57 = vpop.f32.mrf.mxu1  ;;  %v4039_v44 = vpop.f32.mrf.mxu0  ;;  %v4289_v37 = vmul.f32 %v4037_v13, %v4037_v13 }
 0x240   : > { %v4931_v60 = vpack.c.bf16 %v4048_v26, %v4045_v32  ;;  %v4040_v3 = vadd.f32 %v4039_v44, %v3879_v24  ;;  %v4250_v34 = vadd.f32 %v4249_v33, %v4037_v13  ;;  %v4319_v42 = vadd.f32 %v4318_v5, %v4288_v23 }
 0x241   : > { %v5419_v61 = vpop.f32.mrf.mxu1  ;;  %v5491_v1 = vpop.f32.mrf.mxu0  ;;  %v3900_v50 = vadd.f32 %v5417_v14, %v3739_v51  ;;  %v4292_v4 = vmul.f32 %v4048_v26, %v4048_v26 }
 0x242   : > { %v5420_v19 = vadd.f32 %v5419_v61, %v5418_v57  ;;  %4970 = vst [vmem:[%s7207_s19 + $0x68] sm:$0xff] %v4931_v60   ;;  %v4926_v25 = vpack.c.bf16 %v4040_v3, %v4037_v13  ;;  %v4290_v62 = vmul.f32 %v4040_v3, %v4040_v3  ;;  %v4320_v47 = vadd.f32 %v4319_v42, %v4289_v37 }
 0x243   : > { %v4251_v59 = vadd.f32 %v4250_v34, %v4040_v3  ;;  %v4052_v41 = vpop.f32.mrf.mxu0  ;;  %v4061_v2 = vadd.f32 %v5491_v1, %v3900_v50 }
 0x244   : > { %v3903_v11 = vadd.f32 %v5420_v19, %v3742_v7  ;;  %4969 = vst [vmem:[%s7207_s19 + $0x60] sm:$0xff] %v4926_v25   ;;  %v4053_v45 = vadd.f32 %v4052_v41, %v3892_v56  ;;  %v4321_v10 = vadd.f32 %v4320_v47, %v4290_v62 }
 0x245   : > { %v4252_v8 = vadd.f32 %v4251_v59, %v4045_v32  ;;  %v5492_v35 = vpop.f32.mrf.mxu0  ;;  %v4295_v55 = vmul.f32 %v4061_v2, %v4061_v2 }
 0x246   : > { %v4064_v43 = vadd.f32 %v5492_v35, %v3903_v11  ;;  %v4322_v36 = vadd.f32 %v4321_v10, %v4291_v38  ;;  %v4293_v6 = vmul.f32 %v4053_v45, %v4053_v45 }
 0x247   : > { %v4253_v16 = vadd.f32 %v4252_v8, %v4048_v26  ;;  %v4055_v54 = vpop.f32.mrf.mxu0 }
 0x248   : > { %v4056_v28 = vadd.f32 %v4055_v54, %v3895_v48  ;;  %v4941_v17 = vpack.c.bf16 %v4064_v43, %v4061_v2  ;;  %v4323_v63 = vadd.f32 %v4322_v36, %v4292_v4  ;;  %v4296_v46 = vmul.f32 %v4064_v43, %v4064_v43 }
 0x249   : > { %v4254_v29 = vadd.f32 %v4253_v16, %v4053_v45 }
 0x24a   : > { %v4936_v9 = vpack.c.bf16 %v4056_v28, %v4053_v45  ;;  %v4294_v31 = vmul.f32 %v4056_v28, %v4056_v28  ;;  %4972 = vst [vmem:[%s7207_s19 + $0x78] sm:$0xff] %v4941_v17   ;;  %v4324_v12 = vadd.f32 %v4323_v63, %v4293_v6 }
 0x24b   : > { %v4255_v0 = vadd.f32 %v4254_v29, %v4056_v28 }
 0x24c   : > { %4971 = vst [vmem:[%s7207_s19 + $0x70] sm:$0xff] %v4936_v9   ;;  %v4325_v52 = vadd.f32 %v4324_v12, %v4294_v31 }
 0x24d   : > { %v4256_v40 = vadd.f32 %v4255_v0, %v4061_v2 }
 0x24e   : > { %v4326_v30 = vadd.f32 %v4325_v52, %v4295_v55 }
 0x24f   : > { %v4257_v49 = vadd.f32 %v4256_v40, %v4064_v43 }
 0x250   : > { %v4327_v27 = vadd.f32 %v4326_v30, %v4296_v46 }
 0x251   : > { %v4258_v51 = vrot.slane %v4257_v49, 4 }
 0x252   : > { %v4328_v18 = vrot.slane %v4327_v27, 4 }
 0x253   : > { %v4259_v7 = vadd.f32 %v4258_v51, %v4257_v49 }
 0x254   : > { %v4329_v21 = vadd.f32 %v4328_v18, %v4327_v27 }
 0x255   : > { %v4260_v20 = vrot.slane %v4259_v7, 2 }
 0x256   : > { %v4330_v53 = vrot.slane %v4329_v21, 2 }
 0x257   : > { %v4261_v13 = vadd.f32 %v4260_v20, %v4259_v7 }
 0x258   : > { %v4331_v32 = vadd.f32 %v4330_v53, %v4329_v21 }
 0x259   : > { %v4262_v57 = vrot.slane %v4261_v13, 1 }
 0x25a   : > { %v4332_v22 = vrot.slane %v4331_v32, 1 }
 0x25b   : > { %v4263_v26 = vadd.f32 %v4262_v57, %v4261_v13 }
 0x25c   : > { %v4333_v24 = vadd.f32 %v4332_v22, %v4331_v32 }
 0x25d   : > { %4264 = vst [vmem:[%s265_s23] sm:$0x1] %v4263_v26 }
 0x25e   : > { %4334 = vst [vmem:[%s268_s24] sm:$0x1] %v4333_v24 }
 0x25f PF: > { %s17_s21 = sadd.s32 1, %s5754_s21  }
 0x260   : > { %p14_p4 = scmp.ge.s32.totalorder %s17_s21, 4  }
 0x262   :  { %16 = sbr.rel (!%p14_p4) target bundleno = 1 (0x1), region = 92 }

</bundles_post_ra>
